<compile_context>
chip_gen: v6e
topology: v6e:2x2x1
jax: 0.10.0
libtpu: 0.0.40
codegen_flags: <defaults>
</compile_context>

<pallas_src>
import math
import functools

import jax
import jax.numpy as jnp
from jax.experimental import pallas as pl
from jax.experimental.pallas import tpu as pltpu

EPS = 1e-5


def _round_up(x, m):
    return ((x + m - 1) // m) * m


# ----------------------------- Pallas kernels ------------------------------

def _matmul_bias_kernel(x_ref, w_ref, b_ref, o_ref, acc_ref, *, activation):
    """Tiled matmul with f32 accumulator; bias (+tanh) epilogue on last K step."""
    @pl.when(pl.program_id(2) == 0)
    def _():
        acc_ref[...] = jnp.zeros_like(acc_ref)

    acc_ref[...] += jnp.dot(x_ref[...], w_ref[...],
                            preferred_element_type=jnp.float32)

    @pl.when(pl.program_id(2) == pl.num_programs(2) - 1)
    def _():
        r = acc_ref[...] + b_ref[...].astype(jnp.float32)
        if activation == "tanh":
            r = jnp.tanh(r)
        o_ref[...] = r.astype(o_ref.dtype)


def _in_stats_kernel(x_ref, sum_ref, ssq_ref, acc_sum, acc_ssq):
    """Per-(sample) channel sum / sum-of-squares, accumulated over spatial tiles."""
    t = pl.program_id(1)

    @pl.when(t == 0)
    def _():
        acc_sum[...] = jnp.zeros_like(acc_sum)
        acc_ssq[...] = jnp.zeros_like(acc_ssq)

    v = x_ref[...].astype(jnp.float32)
    acc_sum[...] += jnp.sum(v, axis=1, keepdims=True)
    acc_ssq[...] += jnp.sum(v * v, axis=1, keepdims=True)

    @pl.when(t == pl.num_programs(1) - 1)
    def _():
        sum_ref[...] = acc_sum[...]
        ssq_ref[...] = acc_ssq[...]


def _in_apply_kernel(x_ref, sum_ref, ssq_ref, *rest, count, relu, has_res):
    """Apply InstanceNorm (single-pass stats) + optional ReLU or residual add."""
    if has_res:
        r_ref, o_ref = rest
    else:
        (o_ref,) = rest
    v = x_ref[...].astype(jnp.float32)
    inv = 1.0 / count
    mean = sum_ref[...] * inv
    var = jnp.maximum(ssq_ref[...] * inv - mean * mean, 0.0)
    y = (v - mean) * jax.lax.rsqrt(var + EPS)
    if has_res:
        y = y + r_ref[...].astype(jnp.float32)
    if relu:
        y = jnp.maximum(y, 0.0)
    o_ref[...] = y.astype(o_ref.dtype)


# ------------------------------ Pallas wrappers -----------------------------

def matmul_bias(x, w, b, activation="none", tm_max=512, tn_max=256, tk_max=256):
    """x: (M, K) f32, w: (K, N) f32, b: (N,) f32 -> (M, N) f32.

    Tiled bf16 MXU matmul with f32 accumulation. M/K/N are zero-padded to
    lane/tile multiples so narrow layers (cout=3, K=147) become lane-dense.
    """
    M, K = x.shape
    K2, N = w.shape
    assert K == K2

    tm = min(tm_max, _round_up(M, 128))
    tn = min(tn_max, _round_up(N, 128))
    tk = min(tk_max, _round_up(K, 128))
    Mp, Np, Kp = _round_up(M, tm), _round_up(N, tn), _round_up(K, tk)

    xp = jnp.pad(x, ((0, Mp - M), (0, Kp - K))).astype(jnp.bfloat16)
    wp = jnp.pad(w, ((0, Kp - K), (0, Np - N))).astype(jnp.bfloat16)
    bp = jnp.pad(b, ((0, Np - N),)).astype(jnp.float32).reshape(1, Np)

    kernel = functools.partial(_matmul_bias_kernel, activation=activation)
    out = pl.pallas_call(
        kernel,
        out_shape=jax.ShapeDtypeStruct((Mp, Np), jnp.float32),
        grid=(Mp // tm, Np // tn, Kp // tk),
        in_specs=[
            pl.BlockSpec((tm, tk), lambda i, j, k: (i, k)),
            pl.BlockSpec((tk, tn), lambda i, j, k: (k, j)),
            pl.BlockSpec((1, tn), lambda i, j, k: (0, j)),
        ],
        out_specs=pl.BlockSpec((tm, tn), lambda i, j, k: (i, j)),
        scratch_shapes=[pltpu.VMEM((tm, tn), jnp.float32)],
        compiler_params=pltpu.CompilerParams(
            dimension_semantics=("parallel", "parallel", "arbitrary")),
    )(xp, wp, bp)
    return out[:M, :N]


def instance_norm(x, residual=None, relu=True, ts_max=2048):
    """x: (N, H, W, C) f32. InstanceNorm2d(affine=False) then ReLU or + residual.

    Two tiled Pallas passes over (N, H*W, C): stats accumulation, then apply.
    """
    N, H, W, C = x.shape
    HW = H * W
    ts = math.gcd(HW, ts_max)
    if ts < 8:
        ts = HW
    nt = HW // ts
    xf = x.reshape(N, HW, C)

    sums, ssqs = pl.pallas_call(
        _in_stats_kernel,
        out_shape=(jax.ShapeDtypeStruct((N, 1, C), jnp.float32),
                   jax.ShapeDtypeStruct((N, 1, C), jnp.float32)),
        grid=(N, nt),
        in_specs=[pl.BlockSpec((1, ts, C), lambda n, t: (n, t, 0))],
        out_specs=(pl.BlockSpec((1, 1, C), lambda n, t: (n, 0, 0)),
                   pl.BlockSpec((1, 1, C), lambda n, t: (n, 0, 0))),
        scratch_shapes=[pltpu.VMEM((1, 1, C), jnp.float32),
                        pltpu.VMEM((1, 1, C), jnp.float32)],
        compiler_params=pltpu.CompilerParams(
            dimension_semantics=("parallel", "arbitrary")),
    )(xf)

    if residual is None:
        assert relu
        kernel = functools.partial(_in_apply_kernel, count=float(HW),
                                   relu=True, has_res=False)
        args = (xf, sums, ssqs)
        in_specs = [
            pl.BlockSpec((1, ts, C), lambda n, t: (n, t, 0)),
            pl.BlockSpec((1, 1, C), lambda n, t: (n, 0, 0)),
            pl.BlockSpec((1, 1, C), lambda n, t: (n, 0, 0)),
        ]
    else:
        assert not relu
        kernel = functools.partial(_in_apply_kernel, count=float(HW),
                                   relu=False, has_res=True)
        rf = residual.reshape(N, HW, C)
        args = (xf, sums, ssqs, rf)
        in_specs = [
            pl.BlockSpec((1, ts, C), lambda n, t: (n, t, 0)),
            pl.BlockSpec((1, 1, C), lambda n, t: (n, 0, 0)),
            pl.BlockSpec((1, 1, C), lambda n, t: (n, 0, 0)),
            pl.BlockSpec((1, ts, C), lambda n, t: (n, t, 0)),
        ]

    out = pl.pallas_call(
        kernel,
        out_shape=jax.ShapeDtypeStruct((N, HW, C), jnp.float32),
        grid=(N, nt),
        in_specs=in_specs,
        out_specs=pl.BlockSpec((1, ts, C), lambda n, t: (n, t, 0)),
        compiler_params=pltpu.CompilerParams(
            dimension_semantics=("parallel", "parallel")),
    )(*args)
    return out.reshape(N, H, W, C)


# ----------------------------- JAX glue (im2col) ----------------------------

def _extract_patches(x, kh, kw, stride):
    """x: (N, Hp, Wp, C) already padded -> (N, Ho, Wo, kh*kw*C); order (kh, kw, cin)."""
    N, Hp, Wp, C = x.shape
    Ho = (Hp - kh) // stride + 1
    Wo = (Wp - kw) // stride + 1
    cols = []
    for i in range(kh):
        for j in range(kw):
            cols.append(x[:, i:i + stride * Ho:stride, j:j + stride * Wo:stride, :])
    return jnp.concatenate(cols, axis=-1)


def conv2d(x, w, b, stride=1, pad=0, activation="none"):
    """x: NHWC, w: HWIO (kh, kw, cin, cout), b: (cout,). Zero padding if pad>0."""
    kh, kw, cin, cout = w.shape
    if pad > 0:
        x = jnp.pad(x, ((0, 0), (pad, pad), (pad, pad), (0, 0)))
    # TODO(synk): fold kh*kw into the matmul K grid axis via shifted-window
    # index_maps so the im2col tensor is never materialized in HBM.
    p = _extract_patches(x, kh, kw, stride)
    N, Ho, Wo, K = p.shape
    out = matmul_bias(p.reshape(N * Ho * Wo, K), w.reshape(kh * kw * cin, cout), b,
                      activation=activation)
    return out.reshape(N, Ho, Wo, cout)


def reflect_pad(x, p):
    return jnp.pad(x, ((0, 0), (p, p), (p, p), (0, 0)), mode="reflect")


def upsample_nearest_2x(x):
    # TODO(synk): fuse nearest-2x into the following conv's read path (index at
    # (i//2, j//2)) instead of materializing a 4x activation in HBM.
    x = jnp.repeat(x, 2, axis=1)
    return jnp.repeat(x, 2, axis=2)


# ------------------------------- parameters --------------------------------

def _conv_params(key, kh, kw, cin, cout):
    k1, k2 = jax.random.split(key)
    w = jax.random.normal(k1, (kh, kw, cin, cout), jnp.float32) / math.sqrt(kh * kw * cin)
    b = 0.01 * jax.random.normal(k2, (cout,), jnp.float32)
    return w, b


def init_generator_params(key, channels=3, num_residual_blocks=2):
    params = {}
    keys = iter(jax.random.split(key, 64))
    out_features = 64
    params["c1"] = _conv_params(next(keys), 7, 7, channels, out_features)
    in_features = out_features
    for i in range(2):
        out_features *= 2
        params[f"d{i}"] = _conv_params(next(keys), 3, 3, in_features, out_features)
        in_features = out_features
    for i in range(num_residual_blocks):
        params[f"r{i}_1"] = _conv_params(next(keys), 3, 3, out_features, out_features)
        params[f"r{i}_2"] = _conv_params(next(keys), 3, 3, out_features, out_features)
    for i in range(2):
        out_features //= 2
        params[f"u{i}"] = _conv_params(next(keys), 3, 3, in_features, out_features)
        in_features = out_features
    params["cf"] = _conv_params(next(keys), 7, 7, out_features, channels)
    return params


# -------------------------------- forward ----------------------------------

def generator_resnet_forward(x_nchw, params, num_residual_blocks=2, channels=3):
    # NCHW (PyTorch convention) -> NHWC for internal compute
    x = jnp.transpose(x_nchw, (0, 2, 3, 1)).astype(jnp.float32)

    # ReflectionPad2d(channels) -> Conv 7x7 -> InstanceNorm -> ReLU
    w, b = params["c1"]
    x = conv2d(reflect_pad(x, channels), w, b)
    x = instance_norm(x, relu=True)

    # two downsampling blocks (stride-2, zero-pad 1)
    for i in range(2):
        w, b = params[f"d{i}"]
        x = conv2d(x, w, b, stride=2, pad=1)
        x = instance_norm(x, relu=True)

    # residual blocks
    for i in range(num_residual_blocks):
        w1, b1 = params[f"r{i}_1"]
        w2, b2 = params[f"r{i}_2"]
        res = x
        h = conv2d(reflect_pad(x, 1), w1, b1)
        h = instance_norm(h, relu=True)
        h = conv2d(reflect_pad(h, 1), w2, b2)
        x = instance_norm(h, residual=res, relu=False)  # x + block(x), IN before add

    # two upsampling blocks (nearest 2x, conv 3x3 pad 1)
    for i in range(2):
        w, b = params[f"u{i}"]
        x = upsample_nearest_2x(x)
        x = conv2d(x, w, b, stride=1, pad=1)
        x = instance_norm(x, relu=True)

    # ReflectionPad2d(channels) -> Conv 7x7 -> Tanh (tanh fused into matmul epilogue)
    w, b = params["cf"]
    x = conv2d(reflect_pad(x, channels), w, b, activation="tanh")

    # back to NCHW
    return jnp.transpose(x, (0, 3, 1, 2))


# ---------------------------------- main ------------------------------------

if __name__ == "__main__":
    key = jax.random.PRNGKey(0)
    k_params, k_x = jax.random.split(key)

    batch, channels, H, W = 2, 3, 16, 16
    num_residual_blocks = 2

    params = init_generator_params(k_params, channels=channels,
                                   num_residual_blocks=num_residual_blocks)
    x = jax.random.normal(k_x, (batch, channels, H, W), jnp.float32)

    fwd = jax.jit(functools.partial(generator_resnet_forward,
                                    num_residual_blocks=num_residual_blocks,
                                    channels=channels))
    out = fwd(x, params)
    out = jax.block_until_ready(out)

    assert out.shape == (batch, channels, H, W), out.shape
    assert bool(jnp.all(jnp.isfinite(out)))
    assert bool(jnp.all(jnp.abs(out) <= 1.0 + 1e-6))  # tanh output range
    print("KERNEL_OK")
</pallas_src>

<mosaic_0001>
module attributes {stable_mosaic.version = 11 : i64} {
  func.func @_matmul_bias_kernel(%arg0: i32, %arg1: i32, %arg2: i32, %arg3: memref<512x256xbf16, #tpu.memory_space<vmem>>, %arg4: memref<256x128xbf16, #tpu.memory_space<vmem>>, %arg5: memref<1x128xf32, #tpu.memory_space<vmem>>, %arg6: memref<512x128xf32, #tpu.memory_space<vmem>>, %arg7: memref<512x128xf32, #tpu.memory_space<vmem>>) attributes {dimension_semantics = [#tpu.dimension_semantics<parallel>, #tpu.dimension_semantics<parallel>, #tpu.dimension_semantics<arbitrary>], iteration_bounds = array<i64: 1, 1, 1>, scalar_prefetch = 0 : i64, scratch_operands = 1 : i64, tpu.core_type = #tpu.core_type<tc>, window_params = [{transform_indices = @transform_0, window_bounds = array<i64: 512, 256>}, {transform_indices = @transform_1, window_bounds = array<i64: 256, 128>}, {transform_indices = @transform_2, window_bounds = array<i64: 1, 128>}, {transform_indices = @transform_3, window_bounds = array<i64: 512, 128>}]} {
    %c0_i32 = arith.constant 0 : i32
    %0 = arith.cmpi eq, %arg2, %c0_i32 : i32
    %1 = arith.extui %0 : i1 to i32
    %c0_i32_0 = arith.constant 0 : i32
    %2 = arith.cmpi ne, %1, %c0_i32_0 : i32
    scf.if %2 {
      %cst_10 = arith.constant 0.000000e+00 : f32
      %12 = vector.broadcast %cst_10 : f32 to vector<512x128xf32>
      %c0_11 = arith.constant 0 : index
      %c0_12 = arith.constant 0 : index
      %13 = vector.load %arg7[%c0_11, %c0_12] : memref<512x128xf32, #tpu.memory_space<vmem>>, vector<512x128xf32>
      tpu.vector_store %arg7[%c0_11, %c0_12], %12 {strides = array<i32>} : memref<512x128xf32, #tpu.memory_space<vmem>>, vector<512x128xf32>,
    } else {
    }
    %c0 = arith.constant 0 : index
    %c0_1 = arith.constant 0 : index
    %3 = vector.load %arg7[%c0, %c0_1] : memref<512x128xf32, #tpu.memory_space<vmem>>, vector<512x128xf32>
    %c0_2 = arith.constant 0 : index
    %c0_3 = arith.constant 0 : index
    %4 = vector.load %arg3[%c0_2, %c0_3] : memref<512x256xbf16, #tpu.memory_space<vmem>>, vector<512x256xbf16>
    %c0_4 = arith.constant 0 : index
    %c0_5 = arith.constant 0 : index
    %5 = vector.load %arg4[%c0_4, %c0_5] : memref<256x128xbf16, #tpu.memory_space<vmem>>, vector<256x128xbf16>
    %cst = arith.constant dense<0.000000e+00> : vector<512x128xf32>
    %6 = tpu.matmul %4, %5, %cst {dimension_numbers = #tpu.dot_dimension_numbers<[1], [0], [0], [1], [0, 0, 1, 1], [], []>} : vector<512x256xbf16>, vector<256x128xbf16>, vector<512x128xf32> -> vector<512x128xf32>
    %7 = arith.addf %3, %6 : vector<512x128xf32>
    %c0_6 = arith.constant 0 : index
    %c0_7 = arith.constant 0 : index
    %8 = vector.load %arg7[%c0_6, %c0_7] : memref<512x128xf32, #tpu.memory_space<vmem>>, vector<512x128xf32>
    tpu.vector_store %arg7[%c0_6, %c0_7], %7 {strides = array<i32>} : memref<512x128xf32, #tpu.memory_space<vmem>>, vector<512x128xf32>,
    %c0_i32_8 = arith.constant 0 : i32
    %9 = arith.cmpi eq, %arg2, %c0_i32_8 : i32
    %10 = arith.extui %9 : i1 to i32
    %c0_i32_9 = arith.constant 0 : i32
    %11 = arith.cmpi ne, %10, %c0_i32_9 : i32
    scf.if %11 {
      %c0_10 = arith.constant 0 : index
      %c0_11 = arith.constant 0 : index
      %12 = vector.load %arg7[%c0_10, %c0_11] : memref<512x128xf32, #tpu.memory_space<vmem>>, vector<512x128xf32>
      %c0_12 = arith.constant 0 : index
      %c0_13 = arith.constant 0 : index
      %13 = vector.load %arg5[%c0_12, %c0_13] : memref<1x128xf32, #tpu.memory_space<vmem>>, vector<1x128xf32>
      %14 = vector.broadcast %13 : vector<1x128xf32> to vector<512x128xf32>
      %15 = arith.addf %12, %14 : vector<512x128xf32>
      %c0_14 = arith.constant 0 : index
      %c0_15 = arith.constant 0 : index
      %16 = vector.load %arg6[%c0_14, %c0_15] : memref<512x128xf32, #tpu.memory_space<vmem>>, vector<512x128xf32>
      tpu.vector_store %arg6[%c0_14, %c0_15], %15 {strides = array<i32>} : memref<512x128xf32, #tpu.memory_space<vmem>>, vector<512x128xf32>,
    } else {
    }
    return
  }
  func.func @transform_0(%arg0: i32, %arg1: i32, %arg2: i32) -> (i32, i32) {
    %c0_i32 = arith.constant 0 : i32
    return %arg0, %arg2 : i32, i32
  }
  func.func @transform_1(%arg0: i32, %arg1: i32, %arg2: i32) -> (i32, i32) {
    %c0_i32 = arith.constant 0 : i32
    return %arg2, %arg1 : i32, i32
  }
  func.func @transform_2(%arg0: i32, %arg1: i32, %arg2: i32) -> (i32, i32) {
    %c0_i32 = arith.constant 0 : i32
    %c0_i32_0 = arith.constant 0 : i32
    return %c0_i32, %arg1 : i32, i32
  }
  func.func @transform_3(%arg0: i32, %arg1: i32, %arg2: i32) -> (i32, i32) {
    %c0_i32 = arith.constant 0 : i32
    return %arg0, %arg1 : i32, i32
  }
}

module attributes {stable_mosaic.version = 11 : i64} {
  func.func @_in_stats_kernel(%arg0: i32, %arg1: i32, %arg2: memref<1x256x64xf32, #tpu.memory_space<vmem>>, %arg3: memref<1x1x64xf32, #tpu.memory_space<vmem>>, %arg4: memref<1x1x64xf32, #tpu.memory_space<vmem>>, %arg5: memref<1x1x64xf32, #tpu.memory_space<vmem>>, %arg6: memref<1x1x64xf32, #tpu.memory_space<vmem>>) attributes {dimension_semantics = [#tpu.dimension_semantics<parallel>, #tpu.dimension_semantics<arbitrary>], iteration_bounds = array<i64: 2, 1>, scalar_prefetch = 0 : i64, scratch_operands = 2 : i64, tpu.core_type = #tpu.core_type<tc>, window_params = [{transform_indices = @transform_0, window_bounds = array<i64: 1, 256, 64>}, {transform_indices = @transform_1, window_bounds = array<i64: 1, 1, 64>}, {transform_indices = @transform_2, window_bounds = array<i64: 1, 1, 64>}]} {
    %c0_i32 = arith.constant 0 : i32
    %0 = arith.cmpi eq, %arg1, %c0_i32 : i32
    %1 = arith.extui %0 : i1 to i32
    %c0_i32_0 = arith.constant 0 : i32
    %2 = arith.cmpi ne, %1, %c0_i32_0 : i32
    scf.if %2 {
      %cst_18 = arith.constant 0.000000e+00 : f32
      %18 = vector.broadcast %cst_18 : f32 to vector<1x1x64xf32>
      %c0_19 = arith.constant 0 : index
      %c0_20 = arith.constant 0 : index
      %c0_21 = arith.constant 0 : index
      %19 = vector.load %arg5[%c0_19, %c0_20, %c0_21] : memref<1x1x64xf32, #tpu.memory_space<vmem>>, vector<1x1x64xf32>
      tpu.vector_store %arg5[%c0_19, %c0_20, %c0_21], %18 {strides = array<i32>} : memref<1x1x64xf32, #tpu.memory_space<vmem>>, vector<1x1x64xf32>,
      %cst_22 = arith.constant 0.000000e+00 : f32
      %20 = vector.broadcast %cst_22 : f32 to vector<1x1x64xf32>
      %c0_23 = arith.constant 0 : index
      %c0_24 = arith.constant 0 : index
      %c0_25 = arith.constant 0 : index
      %21 = vector.load %arg6[%c0_23, %c0_24, %c0_25] : memref<1x1x64xf32, #tpu.memory_space<vmem>>, vector<1x1x64xf32>
      tpu.vector_store %arg6[%c0_23, %c0_24, %c0_25], %20 {strides = array<i32>} : memref<1x1x64xf32, #tpu.memory_space<vmem>>, vector<1x1x64xf32>,
    } else {
    }
    %c0 = arith.constant 0 : index
    %c0_1 = arith.constant 0 : index
    %c0_2 = arith.constant 0 : index
    %3 = vector.load %arg2[%c0, %c0_1, %c0_2] : memref<1x256x64xf32, #tpu.memory_space<vmem>>, vector<1x256x64xf32>
    %c0_3 = arith.constant 0 : index
    %c0_4 = arith.constant 0 : index
    %c0_5 = arith.constant 0 : index
    %4 = vector.load %arg5[%c0_3, %c0_4, %c0_5] : memref<1x1x64xf32, #tpu.memory_space<vmem>>, vector<1x1x64xf32>
    %cst = arith.constant dense<0.000000e+00> : vector<1x64xf32>
    %5 = vector.multi_reduction <add>, %3, %cst [1] : vector<1x256x64xf32> to vector<1x64xf32>
    %6 = vector.shape_cast %5 : vector<1x64xf32> to vector<1x1x64xf32>
    %7 = arith.addf %4, %6 : vector<1x1x64xf32>
    %c0_6 = arith.constant 0 : index
    %c0_7 = arith.constant 0 : index
    %c0_8 = arith.constant 0 : index
    %8 = vector.load %arg5[%c0_6, %c0_7, %c0_8] : memref<1x1x64xf32, #tpu.memory_space<vmem>>, vector<1x1x64xf32>
    tpu.vector_store %arg5[%c0_6, %c0_7, %c0_8], %7 {strides = array<i32>} : memref<1x1x64xf32, #tpu.memory_space<vmem>>, vector<1x1x64xf32>,
    %c0_9 = arith.constant 0 : index
    %c0_10 = arith.constant 0 : index
    %c0_11 = arith.constant 0 : index
    %9 = vector.load %arg6[%c0_9, %c0_10, %c0_11] : memref<1x1x64xf32, #tpu.memory_space<vmem>>, vector<1x1x64xf32>
    %10 = arith.mulf %3, %3 : vector<1x256x64xf32>
    %cst_12 = arith.constant dense<0.000000e+00> : vector<1x64xf32>
    %11 = vector.multi_reduction <add>, %10, %cst_12 [1] : vector<1x256x64xf32> to vector<1x64xf32>
    %12 = vector.shape_cast %11 : vector<1x64xf32> to vector<1x1x64xf32>
    %13 = arith.addf %9, %12 : vector<1x1x64xf32>
    %c0_13 = arith.constant 0 : index
    %c0_14 = arith.constant 0 : index
    %c0_15 = arith.constant 0 : index
    %14 = vector.load %arg6[%c0_13, %c0_14, %c0_15] : memref<1x1x64xf32, #tpu.memory_space<vmem>>, vector<1x1x64xf32>
    tpu.vector_store %arg6[%c0_13, %c0_14, %c0_15], %13 {strides = array<i32>} : memref<1x1x64xf32, #tpu.memory_space<vmem>>, vector<1x1x64xf32>,
    %c0_i32_16 = arith.constant 0 : i32
    %15 = arith.cmpi eq, %arg1, %c0_i32_16 : i32
    %16 = arith.extui %15 : i1 to i32
    %c0_i32_17 = arith.constant 0 : i32
    %17 = arith.cmpi ne, %16, %c0_i32_17 : i32
    scf.if %17 {
      %c0_18 = arith.constant 0 : index
      %c0_19 = arith.constant 0 : index
      %c0_20 = arith.constant 0 : index
      %18 = vector.load %arg5[%c0_18, %c0_19, %c0_20] : memref<1x1x64xf32, #tpu.memory_space<vmem>>, vector<1x1x64xf32>
      %c0_21 = arith.constant 0 : index
      %c0_22 = arith.constant 0 : index
      %c0_23 = arith.constant 0 : index
      %19 = vector.load %arg3[%c0_21, %c0_22, %c0_23] : memref<1x1x64xf32, #tpu.memory_space<vmem>>, vector<1x1x64xf32>
      tpu.vector_store %arg3[%c0_21, %c0_22, %c0_23], %18 {strides = array<i32>} : memref<1x1x64xf32, #tpu.memory_space<vmem>>, vector<1x1x64xf32>,
      %c0_24 = arith.constant 0 : index
      %c0_25 = arith.constant 0 : index
      %c0_26 = arith.constant 0 : index
      %20 = vector.load %arg6[%c0_24, %c0_25, %c0_26] : memref<1x1x64xf32, #tpu.memory_space<vmem>>, vector<1x1x64xf32>
      %c0_27 = arith.constant 0 : index
      %c0_28 = arith.constant 0 : index
      %c0_29 = arith.constant 0 : index
      %21 = vector.load %arg4[%c0_27, %c0_28, %c0_29] : memref<1x1x64xf32, #tpu.memory_space<vmem>>, vector<1x1x64xf32>
      tpu.vector_store %arg4[%c0_27, %c0_28, %c0_29], %20 {strides = array<i32>} : memref<1x1x64xf32, #tpu.memory_space<vmem>>, vector<1x1x64xf32>,
    } else {
    }
    return
  }
  func.func @transform_0(%arg0: i32, %arg1: i32) -> (i32, i32, i32) {
    %c0_i32 = arith.constant 0 : i32
    %c0_i32_0 = arith.constant 0 : i32
    return %arg0, %arg1, %c0_i32 : i32, i32, i32
  }
  func.func @transform_1(%arg0: i32, %arg1: i32) -> (i32, i32, i32) {
    %c0_i32 = arith.constant 0 : i32
    %c0_i32_0 = arith.constant 0 : i32
    %c0_i32_1 = arith.constant 0 : i32
    return %arg0, %c0_i32, %c0_i32_0 : i32, i32, i32
  }
  func.func @transform_2(%arg0: i32, %arg1: i32) -> (i32, i32, i32) {
    %c0_i32 = arith.constant 0 : i32
    %c0_i32_0 = arith.constant 0 : i32
    %c0_i32_1 = arith.constant 0 : i32
    return %arg0, %c0_i32, %c0_i32_0 : i32, i32, i32
  }
}

module attributes {stable_mosaic.version = 11 : i64} {
  func.func @_in_apply_kernel(%arg0: i32, %arg1: i32, %arg2: memref<1x256x64xf32, #tpu.memory_space<vmem>>, %arg3: memref<1x1x64xf32, #tpu.memory_space<vmem>>, %arg4: memref<1x1x64xf32, #tpu.memory_space<vmem>>, %arg5: memref<1x256x64xf32, #tpu.memory_space<vmem>>) attributes {dimension_semantics = [#tpu.dimension_semantics<parallel>, #tpu.dimension_semantics<parallel>], iteration_bounds = array<i64: 2, 1>, scalar_prefetch = 0 : i64, scratch_operands = 0 : i64, tpu.core_type = #tpu.core_type<tc>, window_params = [{transform_indices = @transform_0, window_bounds = array<i64: 1, 256, 64>}, {transform_indices = @transform_1, window_bounds = array<i64: 1, 1, 64>}, {transform_indices = @transform_2, window_bounds = array<i64: 1, 1, 64>}, {transform_indices = @transform_3, window_bounds = array<i64: 1, 256, 64>}]} {
    %c0 = arith.constant 0 : index
    %c0_0 = arith.constant 0 : index
    %c0_1 = arith.constant 0 : index
    %0 = vector.load %arg2[%c0, %c0_0, %c0_1] : memref<1x256x64xf32, #tpu.memory_space<vmem>>, vector<1x256x64xf32>
    %c0_2 = arith.constant 0 : index
    %c0_3 = arith.constant 0 : index
    %c0_4 = arith.constant 0 : index
    %1 = vector.load %arg3[%c0_2, %c0_3, %c0_4] : memref<1x1x64xf32, #tpu.memory_space<vmem>>, vector<1x1x64xf32>
    %cst = arith.constant 3.906250e-03 : f32
    %2 = vector.broadcast %cst : f32 to vector<1x1x64xf32>
    %3 = arith.mulf %1, %2 : vector<1x1x64xf32>
    %c0_5 = arith.constant 0 : index
    %c0_6 = arith.constant 0 : index
    %c0_7 = arith.constant 0 : index
    %4 = vector.load %arg4[%c0_5, %c0_6, %c0_7] : memref<1x1x64xf32, #tpu.memory_space<vmem>>, vector<1x1x64xf32>
    %cst_8 = arith.constant 3.906250e-03 : f32
    %5 = vector.broadcast %cst_8 : f32 to vector<1x1x64xf32>
    %6 = arith.mulf %4, %5 : vector<1x1x64xf32>
    %7 = arith.mulf %3, %3 : vector<1x1x64xf32>
    %8 = arith.subf %6, %7 : vector<1x1x64xf32>
    %cst_9 = arith.constant 0.000000e+00 : f32
    %9 = vector.broadcast %cst_9 : f32 to vector<1x1x64xf32>
    %10 = arith.maximumf %8, %9 : vector<1x1x64xf32>
    %11 = vector.broadcast %3 : vector<1x1x64xf32> to vector<1x256x64xf32>
    %12 = arith.subf %0, %11 : vector<1x256x64xf32>
    %cst_10 = arith.constant 9.99999974E-6 : f32
    %13 = vector.broadcast %cst_10 : f32 to vector<1x1x64xf32>
    %14 = arith.addf %10, %13 : vector<1x1x64xf32>
    %15 = math.rsqrt %14 : vector<1x1x64xf32>
    %16 = vector.broadcast %15 : vector<1x1x64xf32> to vector<1x256x64xf32>
    %17 = arith.mulf %12, %16 : vector<1x256x64xf32>
    %cst_11 = arith.constant 0.000000e+00 : f32
    %18 = vector.broadcast %cst_11 : f32 to vector<1x256x64xf32>
    %19 = arith.maximumf %17, %18 : vector<1x256x64xf32>
    %c0_12 = arith.constant 0 : index
    %c0_13 = arith.constant 0 : index
    %c0_14 = arith.constant 0 : index
    %20 = vector.load %arg5[%c0_12, %c0_13, %c0_14] : memref<1x256x64xf32, #tpu.memory_space<vmem>>, vector<1x256x64xf32>
    tpu.vector_store %arg5[%c0_12, %c0_13, %c0_14], %19 {strides = array<i32>} : memref<1x256x64xf32, #tpu.memory_space<vmem>>, vector<1x256x64xf32>,
    return
  }
  func.func @transform_0(%arg0: i32, %arg1: i32) -> (i32, i32, i32) {
    %c0_i32 = arith.constant 0 : i32
    %c0_i32_0 = arith.constant 0 : i32
    return %arg0, %arg1, %c0_i32 : i32, i32, i32
  }
  func.func @transform_1(%arg0: i32, %arg1: i32) -> (i32, i32, i32) {
    %c0_i32 = arith.constant 0 : i32
    %c0_i32_0 = arith.constant 0 : i32
    %c0_i32_1 = arith.constant 0 : i32
    return %arg0, %c0_i32, %c0_i32_0 : i32, i32, i32
  }
  func.func @transform_2(%arg0: i32, %arg1: i32) -> (i32, i32, i32) {
    %c0_i32 = arith.constant 0 : i32
    %c0_i32_0 = arith.constant 0 : i32
    %c0_i32_1 = arith.constant 0 : i32
    return %arg0, %c0_i32, %c0_i32_0 : i32, i32, i32
  }
  func.func @transform_3(%arg0: i32, %arg1: i32) -> (i32, i32, i32) {
    %c0_i32 = arith.constant 0 : i32
    %c0_i32_0 = arith.constant 0 : i32
    return %arg0, %arg1, %c0_i32 : i32, i32, i32
  }
}

module attributes {stable_mosaic.version = 11 : i64} {
  func.func @_matmul_bias_kernel(%arg0: i32, %arg1: i32, %arg2: i32, %arg3: memref<128x256xbf16, #tpu.memory_space<vmem>>, %arg4: memref<256x128xbf16, #tpu.memory_space<vmem>>, %arg5: memref<1x128xf32, #tpu.memory_space<vmem>>, %arg6: memref<128x128xf32, #tpu.memory_space<vmem>>, %arg7: memref<128x128xf32, #tpu.memory_space<vmem>>) attributes {dimension_semantics = [#tpu.dimension_semantics<parallel>, #tpu.dimension_semantics<parallel>, #tpu.dimension_semantics<arbitrary>], iteration_bounds = array<i64: 1, 1, 3>, scalar_prefetch = 0 : i64, scratch_operands = 1 : i64, tpu.core_type = #tpu.core_type<tc>, window_params = [{transform_indices = @transform_0, window_bounds = array<i64: 128, 256>}, {transform_indices = @transform_1, window_bounds = array<i64: 256, 128>}, {transform_indices = @transform_2, window_bounds = array<i64: 1, 128>}, {transform_indices = @transform_3, window_bounds = array<i64: 128, 128>}]} {
    %c0_i32 = arith.constant 0 : i32
    %0 = arith.cmpi eq, %arg2, %c0_i32 : i32
    %1 = arith.extui %0 : i1 to i32
    %c0_i32_0 = arith.constant 0 : i32
    %2 = arith.cmpi ne, %1, %c0_i32_0 : i32
    scf.if %2 {
      %cst_9 = arith.constant 0.000000e+00 : f32
      %12 = vector.broadcast %cst_9 : f32 to vector<128x128xf32>
      %c0_10 = arith.constant 0 : index
      %c0_11 = arith.constant 0 : index
      %13 = vector.load %arg7[%c0_10, %c0_11] : memref<128x128xf32, #tpu.memory_space<vmem>>, vector<128x128xf32>
      tpu.vector_store %arg7[%c0_10, %c0_11], %12 {strides = array<i32>} : memref<128x128xf32, #tpu.memory_space<vmem>>, vector<128x128xf32>,
    } else {
    }
    %c0 = arith.constant 0 : index
    %c0_1 = arith.constant 0 : index
    %3 = vector.load %arg7[%c0, %c0_1] : memref<128x128xf32, #tpu.memory_space<vmem>>, vector<128x128xf32>
    %c0_2 = arith.constant 0 : index
    %c0_3 = arith.constant 0 : index
    %4 = vector.load %arg3[%c0_2, %c0_3] : memref<128x256xbf16, #tpu.memory_space<vmem>>, vector<128x256xbf16>
    %c0_4 = arith.constant 0 : index
    %c0_5 = arith.constant 0 : index
    %5 = vector.load %arg4[%c0_4, %c0_5] : memref<256x128xbf16, #tpu.memory_space<vmem>>, vector<256x128xbf16>
    %cst = arith.constant dense<0.000000e+00> : vector<128x128xf32>
    %6 = tpu.matmul %4, %5, %cst {dimension_numbers = #tpu.dot_dimension_numbers<[1], [0], [0], [1], [0, 0, 1, 1], [], []>} : vector<128x256xbf16>, vector<256x128xbf16>, vector<128x128xf32> -> vector<128x128xf32>
    %7 = arith.addf %3, %6 : vector<128x128xf32>
    %c0_6 = arith.constant 0 : index
    %c0_7 = arith.constant 0 : index
    %8 = vector.load %arg7[%c0_6, %c0_7] : memref<128x128xf32, #tpu.memory_space<vmem>>, vector<128x128xf32>
    tpu.vector_store %arg7[%c0_6, %c0_7], %7 {strides = array<i32>} : memref<128x128xf32, #tpu.memory_space<vmem>>, vector<128x128xf32>,
    %c2_i32 = arith.constant 2 : i32
    %9 = arith.cmpi eq, %arg2, %c2_i32 : i32
    %10 = arith.extui %9 : i1 to i32
    %c0_i32_8 = arith.constant 0 : i32
    %11 = arith.cmpi ne, %10, %c0_i32_8 : i32
    scf.if %11 {
      %c0_9 = arith.constant 0 : index
      %c0_10 = arith.constant 0 : index
      %12 = vector.load %arg7[%c0_9, %c0_10] : memref<128x128xf32, #tpu.memory_space<vmem>>, vector<128x128xf32>
      %c0_11 = arith.constant 0 : index
      %c0_12 = arith.constant 0 : index
      %13 = vector.load %arg5[%c0_11, %c0_12] : memref<1x128xf32, #tpu.memory_space<vmem>>, vector<1x128xf32>
      %14 = vector.broadcast %13 : vector<1x128xf32> to vector<128x128xf32>
      %15 = arith.addf %12, %14 : vector<128x128xf32>
      %c0_13 = arith.constant 0 : index
      %c0_14 = arith.constant 0 : index
      %16 = vector.load %arg6[%c0_13, %c0_14] : memref<128x128xf32, #tpu.memory_space<vmem>>, vector<128x128xf32>
      tpu.vector_store %arg6[%c0_13, %c0_14], %15 {strides = array<i32>} : memref<128x128xf32, #tpu.memory_space<vmem>>, vector<128x128xf32>,
    } else {
    }
    return
  }
  func.func @transform_0(%arg0: i32, %arg1: i32, %arg2: i32) -> (i32, i32) {
    %c0_i32 = arith.constant 0 : i32
    return %arg0, %arg2 : i32, i32
  }
  func.func @transform_1(%arg0: i32, %arg1: i32, %arg2: i32) -> (i32, i32) {
    %c0_i32 = arith.constant 0 : i32
    return %arg2, %arg1 : i32, i32
  }
  func.func @transform_2(%arg0: i32, %arg1: i32, %arg2: i32) -> (i32, i32) {
    %c0_i32 = arith.constant 0 : i32
    %c0_i32_0 = arith.constant 0 : i32
    return %c0_i32, %arg1 : i32, i32
  }
  func.func @transform_3(%arg0: i32, %arg1: i32, %arg2: i32) -> (i32, i32) {
    %c0_i32 = arith.constant 0 : i32
    return %arg0, %arg1 : i32, i32
  }
}

module attributes {stable_mosaic.version = 11 : i64} {
  func.func @_in_stats_kernel(%arg0: i32, %arg1: i32, %arg2: memref<1x64x128xf32, #tpu.memory_space<vmem>>, %arg3: memref<1x1x128xf32, #tpu.memory_space<vmem>>, %arg4: memref<1x1x128xf32, #tpu.memory_space<vmem>>, %arg5: memref<1x1x128xf32, #tpu.memory_space<vmem>>, %arg6: memref<1x1x128xf32, #tpu.memory_space<vmem>>) attributes {dimension_semantics = [#tpu.dimension_semantics<parallel>, #tpu.dimension_semantics<arbitrary>], iteration_bounds = array<i64: 2, 1>, scalar_prefetch = 0 : i64, scratch_operands = 2 : i64, tpu.core_type = #tpu.core_type<tc>, window_params = [{transform_indices = @transform_0, window_bounds = array<i64: 1, 64, 128>}, {transform_indices = @transform_1, window_bounds = array<i64: 1, 1, 128>}, {transform_indices = @transform_2, window_bounds = array<i64: 1, 1, 128>}]} {
    %c0_i32 = arith.constant 0 : i32
    %0 = arith.cmpi eq, %arg1, %c0_i32 : i32
    %1 = arith.extui %0 : i1 to i32
    %c0_i32_0 = arith.constant 0 : i32
    %2 = arith.cmpi ne, %1, %c0_i32_0 : i32
    scf.if %2 {
      %cst_18 = arith.constant 0.000000e+00 : f32
      %18 = vector.broadcast %cst_18 : f32 to vector<1x1x128xf32>
      %c0_19 = arith.constant 0 : index
      %c0_20 = arith.constant 0 : index
      %c0_21 = arith.constant 0 : index
      %19 = vector.load %arg5[%c0_19, %c0_20, %c0_21] : memref<1x1x128xf32, #tpu.memory_space<vmem>>, vector<1x1x128xf32>
      tpu.vector_store %arg5[%c0_19, %c0_20, %c0_21], %18 {strides = array<i32>} : memref<1x1x128xf32, #tpu.memory_space<vmem>>, vector<1x1x128xf32>,
      %cst_22 = arith.constant 0.000000e+00 : f32
      %20 = vector.broadcast %cst_22 : f32 to vector<1x1x128xf32>
      %c0_23 = arith.constant 0 : index
      %c0_24 = arith.constant 0 : index
      %c0_25 = arith.constant 0 : index
      %21 = vector.load %arg6[%c0_23, %c0_24, %c0_25] : memref<1x1x128xf32, #tpu.memory_space<vmem>>, vector<1x1x128xf32>
      tpu.vector_store %arg6[%c0_23, %c0_24, %c0_25], %20 {strides = array<i32>} : memref<1x1x128xf32, #tpu.memory_space<vmem>>, vector<1x1x128xf32>,
    } else {
    }
    %c0 = arith.constant 0 : index
    %c0_1 = arith.constant 0 : index
    %c0_2 = arith.constant 0 : index
    %3 = vector.load %arg2[%c0, %c0_1, %c0_2] : memref<1x64x128xf32, #tpu.memory_space<vmem>>, vector<1x64x128xf32>
    %c0_3 = arith.constant 0 : index
    %c0_4 = arith.constant 0 : index
    %c0_5 = arith.constant 0 : index
    %4 = vector.load %arg5[%c0_3, %c0_4, %c0_5] : memref<1x1x128xf32, #tpu.memory_space<vmem>>, vector<1x1x128xf32>
    %cst = arith.constant dense<0.000000e+00> : vector<1x128xf32>
    %5 = vector.multi_reduction <add>, %3, %cst [1] : vector<1x64x128xf32> to vector<1x128xf32>
    %6 = vector.shape_cast %5 : vector<1x128xf32> to vector<1x1x128xf32>
    %7 = arith.addf %4, %6 : vector<1x1x128xf32>
    %c0_6 = arith.constant 0 : index
    %c0_7 = arith.constant 0 : index
    %c0_8 = arith.constant 0 : index
    %8 = vector.load %arg5[%c0_6, %c0_7, %c0_8] : memref<1x1x128xf32, #tpu.memory_space<vmem>>, vector<1x1x128xf32>
    tpu.vector_store %arg5[%c0_6, %c0_7, %c0_8], %7 {strides = array<i32>} : memref<1x1x128xf32, #tpu.memory_space<vmem>>, vector<1x1x128xf32>,
    %c0_9 = arith.constant 0 : index
    %c0_10 = arith.constant 0 : index
    %c0_11 = arith.constant 0 : index
    %9 = vector.load %arg6[%c0_9, %c0_10, %c0_11] : memref<1x1x128xf32, #tpu.memory_space<vmem>>, vector<1x1x128xf32>
    %10 = arith.mulf %3, %3 : vector<1x64x128xf32>
    %cst_12 = arith.constant dense<0.000000e+00> : vector<1x128xf32>
    %11 = vector.multi_reduction <add>, %10, %cst_12 [1] : vector<1x64x128xf32> to vector<1x128xf32>
    %12 = vector.shape_cast %11 : vector<1x128xf32> to vector<1x1x128xf32>
    %13 = arith.addf %9, %12 : vector<1x1x128xf32>
    %c0_13 = arith.constant 0 : index
    %c0_14 = arith.constant 0 : index
    %c0_15 = arith.constant 0 : index
    %14 = vector.load %arg6[%c0_13, %c0_14, %c0_15] : memref<1x1x128xf32, #tpu.memory_space<vmem>>, vector<1x1x128xf32>
    tpu.vector_store %arg6[%c0_13, %c0_14, %c0_15], %13 {strides = array<i32>} : memref<1x1x128xf32, #tpu.memory_space<vmem>>, vector<1x1x128xf32>,
    %c0_i32_16 = arith.constant 0 : i32
    %15 = arith.cmpi eq, %arg1, %c0_i32_16 : i32
    %16 = arith.extui %15 : i1 to i32
    %c0_i32_17 = arith.constant 0 : i32
    %17 = arith.cmpi ne, %16, %c0_i32_17 : i32
    scf.if %17 {
      %c0_18 = arith.constant 0 : index
      %c0_19 = arith.constant 0 : index
      %c0_20 = arith.constant 0 : index
      %18 = vector.load %arg5[%c0_18, %c0_19, %c0_20] : memref<1x1x128xf32, #tpu.memory_space<vmem>>, vector<1x1x128xf32>
      %c0_21 = arith.constant 0 : index
      %c0_22 = arith.constant 0 : index
      %c0_23 = arith.constant 0 : index
      %19 = vector.load %arg3[%c0_21, %c0_22, %c0_23] : memref<1x1x128xf32, #tpu.memory_space<vmem>>, vector<1x1x128xf32>
      tpu.vector_store %arg3[%c0_21, %c0_22, %c0_23], %18 {strides = array<i32>} : memref<1x1x128xf32, #tpu.memory_space<vmem>>, vector<1x1x128xf32>,
      %c0_24 = arith.constant 0 : index
      %c0_25 = arith.constant 0 : index
      %c0_26 = arith.constant 0 : index
      %20 = vector.load %arg6[%c0_24, %c0_25, %c0_26] : memref<1x1x128xf32, #tpu.memory_space<vmem>>, vector<1x1x128xf32>
      %c0_27 = arith.constant 0 : index
      %c0_28 = arith.constant 0 : index
      %c0_29 = arith.constant 0 : index
      %21 = vector.load %arg4[%c0_27, %c0_28, %c0_29] : memref<1x1x128xf32, #tpu.memory_space<vmem>>, vector<1x1x128xf32>
      tpu.vector_store %arg4[%c0_27, %c0_28, %c0_29], %20 {strides = array<i32>} : memref<1x1x128xf32, #tpu.memory_space<vmem>>, vector<1x1x128xf32>,
    } else {
    }
    return
  }
  func.func @transform_0(%arg0: i32, %arg1: i32) -> (i32, i32, i32) {
    %c0_i32 = arith.constant 0 : i32
    %c0_i32_0 = arith.constant 0 : i32
    return %arg0, %arg1, %c0_i32 : i32, i32, i32
  }
  func.func @transform_1(%arg0: i32, %arg1: i32) -> (i32, i32, i32) {
    %c0_i32 = arith.constant 0 : i32
    %c0_i32_0 = arith.constant 0 : i32
    %c0_i32_1 = arith.constant 0 : i32
    return %arg0, %c0_i32, %c0_i32_0 : i32, i32, i32
  }
  func.func @transform_2(%arg0: i32, %arg1: i32) -> (i32, i32, i32) {
    %c0_i32 = arith.constant 0 : i32
    %c0_i32_0 = arith.constant 0 : i32
    %c0_i32_1 = arith.constant 0 : i32
    return %arg0, %c0_i32, %c0_i32_0 : i32, i32, i32
  }
}

module attributes {stable_mosaic.version = 11 : i64} {
  func.func @_in_apply_kernel(%arg0: i32, %arg1: i32, %arg2: memref<1x64x128xf32, #tpu.memory_space<vmem>>, %arg3: memref<1x1x128xf32, #tpu.memory_space<vmem>>, %arg4: memref<1x1x128xf32, #tpu.memory_space<vmem>>, %arg5: memref<1x64x128xf32, #tpu.memory_space<vmem>>) attributes {dimension_semantics = [#tpu.dimension_semantics<parallel>, #tpu.dimension_semantics<parallel>], iteration_bounds = array<i64: 2, 1>, scalar_prefetch = 0 : i64, scratch_operands = 0 : i64, tpu.core_type = #tpu.core_type<tc>, window_params = [{transform_indices = @transform_0, window_bounds = array<i64: 1, 64, 128>}, {transform_indices = @transform_1, window_bounds = array<i64: 1, 1, 128>}, {transform_indices = @transform_2, window_bounds = array<i64: 1, 1, 128>}, {transform_indices = @transform_3, window_bounds = array<i64: 1, 64, 128>}]} {
    %c0 = arith.constant 0 : index
    %c0_0 = arith.constant 0 : index
    %c0_1 = arith.constant 0 : index
    %0 = vector.load %arg2[%c0, %c0_0, %c0_1] : memref<1x64x128xf32, #tpu.memory_space<vmem>>, vector<1x64x128xf32>
    %c0_2 = arith.constant 0 : index
    %c0_3 = arith.constant 0 : index
    %c0_4 = arith.constant 0 : index
    %1 = vector.load %arg3[%c0_2, %c0_3, %c0_4] : memref<1x1x128xf32, #tpu.memory_space<vmem>>, vector<1x1x128xf32>
    %cst = arith.constant 1.562500e-02 : f32
    %2 = vector.broadcast %cst : f32 to vector<1x1x128xf32>
    %3 = arith.mulf %1, %2 : vector<1x1x128xf32>
    %c0_5 = arith.constant 0 : index
    %c0_6 = arith.constant 0 : index
    %c0_7 = arith.constant 0 : index
    %4 = vector.load %arg4[%c0_5, %c0_6, %c0_7] : memref<1x1x128xf32, #tpu.memory_space<vmem>>, vector<1x1x128xf32>
    %cst_8 = arith.constant 1.562500e-02 : f32
    %5 = vector.broadcast %cst_8 : f32 to vector<1x1x128xf32>
    %6 = arith.mulf %4, %5 : vector<1x1x128xf32>
    %7 = arith.mulf %3, %3 : vector<1x1x128xf32>
    %8 = arith.subf %6, %7 : vector<1x1x128xf32>
    %cst_9 = arith.constant 0.000000e+00 : f32
    %9 = vector.broadcast %cst_9 : f32 to vector<1x1x128xf32>
    %10 = arith.maximumf %8, %9 : vector<1x1x128xf32>
    %11 = vector.broadcast %3 : vector<1x1x128xf32> to vector<1x64x128xf32>
    %12 = arith.subf %0, %11 : vector<1x64x128xf32>
    %cst_10 = arith.constant 9.99999974E-6 : f32
    %13 = vector.broadcast %cst_10 : f32 to vector<1x1x128xf32>
    %14 = arith.addf %10, %13 : vector<1x1x128xf32>
    %15 = math.rsqrt %14 : vector<1x1x128xf32>
    %16 = vector.broadcast %15 : vector<1x1x128xf32> to vector<1x64x128xf32>
    %17 = arith.mulf %12, %16 : vector<1x64x128xf32>
    %cst_11 = arith.constant 0.000000e+00 : f32
    %18 = vector.broadcast %cst_11 : f32 to vector<1x64x128xf32>
    %19 = arith.maximumf %17, %18 : vector<1x64x128xf32>
    %c0_12 = arith.constant 0 : index
    %c0_13 = arith.constant 0 : index
    %c0_14 = arith.constant 0 : index
    %20 = vector.load %arg5[%c0_12, %c0_13, %c0_14] : memref<1x64x128xf32, #tpu.memory_space<vmem>>, vector<1x64x128xf32>
    tpu.vector_store %arg5[%c0_12, %c0_13, %c0_14], %19 {strides = array<i32>} : memref<1x64x128xf32, #tpu.memory_space<vmem>>, vector<1x64x128xf32>,
    return
  }
  func.func @transform_0(%arg0: i32, %arg1: i32) -> (i32, i32, i32) {
    %c0_i32 = arith.constant 0 : i32
    %c0_i32_0 = arith.constant 0 : i32
    return %arg0, %arg1, %c0_i32 : i32, i32, i32
  }
  func.func @transform_1(%arg0: i32, %arg1: i32) -> (i32, i32, i32) {
    %c0_i32 = arith.constant 0 : i32
    %c0_i32_0 = arith.constant 0 : i32
    %c0_i32_1 = arith.constant 0 : i32
    return %arg0, %c0_i32, %c0_i32_0 : i32, i32, i32
  }
  func.func @transform_2(%arg0: i32, %arg1: i32) -> (i32, i32, i32) {
    %c0_i32 = arith.constant 0 : i32
    %c0_i32_0 = arith.constant 0 : i32
    %c0_i32_1 = arith.constant 0 : i32
    return %arg0, %c0_i32, %c0_i32_0 : i32, i32, i32
  }
  func.func @transform_3(%arg0: i32, %arg1: i32) -> (i32, i32, i32) {
    %c0_i32 = arith.constant 0 : i32
    %c0_i32_0 = arith.constant 0 : i32
    return %arg0, %arg1, %c0_i32 : i32, i32, i32
  }
}

module attributes {stable_mosaic.version = 11 : i64} {
  func.func @_matmul_bias_kernel(%arg0: i32, %arg1: i32, %arg2: i32, %arg3: memref<128x256xbf16, #tpu.memory_space<vmem>>, %arg4: memref<256x256xbf16, #tpu.memory_space<vmem>>, %arg5: memref<1x256xf32, #tpu.memory_space<vmem>>, %arg6: memref<128x256xf32, #tpu.memory_space<vmem>>, %arg7: memref<128x256xf32, #tpu.memory_space<vmem>>) attributes {dimension_semantics = [#tpu.dimension_semantics<parallel>, #tpu.dimension_semantics<parallel>, #tpu.dimension_semantics<arbitrary>], iteration_bounds = array<i64: 1, 1, 5>, scalar_prefetch = 0 : i64, scratch_operands = 1 : i64, tpu.core_type = #tpu.core_type<tc>, window_params = [{transform_indices = @transform_0, window_bounds = array<i64: 128, 256>}, {transform_indices = @transform_1, window_bounds = array<i64: 256, 256>}, {transform_indices = @transform_2, window_bounds = array<i64: 1, 256>}, {transform_indices = @transform_3, window_bounds = array<i64: 128, 256>}]} {
    %c0_i32 = arith.constant 0 : i32
    %0 = arith.cmpi eq, %arg2, %c0_i32 : i32
    %1 = arith.extui %0 : i1 to i32
    %c0_i32_0 = arith.constant 0 : i32
    %2 = arith.cmpi ne, %1, %c0_i32_0 : i32
    scf.if %2 {
      %cst_9 = arith.constant 0.000000e+00 : f32
      %12 = vector.broadcast %cst_9 : f32 to vector<128x256xf32>
      %c0_10 = arith.constant 0 : index
      %c0_11 = arith.constant 0 : index
      %13 = vector.load %arg7[%c0_10, %c0_11] : memref<128x256xf32, #tpu.memory_space<vmem>>, vector<128x256xf32>
      tpu.vector_store %arg7[%c0_10, %c0_11], %12 {strides = array<i32>} : memref<128x256xf32, #tpu.memory_space<vmem>>, vector<128x256xf32>,
    } else {
    }
    %c0 = arith.constant 0 : index
    %c0_1 = arith.constant 0 : index
    %3 = vector.load %arg7[%c0, %c0_1] : memref<128x256xf32, #tpu.memory_space<vmem>>, vector<128x256xf32>
    %c0_2 = arith.constant 0 : index
    %c0_3 = arith.constant 0 : index
    %4 = vector.load %arg3[%c0_2, %c0_3] : memref<128x256xbf16, #tpu.memory_space<vmem>>, vector<128x256xbf16>
    %c0_4 = arith.constant 0 : index
    %c0_5 = arith.constant 0 : index
    %5 = vector.load %arg4[%c0_4, %c0_5] : memref<256x256xbf16, #tpu.memory_space<vmem>>, vector<256x256xbf16>
    %cst = arith.constant dense<0.000000e+00> : vector<128x256xf32>
    %6 = tpu.matmul %4, %5, %cst {dimension_numbers = #tpu.dot_dimension_numbers<[1], [0], [0], [1], [0, 0, 1, 1], [], []>} : vector<128x256xbf16>, vector<256x256xbf16>, vector<128x256xf32> -> vector<128x256xf32>
    %7 = arith.addf %3, %6 : vector<128x256xf32>
    %c0_6 = arith.constant 0 : index
    %c0_7 = arith.constant 0 : index
    %8 = vector.load %arg7[%c0_6, %c0_7] : memref<128x256xf32, #tpu.memory_space<vmem>>, vector<128x256xf32>
    tpu.vector_store %arg7[%c0_6, %c0_7], %7 {strides = array<i32>} : memref<128x256xf32, #tpu.memory_space<vmem>>, vector<128x256xf32>,
    %c4_i32 = arith.constant 4 : i32
    %9 = arith.cmpi eq, %arg2, %c4_i32 : i32
    %10 = arith.extui %9 : i1 to i32
    %c0_i32_8 = arith.constant 0 : i32
    %11 = arith.cmpi ne, %10, %c0_i32_8 : i32
    scf.if %11 {
      %c0_9 = arith.constant 0 : index
      %c0_10 = arith.constant 0 : index
      %12 = vector.load %arg7[%c0_9, %c0_10] : memref<128x256xf32, #tpu.memory_space<vmem>>, vector<128x256xf32>
      %c0_11 = arith.constant 0 : index
      %c0_12 = arith.constant 0 : index
      %13 = vector.load %arg5[%c0_11, %c0_12] : memref<1x256xf32, #tpu.memory_space<vmem>>, vector<1x256xf32>
      %14 = vector.broadcast %13 : vector<1x256xf32> to vector<128x256xf32>
      %15 = arith.addf %12, %14 : vector<128x256xf32>
      %c0_13 = arith.constant 0 : index
      %c0_14 = arith.constant 0 : index
      %16 = vector.load %arg6[%c0_13, %c0_14] : memref<128x256xf32, #tpu.memory_space<vmem>>, vector<128x256xf32>
      tpu.vector_store %arg6[%c0_13, %c0_14], %15 {strides = array<i32>} : memref<128x256xf32, #tpu.memory_space<vmem>>, vector<128x256xf32>,
    } else {
    }
    return
  }
  func.func @transform_0(%arg0: i32, %arg1: i32, %arg2: i32) -> (i32, i32) {
    %c0_i32 = arith.constant 0 : i32
    return %arg0, %arg2 : i32, i32
  }
  func.func @transform_1(%arg0: i32, %arg1: i32, %arg2: i32) -> (i32, i32) {
    %c0_i32 = arith.constant 0 : i32
    return %arg2, %arg1 : i32, i32
  }
  func.func @transform_2(%arg0: i32, %arg1: i32, %arg2: i32) -> (i32, i32) {
    %c0_i32 = arith.constant 0 : i32
    %c0_i32_0 = arith.constant 0 : i32
    return %c0_i32, %arg1 : i32, i32
  }
  func.func @transform_3(%arg0: i32, %arg1: i32, %arg2: i32) -> (i32, i32) {
    %c0_i32 = arith.constant 0 : i32
    return %arg0, %arg1 : i32, i32
  }
}

module attributes {stable_mosaic.version = 11 : i64} {
  func.func @_in_stats_kernel(%arg0: i32, %arg1: i32, %arg2: memref<1x16x256xf32, #tpu.memory_space<vmem>>, %arg3: memref<1x1x256xf32, #tpu.memory_space<vmem>>, %arg4: memref<1x1x256xf32, #tpu.memory_space<vmem>>, %arg5: memref<1x1x256xf32, #tpu.memory_space<vmem>>, %arg6: memref<1x1x256xf32, #tpu.memory_space<vmem>>) attributes {dimension_semantics = [#tpu.dimension_semantics<parallel>, #tpu.dimension_semantics<arbitrary>], iteration_bounds = array<i64: 2, 1>, scalar_prefetch = 0 : i64, scratch_operands = 2 : i64, tpu.core_type = #tpu.core_type<tc>, window_params = [{transform_indices = @transform_0, window_bounds = array<i64: 1, 16, 256>}, {transform_indices = @transform_1, window_bounds = array<i64: 1, 1, 256>}, {transform_indices = @transform_2, window_bounds = array<i64: 1, 1, 256>}]} {
    %c0_i32 = arith.constant 0 : i32
    %0 = arith.cmpi eq, %arg1, %c0_i32 : i32
    %1 = arith.extui %0 : i1 to i32
    %c0_i32_0 = arith.constant 0 : i32
    %2 = arith.cmpi ne, %1, %c0_i32_0 : i32
    scf.if %2 {
      %cst_18 = arith.constant 0.000000e+00 : f32
      %18 = vector.broadcast %cst_18 : f32 to vector<1x1x256xf32>
      %c0_19 = arith.constant 0 : index
      %c0_20 = arith.constant 0 : index
      %c0_21 = arith.constant 0 : index
      %19 = vector.load %arg5[%c0_19, %c0_20, %c0_21] : memref<1x1x256xf32, #tpu.memory_space<vmem>>, vector<1x1x256xf32>
      tpu.vector_store %arg5[%c0_19, %c0_20, %c0_21], %18 {strides = array<i32>} : memref<1x1x256xf32, #tpu.memory_space<vmem>>, vector<1x1x256xf32>,
      %cst_22 = arith.constant 0.000000e+00 : f32
      %20 = vector.broadcast %cst_22 : f32 to vector<1x1x256xf32>
      %c0_23 = arith.constant 0 : index
      %c0_24 = arith.constant 0 : index
      %c0_25 = arith.constant 0 : index
      %21 = vector.load %arg6[%c0_23, %c0_24, %c0_25] : memref<1x1x256xf32, #tpu.memory_space<vmem>>, vector<1x1x256xf32>
      tpu.vector_store %arg6[%c0_23, %c0_24, %c0_25], %20 {strides = array<i32>} : memref<1x1x256xf32, #tpu.memory_space<vmem>>, vector<1x1x256xf32>,
    } else {
    }
    %c0 = arith.constant 0 : index
    %c0_1 = arith.constant 0 : index
    %c0_2 = arith.constant 0 : index
    %3 = vector.load %arg2[%c0, %c0_1, %c0_2] : memref<1x16x256xf32, #tpu.memory_space<vmem>>, vector<1x16x256xf32>
    %c0_3 = arith.constant 0 : index
    %c0_4 = arith.constant 0 : index
    %c0_5 = arith.constant 0 : index
    %4 = vector.load %arg5[%c0_3, %c0_4, %c0_5] : memref<1x1x256xf32, #tpu.memory_space<vmem>>, vector<1x1x256xf32>
    %cst = arith.constant dense<0.000000e+00> : vector<1x256xf32>
    %5 = vector.multi_reduction <add>, %3, %cst [1] : vector<1x16x256xf32> to vector<1x256xf32>
    %6 = vector.shape_cast %5 : vector<1x256xf32> to vector<1x1x256xf32>
    %7 = arith.addf %4, %6 : vector<1x1x256xf32>
    %c0_6 = arith.constant 0 : index
    %c0_7 = arith.constant 0 : index
    %c0_8 = arith.constant 0 : index
    %8 = vector.load %arg5[%c0_6, %c0_7, %c0_8] : memref<1x1x256xf32, #tpu.memory_space<vmem>>, vector<1x1x256xf32>
    tpu.vector_store %arg5[%c0_6, %c0_7, %c0_8], %7 {strides = array<i32>} : memref<1x1x256xf32, #tpu.memory_space<vmem>>, vector<1x1x256xf32>,
    %c0_9 = arith.constant 0 : index
    %c0_10 = arith.constant 0 : index
    %c0_11 = arith.constant 0 : index
    %9 = vector.load %arg6[%c0_9, %c0_10, %c0_11] : memref<1x1x256xf32, #tpu.memory_space<vmem>>, vector<1x1x256xf32>
    %10 = arith.mulf %3, %3 : vector<1x16x256xf32>
    %cst_12 = arith.constant dense<0.000000e+00> : vector<1x256xf32>
    %11 = vector.multi_reduction <add>, %10, %cst_12 [1] : vector<1x16x256xf32> to vector<1x256xf32>
    %12 = vector.shape_cast %11 : vector<1x256xf32> to vector<1x1x256xf32>
    %13 = arith.addf %9, %12 : vector<1x1x256xf32>
    %c0_13 = arith.constant 0 : index
    %c0_14 = arith.constant 0 : index
    %c0_15 = arith.constant 0 : index
    %14 = vector.load %arg6[%c0_13, %c0_14, %c0_15] : memref<1x1x256xf32, #tpu.memory_space<vmem>>, vector<1x1x256xf32>
    tpu.vector_store %arg6[%c0_13, %c0_14, %c0_15], %13 {strides = array<i32>} : memref<1x1x256xf32, #tpu.memory_space<vmem>>, vector<1x1x256xf32>,
    %c0_i32_16 = arith.constant 0 : i32
    %15 = arith.cmpi eq, %arg1, %c0_i32_16 : i32
    %16 = arith.extui %15 : i1 to i32
    %c0_i32_17 = arith.constant 0 : i32
    %17 = arith.cmpi ne, %16, %c0_i32_17 : i32
    scf.if %17 {
      %c0_18 = arith.constant 0 : index
      %c0_19 = arith.constant 0 : index
      %c0_20 = arith.constant 0 : index
      %18 = vector.load %arg5[%c0_18, %c0_19, %c0_20] : memref<1x1x256xf32, #tpu.memory_space<vmem>>, vector<1x1x256xf32>
      %c0_21 = arith.constant 0 : index
      %c0_22 = arith.constant 0 : index
      %c0_23 = arith.constant 0 : index
      %19 = vector.load %arg3[%c0_21, %c0_22, %c0_23] : memref<1x1x256xf32, #tpu.memory_space<vmem>>, vector<1x1x256xf32>
      tpu.vector_store %arg3[%c0_21, %c0_22, %c0_23], %18 {strides = array<i32>} : memref<1x1x256xf32, #tpu.memory_space<vmem>>, vector<1x1x256xf32>,
      %c0_24 = arith.constant 0 : index
      %c0_25 = arith.constant 0 : index
      %c0_26 = arith.constant 0 : index
      %20 = vector.load %arg6[%c0_24, %c0_25, %c0_26] : memref<1x1x256xf32, #tpu.memory_space<vmem>>, vector<1x1x256xf32>
      %c0_27 = arith.constant 0 : index
      %c0_28 = arith.constant 0 : index
      %c0_29 = arith.constant 0 : index
      %21 = vector.load %arg4[%c0_27, %c0_28, %c0_29] : memref<1x1x256xf32, #tpu.memory_space<vmem>>, vector<1x1x256xf32>
      tpu.vector_store %arg4[%c0_27, %c0_28, %c0_29], %20 {strides = array<i32>} : memref<1x1x256xf32, #tpu.memory_space<vmem>>, vector<1x1x256xf32>,
    } else {
    }
    return
  }
  func.func @transform_0(%arg0: i32, %arg1: i32) -> (i32, i32, i32) {
    %c0_i32 = arith.constant 0 : i32
    %c0_i32_0 = arith.constant 0 : i32
    return %arg0, %arg1, %c0_i32 : i32, i32, i32
  }
  func.func @transform_1(%arg0: i32, %arg1: i32) -> (i32, i32, i32) {
    %c0_i32 = arith.constant 0 : i32
    %c0_i32_0 = arith.constant 0 : i32
    %c0_i32_1 = arith.constant 0 : i32
    return %arg0, %c0_i32, %c0_i32_0 : i32, i32, i32
  }
  func.func @transform_2(%arg0: i32, %arg1: i32) -> (i32, i32, i32) {
    %c0_i32 = arith.constant 0 : i32
    %c0_i32_0 = arith.constant 0 : i32
    %c0_i32_1 = arith.constant 0 : i32
    return %arg0, %c0_i32, %c0_i32_0 : i32, i32, i32
  }
}

module attributes {stable_mosaic.version = 11 : i64} {
  func.func @_in_apply_kernel(%arg0: i32, %arg1: i32, %arg2: memref<1x16x256xf32, #tpu.memory_space<vmem>>, %arg3: memref<1x1x256xf32, #tpu.memory_space<vmem>>, %arg4: memref<1x1x256xf32, #tpu.memory_space<vmem>>, %arg5: memref<1x16x256xf32, #tpu.memory_space<vmem>>) attributes {dimension_semantics = [#tpu.dimension_semantics<parallel>, #tpu.dimension_semantics<parallel>], iteration_bounds = array<i64: 2, 1>, scalar_prefetch = 0 : i64, scratch_operands = 0 : i64, tpu.core_type = #tpu.core_type<tc>, window_params = [{transform_indices = @transform_0, window_bounds = array<i64: 1, 16, 256>}, {transform_indices = @transform_1, window_bounds = array<i64: 1, 1, 256>}, {transform_indices = @transform_2, window_bounds = array<i64: 1, 1, 256>}, {transform_indices = @transform_3, window_bounds = array<i64: 1, 16, 256>}]} {
    %c0 = arith.constant 0 : index
    %c0_0 = arith.constant 0 : index
    %c0_1 = arith.constant 0 : index
    %0 = vector.load %arg2[%c0, %c0_0, %c0_1] : memref<1x16x256xf32, #tpu.memory_space<vmem>>, vector<1x16x256xf32>
    %c0_2 = arith.constant 0 : index
    %c0_3 = arith.constant 0 : index
    %c0_4 = arith.constant 0 : index
    %1 = vector.load %arg3[%c0_2, %c0_3, %c0_4] : memref<1x1x256xf32, #tpu.memory_space<vmem>>, vector<1x1x256xf32>
    %cst = arith.constant 6.250000e-02 : f32
    %2 = vector.broadcast %cst : f32 to vector<1x1x256xf32>
    %3 = arith.mulf %1, %2 : vector<1x1x256xf32>
    %c0_5 = arith.constant 0 : index
    %c0_6 = arith.constant 0 : index
    %c0_7 = arith.constant 0 : index
    %4 = vector.load %arg4[%c0_5, %c0_6, %c0_7] : memref<1x1x256xf32, #tpu.memory_space<vmem>>, vector<1x1x256xf32>
    %cst_8 = arith.constant 6.250000e-02 : f32
    %5 = vector.broadcast %cst_8 : f32 to vector<1x1x256xf32>
    %6 = arith.mulf %4, %5 : vector<1x1x256xf32>
    %7 = arith.mulf %3, %3 : vector<1x1x256xf32>
    %8 = arith.subf %6, %7 : vector<1x1x256xf32>
    %cst_9 = arith.constant 0.000000e+00 : f32
    %9 = vector.broadcast %cst_9 : f32 to vector<1x1x256xf32>
    %10 = arith.maximumf %8, %9 : vector<1x1x256xf32>
    %11 = vector.broadcast %3 : vector<1x1x256xf32> to vector<1x16x256xf32>
    %12 = arith.subf %0, %11 : vector<1x16x256xf32>
    %cst_10 = arith.constant 9.99999974E-6 : f32
    %13 = vector.broadcast %cst_10 : f32 to vector<1x1x256xf32>
    %14 = arith.addf %10, %13 : vector<1x1x256xf32>
    %15 = math.rsqrt %14 : vector<1x1x256xf32>
    %16 = vector.broadcast %15 : vector<1x1x256xf32> to vector<1x16x256xf32>
    %17 = arith.mulf %12, %16 : vector<1x16x256xf32>
    %cst_11 = arith.constant 0.000000e+00 : f32
    %18 = vector.broadcast %cst_11 : f32 to vector<1x16x256xf32>
    %19 = arith.maximumf %17, %18 : vector<1x16x256xf32>
    %c0_12 = arith.constant 0 : index
    %c0_13 = arith.constant 0 : index
    %c0_14 = arith.constant 0 : index
    %20 = vector.load %arg5[%c0_12, %c0_13, %c0_14] : memref<1x16x256xf32, #tpu.memory_space<vmem>>, vector<1x16x256xf32>
    tpu.vector_store %arg5[%c0_12, %c0_13, %c0_14], %19 {strides = array<i32>} : memref<1x16x256xf32, #tpu.memory_space<vmem>>, vector<1x16x256xf32>,
    return
  }
  func.func @transform_0(%arg0: i32, %arg1: i32) -> (i32, i32, i32) {
    %c0_i32 = arith.constant 0 : i32
    %c0_i32_0 = arith.constant 0 : i32
    return %arg0, %arg1, %c0_i32 : i32, i32, i32
  }
  func.func @transform_1(%arg0: i32, %arg1: i32) -> (i32, i32, i32) {
    %c0_i32 = arith.constant 0 : i32
    %c0_i32_0 = arith.constant 0 : i32
    %c0_i32_1 = arith.constant 0 : i32
    return %arg0, %c0_i32, %c0_i32_0 : i32, i32, i32
  }
  func.func @transform_2(%arg0: i32, %arg1: i32) -> (i32, i32, i32) {
    %c0_i32 = arith.constant 0 : i32
    %c0_i32_0 = arith.constant 0 : i32
    %c0_i32_1 = arith.constant 0 : i32
    return %arg0, %c0_i32, %c0_i32_0 : i32, i32, i32
  }
  func.func @transform_3(%arg0: i32, %arg1: i32) -> (i32, i32, i32) {
    %c0_i32 = arith.constant 0 : i32
    %c0_i32_0 = arith.constant 0 : i32
    return %arg0, %arg1, %c0_i32 : i32, i32, i32
  }
}

module attributes {stable_mosaic.version = 11 : i64} {
  func.func @_matmul_bias_kernel(%arg0: i32, %arg1: i32, %arg2: i32, %arg3: memref<128x256xbf16, #tpu.memory_space<vmem>>, %arg4: memref<256x256xbf16, #tpu.memory_space<vmem>>, %arg5: memref<1x256xf32, #tpu.memory_space<vmem>>, %arg6: memref<128x256xf32, #tpu.memory_space<vmem>>, %arg7: memref<128x256xf32, #tpu.memory_space<vmem>>) attributes {dimension_semantics = [#tpu.dimension_semantics<parallel>, #tpu.dimension_semantics<parallel>, #tpu.dimension_semantics<arbitrary>], iteration_bounds = array<i64: 1, 1, 9>, scalar_prefetch = 0 : i64, scratch_operands = 1 : i64, tpu.core_type = #tpu.core_type<tc>, window_params = [{transform_indices = @transform_0, window_bounds = array<i64: 128, 256>}, {transform_indices = @transform_1, window_bounds = array<i64: 256, 256>}, {transform_indices = @transform_2, window_bounds = array<i64: 1, 256>}, {transform_indices = @transform_3, window_bounds = array<i64: 128, 256>}]} {
    %c0_i32 = arith.constant 0 : i32
    %0 = arith.cmpi eq, %arg2, %c0_i32 : i32
    %1 = arith.extui %0 : i1 to i32
    %c0_i32_0 = arith.constant 0 : i32
    %2 = arith.cmpi ne, %1, %c0_i32_0 : i32
    scf.if %2 {
      %cst_9 = arith.constant 0.000000e+00 : f32
      %12 = vector.broadcast %cst_9 : f32 to vector<128x256xf32>
      %c0_10 = arith.constant 0 : index
      %c0_11 = arith.constant 0 : index
      %13 = vector.load %arg7[%c0_10, %c0_11] : memref<128x256xf32, #tpu.memory_space<vmem>>, vector<128x256xf32>
      tpu.vector_store %arg7[%c0_10, %c0_11], %12 {strides = array<i32>} : memref<128x256xf32, #tpu.memory_space<vmem>>, vector<128x256xf32>,
    } else {
    }
    %c0 = arith.constant 0 : index
    %c0_1 = arith.constant 0 : index
    %3 = vector.load %arg7[%c0, %c0_1] : memref<128x256xf32, #tpu.memory_space<vmem>>, vector<128x256xf32>
    %c0_2 = arith.constant 0 : index
    %c0_3 = arith.constant 0 : index
    %4 = vector.load %arg3[%c0_2, %c0_3] : memref<128x256xbf16, #tpu.memory_space<vmem>>, vector<128x256xbf16>
    %c0_4 = arith.constant 0 : index
    %c0_5 = arith.constant 0 : index
    %5 = vector.load %arg4[%c0_4, %c0_5] : memref<256x256xbf16, #tpu.memory_space<vmem>>, vector<256x256xbf16>
    %cst = arith.constant dense<0.000000e+00> : vector<128x256xf32>
    %6 = tpu.matmul %4, %5, %cst {dimension_numbers = #tpu.dot_dimension_numbers<[1], [0], [0], [1], [0, 0, 1, 1], [], []>} : vector<128x256xbf16>, vector<256x256xbf16>, vector<128x256xf32> -> vector<128x256xf32>
    %7 = arith.addf %3, %6 : vector<128x256xf32>
    %c0_6 = arith.constant 0 : index
    %c0_7 = arith.constant 0 : index
    %8 = vector.load %arg7[%c0_6, %c0_7] : memref<128x256xf32, #tpu.memory_space<vmem>>, vector<128x256xf32>
    tpu.vector_store %arg7[%c0_6, %c0_7], %7 {strides = array<i32>} : memref<128x256xf32, #tpu.memory_space<vmem>>, vector<128x256xf32>,
    %c8_i32 = arith.constant 8 : i32
    %9 = arith.cmpi eq, %arg2, %c8_i32 : i32
    %10 = arith.extui %9 : i1 to i32
    %c0_i32_8 = arith.constant 0 : i32
    %11 = arith.cmpi ne, %10, %c0_i32_8 : i32
    scf.if %11 {
      %c0_9 = arith.constant 0 : index
      %c0_10 = arith.constant 0 : index
      %12 = vector.load %arg7[%c0_9, %c0_10] : memref<128x256xf32, #tpu.memory_space<vmem>>, vector<128x256xf32>
      %c0_11 = arith.constant 0 : index
      %c0_12 = arith.constant 0 : index
      %13 = vector.load %arg5[%c0_11, %c0_12] : memref<1x256xf32, #tpu.memory_space<vmem>>, vector<1x256xf32>
      %14 = vector.broadcast %13 : vector<1x256xf32> to vector<128x256xf32>
      %15 = arith.addf %12, %14 : vector<128x256xf32>
      %c0_13 = arith.constant 0 : index
      %c0_14 = arith.constant 0 : index
      %16 = vector.load %arg6[%c0_13, %c0_14] : memref<128x256xf32, #tpu.memory_space<vmem>>, vector<128x256xf32>
      tpu.vector_store %arg6[%c0_13, %c0_14], %15 {strides = array<i32>} : memref<128x256xf32, #tpu.memory_space<vmem>>, vector<128x256xf32>,
    } else {
    }
    return
  }
  func.func @transform_0(%arg0: i32, %arg1: i32, %arg2: i32) -> (i32, i32) {
    %c0_i32 = arith.constant 0 : i32
    return %arg0, %arg2 : i32, i32
  }
  func.func @transform_1(%arg0: i32, %arg1: i32, %arg2: i32) -> (i32, i32) {
    %c0_i32 = arith.constant 0 : i32
    return %arg2, %arg1 : i32, i32
  }
  func.func @transform_2(%arg0: i32, %arg1: i32, %arg2: i32) -> (i32, i32) {
    %c0_i32 = arith.constant 0 : i32
    %c0_i32_0 = arith.constant 0 : i32
    return %c0_i32, %arg1 : i32, i32
  }
  func.func @transform_3(%arg0: i32, %arg1: i32, %arg2: i32) -> (i32, i32) {
    %c0_i32 = arith.constant 0 : i32
    return %arg0, %arg1 : i32, i32
  }
}

module attributes {stable_mosaic.version = 11 : i64} {
  func.func @_in_apply_kernel(%arg0: i32, %arg1: i32, %arg2: memref<1x16x256xf32, #tpu.memory_space<vmem>>, %arg3: memref<1x1x256xf32, #tpu.memory_space<vmem>>, %arg4: memref<1x1x256xf32, #tpu.memory_space<vmem>>, %arg5: memref<1x16x256xf32, #tpu.memory_space<vmem>>, %arg6: memref<1x16x256xf32, #tpu.memory_space<vmem>>) attributes {dimension_semantics = [#tpu.dimension_semantics<parallel>, #tpu.dimension_semantics<parallel>], iteration_bounds = array<i64: 2, 1>, scalar_prefetch = 0 : i64, scratch_operands = 0 : i64, tpu.core_type = #tpu.core_type<tc>, window_params = [{transform_indices = @transform_0, window_bounds = array<i64: 1, 16, 256>}, {transform_indices = @transform_1, window_bounds = array<i64: 1, 1, 256>}, {transform_indices = @transform_2, window_bounds = array<i64: 1, 1, 256>}, {transform_indices = @transform_3, window_bounds = array<i64: 1, 16, 256>}, {transform_indices = @transform_4, window_bounds = array<i64: 1, 16, 256>}]} {
    %c0 = arith.constant 0 : index
    %c0_0 = arith.constant 0 : index
    %c0_1 = arith.constant 0 : index
    %0 = vector.load %arg2[%c0, %c0_0, %c0_1] : memref<1x16x256xf32, #tpu.memory_space<vmem>>, vector<1x16x256xf32>
    %c0_2 = arith.constant 0 : index
    %c0_3 = arith.constant 0 : index
    %c0_4 = arith.constant 0 : index
    %1 = vector.load %arg3[%c0_2, %c0_3, %c0_4] : memref<1x1x256xf32, #tpu.memory_space<vmem>>, vector<1x1x256xf32>
    %cst = arith.constant 6.250000e-02 : f32
    %2 = vector.broadcast %cst : f32 to vector<1x1x256xf32>
    %3 = arith.mulf %1, %2 : vector<1x1x256xf32>
    %c0_5 = arith.constant 0 : index
    %c0_6 = arith.constant 0 : index
    %c0_7 = arith.constant 0 : index
    %4 = vector.load %arg4[%c0_5, %c0_6, %c0_7] : memref<1x1x256xf32, #tpu.memory_space<vmem>>, vector<1x1x256xf32>
    %cst_8 = arith.constant 6.250000e-02 : f32
    %5 = vector.broadcast %cst_8 : f32 to vector<1x1x256xf32>
    %6 = arith.mulf %4, %5 : vector<1x1x256xf32>
    %7 = arith.mulf %3, %3 : vector<1x1x256xf32>
    %8 = arith.subf %6, %7 : vector<1x1x256xf32>
    %cst_9 = arith.constant 0.000000e+00 : f32
    %9 = vector.broadcast %cst_9 : f32 to vector<1x1x256xf32>
    %10 = arith.maximumf %8, %9 : vector<1x1x256xf32>
    %11 = vector.broadcast %3 : vector<1x1x256xf32> to vector<1x16x256xf32>
    %12 = arith.subf %0, %11 : vector<1x16x256xf32>
    %cst_10 = arith.constant 9.99999974E-6 : f32
    %13 = vector.broadcast %cst_10 : f32 to vector<1x1x256xf32>
    %14 = arith.addf %10, %13 : vector<1x1x256xf32>
    %15 = math.rsqrt %14 : vector<1x1x256xf32>
    %16 = vector.broadcast %15 : vector<1x1x256xf32> to vector<1x16x256xf32>
    %17 = arith.mulf %12, %16 : vector<1x16x256xf32>
    %c0_11 = arith.constant 0 : index
    %c0_12 = arith.constant 0 : index
    %c0_13 = arith.constant 0 : index
    %18 = vector.load %arg5[%c0_11, %c0_12, %c0_13] : memref<1x16x256xf32, #tpu.memory_space<vmem>>, vector<1x16x256xf32>
    %19 = arith.addf %17, %18 : vector<1x16x256xf32>
    %c0_14 = arith.constant 0 : index
    %c0_15 = arith.constant 0 : index
    %c0_16 = arith.constant 0 : index
    %20 = vector.load %arg6[%c0_14, %c0_15, %c0_16] : memref<1x16x256xf32, #tpu.memory_space<vmem>>, vector<1x16x256xf32>
    tpu.vector_store %arg6[%c0_14, %c0_15, %c0_16], %19 {strides = array<i32>} : memref<1x16x256xf32, #tpu.memory_space<vmem>>, vector<1x16x256xf32>,
    return
  }
  func.func @transform_0(%arg0: i32, %arg1: i32) -> (i32, i32, i32) {
    %c0_i32 = arith.constant 0 : i32
    %c0_i32_0 = arith.constant 0 : i32
    return %arg0, %arg1, %c0_i32 : i32, i32, i32
  }
  func.func @transform_1(%arg0: i32, %arg1: i32) -> (i32, i32, i32) {
    %c0_i32 = arith.constant 0 : i32
    %c0_i32_0 = arith.constant 0 : i32
    %c0_i32_1 = arith.constant 0 : i32
    return %arg0, %c0_i32, %c0_i32_0 : i32, i32, i32
  }
  func.func @transform_2(%arg0: i32, %arg1: i32) -> (i32, i32, i32) {
    %c0_i32 = arith.constant 0 : i32
    %c0_i32_0 = arith.constant 0 : i32
    %c0_i32_1 = arith.constant 0 : i32
    return %arg0, %c0_i32, %c0_i32_0 : i32, i32, i32
  }
  func.func @transform_3(%arg0: i32, %arg1: i32) -> (i32, i32, i32) {
    %c0_i32 = arith.constant 0 : i32
    %c0_i32_0 = arith.constant 0 : i32
    return %arg0, %arg1, %c0_i32 : i32, i32, i32
  }
  func.func @transform_4(%arg0: i32, %arg1: i32) -> (i32, i32, i32) {
    %c0_i32 = arith.constant 0 : i32
    %c0_i32_0 = arith.constant 0 : i32
    return %arg0, %arg1, %c0_i32 : i32, i32, i32
  }
}

module attributes {stable_mosaic.version = 11 : i64} {
  func.func @_matmul_bias_kernel(%arg0: i32, %arg1: i32, %arg2: i32, %arg3: memref<128x256xbf16, #tpu.memory_space<vmem>>, %arg4: memref<256x128xbf16, #tpu.memory_space<vmem>>, %arg5: memref<1x128xf32, #tpu.memory_space<vmem>>, %arg6: memref<128x128xf32, #tpu.memory_space<vmem>>, %arg7: memref<128x128xf32, #tpu.memory_space<vmem>>) attributes {dimension_semantics = [#tpu.dimension_semantics<parallel>, #tpu.dimension_semantics<parallel>, #tpu.dimension_semantics<arbitrary>], iteration_bounds = array<i64: 1, 1, 9>, scalar_prefetch = 0 : i64, scratch_operands = 1 : i64, tpu.core_type = #tpu.core_type<tc>, window_params = [{transform_indices = @transform_0, window_bounds = array<i64: 128, 256>}, {transform_indices = @transform_1, window_bounds = array<i64: 256, 128>}, {transform_indices = @transform_2, window_bounds = array<i64: 1, 128>}, {transform_indices = @transform_3, window_bounds = array<i64: 128, 128>}]} {
    %c0_i32 = arith.constant 0 : i32
    %0 = arith.cmpi eq, %arg2, %c0_i32 : i32
    %1 = arith.extui %0 : i1 to i32
    %c0_i32_0 = arith.constant 0 : i32
    %2 = arith.cmpi ne, %1, %c0_i32_0 : i32
    scf.if %2 {
      %cst_9 = arith.constant 0.000000e+00 : f32
      %12 = vector.broadcast %cst_9 : f32 to vector<128x128xf32>
      %c0_10 = arith.constant 0 : index
      %c0_11 = arith.constant 0 : index
      %13 = vector.load %arg7[%c0_10, %c0_11] : memref<128x128xf32, #tpu.memory_space<vmem>>, vector<128x128xf32>
      tpu.vector_store %arg7[%c0_10, %c0_11], %12 {strides = array<i32>} : memref<128x128xf32, #tpu.memory_space<vmem>>, vector<128x128xf32>,
    } else {
    }
    %c0 = arith.constant 0 : index
    %c0_1 = arith.constant 0 : index
    %3 = vector.load %arg7[%c0, %c0_1] : memref<128x128xf32, #tpu.memory_space<vmem>>, vector<128x128xf32>
    %c0_2 = arith.constant 0 : index
    %c0_3 = arith.constant 0 : index
    %4 = vector.load %arg3[%c0_2, %c0_3] : memref<128x256xbf16, #tpu.memory_space<vmem>>, vector<128x256xbf16>
    %c0_4 = arith.constant 0 : index
    %c0_5 = arith.constant 0 : index
    %5 = vector.load %arg4[%c0_4, %c0_5] : memref<256x128xbf16, #tpu.memory_space<vmem>>, vector<256x128xbf16>
    %cst = arith.constant dense<0.000000e+00> : vector<128x128xf32>
    %6 = tpu.matmul %4, %5, %cst {dimension_numbers = #tpu.dot_dimension_numbers<[1], [0], [0], [1], [0, 0, 1, 1], [], []>} : vector<128x256xbf16>, vector<256x128xbf16>, vector<128x128xf32> -> vector<128x128xf32>
    %7 = arith.addf %3, %6 : vector<128x128xf32>
    %c0_6 = arith.constant 0 : index
    %c0_7 = arith.constant 0 : index
    %8 = vector.load %arg7[%c0_6, %c0_7] : memref<128x128xf32, #tpu.memory_space<vmem>>, vector<128x128xf32>
    tpu.vector_store %arg7[%c0_6, %c0_7], %7 {strides = array<i32>} : memref<128x128xf32, #tpu.memory_space<vmem>>, vector<128x128xf32>,
    %c8_i32 = arith.constant 8 : i32
    %9 = arith.cmpi eq, %arg2, %c8_i32 : i32
    %10 = arith.extui %9 : i1 to i32
    %c0_i32_8 = arith.constant 0 : i32
    %11 = arith.cmpi ne, %10, %c0_i32_8 : i32
    scf.if %11 {
      %c0_9 = arith.constant 0 : index
      %c0_10 = arith.constant 0 : index
      %12 = vector.load %arg7[%c0_9, %c0_10] : memref<128x128xf32, #tpu.memory_space<vmem>>, vector<128x128xf32>
      %c0_11 = arith.constant 0 : index
      %c0_12 = arith.constant 0 : index
      %13 = vector.load %arg5[%c0_11, %c0_12] : memref<1x128xf32, #tpu.memory_space<vmem>>, vector<1x128xf32>
      %14 = vector.broadcast %13 : vector<1x128xf32> to vector<128x128xf32>
      %15 = arith.addf %12, %14 : vector<128x128xf32>
      %c0_13 = arith.constant 0 : index
      %c0_14 = arith.constant 0 : index
      %16 = vector.load %arg6[%c0_13, %c0_14] : memref<128x128xf32, #tpu.memory_space<vmem>>, vector<128x128xf32>
      tpu.vector_store %arg6[%c0_13, %c0_14], %15 {strides = array<i32>} : memref<128x128xf32, #tpu.memory_space<vmem>>, vector<128x128xf32>,
    } else {
    }
    return
  }
  func.func @transform_0(%arg0: i32, %arg1: i32, %arg2: i32) -> (i32, i32) {
    %c0_i32 = arith.constant 0 : i32
    return %arg0, %arg2 : i32, i32
  }
  func.func @transform_1(%arg0: i32, %arg1: i32, %arg2: i32) -> (i32, i32) {
    %c0_i32 = arith.constant 0 : i32
    return %arg2, %arg1 : i32, i32
  }
  func.func @transform_2(%arg0: i32, %arg1: i32, %arg2: i32) -> (i32, i32) {
    %c0_i32 = arith.constant 0 : i32
    %c0_i32_0 = arith.constant 0 : i32
    return %c0_i32, %arg1 : i32, i32
  }
  func.func @transform_3(%arg0: i32, %arg1: i32, %arg2: i32) -> (i32, i32) {
    %c0_i32 = arith.constant 0 : i32
    return %arg0, %arg1 : i32, i32
  }
}

module attributes {stable_mosaic.version = 11 : i64} {
  func.func @_matmul_bias_kernel(%arg0: i32, %arg1: i32, %arg2: i32, %arg3: memref<512x256xbf16, #tpu.memory_space<vmem>>, %arg4: memref<256x128xbf16, #tpu.memory_space<vmem>>, %arg5: memref<1x128xf32, #tpu.memory_space<vmem>>, %arg6: memref<512x128xf32, #tpu.memory_space<vmem>>, %arg7: memref<512x128xf32, #tpu.memory_space<vmem>>) attributes {dimension_semantics = [#tpu.dimension_semantics<parallel>, #tpu.dimension_semantics<parallel>, #tpu.dimension_semantics<arbitrary>], iteration_bounds = array<i64: 1, 1, 5>, scalar_prefetch = 0 : i64, scratch_operands = 1 : i64, tpu.core_type = #tpu.core_type<tc>, window_params = [{transform_indices = @transform_0, window_bounds = array<i64: 512, 256>}, {transform_indices = @transform_1, window_bounds = array<i64: 256, 128>}, {transform_indices = @transform_2, window_bounds = array<i64: 1, 128>}, {transform_indices = @transform_3, window_bounds = array<i64: 512, 128>}]} {
    %c0_i32 = arith.constant 0 : i32
    %0 = arith.cmpi eq, %arg2, %c0_i32 : i32
    %1 = arith.extui %0 : i1 to i32
    %c0_i32_0 = arith.constant 0 : i32
    %2 = arith.cmpi ne, %1, %c0_i32_0 : i32
    scf.if %2 {
      %cst_9 = arith.constant 0.000000e+00 : f32
      %12 = vector.broadcast %cst_9 : f32 to vector<512x128xf32>
      %c0_10 = arith.constant 0 : index
      %c0_11 = arith.constant 0 : index
      %13 = vector.load %arg7[%c0_10, %c0_11] : memref<512x128xf32, #tpu.memory_space<vmem>>, vector<512x128xf32>
      tpu.vector_store %arg7[%c0_10, %c0_11], %12 {strides = array<i32>} : memref<512x128xf32, #tpu.memory_space<vmem>>, vector<512x128xf32>,
    } else {
    }
    %c0 = arith.constant 0 : index
    %c0_1 = arith.constant 0 : index
    %3 = vector.load %arg7[%c0, %c0_1] : memref<512x128xf32, #tpu.memory_space<vmem>>, vector<512x128xf32>
    %c0_2 = arith.constant 0 : index
    %c0_3 = arith.constant 0 : index
    %4 = vector.load %arg3[%c0_2, %c0_3] : memref<512x256xbf16, #tpu.memory_space<vmem>>, vector<512x256xbf16>
    %c0_4 = arith.constant 0 : index
    %c0_5 = arith.constant 0 : index
    %5 = vector.load %arg4[%c0_4, %c0_5] : memref<256x128xbf16, #tpu.memory_space<vmem>>, vector<256x128xbf16>
    %cst = arith.constant dense<0.000000e+00> : vector<512x128xf32>
    %6 = tpu.matmul %4, %5, %cst {dimension_numbers = #tpu.dot_dimension_numbers<[1], [0], [0], [1], [0, 0, 1, 1], [], []>} : vector<512x256xbf16>, vector<256x128xbf16>, vector<512x128xf32> -> vector<512x128xf32>
    %7 = arith.addf %3, %6 : vector<512x128xf32>
    %c0_6 = arith.constant 0 : index
    %c0_7 = arith.constant 0 : index
    %8 = vector.load %arg7[%c0_6, %c0_7] : memref<512x128xf32, #tpu.memory_space<vmem>>, vector<512x128xf32>
    tpu.vector_store %arg7[%c0_6, %c0_7], %7 {strides = array<i32>} : memref<512x128xf32, #tpu.memory_space<vmem>>, vector<512x128xf32>,
    %c4_i32 = arith.constant 4 : i32
    %9 = arith.cmpi eq, %arg2, %c4_i32 : i32
    %10 = arith.extui %9 : i1 to i32
    %c0_i32_8 = arith.constant 0 : i32
    %11 = arith.cmpi ne, %10, %c0_i32_8 : i32
    scf.if %11 {
      %c0_9 = arith.constant 0 : index
      %c0_10 = arith.constant 0 : index
      %12 = vector.load %arg7[%c0_9, %c0_10] : memref<512x128xf32, #tpu.memory_space<vmem>>, vector<512x128xf32>
      %c0_11 = arith.constant 0 : index
      %c0_12 = arith.constant 0 : index
      %13 = vector.load %arg5[%c0_11, %c0_12] : memref<1x128xf32, #tpu.memory_space<vmem>>, vector<1x128xf32>
      %14 = vector.broadcast %13 : vector<1x128xf32> to vector<512x128xf32>
      %15 = arith.addf %12, %14 : vector<512x128xf32>
      %c0_13 = arith.constant 0 : index
      %c0_14 = arith.constant 0 : index
      %16 = vector.load %arg6[%c0_13, %c0_14] : memref<512x128xf32, #tpu.memory_space<vmem>>, vector<512x128xf32>
      tpu.vector_store %arg6[%c0_13, %c0_14], %15 {strides = array<i32>} : memref<512x128xf32, #tpu.memory_space<vmem>>, vector<512x128xf32>,
    } else {
    }
    return
  }
  func.func @transform_0(%arg0: i32, %arg1: i32, %arg2: i32) -> (i32, i32) {
    %c0_i32 = arith.constant 0 : i32
    return %arg0, %arg2 : i32, i32
  }
  func.func @transform_1(%arg0: i32, %arg1: i32, %arg2: i32) -> (i32, i32) {
    %c0_i32 = arith.constant 0 : i32
    return %arg2, %arg1 : i32, i32
  }
  func.func @transform_2(%arg0: i32, %arg1: i32, %arg2: i32) -> (i32, i32) {
    %c0_i32 = arith.constant 0 : i32
    %c0_i32_0 = arith.constant 0 : i32
    return %c0_i32, %arg1 : i32, i32
  }
  func.func @transform_3(%arg0: i32, %arg1: i32, %arg2: i32) -> (i32, i32) {
    %c0_i32 = arith.constant 0 : i32
    return %arg0, %arg1 : i32, i32
  }
}

module attributes {stable_mosaic.version = 11 : i64} {
  func.func @_matmul_bias_kernel(%arg0: i32, %arg1: i32, %arg2: i32, %arg3: memref<512x256xbf16, #tpu.memory_space<vmem>>, %arg4: memref<256x128xbf16, #tpu.memory_space<vmem>>, %arg5: memref<1x128xf32, #tpu.memory_space<vmem>>, %arg6: memref<512x128xf32, #tpu.memory_space<vmem>>, %arg7: memref<512x128xf32, #tpu.memory_space<vmem>>) attributes {dimension_semantics = [#tpu.dimension_semantics<parallel>, #tpu.dimension_semantics<parallel>, #tpu.dimension_semantics<arbitrary>], iteration_bounds = array<i64: 1, 1, 13>, scalar_prefetch = 0 : i64, scratch_operands = 1 : i64, tpu.core_type = #tpu.core_type<tc>, window_params = [{transform_indices = @transform_0, window_bounds = array<i64: 512, 256>}, {transform_indices = @transform_1, window_bounds = array<i64: 256, 128>}, {transform_indices = @transform_2, window_bounds = array<i64: 1, 128>}, {transform_indices = @transform_3, window_bounds = array<i64: 512, 128>}]} {
    %c0_i32 = arith.constant 0 : i32
    %0 = arith.cmpi eq, %arg2, %c0_i32 : i32
    %1 = arith.extui %0 : i1 to i32
    %c0_i32_0 = arith.constant 0 : i32
    %2 = arith.cmpi ne, %1, %c0_i32_0 : i32
    scf.if %2 {
      %cst_9 = arith.constant 0.000000e+00 : f32
      %12 = vector.broadcast %cst_9 : f32 to vector<512x128xf32>
      %c0_10 = arith.constant 0 : index
      %c0_11 = arith.constant 0 : index
      %13 = vector.load %arg7[%c0_10, %c0_11] : memref<512x128xf32, #tpu.memory_space<vmem>>, vector<512x128xf32>
      tpu.vector_store %arg7[%c0_10, %c0_11], %12 {strides = array<i32>} : memref<512x128xf32, #tpu.memory_space<vmem>>, vector<512x128xf32>,
    } else {
    }
    %c0 = arith.constant 0 : index
    %c0_1 = arith.constant 0 : index
    %3 = vector.load %arg7[%c0, %c0_1] : memref<512x128xf32, #tpu.memory_space<vmem>>, vector<512x128xf32>
    %c0_2 = arith.constant 0 : index
    %c0_3 = arith.constant 0 : index
    %4 = vector.load %arg3[%c0_2, %c0_3] : memref<512x256xbf16, #tpu.memory_space<vmem>>, vector<512x256xbf16>
    %c0_4 = arith.constant 0 : index
    %c0_5 = arith.constant 0 : index
    %5 = vector.load %arg4[%c0_4, %c0_5] : memref<256x128xbf16, #tpu.memory_space<vmem>>, vector<256x128xbf16>
    %cst = arith.constant dense<0.000000e+00> : vector<512x128xf32>
    %6 = tpu.matmul %4, %5, %cst {dimension_numbers = #tpu.dot_dimension_numbers<[1], [0], [0], [1], [0, 0, 1, 1], [], []>} : vector<512x256xbf16>, vector<256x128xbf16>, vector<512x128xf32> -> vector<512x128xf32>
    %7 = arith.addf %3, %6 : vector<512x128xf32>
    %c0_6 = arith.constant 0 : index
    %c0_7 = arith.constant 0 : index
    %8 = vector.load %arg7[%c0_6, %c0_7] : memref<512x128xf32, #tpu.memory_space<vmem>>, vector<512x128xf32>
    tpu.vector_store %arg7[%c0_6, %c0_7], %7 {strides = array<i32>} : memref<512x128xf32, #tpu.memory_space<vmem>>, vector<512x128xf32>,
    %c12_i32 = arith.constant 12 : i32
    %9 = arith.cmpi eq, %arg2, %c12_i32 : i32
    %10 = arith.extui %9 : i1 to i32
    %c0_i32_8 = arith.constant 0 : i32
    %11 = arith.cmpi ne, %10, %c0_i32_8 : i32
    scf.if %11 {
      %c0_9 = arith.constant 0 : index
      %c0_10 = arith.constant 0 : index
      %12 = vector.load %arg7[%c0_9, %c0_10] : memref<512x128xf32, #tpu.memory_space<vmem>>, vector<512x128xf32>
      %c0_11 = arith.constant 0 : index
      %c0_12 = arith.constant 0 : index
      %13 = vector.load %arg5[%c0_11, %c0_12] : memref<1x128xf32, #tpu.memory_space<vmem>>, vector<1x128xf32>
      %14 = vector.broadcast %13 : vector<1x128xf32> to vector<512x128xf32>
      %15 = arith.addf %12, %14 : vector<512x128xf32>
      %16 = math.tanh %15 : vector<512x128xf32>
      %c0_13 = arith.constant 0 : index
      %c0_14 = arith.constant 0 : index
      %17 = vector.load %arg6[%c0_13, %c0_14] : memref<512x128xf32, #tpu.memory_space<vmem>>, vector<512x128xf32>
      tpu.vector_store %arg6[%c0_13, %c0_14], %16 {strides = array<i32>} : memref<512x128xf32, #tpu.memory_space<vmem>>, vector<512x128xf32>,
    } else {
    }
    return
  }
  func.func @transform_0(%arg0: i32, %arg1: i32, %arg2: i32) -> (i32, i32) {
    %c0_i32 = arith.constant 0 : i32
    return %arg0, %arg2 : i32, i32
  }
  func.func @transform_1(%arg0: i32, %arg1: i32, %arg2: i32) -> (i32, i32) {
    %c0_i32 = arith.constant 0 : i32
    return %arg2, %arg1 : i32, i32
  }
  func.func @transform_2(%arg0: i32, %arg1: i32, %arg2: i32) -> (i32, i32) {
    %c0_i32 = arith.constant 0 : i32
    %c0_i32_0 = arith.constant 0 : i32
    return %c0_i32, %arg1 : i32, i32
  }
  func.func @transform_3(%arg0: i32, %arg1: i32, %arg2: i32) -> (i32, i32) {
    %c0_i32 = arith.constant 0 : i32
    return %arg0, %arg1 : i32, i32
  }
}

</mosaic_0001>

<bundles_post_ra>
// kernel: generator_resnet_forward.29
= control target key start
LH: loop header
LB: loop body
LE: loop exit
PB: predicated region body
PF: predicated region fallthrough
CT: control target
= control target key end

     0   :  { %s562_s9 = smov 0   ;;  %s564_s10 = smov 0   ;;  %s707_s0 = inlined_call_operand.vmem [shape: f32[2,256,64], index: 0, kind: input, shape index: {}]   ;;  %s708_s1 = inlined_call_operand.vmem [shape: f32[2,1,64], index: 1, kind: output, shape index: {0}]   ;;  %s709_s2 = inlined_call_operand.vmem [shape: f32[2,1,64], index: 2, kind: output, shape index: {1}]  }
   0x1   :  { %s566_s11 = smov 0  }
   0x2 LB: > { %s25_s12 = sadd.s32 1, %s540_s10  ;;  %p491_p0 = scmp.ge.s32.totalorder %s544_s11, 1  ;;  %s544_s11 = sphi %s566_s11, %s13_s11   ;;  %s540_s10 = sphi %s564_s10, %s711_s10   ;;  %s536_s9 = sphi %s562_s9, %s710_s9  }
   0x3   : > { %p27_p1 = scmp.ge.s32.totalorder %s25_s12, 2  ;;  %p134_p2 = scmp.lt.s32.totalorder %s544_s11, 3 }
   0x5   : > { %s713_s12 = smov (%p27_p1, %s25_s12), 0  ;;  %p135_p3 = pnand %p491_p0, %p134_p2 }
   0x6   : > { %p162_p4 = scmp.lt.s32.totalorder (!%p135_p3), %s536_s9, 1 }
   0x7   : > { %138 = sbr.rel (%p135_p3) target bundleno = 107 (0x6b), region = 24 }
   0xc   : > { %vm181_vm0 = vcmask 516096   ;;  %v546_v0 = vmov 0.0   ;;  %s715_s9 = smov (!%p162_p4, %s536_s9), 1  ;;  %vm217_vm1 = vcmask 523264  }
   0xd   : > { %182 = vst.msk [vmem:[#allocation2] sm:$0x1] %vm181_vm0, %v546_v0  ;;  %183 = vst.msk [vmem:[#allocation3] sm:$0x1] %vm181_vm0, %v546_v0  ;;  %s496_s13 = sshll.u32 %s715_s9, 8  ;;  %s173_s19 = scalar_lea.vmem %s708_s1, %s715_s9 }
   0xe   : > { %s588_s16 = scalar_lea.vmem %s707_s0, %s496_s13  ;;  %s176_s22 = scalar_lea.vmem %s709_s2, %s715_s9 }
   0xf   : > { %v184_v1 = vld [vmem:[%s588_s16] sm:$0xff]  ;;  %v185_v2 = vld [vmem:[%s588_s16 + $0x8] sm:$0xff]  ;;  %v186_v3 = vld [vmem:[%s588_s16 + $0x10] sm:$0xff] }
  0x10   : > { %v218_v4 = vsel %vm217_vm1, %v184_v1, 0.0  ;;  %v219_v5 = vsel %vm217_vm1, %v185_v2, 0.0  ;;  %v221_v6 = vsel %vm217_vm1, %v186_v3, 0.0  ;;  %v187_v7 = vld [vmem:[%s588_s16 + $0x18] sm:$0xff]  ;;  %v188_v10 = vld [vmem:[%s588_s16 + $0x20] sm:$0xff]  ;;  %v189_v13 = vld [vmem:[%s588_s16 + $0x28] sm:$0xff]  ;;  %v291_v28 = vmul.f32 %v184_v1, %v184_v1 }
  0x11   : > { %v220_v8 = vadd.f32 %v219_v5, %v218_v4  ;;  %v223_v9 = vsel %vm217_vm1, %v187_v7, 0.0  ;;  %v225_v12 = vsel %vm217_vm1, %v188_v10, 0.0  ;;  %v227_v15 = vsel %vm217_vm1, %v189_v13, 0.0  ;;  %v190_v16 = vld [vmem:[%s588_s16 + $0x30] sm:$0xff]  ;;  %v191_v19 = vld [vmem:[%s588_s16 + $0x38] sm:$0xff]  ;;  %v192_v22 = vld [vmem:[%s588_s16 + $0x40] sm:$0xff] }
  0x12   : > { %v229_v18 = vsel %vm217_vm1, %v190_v16, 0.0  ;;  %v231_v21 = vsel %vm217_vm1, %v191_v19, 0.0  ;;  %v233_v24 = vsel %vm217_vm1, %v192_v22, 0.0  ;;  %v193_v25 = vld [vmem:[%s588_s16 + $0x48] sm:$0xff]  ;;  %v292_v29 = vmul.f32 %v185_v2, %v185_v2  ;;  %v194_v31 = vld [vmem:[%s588_s16 + $0x50] sm:$0xff]  ;;  %v195_v33 = vld [vmem:[%s588_s16 + $0x58] sm:$0xff] }
  0x13   : > { %v222_v11 = vadd.f32 %v221_v6, %v220_v8  ;;  %v235_v27 = vsel %vm217_vm1, %v193_v25, 0.0  ;;  %v293_v30 = vmul.f32 %v186_v3, %v186_v3  ;;  %v237_v34 = vsel %vm217_vm1, %v194_v31, 0.0  ;;  %v196_v42 = vld [vmem:[%s588_s16 + $0x60] sm:$0xff]  ;;  %v197_v48 = vld [vmem:[%s588_s16 + $0x68] sm:$0xff]  ;;  %v198_v54 = vld [vmem:[%s588_s16 + $0x70] sm:$0xff] }
  0x14   : > { %v294_v35 = vmul.f32 %v187_v7, %v187_v7  ;;  %v239_v37 = vsel %vm217_vm1, %v195_v33, 0.0  ;;  %v295_v38 = vmul.f32 %v188_v10, %v188_v10  ;;  %v323_v39 = vsel %vm217_vm1, %v291_v28, 0.0  ;;  %v199_v60 = vld [vmem:[%s588_s16 + $0x78] sm:$0xff]  ;;  %v200_v2 = vld [vmem:[%s588_s16 + $0x80] sm:$0xff]  ;;  %v201_v8 = vld [vmem:[%s588_s16 + $0x88] sm:$0xff] }
  0x15   : > { %v224_v14 = vadd.f32 %v223_v9, %v222_v11  ;;  %v324_v40 = vsel %vm217_vm1, %v292_v29, 0.0  ;;  %v326_v41 = vsel %vm217_vm1, %v293_v30, 0.0  ;;  %v241_v45 = vsel %vm217_vm1, %v196_v42, 0.0 }
  0x16   : > { %v325_v44 = vadd.f32 %v324_v40, %v323_v39  ;;  %v296_v46 = vmul.f32 %v189_v13, %v189_v13  ;;  %v328_v47 = vsel %vm217_vm1, %v294_v35, 0.0  ;;  %v243_v51 = vsel %vm217_vm1, %v197_v48, 0.0 }
  0x17   : > { %v226_v17 = vadd.f32 %v225_v12, %v224_v14  ;;  %v297_v52 = vmul.f32 %v190_v16, %v190_v16  ;;  %v330_v53 = vsel %vm217_vm1, %v295_v38, 0.0  ;;  %v245_v57 = vsel %vm217_vm1, %v198_v54, 0.0  ;;  %v202_v14 = vld [vmem:[%s588_s16 + $0x90] sm:$0xff] }
  0x18   : > { %v327_v50 = vadd.f32 %v326_v41, %v325_v44  ;;  %v298_v58 = vmul.f32 %v191_v19, %v191_v19  ;;  %v332_v59 = vsel %vm217_vm1, %v296_v46, 0.0  ;;  %v247_v63 = vsel %vm217_vm1, %v199_v60, 0.0  ;;  %v206_v38 = vld [vmem:[%s588_s16 + $0xb0] sm:$0xff]  ;;  %v207_v44 = vld [vmem:[%s588_s16 + $0xb8] sm:$0xff] }
  0x19   : > { %v228_v20 = vadd.f32 %v227_v15, %v226_v17  ;;  %v299_v0 = vmul.f32 %v192_v22, %v192_v22  ;;  %v334_v1 = vsel %vm217_vm1, %v297_v52, 0.0  ;;  %v249_v5 = vsel %vm217_vm1, %v200_v2, 0.0 }
  0x1a   : > { %v329_v56 = vadd.f32 %v328_v47, %v327_v50  ;;  %v300_v6 = vmul.f32 %v193_v25, %v193_v25  ;;  %v336_v7 = vsel %vm217_vm1, %v298_v58, 0.0  ;;  %v251_v11 = vsel %vm217_vm1, %v201_v8, 0.0  ;;  %v208_v50 = vld [vmem:[%s588_s16 + $0xc0] sm:$0xff] }
  0x1b   : > { %v230_v23 = vadd.f32 %v229_v18, %v228_v20  ;;  %v301_v12 = vmul.f32 %v194_v31, %v194_v31  ;;  %v338_v13 = vsel %vm217_vm1, %v299_v0, 0.0  ;;  %v253_v17 = vsel %vm217_vm1, %v202_v14, 0.0  ;;  %v203_v20 = vld [vmem:[%s588_s16 + $0x98] sm:$0xff] }
  0x1c   : > { %v331_v62 = vadd.f32 %v330_v53, %v329_v56  ;;  %v302_v18 = vmul.f32 %v195_v33, %v195_v33  ;;  %v340_v19 = vsel %vm217_vm1, %v300_v6, 0.0  ;;  %v304_v30 = vmul.f32 %v197_v48, %v197_v48  ;;  %v209_v56 = vld [vmem:[%s588_s16 + $0xc8] sm:$0xff] }
  0x1d   : > { %v232_v26 = vadd.f32 %v231_v21, %v230_v23  ;;  %v255_v23 = vsel %vm217_vm1, %v203_v20, 0.0  ;;  %v342_v25 = vsel %vm217_vm1, %v301_v12, 0.0  ;;  %v261_v41 = vsel %vm217_vm1, %v206_v38, 0.0 }
  0x1e   : > { %v333_v4 = vadd.f32 %v332_v59, %v331_v62  ;;  %v344_v31 = vsel %vm217_vm1, %v302_v18, 0.0  ;;  %v263_v47 = vsel %vm217_vm1, %v207_v44, 0.0  ;;  %v307_v48 = vmul.f32 %v200_v2, %v200_v2  ;;  %v210_v62 = vld [vmem:[%s588_s16 + $0xd0] sm:$0xff] }
  0x1f   : > { %v234_v32 = vadd.f32 %v233_v24, %v232_v26  ;;  %v303_v24 = vmul.f32 %v196_v42, %v196_v42  ;;  %v204_v26 = vld [vmem:[%s588_s16 + $0xa0] sm:$0xff]  ;;  %v306_v42 = vmul.f32 %v199_v60, %v199_v60  ;;  %v265_v53 = vsel %vm217_vm1, %v208_v50, 0.0 }
  0x20   : > { %v335_v10 = vadd.f32 %v334_v1, %v333_v4  ;;  %v257_v29 = vsel %vm217_vm1, %v204_v26, 0.0  ;;  %v267_v59 = vsel %vm217_vm1, %v209_v56, 0.0  ;;  %v309_v60 = vmul.f32 %v202_v14, %v202_v14  ;;  %v211_v4 = vld [vmem:[%s588_s16 + $0xd8] sm:$0xff] }
  0x21   : > { %v236_v36 = vadd.f32 %v235_v27, %v234_v32  ;;  %v205_v32 = vld [vmem:[%s588_s16 + $0xa8] sm:$0xff]  ;;  %v269_v1 = vsel %vm217_vm1, %v210_v62, 0.0  ;;  %v310_v2 = vmul.f32 %v203_v20, %v203_v20  ;;  %v313_v20 = vmul.f32 %v206_v38, %v206_v38 }
  0x22   : > { %v337_v16 = vadd.f32 %v336_v7, %v335_v10  ;;  %v259_v35 = vsel %vm217_vm1, %v205_v32, 0.0  ;;  %v271_v7 = vsel %vm217_vm1, %v211_v4, 0.0  ;;  %v212_v10 = vld [vmem:[%s588_s16 + $0xe0] sm:$0xff]  ;;  %v312_v14 = vmul.f32 %v205_v32, %v205_v32 }
  0x23   : > { %v238_v43 = vadd.f32 %v237_v34, %v236_v36  ;;  %v305_v36 = vmul.f32 %v198_v54, %v198_v54  ;;  %v308_v54 = vmul.f32 %v201_v8, %v201_v8  ;;  %v311_v8 = vmul.f32 %v204_v26, %v204_v26 }
  0x24   : > { %v339_v22 = vadd.f32 %v338_v13, %v337_v16  ;;  %v273_v13 = vsel %vm217_vm1, %v212_v10, 0.0  ;;  %v213_v16 = vld [vmem:[%s588_s16 + $0xe8] sm:$0xff]  ;;  %v314_v26 = vmul.f32 %v207_v44, %v207_v44  ;;  %v315_v32 = vmul.f32 %v208_v50, %v208_v50 }
  0x25   : > { %v240_v49 = vadd.f32 %v239_v37, %v238_v43  ;;  %v346_v37 = vsel %vm217_vm1, %v303_v24, 0.0  ;;  %v348_v43 = vsel %vm217_vm1, %v304_v30, 0.0  ;;  %v318_v44 = vmul.f32 %v211_v4, %v211_v4 }
  0x26   : > { %v341_v28 = vadd.f32 %v340_v19, %v339_v22  ;;  %v275_v19 = vsel %vm217_vm1, %v213_v16, 0.0  ;;  %v214_v22 = vld [vmem:[%s588_s16 + $0xf0] sm:$0xff] }
  0x27   : > { %v242_v55 = vadd.f32 %v241_v45, %v240_v49  ;;  %v350_v49 = vsel %vm217_vm1, %v305_v36, 0.0  ;;  %v316_v36 = vmul.f32 %v209_v56, %v209_v56  ;;  %v321_v56 = vmul.f32 %v214_v22, %v214_v22 }
  0x28   : > { %v343_v34 = vadd.f32 %v342_v25, %v341_v28  ;;  %v277_v25 = vsel %vm217_vm1, %v214_v22, 0.0  ;;  %v215_v28 = vld [vmem:[%s588_s16 + $0xf8] sm:$0xff] }
  0x29   : > { %v244_v61 = vadd.f32 %v243_v51, %v242_v55  ;;  %v352_v55 = vsel %vm217_vm1, %v306_v42, 0.0 }
  0x2a   : > { %v345_v40 = vadd.f32 %v344_v31, %v343_v34  ;;  %v279_v31 = vsel %vm217_vm1, %v215_v28, 0.0 }
  0x2b   : > { %v246_v3 = vadd.f32 %v245_v57, %v244_v61  ;;  %v354_v61 = vsel %vm217_vm1, %v307_v48, 0.0  ;;  %v319_v48 = vmul.f32 %v212_v10, %v212_v10 }
  0x2c   : > { %v347_v46 = vadd.f32 %v346_v37, %v345_v40  ;;  %v368_v37 = vsel %vm217_vm1, %v314_v26, 0.0  ;;  %v317_v40 = vmul.f32 %v210_v62, %v210_v62 }
  0x2d   : > { %v248_v9 = vadd.f32 %v247_v63, %v246_v3  ;;  %v356_v3 = vsel %vm217_vm1, %v308_v54, 0.0 }
  0x2e   : > { %v349_v52 = vadd.f32 %v348_v43, %v347_v46 }
  0x2f   : > { %v250_v15 = vadd.f32 %v249_v5, %v248_v9  ;;  %v358_v9 = vsel %vm217_vm1, %v309_v60, 0.0  ;;  %v216_v60 = vld [vmem:[#allocation2] sm:$0x1] }
  0x30   : > { %v351_v58 = vadd.f32 %v350_v49, %v349_v52  ;;  %v374_v49 = vsel %vm217_vm1, %v317_v40, 0.0  ;;  %v320_v52 = vmul.f32 %v213_v16, %v213_v16 }
  0x31   : > { %v252_v21 = vadd.f32 %v251_v11, %v250_v15  ;;  %v360_v15 = vsel %vm217_vm1, %v310_v2, 0.0 }
  0x32   : > { %v353_v0 = vadd.f32 %v352_v55, %v351_v58  ;;  %v380_v62 = vsel %vm217_vm1, %v320_v52, 0.0 }
  0x33   : > { %v254_v27 = vadd.f32 %v253_v17, %v252_v21  ;;  %v362_v21 = vsel %vm217_vm1, %v311_v8, 0.0 }
  0x34   : > { %v355_v6 = vadd.f32 %v354_v61, %v353_v0  ;;  %v322_v61 = vmul.f32 %v215_v28, %v215_v28 }
  0x35   : > { %v256_v33 = vadd.f32 %v255_v23, %v254_v27  ;;  %v364_v27 = vsel %vm217_vm1, %v312_v14, 0.0 }
  0x36   : > { %v357_v12 = vadd.f32 %v356_v3, %v355_v6  ;;  %v384_v4 = vsel %vm217_vm1, %v322_v61, 0.0 }
  0x37   : > { %v258_v39 = vadd.f32 %v257_v29, %v256_v33  ;;  %v366_v33 = vsel %vm217_vm1, %v313_v20, 0.0 }
  0x38   : > { %v359_v18 = vadd.f32 %v358_v9, %v357_v12 }
  0x39   : > { %v260_v45 = vadd.f32 %v259_v35, %v258_v39 }
  0x3a   : > { %v361_v24 = vadd.f32 %v360_v15, %v359_v18 }
  0x3b   : > { %v262_v51 = vadd.f32 %v261_v41, %v260_v45  ;;  %v370_v41 = vsel %vm217_vm1, %v315_v32, 0.0  ;;  %v372_v45 = vsel %vm217_vm1, %v316_v36, 0.0 }
  0x3c   : > { %v363_v30 = vadd.f32 %v362_v21, %v361_v24 }
  0x3d   : > { %v264_v57 = vadd.f32 %v263_v47, %v262_v51 }
  0x3e   : > { %v365_v35 = vadd.f32 %v364_v27, %v363_v30 }
  0x3f   : > { %v266_v63 = vadd.f32 %v265_v53, %v264_v57  ;;  %v376_v53 = vsel %vm217_vm1, %v318_v44, 0.0  ;;  %v378_v57 = vsel %vm217_vm1, %v319_v48, 0.0 }
  0x40   : > { %v367_v39 = vadd.f32 %v366_v33, %v365_v35 }
  0x41   : > { %v268_v5 = vadd.f32 %v267_v59, %v266_v63 }
  0x42   : > { %v369_v43 = vadd.f32 %v368_v37, %v367_v39 }
  0x43   : > { %v270_v11 = vadd.f32 %v269_v1, %v268_v5  ;;  %v382_v1 = vsel %vm217_vm1, %v321_v56, 0.0 }
  0x44   : > { %v371_v47 = vadd.f32 %v370_v41, %v369_v43 }
  0x45   : > { %v272_v17 = vadd.f32 %v271_v7, %v270_v11 }
  0x46   : > { %v373_v51 = vadd.f32 %v372_v45, %v371_v47 }
  0x47   : > { %v274_v23 = vadd.f32 %v273_v13, %v272_v17  ;;  %v290_v13 = vld [vmem:[#allocation3] sm:$0x1] }
  0x48   : > { %v375_v55 = vadd.f32 %v374_v49, %v373_v51 }
  0x49   : > { %v276_v29 = vadd.f32 %v275_v19, %v274_v23 }
  0x4a   : > { %v377_v59 = vadd.f32 %v376_v53, %v375_v55 }
  0x4b   : > { %v278_v34 = vadd.f32 %v277_v25, %v276_v29 }
  0x4c   : > { %v379_v0 = vadd.f32 %v378_v57, %v377_v59 }
  0x4d   : > { %v280_v38 = vadd.f32 %v279_v31, %v278_v34 }
  0x4e   : > { %v381_v3 = vadd.f32 %v380_v62, %v379_v0 }
  0x4f   : > { %v281_v42 = vrot.slane %v280_v38, 4 }
  0x50   : > { %v383_v5 = vadd.f32 %v382_v1, %v381_v3 }
  0x51   : > { %v282_v46 = vadd.f32 %v281_v42, %v280_v38 }
  0x52   : > { %v385_v6 = vadd.f32 %v384_v4, %v383_v5 }
  0x53   : > { %v283_v50 = vrot.slane %v282_v46, 2 }
  0x54   : > { %v386_v7 = vrot.slane %v385_v6, 4 }
  0x55   : > { %v284_v54 = vadd.f32 %v283_v50, %v282_v46 }
  0x56   : > { %v387_v8 = vadd.f32 %v386_v7, %v385_v6 }
  0x57   : > { %v285_v58 = vrot.slane %v284_v54, 1 }
  0x58   : > { %v388_v10 = vrot.slane %v387_v8, 2 }
  0x59   : > { %v286_v63 = vadd.f32 %v285_v58, %v284_v54 }
  0x5a   : > { %v389_v11 = vadd.f32 %v388_v10, %v387_v8 }
  0x5b   : > { %v287_v2 = vadd.f32 %v286_v63, %v216_v60 }
  0x5c   : > { %v390_v12 = vrot.slane %v389_v11, 1 }
  0x5d   : > { %289 = vst.msk [vmem:[#allocation2] sm:$0x1] %vm181_vm0, %v287_v2 }
  0x5e   : > { %v391_v14 = vadd.f32 %v390_v12, %v389_v11 }
  0x60   : > { %v392_v15 = vadd.f32 %v391_v14, %v290_v13 }
  0x62   : > { %393 = vst.msk [vmem:[#allocation3] sm:$0x1] %vm181_vm0, %v392_v15 }
  0x64   : > { %v397_v9 = vld [vmem:[#allocation2] sm:$0x1] }
  0x65   : > { %398 = vst.msk [vmem:[%s173_s19] sm:$0x1] %vm181_vm0, %v397_v9 }
  0x69   : > { %v399_v16 = vld [vmem:[#allocation3] sm:$0x1] }
  0x6a   : > { %400 = vst.msk [vmem:[%s176_s22] sm:$0x1] %vm181_vm0, %v399_v16 }
  0x6b PF: > { %s13_s11 = sadd.s32 1, %s544_s11   ;;  %s710_s9 = smov %s540_s10 }
  0x6c   : > { %p10_p5 = scmp.ge.s32.totalorder %s13_s11, 4   ;;  %s711_s10 = smov %s713_s12 }
  0x6e   :  { %12 = sbr.rel (!%p10_p5) target bundleno = 2 (0x2), region = 74 }

// kernel: generator_resnet_forward.28
= control target key start
LH: loop header
LB: loop body
LE: loop exit
PB: predicated region body
PF: predicated region fallthrough
CT: control target
= control target key end

     0   :  { %v1508_v0 = vmov 0   ;;  %s2062_s1 = inlined_call_operand.vmem [shape: bf16[256,128], index: 1, kind: input, shape index: {}]   ;;  %s2063_s0 = inlined_call_operand.vmem [shape: bf16[512,256], index: 0, kind: input, shape index: {}]   ;;  %s2064_s2 = inlined_call_operand.vmem [shape: f32[1,128], index: 2, kind: input, shape index: {}]   ;;  %s2065_s3 = inlined_call_operand.vmem [shape: f32[512,128], index: 3, kind: output, shape index: {}]  }
   0x1   :  { %659 = vmatprep.subr.bf16.mxu0 %v1508_v0  ;;  %1363 = vmatprep.subr.bf16.mxu1 %v1508_v0  ;;  %v1396_v1 = vld [vmem:[%s2062_s1 + $0x38] sm:$0xff]   ;;  %v1397_v2 = vld [vmem:[%s2062_s1 + $0x30] sm:$0xff]   ;;  %v1398_v3 = vld [vmem:[%s2062_s1 + $0x28] sm:$0xff]  }
   0x2   :  { %660 = vmatpush1.bf16.msra.mxu0 %v1396_v1  ;;  %1379 = vmatpush1.bf16.msra.mxu1 %v1396_v1  ;;  %v1399_v4 = vld [vmem:[%s2062_s1 + $0x20] sm:$0xff]   ;;  %v1400_v5 = vld [vmem:[%s2062_s1 + $0x18] sm:$0xff]   ;;  %v1401_v7 = vld [vmem:[%s2062_s1 + $0x10] sm:$0xff]  }
   0x3   :  { %661 = vmatprep.subr.bf16.mxu0 %v1508_v0  ;;  %1364 = vmatprep.subr.bf16.mxu1 %v1508_v0  ;;  %v1414_v6 = vld [vmem:[%s2063_s0 + $0x4] ss:$8 sps:$4 sm:$0xff]   ;;  %v1404_v11 = vld [vmem:[%s2062_s1 + $0x78] sm:$0xff]   ;;  %v1405_v12 = vld [vmem:[%s2062_s1 + $0x70] sm:$0xff]  }
   0x4   :  { %v1417_v8 = vld [vmem:[%s2063_s0 + $0x104] ss:$8 sps:$4 sm:$0xff]   ;;  %691 = vmatprep.mubr.bf16.mxu0 %v1414_v6  ;;  %v1408_v15 = vld [vmem:[%s2062_s1 + $0x58] sm:$0xff]   ;;  %v1409_v16 = vld [vmem:[%s2062_s1 + $0x50] sm:$0xff]  }
   0x5   :  { %819 = vmatprep.mubr.bf16.mxu1 %v1417_v8  ;;  %v1402_v9 = vld [vmem:[%s2062_s1 + $0x8] sm:$0xff]   ;;  %v1403_v10 = vld [vmem:[%s2062_s1] sm:$0xff]   ;;  %v1418_v21 = vld [vmem:[%s2063_s0 + $0x14] ss:$8 sps:$4 sm:$0xff]  }
   0x6   :  { %662 = vmatpush1.bf16.msra.mxu0 %v1397_v2  ;;  %1380 = vmatpush1.bf16.msra.mxu1 %v1397_v2  ;;  %v1406_v13 = vld [vmem:[%s2062_s1 + $0x68] sm:$0xff]   ;;  %v1407_v14 = vld [vmem:[%s2062_s1 + $0x60] sm:$0xff]   ;;  %v1420_v22 = vld [vmem:[%s2063_s0 + $0x114] ss:$8 sps:$4 sm:$0xff]  }
   0x7   :  { %663 = vmatprep.subr.bf16.mxu0 %v1508_v0  ;;  %1365 = vmatprep.subr.bf16.mxu1 %v1508_v0  ;;  %v1410_v17 = vld [vmem:[%s2062_s1 + $0x48] sm:$0xff]   ;;  %v1411_v18 = vld [vmem:[%s2062_s1 + $0x40] sm:$0xff]   ;;  %v1422_v23 = vld [vmem:[%s2063_s0 + $0x10] ss:$8 sps:$4 sm:$0xff]  }
   0x8   :  { %v1412_v19 = vld [vmem:[%s2063_s0] ss:$8 sps:$4 sm:$0xff]   ;;  %v1423_v24 = vld [vmem:[%s2063_s0 + $0x110] ss:$8 sps:$4 sm:$0xff]   ;;  %v1424_v25 = vld [vmem:[%s2063_s0 + $0x24] ss:$8 sps:$4 sm:$0xff]  }
   0x9   :  { %v1415_v20 = vld [vmem:[%s2063_s0 + $0x100] ss:$8 sps:$4 sm:$0xff]   ;;  %v1426_v26 = vld [vmem:[%s2063_s0 + $0x124] ss:$8 sps:$4 sm:$0xff]   ;;  %v1430_v29 = vld [vmem:[%s2063_s0 + $0x34] ss:$8 sps:$4 sm:$0xff]  }
   0xa   :  { %664 = vmatpush1.bf16.msra.mxu0 %v1398_v3  ;;  %1381 = vmatpush1.bf16.msra.mxu1 %v1398_v3  ;;  %v1428_v27 = vld [vmem:[%s2063_s0 + $0x20] ss:$8 sps:$4 sm:$0xff]   ;;  %v1432_v30 = vld [vmem:[%s2063_s0 + $0x134] ss:$8 sps:$4 sm:$0xff]   ;;  %v1434_v31 = vld [vmem:[%s2063_s0 + $0x30] ss:$8 sps:$4 sm:$0xff]  }
   0xb   :  { %665 = vmatprep.subr.bf16.mxu0 %v1508_v0  ;;  %1366 = vmatprep.subr.bf16.mxu1 %v1508_v0  ;;  %v1429_v28 = vld [vmem:[%s2063_s0 + $0x120] ss:$8 sps:$4 sm:$0xff]   ;;  %v1435_v32 = vld [vmem:[%s2063_s0 + $0x130] ss:$8 sps:$4 sm:$0xff]   ;;  %v1436_v33 = vld [vmem:[%s2063_s0 + $0x44] ss:$8 sps:$4 sm:$0xff]  }
   0xc   :  { %v1438_v34 = vld [vmem:[%s2063_s0 + $0x144] ss:$8 sps:$4 sm:$0xff]   ;;  %v1440_v35 = vld [vmem:[%s2063_s0 + $0x40] ss:$8 sps:$4 sm:$0xff]   ;;  %v1442_v37 = vld [vmem:[%s2063_s0 + $0x54] ss:$8 sps:$4 sm:$0xff]  }
   0xd   :  { %v1441_v36 = vld [vmem:[%s2063_s0 + $0x140] ss:$8 sps:$4 sm:$0xff]   ;;  %v1444_v38 = vld [vmem:[%s2063_s0 + $0x154] ss:$8 sps:$4 sm:$0xff]   ;;  %v1446_v39 = vld [vmem:[%s2063_s0 + $0x50] ss:$8 sps:$4 sm:$0xff]  }
   0xe   :  { %666 = vmatpush1.bf16.msra.mxu0 %v1399_v4  ;;  %1382 = vmatpush1.bf16.msra.mxu1 %v1399_v4  ;;  %v1447_v40 = vld [vmem:[%s2063_s0 + $0x150] ss:$8 sps:$4 sm:$0xff]   ;;  %v1448_v41 = vld [vmem:[%s2063_s0 + $0x64] ss:$8 sps:$4 sm:$0xff]   ;;  %v1452_v43 = vld [vmem:[%s2063_s0 + $0x60] ss:$8 sps:$4 sm:$0xff]  }
   0xf   :  { %667 = vmatprep.subr.bf16.mxu0 %v1508_v0  ;;  %1367 = vmatprep.subr.bf16.mxu1 %v1508_v0  ;;  %v1450_v42 = vld [vmem:[%s2063_s0 + $0x164] ss:$8 sps:$4 sm:$0xff]   ;;  %v1453_v44 = vld [vmem:[%s2063_s0 + $0x160] ss:$8 sps:$4 sm:$0xff]   ;;  %v1454_v45 = vld [vmem:[%s2063_s0 + $0x74] ss:$8 sps:$4 sm:$0xff]  }
  0x10   :  { %v1456_v46 = vld [vmem:[%s2063_s0 + $0x174] ss:$8 sps:$4 sm:$0xff]   ;;  %v1458_v47 = vld [vmem:[%s2063_s0 + $0x70] ss:$8 sps:$4 sm:$0xff]   ;;  %v1460_v49 = vld [vmem:[%s2063_s0 + $0x84] ss:$8 sps:$4 sm:$0xff]  }
  0x11   :  { %v1459_v48 = vld [vmem:[%s2063_s0 + $0x170] ss:$8 sps:$4 sm:$0xff]   ;;  %v1462_v50 = vld [vmem:[%s2063_s0 + $0x184] ss:$8 sps:$4 sm:$0xff]   ;;  %v1464_v51 = vld [vmem:[%s2063_s0 + $0x80] ss:$8 sps:$4 sm:$0xff]  }
  0x12   :  { %668 = vmatpush1.bf16.msra.mxu0 %v1400_v5  ;;  %1383 = vmatpush1.bf16.msra.mxu1 %v1400_v5  ;;  %v1465_v52 = vld [vmem:[%s2063_s0 + $0x180] ss:$8 sps:$4 sm:$0xff]   ;;  %v1466_v53 = vld [vmem:[%s2063_s0 + $0x94] ss:$8 sps:$4 sm:$0xff]   ;;  %v1470_v55 = vld [vmem:[%s2063_s0 + $0x90] ss:$8 sps:$4 sm:$0xff]  }
  0x13   :  { %669 = vmatprep.subr.bf16.mxu0 %v1508_v0  ;;  %1368 = vmatprep.subr.bf16.mxu1 %v1508_v0  ;;  %v1468_v54 = vld [vmem:[%s2063_s0 + $0x194] ss:$8 sps:$4 sm:$0xff]   ;;  %v1471_v56 = vld [vmem:[%s2063_s0 + $0x190] ss:$8 sps:$4 sm:$0xff]   ;;  %v1472_v57 = vld [vmem:[%s2063_s0 + $0xa4] ss:$8 sps:$4 sm:$0xff]  }
  0x14   :  { %v1474_v58 = vld [vmem:[%s2063_s0 + $0x1a4] ss:$8 sps:$4 sm:$0xff]   ;;  %v1476_v59 = vld [vmem:[%s2063_s0 + $0xa0] ss:$8 sps:$4 sm:$0xff]   ;;  %v1478_v61 = vld [vmem:[%s2063_s0 + $0xb4] ss:$8 sps:$4 sm:$0xff]  }
  0x15   :  { %v1477_v60 = vld [vmem:[%s2063_s0 + $0x1a0] ss:$8 sps:$4 sm:$0xff]   ;;  %v1480_v62 = vld [vmem:[%s2063_s0 + $0x1b4] ss:$8 sps:$4 sm:$0xff]   ;;  %v1482_v63 = vld [vmem:[%s2063_s0 + $0xb0] ss:$8 sps:$4 sm:$0xff]  }
  0x16   :  { %670 = vmatpush1.bf16.msra.mxu0 %v1401_v7  ;;  %1384 = vmatpush1.bf16.msra.mxu1 %v1401_v7  ;;  %v1484_v1 = vld [vmem:[%s2063_s0 + $0xc4] ss:$8 sps:$4 sm:$0xff]   ;;  %v1488_v3 = vld [vmem:[%s2063_s0 + $0xc0] ss:$8 sps:$4 sm:$0xff]   ;;  %v1490_v5 = vld [vmem:[%s2063_s0 + $0xd4] ss:$8 sps:$4 sm:$0xff]  }
  0x17   :  { %671 = vmatprep.subr.bf16.mxu0 %v1508_v0  ;;  %1369 = vmatprep.subr.bf16.mxu1 %v1508_v0  ;;  %v1486_v2 = vld [vmem:[%s2063_s0 + $0x1c4] ss:$8 sps:$4 sm:$0xff]   ;;  %v1489_v4 = vld [vmem:[%s2063_s0 + $0x1c0] ss:$8 sps:$4 sm:$0xff]   ;;  %v1492_v6 = vld [vmem:[%s2063_s0 + $0x1d4] ss:$8 sps:$4 sm:$0xff]  }
  0x18   :  { %v1494_v7 = vld [vmem:[%s2063_s0 + $0xd0] ss:$8 sps:$4 sm:$0xff]  }
  0x19   :  { %v1495_v8 = vld [vmem:[%s2063_s0 + $0x1d0] ss:$8 sps:$4 sm:$0xff]  }
  0x1a   :  { %672 = vmatpush1.bf16.msra.mxu0 %v1402_v9  ;;  %1385 = vmatpush1.bf16.msra.mxu1 %v1402_v9  ;;  %v1496_v9 = vld [vmem:[%s2063_s0 + $0xe4] ss:$8 sps:$4 sm:$0xff]  }
  0x1b   :  { %673 = vmatprep.subr.bf16.mxu0 %v1508_v0  ;;  %1370 = vmatprep.subr.bf16.mxu1 %v1508_v0 }
  0x1e   :  { %674 = vmatpush1.bf16.msra.mxu0 %v1403_v10  ;;  %1386 = vmatpush1.bf16.msra.mxu1 %v1403_v10  ;;  %v1498_v10 = vld [vmem:[%s2063_s0 + $0x1e4] ss:$8 sps:$4 sm:$0xff]  }
  0x1f   :  { %675 = vmatprep.subr.bf16.mxu0 %v1508_v0  ;;  %1371 = vmatprep.subr.bf16.mxu1 %v1508_v0 }
  0x22   :  { %676 = vmatpush2.bf16.msra.mxu0 %v1404_v11  ;;  %1387 = vmatpush2.bf16.msra.mxu1 %v1404_v11  ;;  %v1500_v11 = vld [vmem:[%s2063_s0 + $0xe0] ss:$8 sps:$4 sm:$0xff]  }
  0x23   :  { %677 = vmatprep.subr.bf16.mxu0 %v1508_v0  ;;  %1372 = vmatprep.subr.bf16.mxu1 %v1508_v0 }
  0x26   :  { %678 = vmatpush2.bf16.msra.mxu0 %v1405_v12  ;;  %1388 = vmatpush2.bf16.msra.mxu1 %v1405_v12  ;;  %v1501_v12 = vld [vmem:[%s2063_s0 + $0x1e0] ss:$8 sps:$4 sm:$0xff]  }
  0x27   :  { %679 = vmatprep.subr.bf16.mxu0 %v1508_v0  ;;  %1373 = vmatprep.subr.bf16.mxu1 %v1508_v0 }
  0x2a   :  { %680 = vmatpush2.bf16.msra.mxu0 %v1406_v13  ;;  %1389 = vmatpush2.bf16.msra.mxu1 %v1406_v13  ;;  %v1502_v13 = vld [vmem:[%s2063_s0 + $0xf4] ss:$8 sps:$4 sm:$0xff]  }
  0x2b   :  { %681 = vmatprep.subr.bf16.mxu0 %v1508_v0  ;;  %1374 = vmatprep.subr.bf16.mxu1 %v1508_v0 }
  0x2e   :  { %682 = vmatpush2.bf16.msra.mxu0 %v1407_v14  ;;  %1390 = vmatpush2.bf16.msra.mxu1 %v1407_v14  ;;  %v1504_v14 = vld [vmem:[%s2063_s0 + $0x1f4] ss:$8 sps:$4 sm:$0xff]  }
  0x2f   :  { %683 = vmatprep.subr.bf16.mxu0 %v1508_v0  ;;  %1375 = vmatprep.subr.bf16.mxu1 %v1508_v0 }
  0x32   :  { %684 = vmatpush2.bf16.msra.mxu0 %v1408_v15  ;;  %1391 = vmatpush2.bf16.msra.mxu1 %v1408_v15  ;;  %v1506_v15 = vld [vmem:[%s2063_s0 + $0xf0] ss:$8 sps:$4 sm:$0xff]  }
  0x33   :  { %685 = vmatprep.subr.bf16.mxu0 %v1508_v0  ;;  %1376 = vmatprep.subr.bf16.mxu1 %v1508_v0 }
  0x36   :  { %686 = vmatpush2.bf16.msra.mxu0 %v1409_v16  ;;  %1392 = vmatpush2.bf16.msra.mxu1 %v1409_v16  ;;  %v1507_v16 = vld [vmem:[%s2063_s0 + $0x1f0] ss:$8 sps:$4 sm:$0xff]  }
  0x37   :  { %687 = vmatprep.subr.bf16.mxu0 %v1508_v0  ;;  %1377 = vmatprep.subr.bf16.mxu1 %v1508_v0 }
  0x3a   :  { %688 = vmatpush2.bf16.msra.mxu0 %v1410_v17  ;;  %1393 = vmatpush2.bf16.msra.mxu1 %v1410_v17  ;;  %v1804_v17 = vld [vmem:[%s2064_s2] ss:$0 sm:$0xff] }
  0x3b   :  { %689 = vmatprep.subr.bf16.mxu0 %v1508_v0  ;;  %1378 = vmatprep.subr.bf16.mxu1 %v1508_v0  ;;  %v1483_v0 = vld [vmem:[%s2063_s0 + $0x1b0] ss:$8 sps:$4 sm:$0xff]  }
  0x3e   :  { %690 = vmatpush2.bf16.msra.mxu0 %v1411_v18  ;;  %1394 = vmatpush2.bf16.msra.mxu1 %v1411_v18 }
  0x41   :  { %692 = vmatmul.mubr.bf16.vlgmr.msra.gmra.mxu0 %v1412_v19  ;;  %820 = vmatmul.mubr.bf16.vlgmr.msra.gmra.mxu1 %v1415_v20 }
  0x42   :  { %699 = vmatprep.mubr.bf16.mxu0 %v1418_v21  ;;  %827 = vmatprep.mubr.bf16.mxu1 %v1420_v22 }
  0x49   :  { %700 = vmatmul.mubr.bf16.gmra.mxu0 %v1422_v23  ;;  %828 = vmatmul.mubr.bf16.gmra.mxu1 %v1423_v24 }
  0x4a   :  { %707 = vmatprep.mubr.bf16.mxu0 %v1424_v25  ;;  %835 = vmatprep.mubr.bf16.mxu1 %v1426_v26 }
  0x51   :  { %708 = vmatmul.mubr.bf16.gmra.mxu0 %v1428_v27  ;;  %836 = vmatmul.mubr.bf16.gmra.mxu1 %v1429_v28 }
  0x52   :  { %715 = vmatprep.mubr.bf16.mxu0 %v1430_v29  ;;  %843 = vmatprep.mubr.bf16.mxu1 %v1432_v30 }
  0x59   :  { %716 = vmatmul.mubr.bf16.gmra.mxu0 %v1434_v31  ;;  %844 = vmatmul.mubr.bf16.gmra.mxu1 %v1435_v32 }
  0x5a   :  { %723 = vmatprep.mubr.bf16.mxu0 %v1436_v33  ;;  %851 = vmatprep.mubr.bf16.mxu1 %v1438_v34 }
  0x61   :  { %724 = vmatmul.mubr.bf16.gmra.mxu0 %v1440_v35  ;;  %852 = vmatmul.mubr.bf16.gmra.mxu1 %v1441_v36 }
  0x62   :  { %731 = vmatprep.mubr.bf16.mxu0 %v1442_v37  ;;  %859 = vmatprep.mubr.bf16.mxu1 %v1444_v38 }
  0x69   :  { %732 = vmatmul.mubr.bf16.gmra.mxu0 %v1446_v39  ;;  %860 = vmatmul.mubr.bf16.gmra.mxu1 %v1447_v40 }
  0x6a   :  { %739 = vmatprep.mubr.bf16.mxu0 %v1448_v41  ;;  %867 = vmatprep.mubr.bf16.mxu1 %v1450_v42 }
  0x71   :  { %740 = vmatmul.mubr.bf16.gmra.mxu0 %v1452_v43  ;;  %868 = vmatmul.mubr.bf16.gmra.mxu1 %v1453_v44 }
  0x72   :  { %747 = vmatprep.mubr.bf16.mxu0 %v1454_v45  ;;  %875 = vmatprep.mubr.bf16.mxu1 %v1456_v46 }
  0x79   :  { %748 = vmatmul.mubr.bf16.gmra.mxu0 %v1458_v47  ;;  %876 = vmatmul.mubr.bf16.gmra.mxu1 %v1459_v48 }
  0x7a   :  { %755 = vmatprep.mubr.bf16.mxu0 %v1460_v49  ;;  %883 = vmatprep.mubr.bf16.mxu1 %v1462_v50 }
  0x81   :  { %756 = vmatmul.mubr.bf16.gmra.mxu0 %v1464_v51  ;;  %884 = vmatmul.mubr.bf16.gmra.mxu1 %v1465_v52 }
  0x82   :  { %763 = vmatprep.mubr.bf16.mxu0 %v1466_v53  ;;  %891 = vmatprep.mubr.bf16.mxu1 %v1468_v54 }
  0x89   :  { %764 = vmatmul.mubr.bf16.gmra.mxu0 %v1470_v55  ;;  %892 = vmatmul.mubr.bf16.gmra.mxu1 %v1471_v56 }
  0x8a   :  { %771 = vmatprep.mubr.bf16.mxu0 %v1472_v57  ;;  %899 = vmatprep.mubr.bf16.mxu1 %v1474_v58 }
  0x91   :  { %772 = vmatmul.mubr.bf16.gmra.mxu0 %v1476_v59  ;;  %900 = vmatmul.mubr.bf16.gmra.mxu1 %v1477_v60 }
  0x92   :  { %779 = vmatprep.mubr.bf16.mxu0 %v1478_v61  ;;  %907 = vmatprep.mubr.bf16.mxu1 %v1480_v62 }
  0x99   :  { %780 = vmatmul.mubr.bf16.gmra.mxu0 %v1482_v63  ;;  %908 = vmatmul.mubr.bf16.gmra.mxu1 %v1483_v0 }
  0x9a   :  { %787 = vmatprep.mubr.bf16.mxu0 %v1484_v1  ;;  %915 = vmatprep.mubr.bf16.mxu1 %v1486_v2 }
  0xa1   :  { %788 = vmatmul.mubr.bf16.gmra.mxu0 %v1488_v3  ;;  %916 = vmatmul.mubr.bf16.gmra.mxu1 %v1489_v4 }
  0xa2   :  { %795 = vmatprep.mubr.bf16.mxu0 %v1490_v5  ;;  %923 = vmatprep.mubr.bf16.mxu1 %v1492_v6 }
  0xa9   :  { %796 = vmatmul.mubr.bf16.gmra.mxu0 %v1494_v7  ;;  %924 = vmatmul.mubr.bf16.gmra.mxu1 %v1495_v8 }
  0xaa   :  { %803 = vmatprep.mubr.bf16.mxu0 %v1496_v9  ;;  %931 = vmatprep.mubr.bf16.mxu1 %v1498_v10 }
  0xb1   :  { %804 = vmatmul.mubr.bf16.gmra.mxu0 %v1500_v11  ;;  %932 = vmatmul.mubr.bf16.gmra.mxu1 %v1501_v12 }
  0xb2   :  { %811 = vmatprep.mubr.bf16.mxu0 %v1502_v13  ;;  %939 = vmatprep.mubr.bf16.mxu1 %v1504_v14 }
  0xb9   :  { %812 = vmatmul.mubr.bf16.gmra.mxu0 %v1506_v15  ;;  %940 = vmatmul.mubr.bf16.gmra.mxu1 %v1507_v16 }
 0x101   :  { %v693_v18 = vpop.f32.mrf.mxu0  ;;  %v821_v19 = vpop.f32.mrf.mxu1 }
 0x102   :  { %v1150_v20 = vadd.f32 %v1804_v17, %v693_v18  ;;  %v1182_v21 = vadd.f32 %v1804_v17, %v821_v19 }
 0x103   :  { %v695_v22 = vpop.f32.mrf.mxu0  ;;  %v823_v23 = vpop.f32.mrf.mxu1 }
 0x104   :  { %1214 = vst [vmem:[%s2065_s3] sm:$0xff] %v1150_v20  ;;  %1246 = vst [vmem:[%s2065_s3 + $0x100] sm:$0xff] %v1182_v21 }
 0x105   :  { %v696_v24 = vpop.f32.mrf.mxu0  ;;  %v824_v25 = vpop.f32.mrf.mxu1 }
 0x106   :  { %v1151_v26 = vadd.f32 %v1804_v17, %v696_v24  ;;  %v1183_v27 = vadd.f32 %v1804_v17, %v824_v25 }
 0x107   :  { %v698_v28 = vpop.f32.mrf.mxu0  ;;  %v826_v29 = vpop.f32.mrf.mxu1 }
 0x108   :  { %1215 = vst [vmem:[%s2065_s3 + $0x8] sm:$0xff] %v1151_v26  ;;  %1247 = vst [vmem:[%s2065_s3 + $0x108] sm:$0xff] %v1183_v27 }
 0x109   :  { %v701_v30 = vpop.f32.mrf.mxu0  ;;  %v829_v31 = vpop.f32.mrf.mxu1 }
 0x10a   :  { %v1152_v32 = vadd.f32 %v1804_v17, %v701_v30  ;;  %v1184_v33 = vadd.f32 %v1804_v17, %v829_v31 }
 0x10b   :  { %v703_v34 = vpop.f32.mrf.mxu0  ;;  %v831_v35 = vpop.f32.mrf.mxu1 }
 0x10c   :  { %1216 = vst [vmem:[%s2065_s3 + $0x10] sm:$0xff] %v1152_v32  ;;  %1248 = vst [vmem:[%s2065_s3 + $0x110] sm:$0xff] %v1184_v33 }
 0x10d   :  { %v704_v36 = vpop.f32.mrf.mxu0  ;;  %v832_v37 = vpop.f32.mrf.mxu1 }
 0x10e   :  { %v1153_v38 = vadd.f32 %v1804_v17, %v704_v36  ;;  %v1185_v39 = vadd.f32 %v1804_v17, %v832_v37 }
 0x10f   :  { %v706_v40 = vpop.f32.mrf.mxu0  ;;  %v834_v41 = vpop.f32.mrf.mxu1 }
 0x110   :  { %1217 = vst [vmem:[%s2065_s3 + $0x18] sm:$0xff] %v1153_v38  ;;  %1249 = vst [vmem:[%s2065_s3 + $0x118] sm:$0xff] %v1185_v39 }
 0x111   :  { %v709_v42 = vpop.f32.mrf.mxu0  ;;  %v837_v43 = vpop.f32.mrf.mxu1 }
 0x112   :  { %v1154_v44 = vadd.f32 %v1804_v17, %v709_v42  ;;  %v1186_v45 = vadd.f32 %v1804_v17, %v837_v43 }
 0x113   :  { %v711_v46 = vpop.f32.mrf.mxu0  ;;  %v839_v47 = vpop.f32.mrf.mxu1 }
 0x114   :  { %1218 = vst [vmem:[%s2065_s3 + $0x20] sm:$0xff] %v1154_v44  ;;  %1250 = vst [vmem:[%s2065_s3 + $0x120] sm:$0xff] %v1186_v45 }
 0x115   :  { %v712_v48 = vpop.f32.mrf.mxu0  ;;  %v840_v49 = vpop.f32.mrf.mxu1 }
 0x116   :  { %v1155_v50 = vadd.f32 %v1804_v17, %v712_v48  ;;  %v1187_v51 = vadd.f32 %v1804_v17, %v840_v49 }
 0x117   :  { %v714_v52 = vpop.f32.mrf.mxu0  ;;  %v842_v53 = vpop.f32.mrf.mxu1 }
 0x118   :  { %1219 = vst [vmem:[%s2065_s3 + $0x28] sm:$0xff] %v1155_v50  ;;  %1251 = vst [vmem:[%s2065_s3 + $0x128] sm:$0xff] %v1187_v51 }
 0x119   :  { %v717_v54 = vpop.f32.mrf.mxu0  ;;  %v845_v55 = vpop.f32.mrf.mxu1 }
 0x11a   :  { %v1156_v56 = vadd.f32 %v1804_v17, %v717_v54  ;;  %v1188_v57 = vadd.f32 %v1804_v17, %v845_v55 }
 0x11b   :  { %v719_v58 = vpop.f32.mrf.mxu0  ;;  %v847_v59 = vpop.f32.mrf.mxu1 }
 0x11c   :  { %1220 = vst [vmem:[%s2065_s3 + $0x30] sm:$0xff] %v1156_v56  ;;  %1252 = vst [vmem:[%s2065_s3 + $0x130] sm:$0xff] %v1188_v57 }
 0x11d   :  { %v720_v60 = vpop.f32.mrf.mxu0  ;;  %v848_v61 = vpop.f32.mrf.mxu1 }
 0x11e   :  { %v1157_v62 = vadd.f32 %v1804_v17, %v720_v60  ;;  %v1189_v63 = vadd.f32 %v1804_v17, %v848_v61 }
 0x11f   :  { %v722_v0 = vpop.f32.mrf.mxu0  ;;  %v850_v1 = vpop.f32.mrf.mxu1 }
 0x120   :  { %1221 = vst [vmem:[%s2065_s3 + $0x38] sm:$0xff] %v1157_v62  ;;  %1253 = vst [vmem:[%s2065_s3 + $0x138] sm:$0xff] %v1189_v63 }
 0x121   :  { %v725_v2 = vpop.f32.mrf.mxu0  ;;  %v853_v3 = vpop.f32.mrf.mxu1 }
 0x122   :  { %v1158_v4 = vadd.f32 %v1804_v17, %v725_v2  ;;  %v1190_v5 = vadd.f32 %v1804_v17, %v853_v3 }
 0x123   :  { %v727_v6 = vpop.f32.mrf.mxu0  ;;  %v855_v7 = vpop.f32.mrf.mxu1 }
 0x124   :  { %1222 = vst [vmem:[%s2065_s3 + $0x40] sm:$0xff] %v1158_v4  ;;  %1254 = vst [vmem:[%s2065_s3 + $0x140] sm:$0xff] %v1190_v5 }
 0x125   :  { %v728_v8 = vpop.f32.mrf.mxu0  ;;  %v856_v9 = vpop.f32.mrf.mxu1 }
 0x126   :  { %v1159_v10 = vadd.f32 %v1804_v17, %v728_v8  ;;  %v1191_v11 = vadd.f32 %v1804_v17, %v856_v9 }
 0x127   :  { %v730_v12 = vpop.f32.mrf.mxu0  ;;  %v858_v13 = vpop.f32.mrf.mxu1 }
 0x128   :  { %1223 = vst [vmem:[%s2065_s3 + $0x48] sm:$0xff] %v1159_v10  ;;  %1255 = vst [vmem:[%s2065_s3 + $0x148] sm:$0xff] %v1191_v11 }
 0x129   :  { %v733_v14 = vpop.f32.mrf.mxu0  ;;  %v861_v15 = vpop.f32.mrf.mxu1 }
 0x12a   :  { %v1160_v16 = vadd.f32 %v1804_v17, %v733_v14  ;;  %v1192_v18 = vadd.f32 %v1804_v17, %v861_v15 }
 0x12b   :  { %v735_v19 = vpop.f32.mrf.mxu0  ;;  %v863_v20 = vpop.f32.mrf.mxu1 }
 0x12c   :  { %1224 = vst [vmem:[%s2065_s3 + $0x50] sm:$0xff] %v1160_v16  ;;  %1256 = vst [vmem:[%s2065_s3 + $0x150] sm:$0xff] %v1192_v18 }
 0x12d   :  { %v736_v21 = vpop.f32.mrf.mxu0  ;;  %v864_v22 = vpop.f32.mrf.mxu1 }
 0x12e   :  { %v1161_v23 = vadd.f32 %v1804_v17, %v736_v21  ;;  %v1193_v24 = vadd.f32 %v1804_v17, %v864_v22 }
 0x12f   :  { %v738_v25 = vpop.f32.mrf.mxu0  ;;  %v866_v26 = vpop.f32.mrf.mxu1 }
 0x130   :  { %1225 = vst [vmem:[%s2065_s3 + $0x58] sm:$0xff] %v1161_v23  ;;  %1257 = vst [vmem:[%s2065_s3 + $0x158] sm:$0xff] %v1193_v24 }
 0x131   :  { %v741_v27 = vpop.f32.mrf.mxu0  ;;  %v869_v28 = vpop.f32.mrf.mxu1 }
 0x132   :  { %v1162_v29 = vadd.f32 %v1804_v17, %v741_v27  ;;  %v1194_v30 = vadd.f32 %v1804_v17, %v869_v28 }
 0x133   :  { %v743_v31 = vpop.f32.mrf.mxu0  ;;  %v871_v32 = vpop.f32.mrf.mxu1 }
 0x134   :  { %1226 = vst [vmem:[%s2065_s3 + $0x60] sm:$0xff] %v1162_v29  ;;  %1258 = vst [vmem:[%s2065_s3 + $0x160] sm:$0xff] %v1194_v30 }
 0x135   :  { %v744_v33 = vpop.f32.mrf.mxu0  ;;  %v872_v34 = vpop.f32.mrf.mxu1 }
 0x136   :  { %v1163_v35 = vadd.f32 %v1804_v17, %v744_v33  ;;  %v1195_v36 = vadd.f32 %v1804_v17, %v872_v34 }
 0x137   :  { %v746_v37 = vpop.f32.mrf.mxu0  ;;  %v874_v38 = vpop.f32.mrf.mxu1 }
 0x138   :  { %1227 = vst [vmem:[%s2065_s3 + $0x68] sm:$0xff] %v1163_v35  ;;  %1259 = vst [vmem:[%s2065_s3 + $0x168] sm:$0xff] %v1195_v36 }
 0x139   :  { %v749_v39 = vpop.f32.mrf.mxu0  ;;  %v877_v40 = vpop.f32.mrf.mxu1 }
 0x13a   :  { %v1164_v41 = vadd.f32 %v1804_v17, %v749_v39  ;;  %v1196_v42 = vadd.f32 %v1804_v17, %v877_v40 }
 0x13b   :  { %v751_v43 = vpop.f32.mrf.mxu0  ;;  %v879_v44 = vpop.f32.mrf.mxu1 }
 0x13c   :  { %1228 = vst [vmem:[%s2065_s3 + $0x70] sm:$0xff] %v1164_v41  ;;  %1260 = vst [vmem:[%s2065_s3 + $0x170] sm:$0xff] %v1196_v42 }
 0x13d   :  { %v752_v45 = vpop.f32.mrf.mxu0  ;;  %v880_v46 = vpop.f32.mrf.mxu1 }
 0x13e   :  { %v1165_v47 = vadd.f32 %v1804_v17, %v752_v45  ;;  %v1197_v48 = vadd.f32 %v1804_v17, %v880_v46 }
 0x13f   :  { %v754_v49 = vpop.f32.mrf.mxu0  ;;  %v882_v50 = vpop.f32.mrf.mxu1 }
 0x140   :  { %1229 = vst [vmem:[%s2065_s3 + $0x78] sm:$0xff] %v1165_v47  ;;  %1261 = vst [vmem:[%s2065_s3 + $0x178] sm:$0xff] %v1197_v48 }
 0x141   :  { %v757_v51 = vpop.f32.mrf.mxu0  ;;  %v885_v52 = vpop.f32.mrf.mxu1 }
 0x142   :  { %v1166_v53 = vadd.f32 %v1804_v17, %v757_v51  ;;  %v1198_v54 = vadd.f32 %v1804_v17, %v885_v52 }
 0x143   :  { %v759_v55 = vpop.f32.mrf.mxu0  ;;  %v887_v56 = vpop.f32.mrf.mxu1 }
 0x144   :  { %1230 = vst [vmem:[%s2065_s3 + $0x80] sm:$0xff] %v1166_v53  ;;  %1262 = vst [vmem:[%s2065_s3 + $0x180] sm:$0xff] %v1198_v54 }
 0x145   :  { %v760_v57 = vpop.f32.mrf.mxu0  ;;  %v888_v58 = vpop.f32.mrf.mxu1 }
 0x146   :  { %v1167_v59 = vadd.f32 %v1804_v17, %v760_v57  ;;  %v1199_v60 = vadd.f32 %v1804_v17, %v888_v58 }
 0x147   :  { %v762_v61 = vpop.f32.mrf.mxu0  ;;  %v890_v62 = vpop.f32.mrf.mxu1 }
 0x148   :  { %1231 = vst [vmem:[%s2065_s3 + $0x88] sm:$0xff] %v1167_v59  ;;  %1263 = vst [vmem:[%s2065_s3 + $0x188] sm:$0xff] %v1199_v60 }
 0x149   :  { %v765_v63 = vpop.f32.mrf.mxu0  ;;  %v893_v0 = vpop.f32.mrf.mxu1 }
 0x14a   :  { %v1168_v1 = vadd.f32 %v1804_v17, %v765_v63  ;;  %v1200_v2 = vadd.f32 %v1804_v17, %v893_v0 }
 0x14b   :  { %v767_v3 = vpop.f32.mrf.mxu0  ;;  %v895_v4 = vpop.f32.mrf.mxu1 }
 0x14c   :  { %1232 = vst [vmem:[%s2065_s3 + $0x90] sm:$0xff] %v1168_v1  ;;  %1264 = vst [vmem:[%s2065_s3 + $0x190] sm:$0xff] %v1200_v2 }
 0x14d   :  { %v768_v5 = vpop.f32.mrf.mxu0  ;;  %v896_v6 = vpop.f32.mrf.mxu1 }
 0x14e   :  { %v1169_v7 = vadd.f32 %v1804_v17, %v768_v5  ;;  %v1201_v8 = vadd.f32 %v1804_v17, %v896_v6 }
 0x14f   :  { %v770_v9 = vpop.f32.mrf.mxu0  ;;  %v898_v10 = vpop.f32.mrf.mxu1 }
 0x150   :  { %1233 = vst [vmem:[%s2065_s3 + $0x98] sm:$0xff] %v1169_v7  ;;  %1265 = vst [vmem:[%s2065_s3 + $0x198] sm:$0xff] %v1201_v8 }
 0x151   :  { %v773_v11 = vpop.f32.mrf.mxu0  ;;  %v901_v12 = vpop.f32.mrf.mxu1 }
 0x152   :  { %v1170_v13 = vadd.f32 %v1804_v17, %v773_v11  ;;  %v1202_v14 = vadd.f32 %v1804_v17, %v901_v12 }
 0x153   :  { %v775_v15 = vpop.f32.mrf.mxu0  ;;  %v903_v16 = vpop.f32.mrf.mxu1 }
 0x154   :  { %1234 = vst [vmem:[%s2065_s3 + $0xa0] sm:$0xff] %v1170_v13  ;;  %1266 = vst [vmem:[%s2065_s3 + $0x1a0] sm:$0xff] %v1202_v14 }
 0x155   :  { %v776_v18 = vpop.f32.mrf.mxu0  ;;  %v904_v19 = vpop.f32.mrf.mxu1 }
 0x156   :  { %v1171_v20 = vadd.f32 %v1804_v17, %v776_v18  ;;  %v1203_v21 = vadd.f32 %v1804_v17, %v904_v19 }
 0x157   :  { %v778_v22 = vpop.f32.mrf.mxu0  ;;  %v906_v23 = vpop.f32.mrf.mxu1 }
 0x158   :  { %1235 = vst [vmem:[%s2065_s3 + $0xa8] sm:$0xff] %v1171_v20  ;;  %1267 = vst [vmem:[%s2065_s3 + $0x1a8] sm:$0xff] %v1203_v21 }
 0x159   :  { %v781_v24 = vpop.f32.mrf.mxu0  ;;  %v909_v25 = vpop.f32.mrf.mxu1 }
 0x15a   :  { %v1172_v26 = vadd.f32 %v1804_v17, %v781_v24  ;;  %v1204_v27 = vadd.f32 %v1804_v17, %v909_v25 }
 0x15b   :  { %v783_v28 = vpop.f32.mrf.mxu0  ;;  %v911_v29 = vpop.f32.mrf.mxu1 }
 0x15c   :  { %1236 = vst [vmem:[%s2065_s3 + $0xb0] sm:$0xff] %v1172_v26  ;;  %1268 = vst [vmem:[%s2065_s3 + $0x1b0] sm:$0xff] %v1204_v27 }
 0x15d   :  { %v784_v30 = vpop.f32.mrf.mxu0  ;;  %v912_v31 = vpop.f32.mrf.mxu1 }
 0x15e   :  { %v1173_v32 = vadd.f32 %v1804_v17, %v784_v30  ;;  %v1205_v33 = vadd.f32 %v1804_v17, %v912_v31 }
 0x15f   :  { %v786_v34 = vpop.f32.mrf.mxu0  ;;  %v914_v35 = vpop.f32.mrf.mxu1 }
 0x160   :  { %1237 = vst [vmem:[%s2065_s3 + $0xb8] sm:$0xff] %v1173_v32  ;;  %1269 = vst [vmem:[%s2065_s3 + $0x1b8] sm:$0xff] %v1205_v33 }
 0x161   :  { %v789_v36 = vpop.f32.mrf.mxu0  ;;  %v917_v37 = vpop.f32.mrf.mxu1 }
 0x162   :  { %v1174_v38 = vadd.f32 %v1804_v17, %v789_v36  ;;  %v1206_v39 = vadd.f32 %v1804_v17, %v917_v37 }
 0x163   :  { %v791_v40 = vpop.f32.mrf.mxu0  ;;  %v919_v41 = vpop.f32.mrf.mxu1 }
 0x164   :  { %1238 = vst [vmem:[%s2065_s3 + $0xc0] sm:$0xff] %v1174_v38  ;;  %1270 = vst [vmem:[%s2065_s3 + $0x1c0] sm:$0xff] %v1206_v39 }
 0x165   :  { %v792_v42 = vpop.f32.mrf.mxu0  ;;  %v920_v43 = vpop.f32.mrf.mxu1 }
 0x166   :  { %v1175_v44 = vadd.f32 %v1804_v17, %v792_v42  ;;  %v1207_v45 = vadd.f32 %v1804_v17, %v920_v43 }
 0x167   :  { %v794_v46 = vpop.f32.mrf.mxu0  ;;  %v922_v47 = vpop.f32.mrf.mxu1 }
 0x168   :  { %1239 = vst [vmem:[%s2065_s3 + $0xc8] sm:$0xff] %v1175_v44  ;;  %1271 = vst [vmem:[%s2065_s3 + $0x1c8] sm:$0xff] %v1207_v45 }
 0x169   :  { %v797_v48 = vpop.f32.mrf.mxu0  ;;  %v925_v49 = vpop.f32.mrf.mxu1 }
 0x16a   :  { %v1176_v50 = vadd.f32 %v1804_v17, %v797_v48  ;;  %v1208_v51 = vadd.f32 %v1804_v17, %v925_v49 }
 0x16b   :  { %v799_v52 = vpop.f32.mrf.mxu0  ;;  %v927_v53 = vpop.f32.mrf.mxu1 }
 0x16c   :  { %1240 = vst [vmem:[%s2065_s3 + $0xd0] sm:$0xff] %v1176_v50  ;;  %1272 = vst [vmem:[%s2065_s3 + $0x1d0] sm:$0xff] %v1208_v51 }
 0x16d   :  { %v800_v54 = vpop.f32.mrf.mxu0  ;;  %v928_v55 = vpop.f32.mrf.mxu1 }
 0x16e   :  { %v1177_v56 = vadd.f32 %v1804_v17, %v800_v54  ;;  %v1209_v57 = vadd.f32 %v1804_v17, %v928_v55 }
 0x16f   :  { %v802_v58 = vpop.f32.mrf.mxu0  ;;  %v930_v59 = vpop.f32.mrf.mxu1 }
 0x170   :  { %1241 = vst [vmem:[%s2065_s3 + $0xd8] sm:$0xff] %v1177_v56  ;;  %1273 = vst [vmem:[%s2065_s3 + $0x1d8] sm:$0xff] %v1209_v57 }
 0x171   :  { %v805_v60 = vpop.f32.mrf.mxu0  ;;  %v933_v61 = vpop.f32.mrf.mxu1 }
 0x172   :  { %v1178_v62 = vadd.f32 %v1804_v17, %v805_v60  ;;  %v1210_v63 = vadd.f32 %v1804_v17, %v933_v61 }
 0x173   :  { %v807_v0 = vpop.f32.mrf.mxu0  ;;  %v935_v1 = vpop.f32.mrf.mxu1 }
 0x174   :  { %1242 = vst [vmem:[%s2065_s3 + $0xe0] sm:$0xff] %v1178_v62  ;;  %1274 = vst [vmem:[%s2065_s3 + $0x1e0] sm:$0xff] %v1210_v63 }
 0x175   :  { %v808_v2 = vpop.f32.mrf.mxu0  ;;  %v936_v3 = vpop.f32.mrf.mxu1 }
 0x176   :  { %v1179_v4 = vadd.f32 %v1804_v17, %v808_v2  ;;  %v1211_v5 = vadd.f32 %v1804_v17, %v936_v3 }
 0x177   :  { %v810_v6 = vpop.f32.mrf.mxu0  ;;  %v938_v7 = vpop.f32.mrf.mxu1 }
 0x178   :  { %1243 = vst [vmem:[%s2065_s3 + $0xe8] sm:$0xff] %v1179_v4  ;;  %1275 = vst [vmem:[%s2065_s3 + $0x1e8] sm:$0xff] %v1211_v5 }
 0x179   :  { %v813_v8 = vpop.f32.mrf.mxu0  ;;  %v941_v9 = vpop.f32.mrf.mxu1 }
 0x17a   :  { %v1180_v10 = vadd.f32 %v1804_v17, %v813_v8  ;;  %v1212_v11 = vadd.f32 %v1804_v17, %v941_v9 }
 0x17b   :  { %v815_v12 = vpop.f32.mrf.mxu0  ;;  %v943_v13 = vpop.f32.mrf.mxu1 }
 0x17c   :  { %1244 = vst [vmem:[%s2065_s3 + $0xf0] sm:$0xff] %v1180_v10  ;;  %1276 = vst [vmem:[%s2065_s3 + $0x1f0] sm:$0xff] %v1212_v11 }
 0x17d   :  { %v816_v14 = vpop.f32.mrf.mxu0  ;;  %v944_v15 = vpop.f32.mrf.mxu1 }
 0x17e   :  { %v1181_v16 = vadd.f32 %v1804_v17, %v816_v14  ;;  %v1213_v18 = vadd.f32 %v1804_v17, %v944_v15 }
 0x17f   :  { %v818_v19 = vpop.f32.mrf.mxu0  ;;  %v946_v20 = vpop.f32.mrf.mxu1 }
 0x180   :  { %1245 = vst [vmem:[%s2065_s3 + $0xf8] sm:$0xff] %v1181_v16  ;;  %1277 = vst [vmem:[%s2065_s3 + $0x1f8] sm:$0xff] %v1213_v18 }

// kernel: generator_resnet_forward.30
= control target key start
LH: loop header
LB: loop body
LE: loop exit
PB: predicated region body
PF: predicated region fallthrough
CT: control target
= control target key end

     0   :  { %s608_s12 = smov 0   ;;  %s610_s13 = smov 0   ;;  %s971_s0 = inlined_call_operand.vmem [shape: f32[2,256,64], index: 0, kind: input, shape index: {}]   ;;  %s972_s1 = inlined_call_operand.vmem [shape: f32[2,1,64], index: 1, kind: input, shape index: {}]   ;;  %s973_s2 = inlined_call_operand.vmem [shape: f32[2,1,64], index: 2, kind: input, shape index: {}]   ;;  %s974_s3 = inlined_call_operand.vmem [shape: f32[2,256,64], index: 3, kind: output, shape index: {}]  }
   0x1   :  { %s612_s14 = smov 0  }
   0x2 LB: > { %s25_s15 = sadd.s32 1, %s582_s13  ;;  %p529_p0 = scmp.ge.s32.totalorder %s586_s14, 1  ;;  %s586_s14 = sphi %s612_s14, %s13_s14   ;;  %s582_s13 = sphi %s610_s13, %s976_s13   ;;  %s578_s12 = sphi %s608_s12, %s975_s12  }
   0x3   : > { %p27_p1 = scmp.ge.s32.totalorder %s25_s15, 2  ;;  %p174_p2 = scmp.lt.s32.totalorder %s586_s14, 3 }
   0x5   : > { %s978_s15 = smov (%p27_p1, %s25_s15), 0  ;;  %p175_p3 = pnand %p529_p0, %p174_p2 }
   0x6   : > { %p213_p4 = scmp.lt.s32.totalorder (!%p175_p3), %s578_s12, 1 }
   0x7   : > { %178 = sbr.rel (%p175_p3) target bundleno = 62 (0x3e), region = 32 }
   0xc   : > { %s980_s12 = smov (!%p213_p4, %s578_s12), 1  ;;  %v278_v4 = vlaneseq  ;;  %vm387_vm0 = vcmask 523264  }
   0xd   : > { %s224_s18 = scalar_lea.vmem %s972_s1, %s980_s12  ;;  %s227_s21 = scalar_lea.vmem %s973_s2, %s980_s12 }
   0xe   : > { %v270_v0 = vld [vmem:[%s224_s18] sm:$0x1]  ;;  %v636_v7 = vshrl.u32 %v278_v4, 7  ;;  %s536_s22 = sshll.u32 %s980_s12, 8 }
   0xf   : > { %v271_v1 = vmul.f32 0.00390625, %v270_v0  ;;  %v272_v2 = vld [vmem:[%s227_s21] sm:$0x1]  ;;  %s644_s25 = scalar_lea.vmem %s971_s0, %s536_s22  ;;  %s820_s28 = scalar_lea.vmem %s974_s3, %s536_s22 }
  0x10   : > { %v273_v3 = vmul.f32 0.00390625, %v272_v2  ;;  %v280_v10 = vsub.s32 0, %v636_v7  ;;  %v648_v11 = vld [vmem:[%s644_s25] sm:$0xff]  ;;  %v653_v13 = vld [vmem:[%s644_s25 + $0x8] sm:$0xff]  ;;  %v656_v14 = vld [vmem:[%s644_s25 + $0x10] sm:$0xff] }
  0x11   : > { %v274_v5 = vmul.f32 %v271_v1, %v271_v1  ;;  %v659_v15 = vld [vmem:[%s644_s25 + $0x18] sm:$0xff]  ;;  %v662_v16 = vld [vmem:[%s644_s25 + $0x20] sm:$0xff]  ;;  %v665_v17 = vld [vmem:[%s644_s25 + $0x28] sm:$0xff] }
  0x12   : > { %v650_v12 = vrot.slane %v271_v1, %v280_v10  ;;  %v668_v18 = vld [vmem:[%s644_s25 + $0x30] sm:$0xff]  ;;  %v671_v19 = vld [vmem:[%s644_s25 + $0x38] sm:$0xff]  ;;  %v674_v20 = vld [vmem:[%s644_s25 + $0x40] sm:$0xff] }
  0x13   : > { %v275_v6 = vsub.f32 %v273_v3, %v274_v5  ;;  %v677_v21 = vld [vmem:[%s644_s25 + $0x48] sm:$0xff]  ;;  %v680_v22 = vld [vmem:[%s644_s25 + $0x50] sm:$0xff]  ;;  %v683_v23 = vld [vmem:[%s644_s25 + $0x58] sm:$0xff] }
  0x14   : > { %v686_v24 = vld [vmem:[%s644_s25 + $0x60] sm:$0xff]  ;;  %v689_v25 = vld [vmem:[%s644_s25 + $0x68] sm:$0xff]  ;;  %v283_v26 = vsub.f32 %v648_v11, %v650_v12  ;;  %v694_v27 = vld [vmem:[%s644_s25 + $0x70] sm:$0xff]  ;;  %v284_v30 = vsub.f32 %v653_v13, %v650_v12  ;;  %v285_v31 = vsub.f32 %v656_v14, %v650_v12  ;;  %v286_v32 = vsub.f32 %v659_v15, %v650_v12 }
  0x15   : > { %v276_v8 = vmax.f32 %v275_v6, 0.0  ;;  %v697_v28 = vld [vmem:[%s644_s25 + $0x78] sm:$0xff]  ;;  %v700_v29 = vld [vmem:[%s644_s25 + $0x80] sm:$0xff]  ;;  %v287_v33 = vsub.f32 %v662_v16, %v650_v12  ;;  %v711_v34 = vld [vmem:[%s644_s25 + $0x88] sm:$0xff]  ;;  %v288_v37 = vsub.f32 %v665_v17, %v650_v12  ;;  %v289_v38 = vsub.f32 %v668_v18, %v650_v12 }
  0x16   : > { %v714_v35 = vld [vmem:[%s644_s25 + $0x90] sm:$0xff]  ;;  %v717_v36 = vld [vmem:[%s644_s25 + $0x98] sm:$0xff]  ;;  %v290_v39 = vsub.f32 %v671_v19, %v650_v12  ;;  %v291_v40 = vsub.f32 %v674_v20, %v650_v12  ;;  %v728_v41 = vld [vmem:[%s644_s25 + $0xa0] sm:$0xff]  ;;  %v292_v44 = vsub.f32 %v677_v21, %v650_v12  ;;  %v293_v45 = vsub.f32 %v680_v22, %v650_v12 }
  0x17   : > { %v315_v9 = vadd.f32 1e-05, %v276_v8  ;;  %v731_v42 = vld [vmem:[%s644_s25 + $0xa8] sm:$0xff]  ;;  %v734_v43 = vld [vmem:[%s644_s25 + $0xb0] sm:$0xff]  ;;  %v294_v46 = vsub.f32 %v683_v23, %v650_v12  ;;  %v295_v47 = vsub.f32 %v686_v24, %v650_v12  ;;  %v745_v48 = vld [vmem:[%s644_s25 + $0xb8] sm:$0xff]  ;;  %v296_v51 = vsub.f32 %v689_v25, %v650_v12 }
  0x18   : > { %v748_v49 = vld [vmem:[%s644_s25 + $0xc0] sm:$0xff]  ;;  %v751_v50 = vld [vmem:[%s644_s25 + $0xc8] sm:$0xff]  ;;  %v297_v52 = vsub.f32 %v694_v27, %v650_v12  ;;  %v298_v53 = vsub.f32 %v697_v28, %v650_v12  ;;  %v299_v54 = vsub.f32 %v700_v29, %v650_v12  ;;  %v762_v55 = vld [vmem:[%s644_s25 + $0xd0] sm:$0xff]  ;;  %v300_v58 = vsub.f32 %v711_v34, %v650_v12 }
  0x19   : > { %562 = vrsqrt.f32 %v315_v9  ;;  %v765_v56 = vld [vmem:[%s644_s25 + $0xd8] sm:$0xff]  ;;  %v768_v57 = vld [vmem:[%s644_s25 + $0xe0] sm:$0xff]  ;;  %v301_v59 = vsub.f32 %v714_v35, %v650_v12  ;;  %v302_v60 = vsub.f32 %v717_v36, %v650_v12  ;;  %v303_v61 = vsub.f32 %v728_v41, %v650_v12  ;;  %v779_v62 = vld [vmem:[%s644_s25 + $0xe8] sm:$0xff] }
  0x1a   : > { %v782_v63 = vld [vmem:[%s644_s25 + $0xf0] sm:$0xff]  ;;  %v785_v0 = vld [vmem:[%s644_s25 + $0xf8] sm:$0xff]  ;;  %v304_v2 = vsub.f32 %v731_v42, %v650_v12  ;;  %v305_v3 = vsub.f32 %v734_v43, %v650_v12  ;;  %v306_v4 = vsub.f32 %v745_v48, %v650_v12  ;;  %v307_v5 = vsub.f32 %v748_v49, %v650_v12 }
  0x1b   : > { %v308_v7 = vsub.f32 %v751_v50, %v650_v12  ;;  %v309_v8 = vsub.f32 %v762_v55, %v650_v12  ;;  %v310_v9 = vsub.f32 %v765_v56, %v650_v12  ;;  %v311_v11 = vsub.f32 %v768_v57, %v650_v12 }
  0x1c   : > { %v312_v13 = vsub.f32 %v779_v62, %v650_v12  ;;  %v313_v14 = vsub.f32 %v782_v63, %v650_v12 }
  0x26   : > { %v563_v1 = vpop.eup %562 }
  0x27   : > { %v795_v6 = vrot.slane %v563_v1, %v280_v10  ;;  %v314_v10 = vsub.f32 %v785_v0, %v650_v12 }
  0x29   : > { %v323_v15 = vmul.f32 %v795_v6, %v283_v26  ;;  %v324_v16 = vmul.f32 %v795_v6, %v284_v30  ;;  %v325_v17 = vmul.f32 %v795_v6, %v285_v31  ;;  %v326_v18 = vmul.f32 %v795_v6, %v286_v32 }
  0x2a   : > { %v327_v19 = vmul.f32 %v795_v6, %v287_v33  ;;  %v328_v20 = vmul.f32 %v795_v6, %v288_v37  ;;  %v329_v21 = vmul.f32 %v795_v6, %v289_v38  ;;  %v330_v22 = vmul.f32 %v795_v6, %v290_v39 }
  0x2b   : > { %v355_v23 = vmax.f32 %v323_v15, 0.0  ;;  %v356_v24 = vmax.f32 %v324_v16, 0.0  ;;  %v357_v25 = vmax.f32 %v325_v17, 0.0  ;;  %v358_v26 = vmax.f32 %v326_v18, 0.0 }
  0x2c   : > { %v359_v27 = vmax.f32 %v327_v19, 0.0  ;;  %v360_v28 = vmax.f32 %v328_v20, 0.0  ;;  %v361_v30 = vmax.f32 %v329_v21, 0.0  ;;  %v362_v31 = vmax.f32 %v330_v22, 0.0 }
  0x2d   : > { %388 = vst.msk [vmem:[%s820_s28] sm:$0xff] %vm387_vm0, %v355_v23  ;;  %389 = vst.msk [vmem:[%s820_s28 + $0x8] sm:$0xff] %vm387_vm0, %v356_v24  ;;  %v331_v32 = vmul.f32 %v795_v6, %v291_v40  ;;  %v332_v33 = vmul.f32 %v795_v6, %v292_v44  ;;  %v333_v37 = vmul.f32 %v795_v6, %v293_v45 }
  0x2e   : > { %390 = vst.msk [vmem:[%s820_s28 + $0x10] sm:$0xff] %vm387_vm0, %v357_v25  ;;  %391 = vst.msk [vmem:[%s820_s28 + $0x18] sm:$0xff] %vm387_vm0, %v358_v26  ;;  %v334_v38 = vmul.f32 %v795_v6, %v294_v46  ;;  %v335_v39 = vmul.f32 %v795_v6, %v295_v47  ;;  %v336_v40 = vmul.f32 %v795_v6, %v296_v51 }
  0x2f   : > { %392 = vst.msk [vmem:[%s820_s28 + $0x20] sm:$0xff] %vm387_vm0, %v359_v27  ;;  %393 = vst.msk [vmem:[%s820_s28 + $0x28] sm:$0xff] %vm387_vm0, %v360_v28  ;;  %v337_v44 = vmul.f32 %v795_v6, %v297_v52  ;;  %v338_v45 = vmul.f32 %v795_v6, %v298_v53  ;;  %v363_v46 = vmax.f32 %v331_v32, 0.0  ;;  %v364_v1 = vmax.f32 %v332_v33, 0.0 }
  0x30   : > { %394 = vst.msk [vmem:[%s820_s28 + $0x30] sm:$0xff] %vm387_vm0, %v361_v30  ;;  %395 = vst.msk [vmem:[%s820_s28 + $0x38] sm:$0xff] %vm387_vm0, %v362_v31  ;;  %v365_v15 = vmax.f32 %v333_v37, 0.0  ;;  %v366_v16 = vmax.f32 %v334_v38, 0.0  ;;  %v367_v17 = vmax.f32 %v335_v39, 0.0  ;;  %v368_v18 = vmax.f32 %v336_v40, 0.0 }
  0x31   : > { %v369_v19 = vmax.f32 %v337_v44, 0.0  ;;  %v370_v20 = vmax.f32 %v338_v45, 0.0  ;;  %396 = vst.msk [vmem:[%s820_s28 + $0x40] sm:$0xff] %vm387_vm0, %v363_v46  ;;  %397 = vst.msk [vmem:[%s820_s28 + $0x48] sm:$0xff] %vm387_vm0, %v364_v1  ;;  %v339_v47 = vmul.f32 %v795_v6, %v299_v54  ;;  %v340_v51 = vmul.f32 %v795_v6, %v300_v58 }
  0x32   : > { %398 = vst.msk [vmem:[%s820_s28 + $0x50] sm:$0xff] %vm387_vm0, %v365_v15  ;;  %399 = vst.msk [vmem:[%s820_s28 + $0x58] sm:$0xff] %vm387_vm0, %v366_v16  ;;  %v341_v52 = vmul.f32 %v795_v6, %v301_v59  ;;  %v342_v53 = vmul.f32 %v795_v6, %v302_v60  ;;  %v343_v29 = vmul.f32 %v795_v6, %v303_v61 }
  0x33   : > { %400 = vst.msk [vmem:[%s820_s28 + $0x60] sm:$0xff] %vm387_vm0, %v367_v17  ;;  %401 = vst.msk [vmem:[%s820_s28 + $0x68] sm:$0xff] %vm387_vm0, %v368_v18  ;;  %v344_v34 = vmul.f32 %v795_v6, %v304_v2  ;;  %v345_v35 = vmul.f32 %v795_v6, %v305_v3  ;;  %v346_v36 = vmul.f32 %v795_v6, %v306_v4  ;;  %v371_v54 = vmax.f32 %v339_v47, 0.0 }
  0x34   : > { %402 = vst.msk [vmem:[%s820_s28 + $0x70] sm:$0xff] %vm387_vm0, %v369_v19  ;;  %403 = vst.msk [vmem:[%s820_s28 + $0x78] sm:$0xff] %vm387_vm0, %v370_v20  ;;  %v372_v41 = vmax.f32 %v340_v51, 0.0  ;;  %v373_v58 = vmax.f32 %v341_v52, 0.0  ;;  %v374_v59 = vmax.f32 %v342_v53, 0.0  ;;  %v375_v42 = vmax.f32 %v343_v29, 0.0 }
  0x35   : > { %v376_v60 = vmax.f32 %v344_v34, 0.0  ;;  %v377_v61 = vmax.f32 %v345_v35, 0.0  ;;  %v378_v2 = vmax.f32 %v346_v36, 0.0  ;;  %404 = vst.msk [vmem:[%s820_s28 + $0x80] sm:$0xff] %vm387_vm0, %v371_v54  ;;  %v347_v43 = vmul.f32 %v795_v6, %v307_v5 }
  0x36   : > { %405 = vst.msk [vmem:[%s820_s28 + $0x88] sm:$0xff] %vm387_vm0, %v372_v41  ;;  %406 = vst.msk [vmem:[%s820_s28 + $0x90] sm:$0xff] %vm387_vm0, %v373_v58  ;;  %v348_v48 = vmul.f32 %v795_v6, %v308_v7  ;;  %v349_v3 = vmul.f32 %v795_v6, %v309_v8  ;;  %v350_v4 = vmul.f32 %v795_v6, %v310_v9 }
  0x37   : > { %407 = vst.msk [vmem:[%s820_s28 + $0x98] sm:$0xff] %vm387_vm0, %v374_v59  ;;  %408 = vst.msk [vmem:[%s820_s28 + $0xa0] sm:$0xff] %vm387_vm0, %v375_v42  ;;  %v351_v49 = vmul.f32 %v795_v6, %v311_v11  ;;  %v352_v50 = vmul.f32 %v795_v6, %v312_v13  ;;  %v353_v55 = vmul.f32 %v795_v6, %v313_v14  ;;  %v379_v57 = vmax.f32 %v347_v43, 0.0 }
  0x38   : > { %409 = vst.msk [vmem:[%s820_s28 + $0xa8] sm:$0xff] %vm387_vm0, %v376_v60  ;;  %410 = vst.msk [vmem:[%s820_s28 + $0xb0] sm:$0xff] %vm387_vm0, %v377_v61  ;;  %v354_v56 = vmul.f32 %v795_v6, %v314_v10  ;;  %v380_v5 = vmax.f32 %v348_v48, 0.0  ;;  %v381_v7 = vmax.f32 %v349_v3, 0.0  ;;  %v382_v62 = vmax.f32 %v350_v4, 0.0 }
  0x39   : > { %411 = vst.msk [vmem:[%s820_s28 + $0xb8] sm:$0xff] %vm387_vm0, %v378_v2  ;;  %v383_v8 = vmax.f32 %v351_v49, 0.0  ;;  %v384_v9 = vmax.f32 %v352_v50, 0.0  ;;  %v385_v11 = vmax.f32 %v353_v55, 0.0  ;;  %412 = vst.msk [vmem:[%s820_s28 + $0xc0] sm:$0xff] %vm387_vm0, %v379_v57 }
  0x3a   : > { %v386_v13 = vmax.f32 %v354_v56, 0.0  ;;  %413 = vst.msk [vmem:[%s820_s28 + $0xc8] sm:$0xff] %vm387_vm0, %v380_v5  ;;  %414 = vst.msk [vmem:[%s820_s28 + $0xd0] sm:$0xff] %vm387_vm0, %v381_v7 }
  0x3b   : > { %415 = vst.msk [vmem:[%s820_s28 + $0xd8] sm:$0xff] %vm387_vm0, %v382_v62  ;;  %416 = vst.msk [vmem:[%s820_s28 + $0xe0] sm:$0xff] %vm387_vm0, %v383_v8 }
  0x3c   : > { %417 = vst.msk [vmem:[%s820_s28 + $0xe8] sm:$0xff] %vm387_vm0, %v384_v9  ;;  %418 = vst.msk [vmem:[%s820_s28 + $0xf0] sm:$0xff] %vm387_vm0, %v385_v11 }
  0x3d   : > { %419 = vst.msk [vmem:[%s820_s28 + $0xf8] sm:$0xff] %vm387_vm0, %v386_v13 }
  0x3e PF: > { %s13_s14 = sadd.s32 1, %s586_s14   ;;  %s975_s12 = smov %s582_s13 }
  0x3f   : > { %p10_p5 = scmp.ge.s32.totalorder %s13_s14, 4   ;;  %s976_s13 = smov %s978_s15 }
  0x41   :  { %12 = sbr.rel (!%p10_p5) target bundleno = 2 (0x2), region = 68 }

// kernel: generator_resnet_forward.31
= control target key start
LH: loop header
LB: loop body
LE: loop exit
PB: predicated region body
PF: predicated region fallthrough
CT: control target
= control target key end

     0   :  { %s1182_s12 = smov 0   ;;  %s1184_s13 = smov 0   ;;  %s1354_s0 = inlined_call_operand.vmem [shape: bf16[128,768], index: 0, kind: input, shape index: {}]   ;;  %s1355_s1 = inlined_call_operand.vmem [shape: bf16[768,128], index: 1, kind: input, shape index: {}]   ;;  %s1356_s2 = inlined_call_operand.vmem [shape: f32[1,128], index: 2, kind: input, shape index: {}]   ;;  %s1357_s3 = inlined_call_operand.vmem [shape: f32[128,128], index: 3, kind: output, shape index: {}]  }
   0x1   :  { %s1186_s14 = smov 0   ;;  %s1188_s15 = smov 0  }
   0x2   :  { %s1190_s16 = smov 0  }
   0x3 LB: > { %s25_s17 = sadd.s32 1, %s1155_s15  ;;  %p48_p1 = scmp.ne.s32.totalorder %s1147_s13, %s1143_s12  ;;  %s1159_s16 = sphi %s1190_s16, %s13_s16   ;;  %s1155_s15 = sphi %s1188_s15, %s1361_s15   ;;  %s1151_s14 = sphi %s1186_s14, %s1360_s14   ;;  %s1147_s13 = sphi %s1184_s13, %s1359_s13   ;;  %s1143_s12 = sphi %s1182_s12, %s1358_s12  }
   0x4   : > { %p26_p0 = scmp.ge.s32.totalorder %s25_s17, 3  ;;  %p49_p2 = scmp.eq.s32.totalorder %s1159_s16, 0 }
   0x5   : > { %s41_s19 = sadd.s32 1, %s1147_s13  ;;  %p912_p5 = scmp.ge.s32.totalorder %s1159_s16, 3 }
   0x6   : > { %s1363_s17 = smov (%p26_p0, %s25_s17), 0  ;;  %p50_p3 = por %p49_p2, %p48_p1 }
   0x7   : > { %s37_s18 = ssub.s32 %s1155_s15, %s1363_s17  ;;  %162 = sbr.rel (%p912_p5) target bundleno = 24 (0x18), region = 20 }
   0x8   : > { %p39_p4 = scmp.eq.s32.totalorder %s37_s18, 0 }
   0xa   : > { %s1217_s20 = scalar_select %p39_p4, %s1147_s13, %s41_s19  }
   0xc   : > { %165 = sbr.rel (!%p50_p3) target bundleno = 24 (0x18), region = 24  ;;  %s167_s21 = sand.u32 (%p50_p3), 1, %s1147_s13  }
   0xd   : > { %s959_s22 = sshll.u32 (%p50_p3), %s1155_s15, 3  ;;  %s913_s23 = sshll.u32 (%p50_p3), %s167_s21, 7 }
   0xe   : > { %s1225_s26 = scalar_lea.vmem (%p50_p3), %s1354_s0, %s959_s22  ;;  %s169_s27 = scalar_lea.vmem (%p50_p3), [#allocation3], %s913_s23 }
   0xf   : > { %v234_v0 = vld [vmem:[%s1225_s26] sm:$0xff] (%p50_p3)  ;;  %v236_v1 = vld [vmem:[%s1225_s26 + $0x18] sm:$0xff] (%p50_p3)  ;;  %v238_v2 = vld [vmem:[%s1225_s26 + $0x30] sm:$0xff] (%p50_p3) }
  0x10   : > { %235 = vst [vmem:[%s169_s27] sm:$0xff] (%p50_p3), %v234_v0  ;;  %237 = vst [vmem:[%s169_s27 + $0x8] sm:$0xff] (%p50_p3), %v236_v1  ;;  %v240_v3 = vld [vmem:[%s1225_s26 + $0x48] sm:$0xff] (%p50_p3)  ;;  %v242_v4 = vld [vmem:[%s1225_s26 + $0x60] sm:$0xff] (%p50_p3) }
  0x11   : > { %239 = vst [vmem:[%s169_s27 + $0x10] sm:$0xff] %v238_v2  ;;  %v244_v5 = vld [vmem:[%s1225_s26 + $0x78] sm:$0xff]  ;;  %241 = vst [vmem:[%s169_s27 + $0x18] sm:$0xff] %v240_v3  ;;  %v246_v6 = vld [vmem:[%s1225_s26 + $0x90] sm:$0xff] }
  0x12   : > { %243 = vst [vmem:[%s169_s27 + $0x20] sm:$0xff] %v242_v4  ;;  %245 = vst [vmem:[%s169_s27 + $0x28] sm:$0xff] %v244_v5  ;;  %v248_v7 = vld [vmem:[%s1225_s26 + $0xa8] sm:$0xff]  ;;  %v250_v8 = vld [vmem:[%s1225_s26 + $0xc0] sm:$0xff] }
  0x13   : > { %247 = vst [vmem:[%s169_s27 + $0x30] sm:$0xff] %v246_v6  ;;  %249 = vst [vmem:[%s169_s27 + $0x38] sm:$0xff] %v248_v7  ;;  %v252_v9 = vld [vmem:[%s1225_s26 + $0xd8] sm:$0xff]  ;;  %v254_v10 = vld [vmem:[%s1225_s26 + $0xf0] sm:$0xff] }
  0x14   : > { %251 = vst [vmem:[%s169_s27 + $0x40] sm:$0xff] %v250_v8  ;;  %v256_v11 = vld [vmem:[%s1225_s26 + $0x108] sm:$0xff]  ;;  %253 = vst [vmem:[%s169_s27 + $0x48] sm:$0xff] %v252_v9  ;;  %v258_v12 = vld [vmem:[%s1225_s26 + $0x120] sm:$0xff] }
  0x15   : > { %255 = vst [vmem:[%s169_s27 + $0x50] sm:$0xff] %v254_v10  ;;  %257 = vst [vmem:[%s169_s27 + $0x58] sm:$0xff] %v256_v11  ;;  %v260_v13 = vld [vmem:[%s1225_s26 + $0x138] sm:$0xff]  ;;  %v262_v14 = vld [vmem:[%s1225_s26 + $0x150] sm:$0xff] }
  0x16   : > { %259 = vst [vmem:[%s169_s27 + $0x60] sm:$0xff] %v258_v12  ;;  %261 = vst [vmem:[%s169_s27 + $0x68] sm:$0xff] %v260_v13  ;;  %v264_v15 = vld [vmem:[%s1225_s26 + $0x168] sm:$0xff] }
  0x17   : > { %263 = vst [vmem:[%s169_s27 + $0x70] sm:$0xff] %v262_v14  ;;  %265 = vst [vmem:[%s169_s27 + $0x78] sm:$0xff] %v264_v15 }
  0x18 PF: > { %p916_p6 = scmp.ge.s32.totalorder %s1159_s16, 1  ;;  %p282_p7 = scmp.lt.s32.totalorder %s1159_s16, 4 }
  0x1a   : > { %p283_p8 = pnand %p916_p6, %p282_p7 }
  0x1b   : > { %s289_s28 = sand.u32 (!%p283_p8), 1, %s1143_s12   ;;  %s918_s29 = sshll.u32 (!%p283_p8), %s1151_s14, 5 }
  0x1c   : > { %286 = sbr.rel (%p283_p8) target bundleno = 319 (0x13f), region = 66  ;;  %s917_s30 = sshll.u32 (!%p283_p8), %s289_s28, 7 }
  0x1d   : > { %p329_p9 = scmp.lt.s32.totalorder (!%p283_p8), %s918_s29, 95  ;;  %s1252_s8 = scalar_lea.vmem (!%p283_p8), [#allocation3], %s917_s30 }
  0x1e   : > { %p920_p10 = scmp.ne.s32.totalorder (!%p283_p8), %s1151_s14, 0 }
  0x21   : > { %s1365_s29 = smov (!%p329_p9, %s918_s29), 95  ;;  %353 = sbr.rel (%p920_p10) target bundleno = 47 (0x2f), region = 74 }
  0x22   : > { %s919_s4 = sshll.u32 %s1365_s29, 2 }
  0x23   : > { %s1250_s7 = scalar_lea.vmem %s1355_s1, %s919_s4 }
  0x26   : > { %v1161_v16 = vmov 0.0  }
  0x27   : > { %354 = vst [vmem:[#allocation2 + $0x30] sm:$0xff] %v1161_v16  ;;  %355 = vst [vmem:[#allocation2] sm:$0xff] %v1161_v16 }
  0x28   : > { %356 = vst [vmem:[#allocation2 + $0x58] sm:$0xff] %v1161_v16  ;;  %357 = vst [vmem:[#allocation2 + $0x18] sm:$0xff] %v1161_v16 }
  0x29   : > { %358 = vst [vmem:[#allocation2 + $0x50] sm:$0xff] %v1161_v16  ;;  %359 = vst [vmem:[#allocation2 + $0x68] sm:$0xff] %v1161_v16 }
  0x2a   : > { %360 = vst [vmem:[#allocation2 + $0x8] sm:$0xff] %v1161_v16  ;;  %361 = vst [vmem:[#allocation2 + $0x48] sm:$0xff] %v1161_v16 }
  0x2b   : > { %362 = vst [vmem:[#allocation2 + $0x40] sm:$0xff] %v1161_v16  ;;  %363 = vst [vmem:[#allocation2 + $0x20] sm:$0xff] %v1161_v16 }
  0x2c   : > { %364 = vst [vmem:[#allocation2 + $0x10] sm:$0xff] %v1161_v16  ;;  %365 = vst [vmem:[#allocation2 + $0x38] sm:$0xff] %v1161_v16 }
  0x2d   : > { %366 = vst [vmem:[#allocation2 + $0x60] sm:$0xff] %v1161_v16  ;;  %367 = vst [vmem:[#allocation2 + $0x70] sm:$0xff] %v1161_v16 }
  0x2e   : > { %368 = vst [vmem:[#allocation2 + $0x78] sm:$0xff] %v1161_v16  ;;  %369 = vst [vmem:[#allocation2 + $0x28] sm:$0xff] %v1161_v16 }
  0x2f PF: > { %v1081_v17 = vld [vmem:[%s1250_s7 + $0x78] sm:$0xff]   ;;  %v1083_v19 = vld [vmem:[%s1250_s7 + $0x70] sm:$0xff]   ;;  %v1085_v21 = vld [vmem:[%s1250_s7 + $0x68] sm:$0xff]   ;;  %p953_p11 = scmp.ne.s32.totalorder %s1151_s14, 2 }
  0x30   : > { %v1082_v18 = vld [vmem:[%s1250_s7 + $0x38] sm:$0xff]   ;;  %960 = vmatprep.subr.bf16.mxu0 %v1081_v17  ;;  %1024 = vmatprep.subr.bf16.mxu1 %v1081_v17  ;;  %v1084_v20 = vld [vmem:[%s1250_s7 + $0x30] sm:$0xff]   ;;  %v1086_v22 = vld [vmem:[%s1250_s7 + $0x28] sm:$0xff]  }
  0x31   : > { %961 = vmatpush3.bf16.msra.mxu0 %v1082_v18  ;;  %1032 = vmatpush3.bf16.msra.mxu1 %v1082_v18  ;;  %v1087_v23 = vld [vmem:[%s1250_s7 + $0x60] sm:$0xff]   ;;  %v1089_v25 = vld [vmem:[%s1250_s7 + $0x58] sm:$0xff]   ;;  %v1091_v27 = vld [vmem:[%s1250_s7 + $0x50] sm:$0xff]  }
  0x32   : > { %962 = vmatprep.subr.bf16.mxu0 %v1083_v19  ;;  %1025 = vmatprep.subr.bf16.mxu1 %v1083_v19  ;;  %v1088_v24 = vld [vmem:[%s1250_s7 + $0x20] sm:$0xff]   ;;  %v1090_v26 = vld [vmem:[%s1250_s7 + $0x18] sm:$0xff]   ;;  %v1092_v30 = vld [vmem:[%s1250_s7 + $0x10] sm:$0xff]  }
  0x33   : > { %v1099_v28 = vld [vmem:[%s1252_s8 + $0x4] ss:$8 sps:$4 sm:$0xff]   ;;  %v1097_v35 = vld [vmem:[%s1252_s8] ss:$8 sps:$4 sm:$0xff]   ;;  %v1103_v37 = vld [vmem:[%s1252_s8 + $0x14] ss:$8 sps:$4 sm:$0xff]  }
  0x34   : > { %v1102_v29 = vld [vmem:[%s1252_s8 + $0x44] ss:$8 sps:$4 sm:$0xff]   ;;  %642 = vmatprep.mubr.bf16.mxu0 %v1099_v28  ;;  %v1100_v36 = vld [vmem:[%s1252_s8 + $0x40] ss:$8 sps:$4 sm:$0xff]   ;;  %v1105_v38 = vld [vmem:[%s1252_s8 + $0x54] ss:$8 sps:$4 sm:$0xff]  }
  0x35   : > { %963 = vmatpush3.bf16.msra.mxu0 %v1084_v20  ;;  %1033 = vmatpush3.bf16.msra.mxu1 %v1084_v20  ;;  %v1093_v31 = vld [vmem:[%s1250_s7 + $0x48] sm:$0xff]   ;;  %v1095_v33 = vld [vmem:[%s1250_s7 + $0x40] sm:$0xff]   ;;  %v1107_v39 = vld [vmem:[%s1252_s8 + $0x10] ss:$8 sps:$4 sm:$0xff]  }
  0x36   : > { %964 = vmatprep.subr.bf16.mxu0 %v1085_v21  ;;  %1026 = vmatprep.subr.bf16.mxu1 %v1085_v21  ;;  %v1094_v32 = vld [vmem:[%s1250_s7 + $0x8] sm:$0xff]   ;;  %v1096_v34 = vld [vmem:[%s1250_s7] sm:$0xff]   ;;  %v1108_v40 = vld [vmem:[%s1252_s8 + $0x50] ss:$8 sps:$4 sm:$0xff]  }
  0x37   : > { %674 = vmatprep.mubr.bf16.mxu1 %v1102_v29  ;;  %v1109_v41 = vld [vmem:[%s1252_s8 + $0x24] ss:$8 sps:$4 sm:$0xff]   ;;  %v1113_v43 = vld [vmem:[%s1252_s8 + $0x20] ss:$8 sps:$4 sm:$0xff]   ;;  %v1115_v45 = vld [vmem:[%s1252_s8 + $0x34] ss:$8 sps:$4 sm:$0xff]  }
  0x38   : > { %v1111_v42 = vld [vmem:[%s1252_s8 + $0x64] ss:$8 sps:$4 sm:$0xff]   ;;  %v1114_v44 = vld [vmem:[%s1252_s8 + $0x60] ss:$8 sps:$4 sm:$0xff]   ;;  %v1117_v46 = vld [vmem:[%s1252_s8 + $0x74] ss:$8 sps:$4 sm:$0xff]  }
  0x39   : > { %965 = vmatpush3.bf16.msra.mxu0 %v1086_v22  ;;  %1034 = vmatpush3.bf16.msra.mxu1 %v1086_v22  ;;  %v1119_v47 = vld [vmem:[%s1252_s8 + $0x30] ss:$8 sps:$4 sm:$0xff]   ;;  %v378_v53 = vld [vmem:[#allocation2 + $0x40] sm:$0xff] }
  0x3a   : > { %966 = vmatprep.subr.bf16.mxu0 %v1087_v23  ;;  %1027 = vmatprep.subr.bf16.mxu1 %v1087_v23  ;;  %v1120_v48 = vld [vmem:[%s1252_s8 + $0x70] ss:$8 sps:$4 sm:$0xff]   ;;  %v371_v61 = vld [vmem:[#allocation2] sm:$0xff] }
  0x3b   : > { %v370_v51 = vld [vmem:[#allocation2 + $0x30] sm:$0xff]  ;;  %v379_v63 = vld [vmem:[#allocation2 + $0x20] sm:$0xff]  ;;  %v372_v7 = vld [vmem:[#allocation2 + $0x58] sm:$0xff] }
  0x3c   : > { %v380_v9 = vld [vmem:[#allocation2 + $0x10] sm:$0xff]  ;;  %v373_v17 = vld [vmem:[#allocation2 + $0x18] sm:$0xff]  ;;  %v382_v29 = vld [vmem:[#allocation2 + $0x60] sm:$0xff] }
  0x3d   : > { %967 = vmatpush3.bf16.msra.mxu0 %v1088_v24  ;;  %1035 = vmatpush3.bf16.msra.mxu1 %v1088_v24  ;;  %v381_v19 = vld [vmem:[#allocation2 + $0x38] sm:$0xff] }
  0x3e   : > { %968 = vmatprep.subr.bf16.mxu0 %v1089_v25  ;;  %1028 = vmatprep.subr.bf16.mxu1 %v1089_v25 }
  0x41   : > { %969 = vmatpush3.bf16.msra.mxu0 %v1090_v26  ;;  %1036 = vmatpush3.bf16.msra.mxu1 %v1090_v26 }
  0x42   : > { %970 = vmatprep.subr.bf16.mxu0 %v1091_v27  ;;  %1029 = vmatprep.subr.bf16.mxu1 %v1091_v27  ;;  %v374_v27 = vld [vmem:[#allocation2 + $0x50] sm:$0xff] }
  0x45   : > { %971 = vmatpush3.bf16.msra.mxu0 %v1092_v30  ;;  %1037 = vmatpush3.bf16.msra.mxu1 %v1092_v30 }
  0x46   : > { %972 = vmatprep.subr.bf16.mxu0 %v1093_v31  ;;  %1030 = vmatprep.subr.bf16.mxu1 %v1093_v31 }
  0x49   : > { %973 = vmatpush3.bf16.msra.mxu0 %v1094_v32  ;;  %1038 = vmatpush3.bf16.msra.mxu1 %v1094_v32 }
  0x4a   : > { %974 = vmatprep.subr.bf16.mxu0 %v1095_v33  ;;  %1031 = vmatprep.subr.bf16.mxu1 %v1095_v33 }
  0x4d   : > { %975 = vmatpush3.bf16.msra.mxu0 %v1096_v34  ;;  %1039 = vmatpush3.bf16.msra.mxu1 %v1096_v34 }
  0x50   : > { %643 = vmatmul.mubr.bf16.vlgmr.msra.gmra.mxu0 %v1097_v35  ;;  %675 = vmatmul.mubr.bf16.vlgmr.msra.gmra.mxu1 %v1100_v36 }
  0x51   : > { %650 = vmatprep.mubr.bf16.mxu0 %v1103_v37  ;;  %682 = vmatprep.mubr.bf16.mxu1 %v1105_v38  ;;  %v375_v37 = vld [vmem:[#allocation2 + $0x68] sm:$0xff] }
  0x58   : > { %651 = vmatmul.mubr.bf16.gmra.mxu0 %v1107_v39  ;;  %683 = vmatmul.mubr.bf16.gmra.mxu1 %v1108_v40  ;;  %v383_v39 = vld [vmem:[#allocation2 + $0x70] sm:$0xff] }
  0x59   : > { %658 = vmatprep.mubr.bf16.mxu0 %v1109_v41  ;;  %690 = vmatprep.mubr.bf16.mxu1 %v1111_v42 }
  0x60   : > { %659 = vmatmul.mubr.bf16.gmra.mxu0 %v1113_v43  ;;  %691 = vmatmul.mubr.bf16.gmra.mxu1 %v1114_v44 }
  0x61   : > { %666 = vmatprep.mubr.bf16.mxu0 %v1115_v45  ;;  %698 = vmatprep.mubr.bf16.mxu1 %v1117_v46 }
  0x68   : > { %667 = vmatmul.mubr.bf16.gmra.mxu0 %v1119_v47  ;;  %699 = vmatmul.mubr.bf16.gmra.mxu1 %v1120_v48  ;;  %v376_v47 = vld [vmem:[#allocation2 + $0x8] sm:$0xff] }
 0x110   : > { %v976_v49 = vpop.f32.mrf.mxu0  ;;  %v1000_v50 = vpop.f32.mrf.mxu1 }
 0x112   : > { %v977_v52 = vpop.f32.mrf.mxu0  ;;  %v1001_v54 = vpop.f32.mrf.mxu1 }
 0x113   : > { %v978_v55 = vadd.f32 %v977_v52, %v976_v49  ;;  %v1002_v56 = vadd.f32 %v1001_v54, %v1000_v50  ;;  %v384_v49 = vld [vmem:[#allocation2 + $0x78] sm:$0xff] }
 0x114   : > { %v979_v57 = vpop.f32.mrf.mxu0  ;;  %v1003_v58 = vpop.f32.mrf.mxu1 }
 0x115   : > { %v707_v59 = vadd.f32 %v978_v55, %v370_v51  ;;  %v715_v60 = vadd.f32 %v1002_v56, %v378_v53 }
 0x116   : > { %v980_v62 = vpop.f32.mrf.mxu0  ;;  %v1004_v0 = vpop.f32.mrf.mxu1 }
 0x117   : > { %723 = vst [vmem:[#allocation2 + $0x30] sm:$0xff] %v707_v59  ;;  %731 = vst [vmem:[#allocation2 + $0x40] sm:$0xff] %v715_v60  ;;  %v981_v1 = vadd.f32 %v980_v62, %v979_v57  ;;  %v1005_v2 = vadd.f32 %v1004_v0, %v1003_v58  ;;  %v377_v57 = vld [vmem:[#allocation2 + $0x48] sm:$0xff] }
 0x118   : > { %v982_v3 = vpop.f32.mrf.mxu0  ;;  %v1006_v4 = vpop.f32.mrf.mxu1  ;;  %v385_v59 = vld [vmem:[#allocation2 + $0x28] sm:$0xff] }
 0x119   : > { %v708_v5 = vadd.f32 %v981_v1, %v371_v61  ;;  %v716_v6 = vadd.f32 %v1005_v2, %v379_v63 }
 0x11a   : > { %v983_v8 = vpop.f32.mrf.mxu0  ;;  %v1007_v10 = vpop.f32.mrf.mxu1 }
 0x11b   : > { %724 = vst [vmem:[#allocation2] sm:$0xff] %v708_v5  ;;  %732 = vst [vmem:[#allocation2 + $0x20] sm:$0xff] %v716_v6  ;;  %v984_v11 = vadd.f32 %v983_v8, %v982_v3  ;;  %v1008_v12 = vadd.f32 %v1007_v10, %v1006_v4 }
 0x11c   : > { %v985_v13 = vpop.f32.mrf.mxu0  ;;  %v1009_v14 = vpop.f32.mrf.mxu1 }
 0x11d   : > { %v709_v15 = vadd.f32 %v984_v11, %v372_v7  ;;  %v717_v16 = vadd.f32 %v1008_v12, %v380_v9 }
 0x11e   : > { %v986_v18 = vpop.f32.mrf.mxu0  ;;  %v1010_v20 = vpop.f32.mrf.mxu1 }
 0x11f   : > { %725 = vst [vmem:[#allocation2 + $0x58] sm:$0xff] %v709_v15  ;;  %733 = vst [vmem:[#allocation2 + $0x10] sm:$0xff] %v717_v16  ;;  %v987_v21 = vadd.f32 %v986_v18, %v985_v13  ;;  %v1011_v22 = vadd.f32 %v1010_v20, %v1009_v14 }
 0x120   : > { %v988_v23 = vpop.f32.mrf.mxu0  ;;  %v1012_v24 = vpop.f32.mrf.mxu1 }
 0x121   : > { %v710_v25 = vadd.f32 %v987_v21, %v373_v17  ;;  %v718_v26 = vadd.f32 %v1011_v22, %v381_v19 }
 0x122   : > { %v989_v28 = vpop.f32.mrf.mxu0  ;;  %v1013_v30 = vpop.f32.mrf.mxu1 }
 0x123   : > { %726 = vst [vmem:[#allocation2 + $0x18] sm:$0xff] %v710_v25  ;;  %734 = vst [vmem:[#allocation2 + $0x38] sm:$0xff] %v718_v26  ;;  %v990_v31 = vadd.f32 %v989_v28, %v988_v23  ;;  %v1014_v32 = vadd.f32 %v1013_v30, %v1012_v24 }
 0x124   : > { %v991_v33 = vpop.f32.mrf.mxu0  ;;  %v1015_v34 = vpop.f32.mrf.mxu1 }
 0x125   : > { %v711_v35 = vadd.f32 %v990_v31, %v374_v27  ;;  %v719_v36 = vadd.f32 %v1014_v32, %v382_v29 }
 0x126   : > { %v992_v38 = vpop.f32.mrf.mxu0  ;;  %v1016_v40 = vpop.f32.mrf.mxu1 }
 0x127   : > { %727 = vst [vmem:[#allocation2 + $0x50] sm:$0xff] %v711_v35  ;;  %735 = vst [vmem:[#allocation2 + $0x60] sm:$0xff] %v719_v36  ;;  %v993_v41 = vadd.f32 %v992_v38, %v991_v33  ;;  %v1017_v42 = vadd.f32 %v1016_v40, %v1015_v34 }
 0x128   : > { %v994_v43 = vpop.f32.mrf.mxu0  ;;  %v1018_v44 = vpop.f32.mrf.mxu1 }
 0x129   : > { %v712_v45 = vadd.f32 %v993_v41, %v375_v37  ;;  %v720_v46 = vadd.f32 %v1017_v42, %v383_v39 }
 0x12a   : > { %v995_v48 = vpop.f32.mrf.mxu0  ;;  %v1019_v50 = vpop.f32.mrf.mxu1 }
 0x12b   : > { %728 = vst [vmem:[#allocation2 + $0x68] sm:$0xff] %v712_v45  ;;  %736 = vst [vmem:[#allocation2 + $0x70] sm:$0xff] %v720_v46  ;;  %v996_v51 = vadd.f32 %v995_v48, %v994_v43  ;;  %v1020_v52 = vadd.f32 %v1019_v50, %v1018_v44 }
 0x12c   : > { %v997_v53 = vpop.f32.mrf.mxu0  ;;  %v1021_v54 = vpop.f32.mrf.mxu1 }
 0x12d   : > { %v713_v55 = vadd.f32 %v996_v51, %v376_v47  ;;  %v721_v56 = vadd.f32 %v1020_v52, %v384_v49 }
 0x12e   : > { %v998_v58 = vpop.f32.mrf.mxu0  ;;  %v1022_v60 = vpop.f32.mrf.mxu1 }
 0x12f   : > { %729 = vst [vmem:[#allocation2 + $0x8] sm:$0xff] %v713_v55  ;;  %737 = vst [vmem:[#allocation2 + $0x78] sm:$0xff] %v721_v56  ;;  %v999_v61 = vadd.f32 %v998_v58, %v997_v53  ;;  %v1023_v62 = vadd.f32 %v1022_v60, %v1021_v54  ;;  %742 = sbr.rel (%p953_p11) target bundleno = 319 (0x13f), region = 78 }
 0x131   : > { %v714_v63 = vadd.f32 %v999_v61, %v377_v57  ;;  %v722_v0 = vadd.f32 %v1023_v62, %v385_v59 }
 0x133   : > { %730 = vst [vmem:[#allocation2 + $0x48] sm:$0xff] %v714_v63  ;;  %738 = vst [vmem:[#allocation2 + $0x28] sm:$0xff] %v722_v0 }
 0x134   : > { %v743_v1 = vld [vmem:[#allocation2 + $0x30] sm:$0xff]  ;;  %v954_v2 = vld [vmem:[%s1356_s2] ss:$0 sm:$0xff]  ;;  %v745_v6 = vld [vmem:[#allocation2 + $0x58] sm:$0xff] }
 0x135   : > { %v744_v3 = vld [vmem:[#allocation2] sm:$0xff]  ;;  %v766_v4 = vadd.f32 %v954_v2, %v743_v1  ;;  %v746_v7 = vld [vmem:[#allocation2 + $0x18] sm:$0xff]  ;;  %v747_v8 = vld [vmem:[#allocation2 + $0x50] sm:$0xff]  ;;  %v768_v9 = vadd.f32 %v954_v2, %v745_v6 }
 0x136   : > { %v767_v5 = vadd.f32 %v954_v2, %v744_v3  ;;  %v769_v10 = vadd.f32 %v954_v2, %v746_v7  ;;  %v770_v11 = vadd.f32 %v954_v2, %v747_v8  ;;  %v748_v12 = vld [vmem:[#allocation2 + $0x68] sm:$0xff]  ;;  %v751_v18 = vld [vmem:[#allocation2 + $0x40] sm:$0xff]  ;;  %v753_v20 = vld [vmem:[#allocation2 + $0x10] sm:$0xff] }
 0x137   : > { %v749_v13 = vld [vmem:[#allocation2 + $0x8] sm:$0xff]  ;;  %782 = vst [vmem:[%s1357_s3] sm:$0xff] %v766_v4  ;;  %v771_v15 = vadd.f32 %v954_v2, %v748_v12  ;;  %v752_v19 = vld [vmem:[#allocation2 + $0x20] sm:$0xff]  ;;  %784 = vst [vmem:[%s1357_s3 + $0x10] sm:$0xff] %v768_v9  ;;  %v774_v21 = vadd.f32 %v954_v2, %v751_v18  ;;  %v776_v23 = vadd.f32 %v954_v2, %v753_v20 }
 0x138   : > { %783 = vst [vmem:[%s1357_s3 + $0x8] sm:$0xff] %v767_v5  ;;  %v772_v16 = vadd.f32 %v954_v2, %v749_v13  ;;  %785 = vst [vmem:[%s1357_s3 + $0x18] sm:$0xff] %v769_v10  ;;  %v775_v22 = vadd.f32 %v954_v2, %v752_v19  ;;  %v754_v24 = vld [vmem:[#allocation2 + $0x38] sm:$0xff]  ;;  %v755_v25 = vld [vmem:[#allocation2 + $0x60] sm:$0xff] }
 0x139   : > { %786 = vst [vmem:[%s1357_s3 + $0x20] sm:$0xff] %v770_v11  ;;  %v756_v26 = vld [vmem:[#allocation2 + $0x70] sm:$0xff]  ;;  %787 = vst [vmem:[%s1357_s3 + $0x28] sm:$0xff] %v771_v15  ;;  %v777_v27 = vadd.f32 %v954_v2, %v754_v24  ;;  %v778_v28 = vadd.f32 %v954_v2, %v755_v25  ;;  %v757_v30 = vld [vmem:[#allocation2 + $0x78] sm:$0xff] }
 0x13a   : > { %v750_v14 = vld [vmem:[#allocation2 + $0x48] sm:$0xff]  ;;  %788 = vst [vmem:[%s1357_s3 + $0x30] sm:$0xff] %v772_v16  ;;  %v779_v29 = vadd.f32 %v954_v2, %v756_v26  ;;  %790 = vst [vmem:[%s1357_s3 + $0x40] sm:$0xff] %v774_v21  ;;  %v780_v32 = vadd.f32 %v954_v2, %v757_v30 }
 0x13b   : > { %v773_v17 = vadd.f32 %v954_v2, %v750_v14  ;;  %v758_v31 = vld [vmem:[#allocation2 + $0x28] sm:$0xff]  ;;  %791 = vst [vmem:[%s1357_s3 + $0x48] sm:$0xff] %v775_v22  ;;  %792 = vst [vmem:[%s1357_s3 + $0x50] sm:$0xff] %v776_v23 }
 0x13c   : > { %v781_v33 = vadd.f32 %v954_v2, %v758_v31  ;;  %793 = vst [vmem:[%s1357_s3 + $0x58] sm:$0xff] %v777_v27  ;;  %794 = vst [vmem:[%s1357_s3 + $0x60] sm:$0xff] %v778_v28 }
 0x13d   : > { %789 = vst [vmem:[%s1357_s3 + $0x38] sm:$0xff] %v773_v17  ;;  %795 = vst [vmem:[%s1357_s3 + $0x68] sm:$0xff] %v779_v29 }
 0x13e   : > { %796 = vst [vmem:[%s1357_s3 + $0x70] sm:$0xff] %v780_v32  ;;  %797 = vst [vmem:[%s1357_s3 + $0x78] sm:$0xff] %v781_v33 }
 0x13f PF: > { %s13_s16 = sadd.s32 1, %s1159_s16   ;;  %s1358_s12 = smov %s1147_s13 }
 0x140   : > { %p10_p12 = scmp.ge.s32.totalorder %s13_s16, 5   ;;  %s1359_s13 = smov %s1217_s20 }
 0x141   : > { %s1360_s14 = smov %s1155_s15  ;;  %s1361_s15 = smov %s1363_s17 }
 0x142   :  { %12 = sbr.rel (!%p10_p12) target bundleno = 3 (0x3), region = 119 }

// kernel: generator_resnet_forward.32
= control target key start
LH: loop header
LB: loop body
LE: loop exit
PB: predicated region body
PF: predicated region fallthrough
CT: control target
= control target key end

     0   :  { %s399_s9 = smov 0   ;;  %s401_s10 = smov 0   ;;  %s440_s0 = inlined_call_operand.vmem [shape: f32[2,64,128], index: 0, kind: input, shape index: {}]   ;;  %s441_s1 = inlined_call_operand.vmem [shape: f32[2,1,128], index: 1, kind: output, shape index: {0}]   ;;  %s442_s2 = inlined_call_operand.vmem [shape: f32[2,1,128], index: 2, kind: output, shape index: {1}]  }
   0x1   :  { %s403_s11 = smov 0  }
   0x2 LB: > { %s25_s12 = sadd.s32 1, %s377_s10  ;;  %p328_p0 = scmp.ge.s32.totalorder %s381_s11, 1  ;;  %s381_s11 = sphi %s403_s11, %s13_s11   ;;  %s377_s10 = sphi %s401_s10, %s444_s10   ;;  %s373_s9 = sphi %s399_s9, %s443_s9  }
   0x3   : > { %p27_p1 = scmp.ge.s32.totalorder %s25_s12, 2  ;;  %p134_p2 = scmp.lt.s32.totalorder %s381_s11, 3 }
   0x5   : > { %s446_s12 = smov (%p27_p1, %s25_s12), 0  ;;  %p135_p3 = pnand %p328_p0, %p134_p2 }
   0x6   : > { %p162_p4 = scmp.lt.s32.totalorder (!%p135_p3), %s373_s9, 1 }
   0x7   : > { %138 = sbr.rel (%p135_p3) target bundleno = 55 (0x37), region = 24 }
   0xc   : > { %v383_v0 = vmov 0.0   ;;  %s448_s9 = smov (!%p162_p4, %s373_s9), 1 }
   0xd   : > { %181 = vst [vmem:[#allocation2] sm:$0x1] %v383_v0  ;;  %182 = vst [vmem:[#allocation3] sm:$0x1] %v383_v0  ;;  %s333_s13 = sshll.u32 %s448_s9, 6  ;;  %s173_s19 = scalar_lea.vmem %s441_s1, %s448_s9 }
   0xe   : > { %s169_s16 = scalar_lea.vmem %s440_s0, %s333_s13  ;;  %s176_s22 = scalar_lea.vmem %s442_s2, %s448_s9 }
   0xf   : > { %v183_v1 = vld [vmem:[%s169_s16] sm:$0xff]  ;;  %v184_v2 = vld [vmem:[%s169_s16 + $0x8] sm:$0xff]  ;;  %v185_v3 = vld [vmem:[%s169_s16 + $0x10] sm:$0xff] }
  0x10   : > { %v186_v4 = vld [vmem:[%s169_s16 + $0x18] sm:$0xff]  ;;  %v192_v5 = vadd.f32 %v184_v2, %v183_v1  ;;  %v208_v6 = vmul.f32 %v183_v1, %v183_v1  ;;  %v209_v7 = vmul.f32 %v184_v2, %v184_v2  ;;  %v210_v8 = vmul.f32 %v185_v3, %v185_v3  ;;  %v187_v9 = vld [vmem:[%s169_s16 + $0x20] sm:$0xff]  ;;  %v188_v13 = vld [vmem:[%s169_s16 + $0x28] sm:$0xff] }
  0x11   : > { %v211_v11 = vmul.f32 %v186_v4, %v186_v4  ;;  %v212_v15 = vmul.f32 %v187_v9, %v187_v9  ;;  %v189_v17 = vld [vmem:[%s169_s16 + $0x30] sm:$0xff]  ;;  %v213_v19 = vmul.f32 %v188_v13, %v188_v13  ;;  %v190_v21 = vld [vmem:[%s169_s16 + $0x38] sm:$0xff] }
  0x12   : > { %v193_v10 = vadd.f32 %v192_v5, %v185_v3  ;;  %v216_v12 = vadd.f32 %v209_v7, %v208_v6  ;;  %v214_v23 = vmul.f32 %v189_v17, %v189_v17  ;;  %v215_v26 = vmul.f32 %v190_v21, %v190_v21 }
  0x14   : > { %v194_v14 = vadd.f32 %v193_v10, %v186_v4  ;;  %v217_v16 = vadd.f32 %v216_v12, %v210_v8  ;;  %v191_v40 = vld [vmem:[#allocation2] sm:$0x1]  ;;  %v207_v43 = vld [vmem:[#allocation3] sm:$0x1] }
  0x16   : > { %v195_v18 = vadd.f32 %v194_v14, %v187_v9  ;;  %v218_v20 = vadd.f32 %v217_v16, %v211_v11 }
  0x18   : > { %v196_v22 = vadd.f32 %v195_v18, %v188_v13  ;;  %v219_v24 = vadd.f32 %v218_v20, %v212_v15 }
  0x1a   : > { %v197_v25 = vadd.f32 %v196_v22, %v189_v17  ;;  %v220_v27 = vadd.f32 %v219_v24, %v213_v19 }
  0x1c   : > { %v198_v28 = vadd.f32 %v197_v25, %v190_v21  ;;  %v221_v29 = vadd.f32 %v220_v27, %v214_v23 }
  0x1e   : > { %v199_v30 = vrot.slane %v198_v28, 4  ;;  %v222_v31 = vadd.f32 %v221_v29, %v215_v26 }
  0x20   : > { %v200_v32 = vadd.f32 %v199_v30, %v198_v28  ;;  %v223_v33 = vrot.slane %v222_v31, 4 }
  0x22   : > { %v201_v34 = vrot.slane %v200_v32, 2  ;;  %v224_v35 = vadd.f32 %v223_v33, %v222_v31 }
  0x24   : > { %v202_v36 = vadd.f32 %v201_v34, %v200_v32  ;;  %v225_v37 = vrot.slane %v224_v35, 2 }
  0x26   : > { %v203_v38 = vrot.slane %v202_v36, 1  ;;  %v226_v39 = vadd.f32 %v225_v37, %v224_v35 }
  0x28   : > { %v204_v41 = vadd.f32 %v203_v38, %v202_v36  ;;  %v227_v42 = vrot.slane %v226_v39, 1 }
  0x2a   : > { %v205_v44 = vadd.f32 %v204_v41, %v191_v40  ;;  %v228_v45 = vadd.f32 %v227_v42, %v226_v39 }
  0x2c   : > { %206 = vst [vmem:[#allocation2] sm:$0x1] %v205_v44  ;;  %v229_v46 = vadd.f32 %v228_v45, %v207_v43 }
  0x2e   : > { %230 = vst [vmem:[#allocation3] sm:$0x1] %v229_v46 }
  0x33   : > { %v234_v47 = vld [vmem:[#allocation2] sm:$0x1] }
  0x34   : > { %235 = vst [vmem:[%s173_s19] sm:$0x1] %v234_v47 }
  0x35   : > { %v236_v48 = vld [vmem:[#allocation3] sm:$0x1] }
  0x36   : > { %237 = vst [vmem:[%s176_s22] sm:$0x1] %v236_v48 }
  0x37 PF: > { %s13_s11 = sadd.s32 1, %s381_s11   ;;  %s443_s9 = smov %s377_s10 }
  0x38   : > { %p10_p5 = scmp.ge.s32.totalorder %s13_s11, 4   ;;  %s444_s10 = smov %s446_s12 }
  0x3a   :  { %12 = sbr.rel (!%p10_p5) target bundleno = 2 (0x2), region = 74 }

// kernel: generator_resnet_forward.33
= control target key start
LH: loop header
LB: loop body
LE: loop exit
PB: predicated region body
PF: predicated region fallthrough
CT: control target
= control target key end

     0   :  { %s487_s12 = smov 0   ;;  %s489_s13 = smov 0   ;;  %s531_s0 = inlined_call_operand.vmem [shape: f32[2,64,128], index: 0, kind: input, shape index: {}]   ;;  %s532_s1 = inlined_call_operand.vmem [shape: f32[2,1,128], index: 1, kind: input, shape index: {}]   ;;  %s533_s2 = inlined_call_operand.vmem [shape: f32[2,1,128], index: 2, kind: input, shape index: {}]   ;;  %s534_s3 = inlined_call_operand.vmem [shape: f32[2,64,128], index: 3, kind: output, shape index: {}]  }
   0x1   :  { %s491_s14 = smov 0  }
   0x2 LB: > { %s25_s15 = sadd.s32 1, %s461_s13  ;;  %p408_p0 = scmp.ge.s32.totalorder %s465_s14, 1  ;;  %s465_s14 = sphi %s491_s14, %s13_s14   ;;  %s461_s13 = sphi %s489_s13, %s536_s13   ;;  %s457_s12 = sphi %s487_s12, %s535_s12  }
   0x3   : > { %p27_p1 = scmp.ge.s32.totalorder %s25_s15, 2  ;;  %p174_p2 = scmp.lt.s32.totalorder %s465_s14, 3 }
   0x5   : > { %s538_s15 = smov (%p27_p1, %s25_s15), 0  ;;  %p175_p3 = pnand %p408_p0, %p174_p2 }
   0x6   : > { %p213_p4 = scmp.lt.s32.totalorder (!%p175_p3), %s457_s12, 1 }
   0x7   : > { %178 = sbr.rel (%p175_p3) target bundleno = 49 (0x31), region = 32 }
   0xc   : > { %s540_s12 = smov (!%p213_p4, %s457_s12), 1  ;;  %v254_v7 = vlaneseq }
   0xd   : > { %s224_s18 = scalar_lea.vmem %s532_s1, %s540_s12  ;;  %s227_s21 = scalar_lea.vmem %s533_s2, %s540_s12 }
   0xe   : > { %v246_v0 = vld [vmem:[%s224_s18] sm:$0x1]  ;;  %v255_v9 = vshrl.u32 %v254_v7, 7  ;;  %s415_s22 = sshll.u32 %s540_s12, 6 }
   0xf   : > { %v247_v1 = vmul.f32 0.015625, %v246_v0  ;;  %v248_v2 = vld [vmem:[%s227_s21] sm:$0x1]  ;;  %s220_s25 = scalar_lea.vmem %s531_s0, %s415_s22  ;;  %s236_s28 = scalar_lea.vmem %s534_s3, %s415_s22 }
  0x10   : > { %v249_v3 = vmul.f32 0.015625, %v248_v2  ;;  %v256_v10 = vsub.s32 0, %v255_v9  ;;  %v238_v11 = vld [vmem:[%s220_s25] sm:$0xff]  ;;  %v239_v13 = vld [vmem:[%s220_s25 + $0x8] sm:$0xff]  ;;  %v240_v14 = vld [vmem:[%s220_s25 + $0x10] sm:$0xff] }
  0x11   : > { %v250_v4 = vmul.f32 %v247_v1, %v247_v1  ;;  %v241_v15 = vld [vmem:[%s220_s25 + $0x18] sm:$0xff]  ;;  %v242_v16 = vld [vmem:[%s220_s25 + $0x20] sm:$0xff]  ;;  %v243_v17 = vld [vmem:[%s220_s25 + $0x28] sm:$0xff] }
  0x12   : > { %v257_v12 = vrot.slane %v247_v1, %v256_v10  ;;  %v244_v18 = vld [vmem:[%s220_s25 + $0x30] sm:$0xff]  ;;  %v245_v19 = vld [vmem:[%s220_s25 + $0x38] sm:$0xff] }
  0x13   : > { %v251_v5 = vsub.f32 %v249_v3, %v250_v4 }
  0x14   : > { %v259_v20 = vsub.f32 %v238_v11, %v257_v12  ;;  %v260_v21 = vsub.f32 %v239_v13, %v257_v12  ;;  %v261_v22 = vsub.f32 %v240_v14, %v257_v12  ;;  %v262_v23 = vsub.f32 %v241_v15, %v257_v12 }
  0x15   : > { %v252_v6 = vmax.f32 %v251_v5, 0.0  ;;  %v263_v25 = vsub.f32 %v242_v16, %v257_v12  ;;  %v264_v26 = vsub.f32 %v243_v17, %v257_v12  ;;  %v265_v27 = vsub.f32 %v244_v18, %v257_v12 }
  0x16   : > { %v266_v28 = vsub.f32 %v245_v19, %v257_v12 }
  0x17   : > { %v267_v8 = vadd.f32 1e-05, %v252_v6 }
  0x19   : > { %441 = vrsqrt.f32 %v267_v8 }
  0x26   : > { %v442_v24 = vpop.eup %441 }
  0x27   : > { %v273_v29 = vrot.slane %v442_v24, %v256_v10 }
  0x29   : > { %v275_v30 = vmul.f32 %v273_v29, %v259_v20  ;;  %v276_v31 = vmul.f32 %v273_v29, %v260_v21  ;;  %v277_v32 = vmul.f32 %v273_v29, %v261_v22  ;;  %v278_v33 = vmul.f32 %v273_v29, %v262_v23 }
  0x2a   : > { %v279_v34 = vmul.f32 %v273_v29, %v263_v25  ;;  %v280_v35 = vmul.f32 %v273_v29, %v264_v26  ;;  %v281_v36 = vmul.f32 %v273_v29, %v265_v27  ;;  %v282_v37 = vmul.f32 %v273_v29, %v266_v28 }
  0x2b   : > { %v283_v38 = vmax.f32 %v275_v30, 0.0  ;;  %v284_v39 = vmax.f32 %v276_v31, 0.0  ;;  %v285_v40 = vmax.f32 %v277_v32, 0.0  ;;  %v286_v41 = vmax.f32 %v278_v33, 0.0 }
  0x2c   : > { %v287_v42 = vmax.f32 %v279_v34, 0.0  ;;  %v288_v43 = vmax.f32 %v280_v35, 0.0  ;;  %v289_v44 = vmax.f32 %v281_v36, 0.0  ;;  %v290_v45 = vmax.f32 %v282_v37, 0.0 }
  0x2d   : > { %291 = vst [vmem:[%s236_s28] sm:$0xff] %v283_v38  ;;  %292 = vst [vmem:[%s236_s28 + $0x8] sm:$0xff] %v284_v39 }
  0x2e   : > { %293 = vst [vmem:[%s236_s28 + $0x10] sm:$0xff] %v285_v40  ;;  %294 = vst [vmem:[%s236_s28 + $0x18] sm:$0xff] %v286_v41 }
  0x2f   : > { %295 = vst [vmem:[%s236_s28 + $0x20] sm:$0xff] %v287_v42  ;;  %296 = vst [vmem:[%s236_s28 + $0x28] sm:$0xff] %v288_v43 }
  0x30   : > { %297 = vst [vmem:[%s236_s28 + $0x30] sm:$0xff] %v289_v44  ;;  %298 = vst [vmem:[%s236_s28 + $0x38] sm:$0xff] %v290_v45 }
  0x31 PF: > { %s13_s14 = sadd.s32 1, %s465_s14   ;;  %s535_s12 = smov %s461_s13 }
  0x32   : > { %p10_p5 = scmp.ge.s32.totalorder %s13_s14, 4   ;;  %s536_s13 = smov %s538_s15 }
  0x34   :  { %12 = sbr.rel (!%p10_p5) target bundleno = 2 (0x2), region = 68 }

// kernel: generator_resnet_forward.35
= control target key start
LH: loop header
LB: loop body
LE: loop exit
PB: predicated region body
PF: predicated region fallthrough
CT: control target
= control target key end

     0   :  { %s463_s9 = smov 0   ;;  %s465_s10 = smov 0   ;;  %s519_s0 = inlined_call_operand.vmem [shape: f32[2,16,256], index: 0, kind: input, shape index: {}]   ;;  %s520_s1 = inlined_call_operand.vmem [shape: f32[2,1,256], index: 1, kind: output, shape index: {0}]   ;;  %s521_s2 = inlined_call_operand.vmem [shape: f32[2,1,256], index: 2, kind: output, shape index: {1}]  }
   0x1   :  { %s467_s11 = smov 0  }
   0x2 LB: > { %s25_s12 = sadd.s32 1, %s440_s10  ;;  %p388_p0 = scmp.ge.s32.totalorder %s444_s11, 1  ;;  %s444_s11 = sphi %s467_s11, %s13_s11   ;;  %s440_s10 = sphi %s465_s10, %s525_s10   ;;  %s436_s9 = sphi %s463_s9, %s524_s9  }
   0x3   : > { %p27_p1 = scmp.ge.s32.totalorder %s25_s12, 2  ;;  %p135_p2 = scmp.lt.s32.totalorder %s444_s11, 3 }
   0x5   : > { %s527_s12 = smov (%p27_p1, %s25_s12), 0  ;;  %p136_p3 = pnand %p388_p0, %p135_p2 }
   0x6   : > { %p166_p4 = scmp.lt.s32.totalorder (!%p136_p3), %s436_s9, 1 }
   0x7   : > { %139 = sbr.rel (%p136_p3) target bundleno = 50 (0x32), region = 24 }
   0xc   : > { %v188_v0 = vlaneseq  ;;  %s529_s9 = smov (!%p166_p4, %s436_s9), 1  ;;  %v446_v2 = vmov 0.0   ;;  %v447_v20 = vmov 1966171168  }
   0xd   : > { %s395_s13 = sshll.u32 %s529_s9, 5  ;;  %v217_v21 = vunpack.c.l.s4 %v447_v20  ;;  %s391_s17 = sshll.u32 %s529_s9, 1 }
   0xe   : > { %vm481_vm0 = vcmp.lt.s32.totalorder %v188_v0, 256  ;;  %s174_s16 = scalar_lea.vmem %s519_s0, %s395_s13  ;;  %v220_v29 = vshrl.u32 %v188_v0, 7  ;;  %s179_s20 = scalar_lea.vmem %s520_s1, %s391_s17 }
   0xf   : > { %192 = vst.msk [vmem:[#allocation2] sm:$0x3] %vm481_vm0, %v446_v2  ;;  %193 = vst.msk [vmem:[#allocation3] sm:$0x3] %vm481_vm0, %v446_v2  ;;  %v194_v3 = vld [vmem:[%s174_s16] sm:$0xff]  ;;  %v195_v4 = vld [vmem:[%s174_s16 + $0x8] sm:$0xff]  ;;  %v218_v31 = vunpack.c.0.s8 %v217_v21  ;;  %s183_s23 = scalar_lea.vmem %s521_s2, %s391_s17 }
  0x10   : > { %v196_v5 = vld [vmem:[%s174_s16 + $0x10] sm:$0xff]  ;;  %v197_v6 = vld [vmem:[%s174_s16 + $0x18] sm:$0xff]  ;;  %v238_v8 = vmul.f32 %v194_v3, %v194_v3  ;;  %v239_v9 = vmul.f32 %v195_v4, %v195_v4 }
  0x11   : > { %v199_v7 = vadd.f32 %v196_v5, %v194_v3  ;;  %v240_v10 = vmul.f32 %v196_v5, %v196_v5  ;;  %v206_v11 = vadd.f32 %v197_v6, %v195_v4  ;;  %v241_v12 = vmul.f32 %v197_v6, %v197_v6 }
  0x12   : > { %v221_v40 = vsub.s32 %v218_v31, %v220_v29 }
  0x13   : > { %v200_v13 = vrot.slane %v199_v7, 4  ;;  %v242_v14 = vadd.f32 %v240_v10, %v238_v8  ;;  %v207_v15 = vrot.slane %v206_v11, 4  ;;  %v249_v16 = vadd.f32 %v241_v12, %v239_v9 }
  0x15   : > { %v201_v17 = vadd.f32 %v200_v13, %v199_v7  ;;  %v243_v18 = vrot.slane %v242_v14, 4  ;;  %v208_v19 = vadd.f32 %v207_v15, %v206_v11  ;;  %v250_v22 = vrot.slane %v249_v16, 4 }
  0x16   : > { %v198_v47 = vld [vmem:[#allocation2] sm:$0x3]  ;;  %v237_v50 = vld [vmem:[#allocation3] sm:$0x3] }
  0x17   : > { %v202_v23 = vrot.slane %v201_v17, 2  ;;  %v244_v24 = vadd.f32 %v243_v18, %v242_v14  ;;  %v209_v25 = vrot.slane %v208_v19, 2  ;;  %v251_v26 = vadd.f32 %v250_v22, %v249_v16 }
  0x19   : > { %v203_v27 = vadd.f32 %v202_v23, %v201_v17  ;;  %v245_v28 = vrot.slane %v244_v24, 2  ;;  %v210_v30 = vadd.f32 %v209_v25, %v208_v19  ;;  %v252_v32 = vrot.slane %v251_v26, 2 }
  0x1b   : > { %v204_v33 = vrot.slane %v203_v27, 1  ;;  %v246_v34 = vadd.f32 %v245_v28, %v244_v24  ;;  %v211_v35 = vrot.slane %v210_v30, 1  ;;  %v253_v36 = vadd.f32 %v252_v32, %v251_v26 }
  0x1d   : > { %v205_v37 = vadd.f32 %v204_v33, %v203_v27  ;;  %v247_v38 = vrot.slane %v246_v34, 1  ;;  %v212_v39 = vadd.f32 %v211_v35, %v210_v30  ;;  %v254_v41 = vrot.slane %v253_v36, 1 }
  0x1f   : > { %v248_v42 = vadd.f32 %v247_v38, %v246_v34  ;;  %v215_v43 = vcombine.low %v205_v37, %v212_v39  ;;  %v255_v44 = vadd.f32 %v254_v41, %v253_v36 }
  0x21   : > { %v222_v45 = vrot.slane %v215_v43, %v221_v40  ;;  %v258_v46 = vcombine.low %v248_v42, %v255_v44 }
  0x23   : > { %v229_v48 = vrot.slane %v222_v45, %v221_v40  ;;  %v265_v49 = vrot.slane %v258_v46, %v221_v40 }
  0x25   : > { %v231_v51 = vadd.f32 %v229_v48, %v198_v47  ;;  %v272_v52 = vrot.slane %v265_v49, %v221_v40 }
  0x27   : > { %236 = vst.msk [vmem:[#allocation2] sm:$0x3] %vm481_vm0, %v231_v51  ;;  %v274_v53 = vadd.f32 %v272_v52, %v237_v50 }
  0x29   : > { %275 = vst.msk [vmem:[#allocation3] sm:$0x3] %vm481_vm0, %v274_v53 }
  0x2e   : > { %v279_v54 = vld [vmem:[#allocation2] sm:$0x3] }
  0x2f   : > { %280 = vst.msk [vmem:[%s179_s20] sm:$0x3] %vm481_vm0, %v279_v54 }
  0x30   : > { %v281_v55 = vld [vmem:[#allocation3] sm:$0x3] }
  0x31   : > { %282 = vst.msk [vmem:[%s183_s23] sm:$0x3] %vm481_vm0, %v281_v55 }
  0x32 PF: > { %s13_s11 = sadd.s32 1, %s444_s11   ;;  %s524_s9 = smov %s440_s10 }
  0x33   : > { %p10_p5 = scmp.ge.s32.totalorder %s13_s11, 4   ;;  %s525_s10 = smov %s527_s12 }
  0x35   :  { %12 = sbr.rel (!%p10_p5) target bundleno = 2 (0x2), region = 74 }

// kernel: generator_resnet_forward.34
= control target key start
LH: loop header
LB: loop body
LE: loop exit
PB: predicated region body
PF: predicated region fallthrough
CT: control target
= control target key end

     0   :  { %s1409_s12 = smov 0   ;;  %s1411_s13 = smov 0   ;;  %s1681_s0 = inlined_call_operand.vmem [shape: bf16[128,1280], index: 0, kind: input, shape index: {}]   ;;  %s1682_s1 = inlined_call_operand.vmem [shape: bf16[1280,256], index: 1, kind: input, shape index: {}]   ;;  %s1683_s2 = inlined_call_operand.vmem [shape: f32[1,256], index: 2, kind: input, shape index: {}]   ;;  %s1684_s3 = inlined_call_operand.vmem [shape: f32[128,256], index: 3, kind: output, shape index: {}]  }
   0x1   :  { %s1413_s14 = smov 0   ;;  %s1415_s15 = smov 0  }
   0x2   :  { %s1417_s16 = smov 0  }
   0x3 LB: > { %s25_s17 = sadd.s32 1, %s1382_s15  ;;  %p48_p1 = scmp.ne.s32.totalorder %s1374_s13, %s1370_s12  ;;  %s1386_s16 = sphi %s1417_s16, %s13_s16   ;;  %s1382_s15 = sphi %s1415_s15, %s1688_s15   ;;  %s1378_s14 = sphi %s1413_s14, %s1687_s14   ;;  %s1374_s13 = sphi %s1411_s13, %s1686_s13   ;;  %s1370_s12 = sphi %s1409_s12, %s1685_s12  }
   0x4   : > { %p26_p0 = scmp.ge.s32.totalorder %s25_s17, 5  ;;  %p49_p2 = scmp.eq.s32.totalorder %s1386_s16, 0 }
   0x5   : > { %s41_s19 = sadd.s32 1, %s1374_s13  ;;  %p1138_p5 = scmp.ge.s32.totalorder %s1386_s16, 5 }
   0x6   : > { %s1690_s17 = smov (%p26_p0, %s25_s17), 0  ;;  %p50_p3 = por %p49_p2, %p48_p1 }
   0x7   : > { %s37_s18 = ssub.s32 %s1382_s15, %s1690_s17  ;;  %164 = sbr.rel (%p1138_p5) target bundleno = 24 (0x18), region = 20 }
   0x8   : > { %p39_p4 = scmp.eq.s32.totalorder %s37_s18, 0 }
   0xa   : > { %s1444_s20 = scalar_select %p39_p4, %s1374_s13, %s41_s19  }
   0xc   : > { %167 = sbr.rel (!%p50_p3) target bundleno = 24 (0x18), region = 24  ;;  %s169_s21 = sand.u32 (%p50_p3), 1, %s1374_s13  }
   0xd   : > { %s1201_s22 = sshll.u32 (%p50_p3), %s1382_s15, 3  ;;  %s1139_s23 = sshll.u32 (%p50_p3), %s169_s21, 7 }
   0xe   : > { %s1452_s26 = scalar_lea.vmem (%p50_p3), %s1681_s0, %s1201_s22  ;;  %s171_s27 = scalar_lea.vmem (%p50_p3), [#allocation3], %s1139_s23 }
   0xf   : > { %v236_v0 = vld [vmem:[%s1452_s26] sm:$0xff] (%p50_p3)  ;;  %v238_v1 = vld [vmem:[%s1452_s26 + $0x28] sm:$0xff] (%p50_p3)  ;;  %v240_v2 = vld [vmem:[%s1452_s26 + $0x50] sm:$0xff] (%p50_p3) }
  0x10   : > { %237 = vst [vmem:[%s171_s27] sm:$0xff] (%p50_p3), %v236_v0  ;;  %239 = vst [vmem:[%s171_s27 + $0x8] sm:$0xff] (%p50_p3), %v238_v1  ;;  %v242_v3 = vld [vmem:[%s1452_s26 + $0x78] sm:$0xff] (%p50_p3)  ;;  %v244_v4 = vld [vmem:[%s1452_s26 + $0xa0] sm:$0xff] (%p50_p3) }
  0x11   : > { %241 = vst [vmem:[%s171_s27 + $0x10] sm:$0xff] %v240_v2  ;;  %v246_v5 = vld [vmem:[%s1452_s26 + $0xc8] sm:$0xff]  ;;  %243 = vst [vmem:[%s171_s27 + $0x18] sm:$0xff] %v242_v3  ;;  %v248_v6 = vld [vmem:[%s1452_s26 + $0xf0] sm:$0xff] }
  0x12   : > { %245 = vst [vmem:[%s171_s27 + $0x20] sm:$0xff] %v244_v4  ;;  %247 = vst [vmem:[%s171_s27 + $0x28] sm:$0xff] %v246_v5  ;;  %v250_v7 = vld [vmem:[%s1452_s26 + $0x118] sm:$0xff]  ;;  %v252_v8 = vld [vmem:[%s1452_s26 + $0x140] sm:$0xff] }
  0x13   : > { %249 = vst [vmem:[%s171_s27 + $0x30] sm:$0xff] %v248_v6  ;;  %251 = vst [vmem:[%s171_s27 + $0x38] sm:$0xff] %v250_v7  ;;  %v254_v9 = vld [vmem:[%s1452_s26 + $0x168] sm:$0xff]  ;;  %v256_v10 = vld [vmem:[%s1452_s26 + $0x190] sm:$0xff] }
  0x14   : > { %253 = vst [vmem:[%s171_s27 + $0x40] sm:$0xff] %v252_v8  ;;  %v258_v11 = vld [vmem:[%s1452_s26 + $0x1b8] sm:$0xff]  ;;  %255 = vst [vmem:[%s171_s27 + $0x48] sm:$0xff] %v254_v9  ;;  %v260_v12 = vld [vmem:[%s1452_s26 + $0x1e0] sm:$0xff] }
  0x15   : > { %257 = vst [vmem:[%s171_s27 + $0x50] sm:$0xff] %v256_v10  ;;  %259 = vst [vmem:[%s171_s27 + $0x58] sm:$0xff] %v258_v11  ;;  %v262_v13 = vld [vmem:[%s1452_s26 + $0x208] sm:$0xff]  ;;  %v264_v14 = vld [vmem:[%s1452_s26 + $0x230] sm:$0xff] }
  0x16   : > { %261 = vst [vmem:[%s171_s27 + $0x60] sm:$0xff] %v260_v12  ;;  %263 = vst [vmem:[%s171_s27 + $0x68] sm:$0xff] %v262_v13  ;;  %v266_v15 = vld [vmem:[%s1452_s26 + $0x258] sm:$0xff] }
  0x17   : > { %265 = vst [vmem:[%s171_s27 + $0x70] sm:$0xff] %v264_v14  ;;  %267 = vst [vmem:[%s171_s27 + $0x78] sm:$0xff] %v266_v15 }
  0x18 PF: > { %p1142_p6 = scmp.ge.s32.totalorder %s1386_s16, 1  ;;  %p287_p7 = scmp.lt.s32.totalorder %s1386_s16, 6 }
  0x1a   : > { %p288_p8 = pnand %p1142_p6, %p287_p7 }
  0x1b   : > { %s294_s28 = sand.u32 (!%p288_p8), 1, %s1370_s12   ;;  %s1144_s29 = sshll.u32 (!%p288_p8), %s1378_s14, 5 }
  0x1c   : > { %291 = sbr.rel (%p288_p8) target bundleno = 372 (0x174), region = 66  ;;  %s1143_s30 = sshll.u32 (!%p288_p8), %s294_s28, 7 }
  0x1d   : > { %p340_p9 = scmp.lt.s32.totalorder (!%p288_p8), %s1144_s29, 159  ;;  %s1479_s8 = scalar_lea.vmem (!%p288_p8), [#allocation3], %s1143_s30 }
  0x1e   : > { %p1147_p10 = scmp.ne.s32.totalorder (!%p288_p8), %s1378_s14, 0 }
  0x21   : > { %s1692_s29 = smov (!%p340_p9, %s1144_s29), 159  ;;  %370 = sbr.rel (%p1147_p10) target bundleno = 55 (0x37), region = 74 }
  0x22   : > { %s1202_s4 = sshll.u32 %s1692_s29, 3 }
  0x23   : > { %s1477_s7 = scalar_lea.vmem %s1682_s1, %s1202_s4 }
  0x26   : > { %v1388_v16 = vmov 0.0  }
  0x27   : > { %371 = vst [vmem:[#allocation2 + $0xb0] sm:$0xff] %v1388_v16  ;;  %372 = vst [vmem:[#allocation2] sm:$0xff] %v1388_v16 }
  0x28   : > { %373 = vst [vmem:[#allocation2 + $0xd8] sm:$0xff] %v1388_v16  ;;  %374 = vst [vmem:[#allocation2 + $0x18] sm:$0xff] %v1388_v16 }
  0x29   : > { %375 = vst [vmem:[#allocation2 + $0x50] sm:$0xff] %v1388_v16  ;;  %376 = vst [vmem:[#allocation2 + $0x68] sm:$0xff] %v1388_v16 }
  0x2a   : > { %377 = vst [vmem:[#allocation2 + $0x30] sm:$0xff] %v1388_v16  ;;  %378 = vst [vmem:[#allocation2 + $0x48] sm:$0xff] %v1388_v16 }
  0x2b   : > { %379 = vst [vmem:[#allocation2 + $0x80] sm:$0xff] %v1388_v16  ;;  %380 = vst [vmem:[#allocation2 + $0x88] sm:$0xff] %v1388_v16 }
  0x2c   : > { %381 = vst [vmem:[#allocation2 + $0xe8] sm:$0xff] %v1388_v16  ;;  %382 = vst [vmem:[#allocation2 + $0xb8] sm:$0xff] %v1388_v16 }
  0x2d   : > { %383 = vst [vmem:[#allocation2 + $0x60] sm:$0xff] %v1388_v16  ;;  %384 = vst [vmem:[#allocation2 + $0xf0] sm:$0xff] %v1388_v16 }
  0x2e   : > { %385 = vst [vmem:[#allocation2 + $0x8] sm:$0xff] %v1388_v16  ;;  %386 = vst [vmem:[#allocation2 + $0x78] sm:$0xff] %v1388_v16 }
  0x2f   : > { %387 = vst [vmem:[#allocation2 + $0x38] sm:$0xff] %v1388_v16  ;;  %388 = vst [vmem:[#allocation2 + $0x58] sm:$0xff] %v1388_v16 }
  0x30   : > { %389 = vst [vmem:[#allocation2 + $0x40] sm:$0xff] %v1388_v16  ;;  %390 = vst [vmem:[#allocation2 + $0xc8] sm:$0xff] %v1388_v16 }
  0x31   : > { %391 = vst [vmem:[#allocation2 + $0xe0] sm:$0xff] %v1388_v16  ;;  %392 = vst [vmem:[#allocation2 + $0x90] sm:$0xff] %v1388_v16 }
  0x32   : > { %393 = vst [vmem:[#allocation2 + $0x70] sm:$0xff] %v1388_v16  ;;  %394 = vst [vmem:[#allocation2 + $0xc0] sm:$0xff] %v1388_v16 }
  0x33   : > { %395 = vst [vmem:[#allocation2 + $0xa8] sm:$0xff] %v1388_v16  ;;  %396 = vst [vmem:[#allocation2 + $0xd0] sm:$0xff] %v1388_v16 }
  0x34   : > { %397 = vst [vmem:[#allocation2 + $0x10] sm:$0xff] %v1388_v16  ;;  %398 = vst [vmem:[#allocation2 + $0x28] sm:$0xff] %v1388_v16 }
  0x35   : > { %399 = vst [vmem:[#allocation2 + $0xa0] sm:$0xff] %v1388_v16  ;;  %400 = vst [vmem:[#allocation2 + $0xf8] sm:$0xff] %v1388_v16 }
  0x36   : > { %401 = vst [vmem:[#allocation2 + $0x20] sm:$0xff] %v1388_v16  ;;  %402 = vst [vmem:[#allocation2 + $0x98] sm:$0xff] %v1388_v16 }
  0x37 PF: > { %v1276_v17 = vld [vmem:[%s1477_s7 + $0x74] ss:$8 sps:$4 sm:$0xff]   ;;  %v1278_v18 = vld [vmem:[%s1477_s7 + $0x70] ss:$8 sps:$4 sm:$0xff]   ;;  %v1279_v19 = vld [vmem:[%s1477_s7 + $0x64] ss:$8 sps:$4 sm:$0xff]  }
  0x38   : > { %723 = vmatprep.subr.bf16.mxu0 %v1276_v17  ;;  %1203 = vmatprep.subr.bf16.mxu1 %v1276_v17  ;;  %v1281_v20 = vld [vmem:[%s1477_s7 + $0x60] ss:$8 sps:$4 sm:$0xff]   ;;  %v1282_v21 = vld [vmem:[%s1477_s7 + $0x54] ss:$8 sps:$4 sm:$0xff]   ;;  %v1284_v22 = vld [vmem:[%s1477_s7 + $0x50] ss:$8 sps:$4 sm:$0xff]  }
  0x39   : > { %724 = vmatpush1.bf16.msra.mxu0 %v1278_v18  ;;  %1219 = vmatpush1.bf16.msra.mxu1 %v1278_v18  ;;  %v1285_v23 = vld [vmem:[%s1477_s7 + $0x44] ss:$8 sps:$4 sm:$0xff]   ;;  %v1287_v24 = vld [vmem:[%s1477_s7 + $0x40] ss:$8 sps:$4 sm:$0xff]   ;;  %v1288_v25 = vld [vmem:[%s1477_s7 + $0x34] ss:$8 sps:$4 sm:$0xff]  }
  0x3a   : > { %725 = vmatprep.subr.bf16.mxu0 %v1279_v19  ;;  %1204 = vmatprep.subr.bf16.mxu1 %v1279_v19  ;;  %v1290_v26 = vld [vmem:[%s1477_s7 + $0x30] ss:$8 sps:$4 sm:$0xff]   ;;  %v1291_v27 = vld [vmem:[%s1477_s7 + $0x24] ss:$8 sps:$4 sm:$0xff]   ;;  %v1293_v28 = vld [vmem:[%s1477_s7 + $0x20] ss:$8 sps:$4 sm:$0xff]  }
  0x3b   : > { %v1294_v29 = vld [vmem:[%s1477_s7 + $0x14] ss:$8 sps:$4 sm:$0xff]   ;;  %v1326_v30 = vld [vmem:[%s1479_s8 + $0x4] ss:$8 sps:$4 sm:$0xff]   ;;  %v1296_v31 = vld [vmem:[%s1477_s7 + $0x10] ss:$8 sps:$4 sm:$0xff]  }
  0x3c   : > { %v1329_v32 = vld [vmem:[%s1479_s8 + $0x44] ss:$8 sps:$4 sm:$0xff]   ;;  %755 = vmatprep.mubr.bf16.mxu0 %v1326_v30  ;;  %v1299_v34 = vld [vmem:[%s1477_s7] ss:$8 sps:$4 sm:$0xff]   ;;  %v1300_v35 = vld [vmem:[%s1477_s7 + $0xf4] ss:$8 sps:$4 sm:$0xff]  }
  0x3d   : > { %726 = vmatpush1.bf16.msra.mxu0 %v1281_v20  ;;  %1220 = vmatpush1.bf16.msra.mxu1 %v1281_v20  ;;  %v1297_v33 = vld [vmem:[%s1477_s7 + $0x4] ss:$8 sps:$4 sm:$0xff]   ;;  %v1302_v36 = vld [vmem:[%s1477_s7 + $0xf0] ss:$8 sps:$4 sm:$0xff]   ;;  %v1305_v38 = vld [vmem:[%s1477_s7 + $0xe0] ss:$8 sps:$4 sm:$0xff]  }
  0x3e   : > { %727 = vmatprep.subr.bf16.mxu0 %v1282_v21  ;;  %1205 = vmatprep.subr.bf16.mxu1 %v1282_v21  ;;  %v1303_v37 = vld [vmem:[%s1477_s7 + $0xe4] ss:$8 sps:$4 sm:$0xff]   ;;  %v1306_v39 = vld [vmem:[%s1477_s7 + $0xd4] ss:$8 sps:$4 sm:$0xff]   ;;  %v1308_v40 = vld [vmem:[%s1477_s7 + $0xd0] ss:$8 sps:$4 sm:$0xff]  }
  0x3f   : > { %795 = vmatprep.mubr.bf16.mxu1 %v1329_v32  ;;  %v1309_v41 = vld [vmem:[%s1477_s7 + $0xc4] ss:$8 sps:$4 sm:$0xff]   ;;  %v1311_v42 = vld [vmem:[%s1477_s7 + $0xc0] ss:$8 sps:$4 sm:$0xff]   ;;  %v1312_v43 = vld [vmem:[%s1477_s7 + $0xb4] ss:$8 sps:$4 sm:$0xff]  }
  0x40   : > { %v1314_v44 = vld [vmem:[%s1477_s7 + $0xb0] ss:$8 sps:$4 sm:$0xff]   ;;  %v1315_v45 = vld [vmem:[%s1477_s7 + $0xa4] ss:$8 sps:$4 sm:$0xff]   ;;  %v1317_v46 = vld [vmem:[%s1477_s7 + $0xa0] ss:$8 sps:$4 sm:$0xff]  }
  0x41   : > { %728 = vmatpush1.bf16.msra.mxu0 %v1284_v22  ;;  %1221 = vmatpush1.bf16.msra.mxu1 %v1284_v22  ;;  %v1318_v47 = vld [vmem:[%s1477_s7 + $0x94] ss:$8 sps:$4 sm:$0xff]   ;;  %v1320_v48 = vld [vmem:[%s1477_s7 + $0x90] ss:$8 sps:$4 sm:$0xff]   ;;  %v1321_v49 = vld [vmem:[%s1477_s7 + $0x84] ss:$8 sps:$4 sm:$0xff]  }
  0x42   : > { %729 = vmatprep.subr.bf16.mxu0 %v1285_v23  ;;  %1206 = vmatprep.subr.bf16.mxu1 %v1285_v23  ;;  %v1323_v50 = vld [vmem:[%s1477_s7 + $0x80] ss:$8 sps:$4 sm:$0xff]   ;;  %v1330_v53 = vld [vmem:[%s1479_s8 + $0x14] ss:$8 sps:$4 sm:$0xff]   ;;  %v1334_v55 = vld [vmem:[%s1479_s8 + $0x10] ss:$8 sps:$4 sm:$0xff]  }
  0x43   : > { %v1324_v51 = vld [vmem:[%s1479_s8] ss:$8 sps:$4 sm:$0xff]   ;;  %v1332_v54 = vld [vmem:[%s1479_s8 + $0x54] ss:$8 sps:$4 sm:$0xff]   ;;  %v1335_v56 = vld [vmem:[%s1479_s8 + $0x50] ss:$8 sps:$4 sm:$0xff]  }
  0x44   : > { %v1327_v52 = vld [vmem:[%s1479_s8 + $0x40] ss:$8 sps:$4 sm:$0xff]   ;;  %v1336_v57 = vld [vmem:[%s1479_s8 + $0x24] ss:$8 sps:$4 sm:$0xff]   ;;  %v1342_v61 = vld [vmem:[%s1479_s8 + $0x34] ss:$8 sps:$4 sm:$0xff]  }
  0x45   : > { %730 = vmatpush1.bf16.msra.mxu0 %v1287_v24  ;;  %1222 = vmatpush1.bf16.msra.mxu1 %v1287_v24  ;;  %v1338_v58 = vld [vmem:[%s1479_s8 + $0x64] ss:$8 sps:$4 sm:$0xff]   ;;  %v1340_v59 = vld [vmem:[%s1479_s8 + $0x20] ss:$8 sps:$4 sm:$0xff]   ;;  %v1344_v62 = vld [vmem:[%s1479_s8 + $0x74] ss:$8 sps:$4 sm:$0xff]  }
  0x46   : > { %731 = vmatprep.subr.bf16.mxu0 %v1288_v25  ;;  %1207 = vmatprep.subr.bf16.mxu1 %v1288_v25  ;;  %v1341_v60 = vld [vmem:[%s1479_s8 + $0x60] ss:$8 sps:$4 sm:$0xff]   ;;  %v1346_v63 = vld [vmem:[%s1479_s8 + $0x30] ss:$8 sps:$4 sm:$0xff]   ;;  %p1196_p11 = scmp.ne.s32.totalorder %s1378_s14, 4 }
  0x47   : > { %v1347_v0 = vld [vmem:[%s1479_s8 + $0x70] ss:$8 sps:$4 sm:$0xff]   ;;  %v404_v5 = vld [vmem:[#allocation2] sm:$0xff]  ;;  %v422_v18 = vld [vmem:[#allocation2 + $0xc8] sm:$0xff] }
  0x48   : > { %v403_v1 = vld [vmem:[#allocation2 + $0xb0] sm:$0xff]  ;;  %v419_v2 = vld [vmem:[#allocation2 + $0x38] sm:$0xff]  ;;  %v421_v12 = vld [vmem:[#allocation2 + $0x40] sm:$0xff] }
  0x49   : > { %732 = vmatpush1.bf16.msra.mxu0 %v1290_v26  ;;  %1223 = vmatpush1.bf16.msra.mxu1 %v1290_v26  ;;  %v420_v6 = vld [vmem:[#allocation2 + $0x58] sm:$0xff]  ;;  %v407_v23 = vld [vmem:[#allocation2 + $0x50] sm:$0xff]  ;;  %v423_v24 = vld [vmem:[#allocation2 + $0xe0] sm:$0xff] }
  0x4a   : > { %733 = vmatprep.subr.bf16.mxu0 %v1291_v27  ;;  %1208 = vmatprep.subr.bf16.mxu1 %v1291_v27  ;;  %v405_v11 = vld [vmem:[#allocation2 + $0xd8] sm:$0xff]  ;;  %v424_v30 = vld [vmem:[#allocation2 + $0x90] sm:$0xff] }
  0x4b   : > { %v406_v17 = vld [vmem:[#allocation2 + $0x18] sm:$0xff] }
  0x4d   : > { %734 = vmatpush1.bf16.msra.mxu0 %v1293_v28  ;;  %1224 = vmatpush1.bf16.msra.mxu1 %v1293_v28 }
  0x4e   : > { %735 = vmatprep.subr.bf16.mxu0 %v1294_v29  ;;  %1209 = vmatprep.subr.bf16.mxu1 %v1294_v29  ;;  %v408_v29 = vld [vmem:[#allocation2 + $0x68] sm:$0xff] }
  0x51   : > { %736 = vmatpush1.bf16.msra.mxu0 %v1296_v31  ;;  %1225 = vmatpush1.bf16.msra.mxu1 %v1296_v31 }
  0x52   : > { %737 = vmatprep.subr.bf16.mxu0 %v1297_v33  ;;  %1210 = vmatprep.subr.bf16.mxu1 %v1297_v33 }
  0x55   : > { %738 = vmatpush1.bf16.msra.mxu0 %v1299_v34  ;;  %1226 = vmatpush1.bf16.msra.mxu1 %v1299_v34 }
  0x56   : > { %739 = vmatprep.subr.bf16.mxu0 %v1300_v35  ;;  %1211 = vmatprep.subr.bf16.mxu1 %v1300_v35  ;;  %v409_v35 = vld [vmem:[#allocation2 + $0x30] sm:$0xff] }
  0x59   : > { %740 = vmatpush2.bf16.msra.mxu0 %v1302_v36  ;;  %1227 = vmatpush2.bf16.msra.mxu1 %v1302_v36  ;;  %v425_v36 = vld [vmem:[#allocation2 + $0x70] sm:$0xff] }
  0x5a   : > { %741 = vmatprep.subr.bf16.mxu0 %v1303_v37  ;;  %1212 = vmatprep.subr.bf16.mxu1 %v1303_v37 }
  0x5d   : > { %742 = vmatpush2.bf16.msra.mxu0 %v1305_v38  ;;  %1228 = vmatpush2.bf16.msra.mxu1 %v1305_v38 }
  0x5e   : > { %743 = vmatprep.subr.bf16.mxu0 %v1306_v39  ;;  %1213 = vmatprep.subr.bf16.mxu1 %v1306_v39 }
  0x61   : > { %744 = vmatpush2.bf16.msra.mxu0 %v1308_v40  ;;  %1229 = vmatpush2.bf16.msra.mxu1 %v1308_v40 }
  0x62   : > { %745 = vmatprep.subr.bf16.mxu0 %v1309_v41  ;;  %1214 = vmatprep.subr.bf16.mxu1 %v1309_v41  ;;  %v410_v41 = vld [vmem:[#allocation2 + $0x48] sm:$0xff] }
  0x65   : > { %746 = vmatpush2.bf16.msra.mxu0 %v1311_v42  ;;  %1230 = vmatpush2.bf16.msra.mxu1 %v1311_v42  ;;  %v426_v42 = vld [vmem:[#allocation2 + $0xc0] sm:$0xff] }
  0x66   : > { %747 = vmatprep.subr.bf16.mxu0 %v1312_v43  ;;  %1215 = vmatprep.subr.bf16.mxu1 %v1312_v43 }
  0x69   : > { %748 = vmatpush2.bf16.msra.mxu0 %v1314_v44  ;;  %1231 = vmatpush2.bf16.msra.mxu1 %v1314_v44 }
  0x6a   : > { %749 = vmatprep.subr.bf16.mxu0 %v1315_v45  ;;  %1216 = vmatprep.subr.bf16.mxu1 %v1315_v45 }
  0x6d   : > { %750 = vmatpush2.bf16.msra.mxu0 %v1317_v46  ;;  %1232 = vmatpush2.bf16.msra.mxu1 %v1317_v46 }
  0x6e   : > { %751 = vmatprep.subr.bf16.mxu0 %v1318_v47  ;;  %1217 = vmatprep.subr.bf16.mxu1 %v1318_v47  ;;  %v411_v47 = vld [vmem:[#allocation2 + $0x80] sm:$0xff] }
  0x71   : > { %752 = vmatpush2.bf16.msra.mxu0 %v1320_v48  ;;  %1233 = vmatpush2.bf16.msra.mxu1 %v1320_v48  ;;  %v427_v48 = vld [vmem:[#allocation2 + $0xa8] sm:$0xff] }
  0x72   : > { %753 = vmatprep.subr.bf16.mxu0 %v1321_v49  ;;  %1218 = vmatprep.subr.bf16.mxu1 %v1321_v49 }
  0x75   : > { %754 = vmatpush2.bf16.msra.mxu0 %v1323_v50  ;;  %1234 = vmatpush2.bf16.msra.mxu1 %v1323_v50 }
  0x78   : > { %756 = vmatmul.mubr.bf16.vlgmr.msra.gmra.mxu0 %v1324_v51  ;;  %796 = vmatmul.mubr.bf16.vlgmr.msra.gmra.mxu1 %v1327_v52 }
  0x79   : > { %765 = vmatprep.mubr.bf16.mxu0 %v1330_v53  ;;  %805 = vmatprep.mubr.bf16.mxu1 %v1332_v54  ;;  %v412_v53 = vld [vmem:[#allocation2 + $0x88] sm:$0xff]  ;;  %v428_v54 = vld [vmem:[#allocation2 + $0xd0] sm:$0xff] }
  0x80   : > { %766 = vmatmul.mubr.bf16.gmra.mxu0 %v1334_v55  ;;  %806 = vmatmul.mubr.bf16.gmra.mxu1 %v1335_v56 }
  0x81   : > { %775 = vmatprep.mubr.bf16.mxu0 %v1336_v57  ;;  %815 = vmatprep.mubr.bf16.mxu1 %v1338_v58 }
  0x88   : > { %776 = vmatmul.mubr.bf16.gmra.mxu0 %v1340_v59  ;;  %816 = vmatmul.mubr.bf16.gmra.mxu1 %v1341_v60  ;;  %v413_v59 = vld [vmem:[#allocation2 + $0xe8] sm:$0xff]  ;;  %v429_v60 = vld [vmem:[#allocation2 + $0x10] sm:$0xff] }
  0x89   : > { %785 = vmatprep.mubr.bf16.mxu0 %v1342_v61  ;;  %825 = vmatprep.mubr.bf16.mxu1 %v1344_v62 }
  0x90   : > { %786 = vmatmul.mubr.bf16.gmra.mxu0 %v1346_v63  ;;  %826 = vmatmul.mubr.bf16.gmra.mxu1 %v1347_v0 }
 0x138   : > { %v757_v3 = vpop.f32.mrf.mxu0  ;;  %v797_v4 = vpop.f32.mrf.mxu1 }
 0x139   : > { %v836_v7 = vadd.f32 %v757_v3, %v403_v1  ;;  %v852_v8 = vadd.f32 %v797_v4, %v419_v2  ;;  %v414_v1 = vld [vmem:[#allocation2 + $0xb8] sm:$0xff]  ;;  %v430_v2 = vld [vmem:[#allocation2 + $0x28] sm:$0xff] }
 0x13a   : > { %v759_v9 = vpop.f32.mrf.mxu0  ;;  %v799_v10 = vpop.f32.mrf.mxu1 }
 0x13b   : > { %868 = vst [vmem:[#allocation2 + $0xb0] sm:$0xff] %v836_v7  ;;  %884 = vst [vmem:[#allocation2 + $0x38] sm:$0xff] %v852_v8  ;;  %v837_v13 = vadd.f32 %v759_v9, %v404_v5  ;;  %v853_v14 = vadd.f32 %v799_v10, %v420_v6  ;;  %v415_v7 = vld [vmem:[#allocation2 + $0x60] sm:$0xff] }
 0x13c   : > { %v761_v15 = vpop.f32.mrf.mxu0  ;;  %v801_v16 = vpop.f32.mrf.mxu1  ;;  %v431_v8 = vld [vmem:[#allocation2 + $0xa0] sm:$0xff] }
 0x13d   : > { %869 = vst [vmem:[#allocation2] sm:$0xff] %v837_v13  ;;  %885 = vst [vmem:[#allocation2 + $0x58] sm:$0xff] %v853_v14  ;;  %v838_v19 = vadd.f32 %v761_v15, %v405_v11  ;;  %v854_v20 = vadd.f32 %v801_v16, %v421_v12  ;;  %v416_v13 = vld [vmem:[#allocation2 + $0xf0] sm:$0xff]  ;;  %v432_v14 = vld [vmem:[#allocation2 + $0xf8] sm:$0xff] }
 0x13e   : > { %v763_v21 = vpop.f32.mrf.mxu0  ;;  %v803_v22 = vpop.f32.mrf.mxu1 }
 0x13f   : > { %870 = vst [vmem:[#allocation2 + $0xd8] sm:$0xff] %v838_v19  ;;  %886 = vst [vmem:[#allocation2 + $0x40] sm:$0xff] %v854_v20  ;;  %v839_v25 = vadd.f32 %v763_v21, %v406_v17  ;;  %v855_v26 = vadd.f32 %v803_v22, %v422_v18  ;;  %v417_v19 = vld [vmem:[#allocation2 + $0x8] sm:$0xff]  ;;  %v433_v20 = vld [vmem:[#allocation2 + $0x20] sm:$0xff] }
 0x140   : > { %v767_v27 = vpop.f32.mrf.mxu0  ;;  %v807_v28 = vpop.f32.mrf.mxu1 }
 0x141   : > { %871 = vst [vmem:[#allocation2 + $0x18] sm:$0xff] %v839_v25  ;;  %887 = vst [vmem:[#allocation2 + $0xc8] sm:$0xff] %v855_v26  ;;  %v840_v31 = vadd.f32 %v767_v27, %v407_v23  ;;  %v856_v32 = vadd.f32 %v807_v28, %v423_v24  ;;  %v418_v25 = vld [vmem:[#allocation2 + $0x78] sm:$0xff] }
 0x142   : > { %v769_v33 = vpop.f32.mrf.mxu0  ;;  %v809_v34 = vpop.f32.mrf.mxu1  ;;  %v434_v26 = vld [vmem:[#allocation2 + $0x98] sm:$0xff] }
 0x143   : > { %872 = vst [vmem:[#allocation2 + $0x50] sm:$0xff] %v840_v31  ;;  %888 = vst [vmem:[#allocation2 + $0xe0] sm:$0xff] %v856_v32  ;;  %v841_v37 = vadd.f32 %v769_v33, %v408_v29  ;;  %v857_v38 = vadd.f32 %v809_v34, %v424_v30 }
 0x144   : > { %v771_v39 = vpop.f32.mrf.mxu0  ;;  %v811_v40 = vpop.f32.mrf.mxu1 }
 0x145   : > { %873 = vst [vmem:[#allocation2 + $0x68] sm:$0xff] %v841_v37  ;;  %889 = vst [vmem:[#allocation2 + $0x90] sm:$0xff] %v857_v38  ;;  %v842_v43 = vadd.f32 %v771_v39, %v409_v35  ;;  %v858_v44 = vadd.f32 %v811_v40, %v425_v36 }
 0x146   : > { %v773_v45 = vpop.f32.mrf.mxu0  ;;  %v813_v46 = vpop.f32.mrf.mxu1 }
 0x147   : > { %874 = vst [vmem:[#allocation2 + $0x30] sm:$0xff] %v842_v43  ;;  %890 = vst [vmem:[#allocation2 + $0x70] sm:$0xff] %v858_v44  ;;  %v843_v49 = vadd.f32 %v773_v45, %v410_v41  ;;  %v859_v50 = vadd.f32 %v813_v46, %v426_v42 }
 0x148   : > { %v777_v51 = vpop.f32.mrf.mxu0  ;;  %v817_v52 = vpop.f32.mrf.mxu1 }
 0x149   : > { %875 = vst [vmem:[#allocation2 + $0x48] sm:$0xff] %v843_v49  ;;  %891 = vst [vmem:[#allocation2 + $0xc0] sm:$0xff] %v859_v50  ;;  %v844_v55 = vadd.f32 %v777_v51, %v411_v47  ;;  %v860_v56 = vadd.f32 %v817_v52, %v427_v48 }
 0x14a   : > { %v779_v57 = vpop.f32.mrf.mxu0  ;;  %v819_v58 = vpop.f32.mrf.mxu1 }
 0x14b   : > { %876 = vst [vmem:[#allocation2 + $0x80] sm:$0xff] %v844_v55  ;;  %892 = vst [vmem:[#allocation2 + $0xa8] sm:$0xff] %v860_v56  ;;  %v845_v61 = vadd.f32 %v779_v57, %v412_v53  ;;  %v861_v62 = vadd.f32 %v819_v58, %v428_v54 }
 0x14c   : > { %v781_v63 = vpop.f32.mrf.mxu0  ;;  %v821_v0 = vpop.f32.mrf.mxu1 }
 0x14d   : > { %877 = vst [vmem:[#allocation2 + $0x88] sm:$0xff] %v845_v61  ;;  %893 = vst [vmem:[#allocation2 + $0xd0] sm:$0xff] %v861_v62  ;;  %v846_v3 = vadd.f32 %v781_v63, %v413_v59  ;;  %v862_v4 = vadd.f32 %v821_v0, %v429_v60 }
 0x14e   : > { %v783_v5 = vpop.f32.mrf.mxu0  ;;  %v823_v6 = vpop.f32.mrf.mxu1 }
 0x14f   : > { %878 = vst [vmem:[#allocation2 + $0xe8] sm:$0xff] %v846_v3  ;;  %894 = vst [vmem:[#allocation2 + $0x10] sm:$0xff] %v862_v4  ;;  %v847_v9 = vadd.f32 %v783_v5, %v414_v1  ;;  %v863_v10 = vadd.f32 %v823_v6, %v430_v2 }
 0x150   : > { %v787_v11 = vpop.f32.mrf.mxu0  ;;  %v827_v12 = vpop.f32.mrf.mxu1 }
 0x151   : > { %879 = vst [vmem:[#allocation2 + $0xb8] sm:$0xff] %v847_v9  ;;  %895 = vst [vmem:[#allocation2 + $0x28] sm:$0xff] %v863_v10  ;;  %v848_v15 = vadd.f32 %v787_v11, %v415_v7  ;;  %v864_v16 = vadd.f32 %v827_v12, %v431_v8 }
 0x152   : > { %v789_v17 = vpop.f32.mrf.mxu0  ;;  %v829_v18 = vpop.f32.mrf.mxu1 }
 0x153   : > { %880 = vst [vmem:[#allocation2 + $0x60] sm:$0xff] %v848_v15  ;;  %896 = vst [vmem:[#allocation2 + $0xa0] sm:$0xff] %v864_v16  ;;  %v849_v21 = vadd.f32 %v789_v17, %v416_v13  ;;  %v865_v22 = vadd.f32 %v829_v18, %v432_v14 }
 0x154   : > { %v791_v23 = vpop.f32.mrf.mxu0  ;;  %v831_v24 = vpop.f32.mrf.mxu1 }
 0x155   : > { %881 = vst [vmem:[#allocation2 + $0xf0] sm:$0xff] %v849_v21  ;;  %897 = vst [vmem:[#allocation2 + $0xf8] sm:$0xff] %v865_v22  ;;  %v850_v27 = vadd.f32 %v791_v23, %v417_v19  ;;  %v866_v28 = vadd.f32 %v831_v24, %v433_v20  ;;  %903 = sbr.rel (%p1196_p11) target bundleno = 372 (0x174), region = 78 }
 0x156   : > { %v793_v29 = vpop.f32.mrf.mxu0  ;;  %v833_v30 = vpop.f32.mrf.mxu1 }
 0x157   : > { %882 = vst [vmem:[#allocation2 + $0x8] sm:$0xff] %v850_v27  ;;  %898 = vst [vmem:[#allocation2 + $0x20] sm:$0xff] %v866_v28  ;;  %v851_v31 = vadd.f32 %v793_v29, %v418_v25  ;;  %v867_v32 = vadd.f32 %v833_v30, %v434_v26 }
 0x159   : > { %883 = vst [vmem:[#allocation2 + $0x78] sm:$0xff] %v851_v31  ;;  %899 = vst [vmem:[#allocation2 + $0x98] sm:$0xff] %v867_v32 }
 0x15a   : > { %v938_v33 = vlaneseq  ;;  %v936_v34 = vld [vmem:[%s1683_s2] sm:$0x3]  ;;  %v904_v36 = vld [vmem:[#allocation2 + $0xb0] sm:$0xff]  ;;  %v906_v38 = vld [vmem:[#allocation2 + $0xd8] sm:$0xff] }
 0x15b   : > { %v905_v37 = vld [vmem:[#allocation2] sm:$0xff]  ;;  %v907_v39 = vld [vmem:[#allocation2 + $0x18] sm:$0xff]  ;;  %v908_v42 = vld [vmem:[#allocation2 + $0x50] sm:$0xff] }
 0x15c   : > { %v939_v35 = vshrl.u32 %v938_v33, 7  ;;  %v909_v43 = vld [vmem:[#allocation2 + $0x68] sm:$0xff]  ;;  %v910_v44 = vld [vmem:[#allocation2 + $0x30] sm:$0xff]  ;;  %v912_v46 = vld [vmem:[#allocation2 + $0x80] sm:$0xff] }
 0x15d   : > { %v911_v45 = vld [vmem:[#allocation2 + $0x48] sm:$0xff]  ;;  %v915_v51 = vld [vmem:[#allocation2 + $0xb8] sm:$0xff]  ;;  %v916_v52 = vld [vmem:[#allocation2 + $0x60] sm:$0xff] }
 0x15e   : > { %v940_v40 = vsub.s32 0, %v939_v35  ;;  %v944_v41 = vsub.s32 1, %v939_v35  ;;  %v913_v47 = vld [vmem:[#allocation2 + $0x88] sm:$0xff]  ;;  %v917_v53 = vld [vmem:[#allocation2 + $0xf0] sm:$0xff]  ;;  %v920_v56 = vld [vmem:[#allocation2 + $0x38] sm:$0xff] }
 0x15f   : > { %v914_v48 = vld [vmem:[#allocation2 + $0xe8] sm:$0xff]  ;;  %v921_v61 = vld [vmem:[#allocation2 + $0x58] sm:$0xff]  ;;  %v922_v62 = vld [vmem:[#allocation2 + $0x40] sm:$0xff] }
 0x160   : > { %v1534_v49 = vrot.slane %v936_v34, %v940_v40  ;;  %v1536_v50 = vrot.slane %v936_v34, %v944_v41  ;;  %v918_v54 = vld [vmem:[#allocation2 + $0x8] sm:$0xff]  ;;  %v919_v55 = vld [vmem:[#allocation2 + $0x78] sm:$0xff]  ;;  %v924_v4 = vld [vmem:[#allocation2 + $0xe0] sm:$0xff] }
 0x161   : > { %v923_v63 = vld [vmem:[#allocation2 + $0xc8] sm:$0xff]  ;;  %v925_v5 = vld [vmem:[#allocation2 + $0x90] sm:$0xff]  ;;  %v927_v11 = vld [vmem:[#allocation2 + $0xc0] sm:$0xff] }
 0x162   : > { %v948_v57 = vadd.f32 %v1534_v49, %v904_v36  ;;  %v949_v58 = vadd.f32 %v1536_v50, %v905_v37  ;;  %v950_v59 = vadd.f32 %v1534_v49, %v906_v38  ;;  %v951_v60 = vadd.f32 %v1536_v50, %v907_v39  ;;  %v926_v6 = vld [vmem:[#allocation2 + $0x70] sm:$0xff]  ;;  %v928_v12 = vld [vmem:[#allocation2 + $0xa8] sm:$0xff]  ;;  %v932_v20 = vld [vmem:[#allocation2 + $0xa0] sm:$0xff] }
 0x163   : > { %v952_v0 = vadd.f32 %v1534_v49, %v908_v42  ;;  %v953_v1 = vadd.f32 %v1536_v50, %v909_v43  ;;  %v954_v2 = vadd.f32 %v1534_v49, %v910_v44  ;;  %v955_v3 = vadd.f32 %v1536_v50, %v911_v45  ;;  %v929_v13 = vld [vmem:[#allocation2 + $0xd0] sm:$0xff]  ;;  %v931_v19 = vld [vmem:[#allocation2 + $0x28] sm:$0xff]  ;;  %v933_v25 = vld [vmem:[#allocation2 + $0xf8] sm:$0xff] }
 0x164   : > { %980 = vst [vmem:[%s1684_s3] sm:$0xff] %v948_v57  ;;  %981 = vst [vmem:[%s1684_s3 + $0x8] sm:$0xff] %v949_v58  ;;  %v956_v7 = vadd.f32 %v1534_v49, %v912_v46  ;;  %v957_v8 = vadd.f32 %v1536_v50, %v913_v47  ;;  %v958_v9 = vadd.f32 %v1534_v49, %v914_v48  ;;  %v930_v18 = vld [vmem:[#allocation2 + $0x10] sm:$0xff]  ;;  %v934_v26 = vld [vmem:[#allocation2 + $0x20] sm:$0xff] }
 0x165   : > { %982 = vst [vmem:[%s1684_s3 + $0x10] sm:$0xff] %v950_v59  ;;  %983 = vst [vmem:[%s1684_s3 + $0x18] sm:$0xff] %v951_v60  ;;  %v959_v10 = vadd.f32 %v1536_v50, %v915_v51  ;;  %v960_v14 = vadd.f32 %v1534_v49, %v916_v52  ;;  %v961_v15 = vadd.f32 %v1536_v50, %v917_v53  ;;  %v935_v27 = vld [vmem:[#allocation2 + $0x98] sm:$0xff] }
 0x166   : > { %984 = vst [vmem:[%s1684_s3 + $0x20] sm:$0xff] %v952_v0  ;;  %985 = vst [vmem:[%s1684_s3 + $0x28] sm:$0xff] %v953_v1  ;;  %v962_v16 = vadd.f32 %v1534_v49, %v918_v54  ;;  %v963_v17 = vadd.f32 %v1536_v50, %v919_v55  ;;  %v964_v21 = vadd.f32 %v1534_v49, %v920_v56 }
 0x167   : > { %986 = vst [vmem:[%s1684_s3 + $0x30] sm:$0xff] %v954_v2  ;;  %987 = vst [vmem:[%s1684_s3 + $0x38] sm:$0xff] %v955_v3  ;;  %v965_v22 = vadd.f32 %v1536_v50, %v921_v61  ;;  %v966_v23 = vadd.f32 %v1534_v49, %v922_v62  ;;  %v967_v24 = vadd.f32 %v1536_v50, %v923_v63 }
 0x168   : > { %988 = vst [vmem:[%s1684_s3 + $0x40] sm:$0xff] %v956_v7  ;;  %989 = vst [vmem:[%s1684_s3 + $0x48] sm:$0xff] %v957_v8  ;;  %v968_v28 = vadd.f32 %v1534_v49, %v924_v4  ;;  %v969_v29 = vadd.f32 %v1536_v50, %v925_v5  ;;  %v970_v30 = vadd.f32 %v1534_v49, %v926_v6 }
 0x169   : > { %990 = vst [vmem:[%s1684_s3 + $0x50] sm:$0xff] %v958_v9  ;;  %991 = vst [vmem:[%s1684_s3 + $0x58] sm:$0xff] %v959_v10  ;;  %v971_v31 = vadd.f32 %v1536_v50, %v927_v11  ;;  %v972_v32 = vadd.f32 %v1534_v49, %v928_v12  ;;  %v973_v33 = vadd.f32 %v1536_v50, %v929_v13 }
 0x16a   : > { %992 = vst [vmem:[%s1684_s3 + $0x60] sm:$0xff] %v960_v14  ;;  %993 = vst [vmem:[%s1684_s3 + $0x68] sm:$0xff] %v961_v15  ;;  %v974_v34 = vadd.f32 %v1534_v49, %v930_v18  ;;  %v975_v35 = vadd.f32 %v1536_v50, %v931_v19  ;;  %v976_v36 = vadd.f32 %v1534_v49, %v932_v20 }
 0x16b   : > { %994 = vst [vmem:[%s1684_s3 + $0x70] sm:$0xff] %v962_v16  ;;  %995 = vst [vmem:[%s1684_s3 + $0x78] sm:$0xff] %v963_v17  ;;  %v977_v37 = vadd.f32 %v1536_v50, %v933_v25  ;;  %v978_v38 = vadd.f32 %v1534_v49, %v934_v26  ;;  %v979_v39 = vadd.f32 %v1536_v50, %v935_v27 }
 0x16c   : > { %996 = vst [vmem:[%s1684_s3 + $0x80] sm:$0xff] %v964_v21  ;;  %997 = vst [vmem:[%s1684_s3 + $0x88] sm:$0xff] %v965_v22 }
 0x16d   : > { %998 = vst [vmem:[%s1684_s3 + $0x90] sm:$0xff] %v966_v23  ;;  %999 = vst [vmem:[%s1684_s3 + $0x98] sm:$0xff] %v967_v24 }
 0x16e   : > { %1000 = vst [vmem:[%s1684_s3 + $0xa0] sm:$0xff] %v968_v28  ;;  %1001 = vst [vmem:[%s1684_s3 + $0xa8] sm:$0xff] %v969_v29 }
 0x16f   : > { %1002 = vst [vmem:[%s1684_s3 + $0xb0] sm:$0xff] %v970_v30  ;;  %1003 = vst [vmem:[%s1684_s3 + $0xb8] sm:$0xff] %v971_v31 }
 0x170   : > { %1004 = vst [vmem:[%s1684_s3 + $0xc0] sm:$0xff] %v972_v32  ;;  %1005 = vst [vmem:[%s1684_s3 + $0xc8] sm:$0xff] %v973_v33 }
 0x171   : > { %1006 = vst [vmem:[%s1684_s3 + $0xd0] sm:$0xff] %v974_v34  ;;  %1007 = vst [vmem:[%s1684_s3 + $0xd8] sm:$0xff] %v975_v35 }
 0x172   : > { %1008 = vst [vmem:[%s1684_s3 + $0xe0] sm:$0xff] %v976_v36  ;;  %1009 = vst [vmem:[%s1684_s3 + $0xe8] sm:$0xff] %v977_v37 }
 0x173   : > { %1010 = vst [vmem:[%s1684_s3 + $0xf0] sm:$0xff] %v978_v38  ;;  %1011 = vst [vmem:[%s1684_s3 + $0xf8] sm:$0xff] %v979_v39 }
 0x174 PF: > { %s13_s16 = sadd.s32 1, %s1386_s16   ;;  %s1685_s12 = smov %s1374_s13 }
 0x175   : > { %p10_p12 = scmp.ge.s32.totalorder %s13_s16, 7   ;;  %s1686_s13 = smov %s1444_s20 }
 0x176   : > { %s1687_s14 = smov %s1382_s15  ;;  %s1688_s15 = smov %s1690_s17 }
 0x177   :  { %12 = sbr.rel (!%p10_p12) target bundleno = 3 (0x3), region = 119 }

// kernel: generator_resnet_forward.36
= control target key start
LH: loop header
LB: loop body
LE: loop exit
PB: predicated region body
PF: predicated region fallthrough
CT: control target
= control target key end

     0   :  { %s505_s12 = smov 0   ;;  %s507_s13 = smov 0   ;;  %s548_s0 = inlined_call_operand.vmem [shape: f32[2,16,256], index: 0, kind: input, shape index: {}]   ;;  %s549_s1 = inlined_call_operand.vmem [shape: f32[2,1,256], index: 1, kind: input, shape index: {}]   ;;  %s550_s2 = inlined_call_operand.vmem [shape: f32[2,1,256], index: 2, kind: input, shape index: {}]   ;;  %s551_s3 = inlined_call_operand.vmem [shape: f32[2,16,256], index: 3, kind: output, shape index: {}]  }
   0x1   :  { %s509_s14 = smov 0  }
   0x2 LB: > { %s25_s15 = sadd.s32 1, %s479_s13  ;;  %p424_p0 = scmp.ge.s32.totalorder %s483_s14, 1  ;;  %s483_s14 = sphi %s509_s14, %s13_s14   ;;  %s479_s13 = sphi %s507_s13, %s553_s13   ;;  %s475_s12 = sphi %s505_s12, %s552_s12  }
   0x3   : > { %p27_p1 = scmp.ge.s32.totalorder %s25_s15, 2  ;;  %p177_p2 = scmp.lt.s32.totalorder %s483_s14, 3 }
   0x5   : > { %s555_s15 = smov (%p27_p1, %s25_s15), 0  ;;  %p178_p3 = pnand %p424_p0, %p177_p2 }
   0x6   : > { %p220_p4 = scmp.lt.s32.totalorder (!%p178_p3), %s475_s12, 1 }
   0x7   : > { %181 = sbr.rel (%p178_p3) target bundleno = 48 (0x30), region = 32 }
   0xc   : > { %s557_s12 = smov (!%p220_p4, %s475_s12), 1  ;;  %v261_v7 = vlaneseq }
   0xd   : > { %s427_s16 = sshll.u32 %s557_s12, 1  ;;  %s433_s23 = sshll.u32 %s557_s12, 5 }
   0xe   : > { %s233_s19 = scalar_lea.vmem %s549_s1, %s427_s16  ;;  %s237_s22 = scalar_lea.vmem %s550_s2, %s427_s16  ;;  %v262_v9 = vshrl.u32 %v261_v7, 7 }
   0xf   : > { %v253_v0 = vld [vmem:[%s233_s19] sm:$0x3]  ;;  %s228_s26 = scalar_lea.vmem %s548_s0, %s433_s23  ;;  %s247_s29 = scalar_lea.vmem %s551_s3, %s433_s23 }
  0x10   : > { %v254_v1 = vmul.f32 0.0625, %v253_v0  ;;  %v255_v2 = vld [vmem:[%s237_s22] sm:$0x3]  ;;  %v263_v10 = vsub.s32 0, %v262_v9  ;;  %v267_v11 = vsub.s32 1, %v262_v9  ;;  %v250_v15 = vld [vmem:[%s228_s26 + $0x8] sm:$0xff] }
  0x11   : > { %v256_v3 = vmul.f32 0.0625, %v255_v2  ;;  %v249_v12 = vld [vmem:[%s228_s26] sm:$0xff]  ;;  %v251_v16 = vld [vmem:[%s228_s26 + $0x10] sm:$0xff]  ;;  %v252_v17 = vld [vmem:[%s228_s26 + $0x18] sm:$0xff] }
  0x12   : > { %v257_v4 = vmul.f32 %v254_v1, %v254_v1  ;;  %v264_v13 = vrot.slane %v254_v1, %v263_v10  ;;  %v268_v14 = vrot.slane %v254_v1, %v267_v11 }
  0x14   : > { %v258_v5 = vsub.f32 %v256_v3, %v257_v4  ;;  %v271_v18 = vsub.f32 %v249_v12, %v264_v13  ;;  %v272_v19 = vsub.f32 %v250_v15, %v268_v14  ;;  %v273_v20 = vsub.f32 %v251_v16, %v264_v13 }
  0x15   : > { %v274_v21 = vsub.f32 %v252_v17, %v268_v14 }
  0x16   : > { %v259_v6 = vmax.f32 %v258_v5, 0.0 }
  0x18   : > { %v275_v8 = vadd.f32 1e-05, %v259_v6 }
  0x1a   : > { %459 = vrsqrt.f32 %v275_v8 }
  0x27   : > { %v460_v22 = vpop.eup %459 }
  0x28   : > { %v281_v23 = vrot.slane %v460_v22, %v263_v10  ;;  %v285_v24 = vrot.slane %v460_v22, %v267_v11 }
  0x2a   : > { %v288_v25 = vmul.f32 %v281_v23, %v271_v18  ;;  %v289_v26 = vmul.f32 %v285_v24, %v272_v19  ;;  %v290_v27 = vmul.f32 %v281_v23, %v273_v20  ;;  %v291_v28 = vmul.f32 %v285_v24, %v274_v21 }
  0x2c   : > { %v292_v29 = vmax.f32 %v288_v25, 0.0  ;;  %v293_v30 = vmax.f32 %v289_v26, 0.0  ;;  %v294_v31 = vmax.f32 %v290_v27, 0.0  ;;  %v295_v32 = vmax.f32 %v291_v28, 0.0 }
  0x2e   : > { %296 = vst [vmem:[%s247_s29] sm:$0xff] %v292_v29  ;;  %297 = vst [vmem:[%s247_s29 + $0x8] sm:$0xff] %v293_v30 }
  0x2f   : > { %298 = vst [vmem:[%s247_s29 + $0x10] sm:$0xff] %v294_v31  ;;  %299 = vst [vmem:[%s247_s29 + $0x18] sm:$0xff] %v295_v32 }
  0x30 PF: > { %s13_s14 = sadd.s32 1, %s483_s14   ;;  %s552_s12 = smov %s479_s13 }
  0x31   : > { %p10_p5 = scmp.ge.s32.totalorder %s13_s14, 4   ;;  %s553_s13 = smov %s555_s15 }
  0x33   :  { %12 = sbr.rel (!%p10_p5) target bundleno = 2 (0x2), region = 68 }

// kernel: generator_resnet_forward.42
= control target key start
LH: loop header
LB: loop body
LE: loop exit
PB: predicated region body
PF: predicated region fallthrough
CT: control target
= control target key end

     0   :  { %s604_s15 = smov 0   ;;  %s606_s16 = smov 0   ;;  %s646_s0 = inlined_call_operand.vmem [shape: f32[2,16,256], index: 0, kind: input, shape index: {}]   ;;  %s647_s1 = inlined_call_operand.vmem [shape: f32[2,1,256], index: 1, kind: input, shape index: {}]   ;;  %s648_s2 = inlined_call_operand.vmem [shape: f32[2,1,256], index: 2, kind: input, shape index: {}]   ;;  %s649_s3 = inlined_call_operand.vmem [shape: f32[2,16,256], index: 3, kind: input, shape index: {}]   ;;  %s650_s4 = inlined_call_operand.vmem [shape: f32[2,16,256], index: 4, kind: output, shape index: {}]  }
   0x1   :  { %s608_s17 = smov 0  }
   0x2 LB: > { %s26_s18 = sadd.s32 1, %s573_s16  ;;  %p515_p0 = scmp.ge.s32.totalorder %s577_s17, 1  ;;  %s577_s17 = sphi %s608_s17, %s14_s17   ;;  %s573_s16 = sphi %s606_s16, %s652_s16   ;;  %s569_s15 = sphi %s604_s15, %s651_s15  }
   0x3   : > { %p28_p1 = scmp.ge.s32.totalorder %s26_s18, 2  ;;  %p220_p2 = scmp.lt.s32.totalorder %s577_s17, 3 }
   0x5   : > { %s654_s18 = smov (%p28_p1, %s26_s18), 0  ;;  %p221_p3 = pnand %p515_p0, %p220_p2 }
   0x6   : > { %p275_p4 = scmp.lt.s32.totalorder (!%p221_p3), %s569_s15, 1 }
   0x7   : > { %224 = sbr.rel (%p221_p3) target bundleno = 48 (0x30), region = 36 }
   0xc   : > { %s656_s15 = smov (!%p275_p4, %s569_s15), 1  ;;  %v327_v7 = vlaneseq }
   0xd   : > { %s518_s19 = sshll.u32 %s656_s15, 1  ;;  %s526_s26 = sshll.u32 %s656_s15, 5 }
   0xe   : > { %s288_s22 = scalar_lea.vmem %s647_s1, %s518_s19  ;;  %s292_s25 = scalar_lea.vmem %s648_s2, %s518_s19  ;;  %v328_v9 = vshrl.u32 %v327_v7, 7 }
   0xf   : > { %v319_v0 = vld [vmem:[%s288_s22] sm:$0x3]  ;;  %s283_s29 = scalar_lea.vmem %s646_s0, %s526_s26  ;;  %s302_s6 = scalar_lea.vmem %s649_s3, %s526_s26 }
  0x10   : > { %v320_v1 = vmul.f32 0.0625, %v319_v0  ;;  %v321_v2 = vld [vmem:[%s292_s25] sm:$0x3]  ;;  %v329_v10 = vsub.s32 0, %v328_v9  ;;  %v333_v11 = vsub.s32 1, %v328_v9  ;;  %v316_v15 = vld [vmem:[%s283_s29 + $0x8] sm:$0xff]  ;;  %s313_s9 = scalar_lea.vmem %s650_s4, %s526_s26 }
  0x11   : > { %v322_v3 = vmul.f32 0.0625, %v321_v2  ;;  %v315_v12 = vld [vmem:[%s283_s29] sm:$0xff]  ;;  %v317_v16 = vld [vmem:[%s283_s29 + $0x10] sm:$0xff]  ;;  %v318_v17 = vld [vmem:[%s283_s29 + $0x18] sm:$0xff] }
  0x12   : > { %v323_v4 = vmul.f32 %v320_v1, %v320_v1  ;;  %v330_v13 = vrot.slane %v320_v1, %v329_v10  ;;  %v334_v14 = vrot.slane %v320_v1, %v333_v11  ;;  %v358_v24 = vld [vmem:[%s302_s6] sm:$0xff]  ;;  %v359_v26 = vld [vmem:[%s302_s6 + $0x8] sm:$0xff]  ;;  %v360_v27 = vld [vmem:[%s302_s6 + $0x10] sm:$0xff] }
  0x13   : > { %v361_v28 = vld [vmem:[%s302_s6 + $0x18] sm:$0xff] }
  0x14   : > { %v324_v5 = vsub.f32 %v322_v3, %v323_v4  ;;  %v337_v18 = vsub.f32 %v315_v12, %v330_v13  ;;  %v338_v19 = vsub.f32 %v316_v15, %v334_v14  ;;  %v339_v20 = vsub.f32 %v317_v16, %v330_v13 }
  0x15   : > { %v340_v21 = vsub.f32 %v318_v17, %v334_v14 }
  0x16   : > { %v325_v6 = vmax.f32 %v324_v5, 0.0 }
  0x18   : > { %v341_v8 = vadd.f32 1e-05, %v325_v6 }
  0x1a   : > { %553 = vrsqrt.f32 %v341_v8 }
  0x27   : > { %v554_v22 = vpop.eup %553 }
  0x28   : > { %v347_v23 = vrot.slane %v554_v22, %v329_v10  ;;  %v351_v25 = vrot.slane %v554_v22, %v333_v11 }
  0x2a   : > { %v354_v29 = vmul.f32 %v347_v23, %v337_v18  ;;  %v355_v30 = vmul.f32 %v351_v25, %v338_v19  ;;  %v356_v31 = vmul.f32 %v347_v23, %v339_v20  ;;  %v357_v32 = vmul.f32 %v351_v25, %v340_v21 }
  0x2c   : > { %v362_v33 = vadd.f32 %v358_v24, %v354_v29  ;;  %v363_v34 = vadd.f32 %v359_v26, %v355_v30  ;;  %v364_v35 = vadd.f32 %v360_v27, %v356_v31  ;;  %v365_v36 = vadd.f32 %v361_v28, %v357_v32 }
  0x2e   : > { %366 = vst [vmem:[%s313_s9] sm:$0xff] %v362_v33  ;;  %367 = vst [vmem:[%s313_s9 + $0x8] sm:$0xff] %v363_v34 }
  0x2f   : > { %368 = vst [vmem:[%s313_s9 + $0x10] sm:$0xff] %v364_v35  ;;  %369 = vst [vmem:[%s313_s9 + $0x18] sm:$0xff] %v365_v36 }
  0x30 PF: > { %s14_s17 = sadd.s32 1, %s577_s17   ;;  %s651_s15 = smov %s573_s16 }
  0x31   : > { %p11_p5 = scmp.ge.s32.totalorder %s14_s17, 4   ;;  %s652_s16 = smov %s654_s18 }
  0x33   :  { %13 = sbr.rel (!%p11_p5) target bundleno = 2 (0x2), region = 75 }

// kernel: generator_resnet_forward.37
= control target key start
LH: loop header
LB: loop body
LE: loop exit
PB: predicated region body
PF: predicated region fallthrough
CT: control target
= control target key end

     0   :  { %s1409_s12 = smov 0   ;;  %s1411_s13 = smov 0   ;;  %s1681_s0 = inlined_call_operand.vmem [shape: bf16[128,2304], index: 0, kind: input, shape index: {}]   ;;  %s1682_s1 = inlined_call_operand.vmem [shape: bf16[2304,256], index: 1, kind: input, shape index: {}]   ;;  %s1683_s2 = inlined_call_operand.vmem [shape: f32[1,256], index: 2, kind: input, shape index: {}]   ;;  %s1684_s3 = inlined_call_operand.vmem [shape: f32[128,256], index: 3, kind: output, shape index: {}]  }
   0x1   :  { %s1413_s14 = smov 0   ;;  %s1415_s15 = smov 0  }
   0x2   :  { %s1417_s16 = smov 0  }
   0x3 LB: > { %s25_s17 = sadd.s32 1, %s1382_s15  ;;  %p48_p1 = scmp.ne.s32.totalorder %s1374_s13, %s1370_s12  ;;  %s1386_s16 = sphi %s1417_s16, %s13_s16   ;;  %s1382_s15 = sphi %s1415_s15, %s1688_s15   ;;  %s1378_s14 = sphi %s1413_s14, %s1687_s14   ;;  %s1374_s13 = sphi %s1411_s13, %s1686_s13   ;;  %s1370_s12 = sphi %s1409_s12, %s1685_s12  }
   0x4   : > { %p26_p0 = scmp.ge.s32.totalorder %s25_s17, 9  ;;  %p49_p2 = scmp.eq.s32.totalorder %s1386_s16, 0 }
   0x5   : > { %s41_s19 = sadd.s32 1, %s1374_s13  ;;  %p1138_p5 = scmp.ge.s32.totalorder %s1386_s16, 9 }
   0x6   : > { %s1690_s17 = smov (%p26_p0, %s25_s17), 0  ;;  %p50_p3 = por %p49_p2, %p48_p1 }
   0x7   : > { %s37_s18 = ssub.s32 %s1382_s15, %s1690_s17  ;;  %164 = sbr.rel (%p1138_p5) target bundleno = 24 (0x18), region = 20 }
   0x8   : > { %p39_p4 = scmp.eq.s32.totalorder %s37_s18, 0 }
   0xa   : > { %s1444_s20 = scalar_select %p39_p4, %s1374_s13, %s41_s19  }
   0xc   : > { %167 = sbr.rel (!%p50_p3) target bundleno = 24 (0x18), region = 24  ;;  %s169_s21 = sand.u32 (%p50_p3), 1, %s1374_s13  }
   0xd   : > { %s1201_s22 = sshll.u32 (%p50_p3), %s1382_s15, 3  ;;  %s1139_s23 = sshll.u32 (%p50_p3), %s169_s21, 7 }
   0xe   : > { %s1452_s26 = scalar_lea.vmem (%p50_p3), %s1681_s0, %s1201_s22  ;;  %s171_s27 = scalar_lea.vmem (%p50_p3), [#allocation3], %s1139_s23 }
   0xf   : > { %v236_v0 = vld [vmem:[%s1452_s26] sm:$0xff] (%p50_p3)  ;;  %v238_v1 = vld [vmem:[%s1452_s26 + $0x48] sm:$0xff] (%p50_p3)  ;;  %v240_v2 = vld [vmem:[%s1452_s26 + $0x90] sm:$0xff] (%p50_p3) }
  0x10   : > { %237 = vst [vmem:[%s171_s27] sm:$0xff] (%p50_p3), %v236_v0  ;;  %239 = vst [vmem:[%s171_s27 + $0x8] sm:$0xff] (%p50_p3), %v238_v1  ;;  %v242_v3 = vld [vmem:[%s1452_s26 + $0xd8] sm:$0xff] (%p50_p3)  ;;  %v244_v4 = vld [vmem:[%s1452_s26 + $0x120] sm:$0xff] (%p50_p3) }
  0x11   : > { %241 = vst [vmem:[%s171_s27 + $0x10] sm:$0xff] %v240_v2  ;;  %v246_v5 = vld [vmem:[%s1452_s26 + $0x168] sm:$0xff]  ;;  %243 = vst [vmem:[%s171_s27 + $0x18] sm:$0xff] %v242_v3  ;;  %v248_v6 = vld [vmem:[%s1452_s26 + $0x1b0] sm:$0xff] }
  0x12   : > { %245 = vst [vmem:[%s171_s27 + $0x20] sm:$0xff] %v244_v4  ;;  %247 = vst [vmem:[%s171_s27 + $0x28] sm:$0xff] %v246_v5  ;;  %v250_v7 = vld [vmem:[%s1452_s26 + $0x1f8] sm:$0xff]  ;;  %v252_v8 = vld [vmem:[%s1452_s26 + $0x240] sm:$0xff] }
  0x13   : > { %249 = vst [vmem:[%s171_s27 + $0x30] sm:$0xff] %v248_v6  ;;  %251 = vst [vmem:[%s171_s27 + $0x38] sm:$0xff] %v250_v7  ;;  %v254_v9 = vld [vmem:[%s1452_s26 + $0x288] sm:$0xff]  ;;  %v256_v10 = vld [vmem:[%s1452_s26 + $0x2d0] sm:$0xff] }
  0x14   : > { %253 = vst [vmem:[%s171_s27 + $0x40] sm:$0xff] %v252_v8  ;;  %v258_v11 = vld [vmem:[%s1452_s26 + $0x318] sm:$0xff]  ;;  %255 = vst [vmem:[%s171_s27 + $0x48] sm:$0xff] %v254_v9  ;;  %v260_v12 = vld [vmem:[%s1452_s26 + $0x360] sm:$0xff] }
  0x15   : > { %257 = vst [vmem:[%s171_s27 + $0x50] sm:$0xff] %v256_v10  ;;  %259 = vst [vmem:[%s171_s27 + $0x58] sm:$0xff] %v258_v11  ;;  %v262_v13 = vld [vmem:[%s1452_s26 + $0x3a8] sm:$0xff]  ;;  %v264_v14 = vld [vmem:[%s1452_s26 + $0x3f0] sm:$0xff] }
  0x16   : > { %261 = vst [vmem:[%s171_s27 + $0x60] sm:$0xff] %v260_v12  ;;  %263 = vst [vmem:[%s171_s27 + $0x68] sm:$0xff] %v262_v13  ;;  %v266_v15 = vld [vmem:[%s1452_s26 + $0x438] sm:$0xff] }
  0x17   : > { %265 = vst [vmem:[%s171_s27 + $0x70] sm:$0xff] %v264_v14  ;;  %267 = vst [vmem:[%s171_s27 + $0x78] sm:$0xff] %v266_v15 }
  0x18 PF: > { %p1142_p6 = scmp.ge.s32.totalorder %s1386_s16, 1  ;;  %p287_p7 = scmp.lt.s32.totalorder %s1386_s16, 10 }
  0x1a   : > { %p288_p8 = pnand %p1142_p6, %p287_p7 }
  0x1b   : > { %s294_s28 = sand.u32 (!%p288_p8), 1, %s1370_s12   ;;  %s1144_s29 = sshll.u32 (!%p288_p8), %s1378_s14, 5 }
  0x1c   : > { %291 = sbr.rel (%p288_p8) target bundleno = 372 (0x174), region = 66  ;;  %s1143_s30 = sshll.u32 (!%p288_p8), %s294_s28, 7 }
  0x1d   : > { %p340_p9 = scmp.lt.s32.totalorder (!%p288_p8), %s1144_s29, 287  ;;  %s1479_s8 = scalar_lea.vmem (!%p288_p8), [#allocation3], %s1143_s30 }
  0x1e   : > { %p1147_p10 = scmp.ne.s32.totalorder (!%p288_p8), %s1378_s14, 0 }
  0x21   : > { %s1692_s29 = smov (!%p340_p9, %s1144_s29), 287  ;;  %370 = sbr.rel (%p1147_p10) target bundleno = 55 (0x37), region = 74 }
  0x22   : > { %s1202_s4 = sshll.u32 %s1692_s29, 3 }
  0x23   : > { %s1477_s7 = scalar_lea.vmem %s1682_s1, %s1202_s4 }
  0x26   : > { %v1388_v16 = vmov 0.0  }
  0x27   : > { %371 = vst [vmem:[#allocation2 + $0xb0] sm:$0xff] %v1388_v16  ;;  %372 = vst [vmem:[#allocation2] sm:$0xff] %v1388_v16 }
  0x28   : > { %373 = vst [vmem:[#allocation2 + $0xd8] sm:$0xff] %v1388_v16  ;;  %374 = vst [vmem:[#allocation2 + $0x18] sm:$0xff] %v1388_v16 }
  0x29   : > { %375 = vst [vmem:[#allocation2 + $0x50] sm:$0xff] %v1388_v16  ;;  %376 = vst [vmem:[#allocation2 + $0x68] sm:$0xff] %v1388_v16 }
  0x2a   : > { %377 = vst [vmem:[#allocation2 + $0x30] sm:$0xff] %v1388_v16  ;;  %378 = vst [vmem:[#allocation2 + $0x48] sm:$0xff] %v1388_v16 }
  0x2b   : > { %379 = vst [vmem:[#allocation2 + $0x80] sm:$0xff] %v1388_v16  ;;  %380 = vst [vmem:[#allocation2 + $0x88] sm:$0xff] %v1388_v16 }
  0x2c   : > { %381 = vst [vmem:[#allocation2 + $0xe8] sm:$0xff] %v1388_v16  ;;  %382 = vst [vmem:[#allocation2 + $0xb8] sm:$0xff] %v1388_v16 }
  0x2d   : > { %383 = vst [vmem:[#allocation2 + $0x60] sm:$0xff] %v1388_v16  ;;  %384 = vst [vmem:[#allocation2 + $0xf0] sm:$0xff] %v1388_v16 }
  0x2e   : > { %385 = vst [vmem:[#allocation2 + $0x8] sm:$0xff] %v1388_v16  ;;  %386 = vst [vmem:[#allocation2 + $0x78] sm:$0xff] %v1388_v16 }
  0x2f   : > { %387 = vst [vmem:[#allocation2 + $0x38] sm:$0xff] %v1388_v16  ;;  %388 = vst [vmem:[#allocation2 + $0x58] sm:$0xff] %v1388_v16 }
  0x30   : > { %389 = vst [vmem:[#allocation2 + $0x40] sm:$0xff] %v1388_v16  ;;  %390 = vst [vmem:[#allocation2 + $0xc8] sm:$0xff] %v1388_v16 }
  0x31   : > { %391 = vst [vmem:[#allocation2 + $0xe0] sm:$0xff] %v1388_v16  ;;  %392 = vst [vmem:[#allocation2 + $0x90] sm:$0xff] %v1388_v16 }
  0x32   : > { %393 = vst [vmem:[#allocation2 + $0x70] sm:$0xff] %v1388_v16  ;;  %394 = vst [vmem:[#allocation2 + $0xc0] sm:$0xff] %v1388_v16 }
  0x33   : > { %395 = vst [vmem:[#allocation2 + $0xa8] sm:$0xff] %v1388_v16  ;;  %396 = vst [vmem:[#allocation2 + $0xd0] sm:$0xff] %v1388_v16 }
  0x34   : > { %397 = vst [vmem:[#allocation2 + $0x10] sm:$0xff] %v1388_v16  ;;  %398 = vst [vmem:[#allocation2 + $0x28] sm:$0xff] %v1388_v16 }
  0x35   : > { %399 = vst [vmem:[#allocation2 + $0xa0] sm:$0xff] %v1388_v16  ;;  %400 = vst [vmem:[#allocation2 + $0xf8] sm:$0xff] %v1388_v16 }
  0x36   : > { %401 = vst [vmem:[#allocation2 + $0x20] sm:$0xff] %v1388_v16  ;;  %402 = vst [vmem:[#allocation2 + $0x98] sm:$0xff] %v1388_v16 }
  0x37 PF: > { %v1276_v17 = vld [vmem:[%s1477_s7 + $0x74] ss:$8 sps:$4 sm:$0xff]   ;;  %v1278_v18 = vld [vmem:[%s1477_s7 + $0x70] ss:$8 sps:$4 sm:$0xff]   ;;  %v1279_v19 = vld [vmem:[%s1477_s7 + $0x64] ss:$8 sps:$4 sm:$0xff]  }
  0x38   : > { %723 = vmatprep.subr.bf16.mxu0 %v1276_v17  ;;  %1203 = vmatprep.subr.bf16.mxu1 %v1276_v17  ;;  %v1281_v20 = vld [vmem:[%s1477_s7 + $0x60] ss:$8 sps:$4 sm:$0xff]   ;;  %v1282_v21 = vld [vmem:[%s1477_s7 + $0x54] ss:$8 sps:$4 sm:$0xff]   ;;  %v1284_v22 = vld [vmem:[%s1477_s7 + $0x50] ss:$8 sps:$4 sm:$0xff]  }
  0x39   : > { %724 = vmatpush1.bf16.msra.mxu0 %v1278_v18  ;;  %1219 = vmatpush1.bf16.msra.mxu1 %v1278_v18  ;;  %v1285_v23 = vld [vmem:[%s1477_s7 + $0x44] ss:$8 sps:$4 sm:$0xff]   ;;  %v1287_v24 = vld [vmem:[%s1477_s7 + $0x40] ss:$8 sps:$4 sm:$0xff]   ;;  %v1288_v25 = vld [vmem:[%s1477_s7 + $0x34] ss:$8 sps:$4 sm:$0xff]  }
  0x3a   : > { %725 = vmatprep.subr.bf16.mxu0 %v1279_v19  ;;  %1204 = vmatprep.subr.bf16.mxu1 %v1279_v19  ;;  %v1290_v26 = vld [vmem:[%s1477_s7 + $0x30] ss:$8 sps:$4 sm:$0xff]   ;;  %v1291_v27 = vld [vmem:[%s1477_s7 + $0x24] ss:$8 sps:$4 sm:$0xff]   ;;  %v1293_v28 = vld [vmem:[%s1477_s7 + $0x20] ss:$8 sps:$4 sm:$0xff]  }
  0x3b   : > { %v1294_v29 = vld [vmem:[%s1477_s7 + $0x14] ss:$8 sps:$4 sm:$0xff]   ;;  %v1326_v30 = vld [vmem:[%s1479_s8 + $0x4] ss:$8 sps:$4 sm:$0xff]   ;;  %v1296_v31 = vld [vmem:[%s1477_s7 + $0x10] ss:$8 sps:$4 sm:$0xff]  }
  0x3c   : > { %v1329_v32 = vld [vmem:[%s1479_s8 + $0x44] ss:$8 sps:$4 sm:$0xff]   ;;  %755 = vmatprep.mubr.bf16.mxu0 %v1326_v30  ;;  %v1299_v34 = vld [vmem:[%s1477_s7] ss:$8 sps:$4 sm:$0xff]   ;;  %v1300_v35 = vld [vmem:[%s1477_s7 + $0xf4] ss:$8 sps:$4 sm:$0xff]  }
  0x3d   : > { %726 = vmatpush1.bf16.msra.mxu0 %v1281_v20  ;;  %1220 = vmatpush1.bf16.msra.mxu1 %v1281_v20  ;;  %v1297_v33 = vld [vmem:[%s1477_s7 + $0x4] ss:$8 sps:$4 sm:$0xff]   ;;  %v1302_v36 = vld [vmem:[%s1477_s7 + $0xf0] ss:$8 sps:$4 sm:$0xff]   ;;  %v1305_v38 = vld [vmem:[%s1477_s7 + $0xe0] ss:$8 sps:$4 sm:$0xff]  }
  0x3e   : > { %727 = vmatprep.subr.bf16.mxu0 %v1282_v21  ;;  %1205 = vmatprep.subr.bf16.mxu1 %v1282_v21  ;;  %v1303_v37 = vld [vmem:[%s1477_s7 + $0xe4] ss:$8 sps:$4 sm:$0xff]   ;;  %v1306_v39 = vld [vmem:[%s1477_s7 + $0xd4] ss:$8 sps:$4 sm:$0xff]   ;;  %v1308_v40 = vld [vmem:[%s1477_s7 + $0xd0] ss:$8 sps:$4 sm:$0xff]  }
  0x3f   : > { %795 = vmatprep.mubr.bf16.mxu1 %v1329_v32  ;;  %v1309_v41 = vld [vmem:[%s1477_s7 + $0xc4] ss:$8 sps:$4 sm:$0xff]   ;;  %v1311_v42 = vld [vmem:[%s1477_s7 + $0xc0] ss:$8 sps:$4 sm:$0xff]   ;;  %v1312_v43 = vld [vmem:[%s1477_s7 + $0xb4] ss:$8 sps:$4 sm:$0xff]  }
  0x40   : > { %v1314_v44 = vld [vmem:[%s1477_s7 + $0xb0] ss:$8 sps:$4 sm:$0xff]   ;;  %v1315_v45 = vld [vmem:[%s1477_s7 + $0xa4] ss:$8 sps:$4 sm:$0xff]   ;;  %v1317_v46 = vld [vmem:[%s1477_s7 + $0xa0] ss:$8 sps:$4 sm:$0xff]  }
  0x41   : > { %728 = vmatpush1.bf16.msra.mxu0 %v1284_v22  ;;  %1221 = vmatpush1.bf16.msra.mxu1 %v1284_v22  ;;  %v1318_v47 = vld [vmem:[%s1477_s7 + $0x94] ss:$8 sps:$4 sm:$0xff]   ;;  %v1320_v48 = vld [vmem:[%s1477_s7 + $0x90] ss:$8 sps:$4 sm:$0xff]   ;;  %v1321_v49 = vld [vmem:[%s1477_s7 + $0x84] ss:$8 sps:$4 sm:$0xff]  }
  0x42   : > { %729 = vmatprep.subr.bf16.mxu0 %v1285_v23  ;;  %1206 = vmatprep.subr.bf16.mxu1 %v1285_v23  ;;  %v1323_v50 = vld [vmem:[%s1477_s7 + $0x80] ss:$8 sps:$4 sm:$0xff]   ;;  %v1330_v53 = vld [vmem:[%s1479_s8 + $0x14] ss:$8 sps:$4 sm:$0xff]   ;;  %v1334_v55 = vld [vmem:[%s1479_s8 + $0x10] ss:$8 sps:$4 sm:$0xff]  }
  0x43   : > { %v1324_v51 = vld [vmem:[%s1479_s8] ss:$8 sps:$4 sm:$0xff]   ;;  %v1332_v54 = vld [vmem:[%s1479_s8 + $0x54] ss:$8 sps:$4 sm:$0xff]   ;;  %v1335_v56 = vld [vmem:[%s1479_s8 + $0x50] ss:$8 sps:$4 sm:$0xff]  }
  0x44   : > { %v1327_v52 = vld [vmem:[%s1479_s8 + $0x40] ss:$8 sps:$4 sm:$0xff]   ;;  %v1336_v57 = vld [vmem:[%s1479_s8 + $0x24] ss:$8 sps:$4 sm:$0xff]   ;;  %v1342_v61 = vld [vmem:[%s1479_s8 + $0x34] ss:$8 sps:$4 sm:$0xff]  }
  0x45   : > { %730 = vmatpush1.bf16.msra.mxu0 %v1287_v24  ;;  %1222 = vmatpush1.bf16.msra.mxu1 %v1287_v24  ;;  %v1338_v58 = vld [vmem:[%s1479_s8 + $0x64] ss:$8 sps:$4 sm:$0xff]   ;;  %v1340_v59 = vld [vmem:[%s1479_s8 + $0x20] ss:$8 sps:$4 sm:$0xff]   ;;  %v1344_v62 = vld [vmem:[%s1479_s8 + $0x74] ss:$8 sps:$4 sm:$0xff]  }
  0x46   : > { %731 = vmatprep.subr.bf16.mxu0 %v1288_v25  ;;  %1207 = vmatprep.subr.bf16.mxu1 %v1288_v25  ;;  %v1341_v60 = vld [vmem:[%s1479_s8 + $0x60] ss:$8 sps:$4 sm:$0xff]   ;;  %v1346_v63 = vld [vmem:[%s1479_s8 + $0x30] ss:$8 sps:$4 sm:$0xff]   ;;  %p1196_p11 = scmp.ne.s32.totalorder %s1378_s14, 8 }
  0x47   : > { %v1347_v0 = vld [vmem:[%s1479_s8 + $0x70] ss:$8 sps:$4 sm:$0xff]   ;;  %v404_v5 = vld [vmem:[#allocation2] sm:$0xff]  ;;  %v422_v18 = vld [vmem:[#allocation2 + $0xc8] sm:$0xff] }
  0x48   : > { %v403_v1 = vld [vmem:[#allocation2 + $0xb0] sm:$0xff]  ;;  %v419_v2 = vld [vmem:[#allocation2 + $0x38] sm:$0xff]  ;;  %v421_v12 = vld [vmem:[#allocation2 + $0x40] sm:$0xff] }
  0x49   : > { %732 = vmatpush1.bf16.msra.mxu0 %v1290_v26  ;;  %1223 = vmatpush1.bf16.msra.mxu1 %v1290_v26  ;;  %v420_v6 = vld [vmem:[#allocation2 + $0x58] sm:$0xff]  ;;  %v407_v23 = vld [vmem:[#allocation2 + $0x50] sm:$0xff]  ;;  %v423_v24 = vld [vmem:[#allocation2 + $0xe0] sm:$0xff] }
  0x4a   : > { %733 = vmatprep.subr.bf16.mxu0 %v1291_v27  ;;  %1208 = vmatprep.subr.bf16.mxu1 %v1291_v27  ;;  %v405_v11 = vld [vmem:[#allocation2 + $0xd8] sm:$0xff]  ;;  %v424_v30 = vld [vmem:[#allocation2 + $0x90] sm:$0xff] }
  0x4b   : > { %v406_v17 = vld [vmem:[#allocation2 + $0x18] sm:$0xff] }
  0x4d   : > { %734 = vmatpush1.bf16.msra.mxu0 %v1293_v28  ;;  %1224 = vmatpush1.bf16.msra.mxu1 %v1293_v28 }
  0x4e   : > { %735 = vmatprep.subr.bf16.mxu0 %v1294_v29  ;;  %1209 = vmatprep.subr.bf16.mxu1 %v1294_v29  ;;  %v408_v29 = vld [vmem:[#allocation2 + $0x68] sm:$0xff] }
  0x51   : > { %736 = vmatpush1.bf16.msra.mxu0 %v1296_v31  ;;  %1225 = vmatpush1.bf16.msra.mxu1 %v1296_v31 }
  0x52   : > { %737 = vmatprep.subr.bf16.mxu0 %v1297_v33  ;;  %1210 = vmatprep.subr.bf16.mxu1 %v1297_v33 }
  0x55   : > { %738 = vmatpush1.bf16.msra.mxu0 %v1299_v34  ;;  %1226 = vmatpush1.bf16.msra.mxu1 %v1299_v34 }
  0x56   : > { %739 = vmatprep.subr.bf16.mxu0 %v1300_v35  ;;  %1211 = vmatprep.subr.bf16.mxu1 %v1300_v35  ;;  %v409_v35 = vld [vmem:[#allocation2 + $0x30] sm:$0xff] }
  0x59   : > { %740 = vmatpush2.bf16.msra.mxu0 %v1302_v36  ;;  %1227 = vmatpush2.bf16.msra.mxu1 %v1302_v36  ;;  %v425_v36 = vld [vmem:[#allocation2 + $0x70] sm:$0xff] }
  0x5a   : > { %741 = vmatprep.subr.bf16.mxu0 %v1303_v37  ;;  %1212 = vmatprep.subr.bf16.mxu1 %v1303_v37 }
  0x5d   : > { %742 = vmatpush2.bf16.msra.mxu0 %v1305_v38  ;;  %1228 = vmatpush2.bf16.msra.mxu1 %v1305_v38 }
  0x5e   : > { %743 = vmatprep.subr.bf16.mxu0 %v1306_v39  ;;  %1213 = vmatprep.subr.bf16.mxu1 %v1306_v39 }
  0x61   : > { %744 = vmatpush2.bf16.msra.mxu0 %v1308_v40  ;;  %1229 = vmatpush2.bf16.msra.mxu1 %v1308_v40 }
  0x62   : > { %745 = vmatprep.subr.bf16.mxu0 %v1309_v41  ;;  %1214 = vmatprep.subr.bf16.mxu1 %v1309_v41  ;;  %v410_v41 = vld [vmem:[#allocation2 + $0x48] sm:$0xff] }
  0x65   : > { %746 = vmatpush2.bf16.msra.mxu0 %v1311_v42  ;;  %1230 = vmatpush2.bf16.msra.mxu1 %v1311_v42  ;;  %v426_v42 = vld [vmem:[#allocation2 + $0xc0] sm:$0xff] }
  0x66   : > { %747 = vmatprep.subr.bf16.mxu0 %v1312_v43  ;;  %1215 = vmatprep.subr.bf16.mxu1 %v1312_v43 }
  0x69   : > { %748 = vmatpush2.bf16.msra.mxu0 %v1314_v44  ;;  %1231 = vmatpush2.bf16.msra.mxu1 %v1314_v44 }
  0x6a   : > { %749 = vmatprep.subr.bf16.mxu0 %v1315_v45  ;;  %1216 = vmatprep.subr.bf16.mxu1 %v1315_v45 }
  0x6d   : > { %750 = vmatpush2.bf16.msra.mxu0 %v1317_v46  ;;  %1232 = vmatpush2.bf16.msra.mxu1 %v1317_v46 }
  0x6e   : > { %751 = vmatprep.subr.bf16.mxu0 %v1318_v47  ;;  %1217 = vmatprep.subr.bf16.mxu1 %v1318_v47  ;;  %v411_v47 = vld [vmem:[#allocation2 + $0x80] sm:$0xff] }
  0x71   : > { %752 = vmatpush2.bf16.msra.mxu0 %v1320_v48  ;;  %1233 = vmatpush2.bf16.msra.mxu1 %v1320_v48  ;;  %v427_v48 = vld [vmem:[#allocation2 + $0xa8] sm:$0xff] }
  0x72   : > { %753 = vmatprep.subr.bf16.mxu0 %v1321_v49  ;;  %1218 = vmatprep.subr.bf16.mxu1 %v1321_v49 }
  0x75   : > { %754 = vmatpush2.bf16.msra.mxu0 %v1323_v50  ;;  %1234 = vmatpush2.bf16.msra.mxu1 %v1323_v50 }
  0x78   : > { %756 = vmatmul.mubr.bf16.vlgmr.msra.gmra.mxu0 %v1324_v51  ;;  %796 = vmatmul.mubr.bf16.vlgmr.msra.gmra.mxu1 %v1327_v52 }
  0x79   : > { %765 = vmatprep.mubr.bf16.mxu0 %v1330_v53  ;;  %805 = vmatprep.mubr.bf16.mxu1 %v1332_v54  ;;  %v412_v53 = vld [vmem:[#allocation2 + $0x88] sm:$0xff]  ;;  %v428_v54 = vld [vmem:[#allocation2 + $0xd0] sm:$0xff] }
  0x80   : > { %766 = vmatmul.mubr.bf16.gmra.mxu0 %v1334_v55  ;;  %806 = vmatmul.mubr.bf16.gmra.mxu1 %v1335_v56 }
  0x81   : > { %775 = vmatprep.mubr.bf16.mxu0 %v1336_v57  ;;  %815 = vmatprep.mubr.bf16.mxu1 %v1338_v58 }
  0x88   : > { %776 = vmatmul.mubr.bf16.gmra.mxu0 %v1340_v59  ;;  %816 = vmatmul.mubr.bf16.gmra.mxu1 %v1341_v60  ;;  %v413_v59 = vld [vmem:[#allocation2 + $0xe8] sm:$0xff]  ;;  %v429_v60 = vld [vmem:[#allocation2 + $0x10] sm:$0xff] }
  0x89   : > { %785 = vmatprep.mubr.bf16.mxu0 %v1342_v61  ;;  %825 = vmatprep.mubr.bf16.mxu1 %v1344_v62 }
  0x90   : > { %786 = vmatmul.mubr.bf16.gmra.mxu0 %v1346_v63  ;;  %826 = vmatmul.mubr.bf16.gmra.mxu1 %v1347_v0 }
 0x138   : > { %v757_v3 = vpop.f32.mrf.mxu0  ;;  %v797_v4 = vpop.f32.mrf.mxu1 }
 0x139   : > { %v836_v7 = vadd.f32 %v757_v3, %v403_v1  ;;  %v852_v8 = vadd.f32 %v797_v4, %v419_v2  ;;  %v414_v1 = vld [vmem:[#allocation2 + $0xb8] sm:$0xff]  ;;  %v430_v2 = vld [vmem:[#allocation2 + $0x28] sm:$0xff] }
 0x13a   : > { %v759_v9 = vpop.f32.mrf.mxu0  ;;  %v799_v10 = vpop.f32.mrf.mxu1 }
 0x13b   : > { %868 = vst [vmem:[#allocation2 + $0xb0] sm:$0xff] %v836_v7  ;;  %884 = vst [vmem:[#allocation2 + $0x38] sm:$0xff] %v852_v8  ;;  %v837_v13 = vadd.f32 %v759_v9, %v404_v5  ;;  %v853_v14 = vadd.f32 %v799_v10, %v420_v6  ;;  %v415_v7 = vld [vmem:[#allocation2 + $0x60] sm:$0xff] }
 0x13c   : > { %v761_v15 = vpop.f32.mrf.mxu0  ;;  %v801_v16 = vpop.f32.mrf.mxu1  ;;  %v431_v8 = vld [vmem:[#allocation2 + $0xa0] sm:$0xff] }
 0x13d   : > { %869 = vst [vmem:[#allocation2] sm:$0xff] %v837_v13  ;;  %885 = vst [vmem:[#allocation2 + $0x58] sm:$0xff] %v853_v14  ;;  %v838_v19 = vadd.f32 %v761_v15, %v405_v11  ;;  %v854_v20 = vadd.f32 %v801_v16, %v421_v12  ;;  %v416_v13 = vld [vmem:[#allocation2 + $0xf0] sm:$0xff]  ;;  %v432_v14 = vld [vmem:[#allocation2 + $0xf8] sm:$0xff] }
 0x13e   : > { %v763_v21 = vpop.f32.mrf.mxu0  ;;  %v803_v22 = vpop.f32.mrf.mxu1 }
 0x13f   : > { %870 = vst [vmem:[#allocation2 + $0xd8] sm:$0xff] %v838_v19  ;;  %886 = vst [vmem:[#allocation2 + $0x40] sm:$0xff] %v854_v20  ;;  %v839_v25 = vadd.f32 %v763_v21, %v406_v17  ;;  %v855_v26 = vadd.f32 %v803_v22, %v422_v18  ;;  %v417_v19 = vld [vmem:[#allocation2 + $0x8] sm:$0xff]  ;;  %v433_v20 = vld [vmem:[#allocation2 + $0x20] sm:$0xff] }
 0x140   : > { %v767_v27 = vpop.f32.mrf.mxu0  ;;  %v807_v28 = vpop.f32.mrf.mxu1 }
 0x141   : > { %871 = vst [vmem:[#allocation2 + $0x18] sm:$0xff] %v839_v25  ;;  %887 = vst [vmem:[#allocation2 + $0xc8] sm:$0xff] %v855_v26  ;;  %v840_v31 = vadd.f32 %v767_v27, %v407_v23  ;;  %v856_v32 = vadd.f32 %v807_v28, %v423_v24  ;;  %v418_v25 = vld [vmem:[#allocation2 + $0x78] sm:$0xff] }
 0x142   : > { %v769_v33 = vpop.f32.mrf.mxu0  ;;  %v809_v34 = vpop.f32.mrf.mxu1  ;;  %v434_v26 = vld [vmem:[#allocation2 + $0x98] sm:$0xff] }
 0x143   : > { %872 = vst [vmem:[#allocation2 + $0x50] sm:$0xff] %v840_v31  ;;  %888 = vst [vmem:[#allocation2 + $0xe0] sm:$0xff] %v856_v32  ;;  %v841_v37 = vadd.f32 %v769_v33, %v408_v29  ;;  %v857_v38 = vadd.f32 %v809_v34, %v424_v30 }
 0x144   : > { %v771_v39 = vpop.f32.mrf.mxu0  ;;  %v811_v40 = vpop.f32.mrf.mxu1 }
 0x145   : > { %873 = vst [vmem:[#allocation2 + $0x68] sm:$0xff] %v841_v37  ;;  %889 = vst [vmem:[#allocation2 + $0x90] sm:$0xff] %v857_v38  ;;  %v842_v43 = vadd.f32 %v771_v39, %v409_v35  ;;  %v858_v44 = vadd.f32 %v811_v40, %v425_v36 }
 0x146   : > { %v773_v45 = vpop.f32.mrf.mxu0  ;;  %v813_v46 = vpop.f32.mrf.mxu1 }
 0x147   : > { %874 = vst [vmem:[#allocation2 + $0x30] sm:$0xff] %v842_v43  ;;  %890 = vst [vmem:[#allocation2 + $0x70] sm:$0xff] %v858_v44  ;;  %v843_v49 = vadd.f32 %v773_v45, %v410_v41  ;;  %v859_v50 = vadd.f32 %v813_v46, %v426_v42 }
 0x148   : > { %v777_v51 = vpop.f32.mrf.mxu0  ;;  %v817_v52 = vpop.f32.mrf.mxu1 }
 0x149   : > { %875 = vst [vmem:[#allocation2 + $0x48] sm:$0xff] %v843_v49  ;;  %891 = vst [vmem:[#allocation2 + $0xc0] sm:$0xff] %v859_v50  ;;  %v844_v55 = vadd.f32 %v777_v51, %v411_v47  ;;  %v860_v56 = vadd.f32 %v817_v52, %v427_v48 }
 0x14a   : > { %v779_v57 = vpop.f32.mrf.mxu0  ;;  %v819_v58 = vpop.f32.mrf.mxu1 }
 0x14b   : > { %876 = vst [vmem:[#allocation2 + $0x80] sm:$0xff] %v844_v55  ;;  %892 = vst [vmem:[#allocation2 + $0xa8] sm:$0xff] %v860_v56  ;;  %v845_v61 = vadd.f32 %v779_v57, %v412_v53  ;;  %v861_v62 = vadd.f32 %v819_v58, %v428_v54 }
 0x14c   : > { %v781_v63 = vpop.f32.mrf.mxu0  ;;  %v821_v0 = vpop.f32.mrf.mxu1 }
 0x14d   : > { %877 = vst [vmem:[#allocation2 + $0x88] sm:$0xff] %v845_v61  ;;  %893 = vst [vmem:[#allocation2 + $0xd0] sm:$0xff] %v861_v62  ;;  %v846_v3 = vadd.f32 %v781_v63, %v413_v59  ;;  %v862_v4 = vadd.f32 %v821_v0, %v429_v60 }
 0x14e   : > { %v783_v5 = vpop.f32.mrf.mxu0  ;;  %v823_v6 = vpop.f32.mrf.mxu1 }
 0x14f   : > { %878 = vst [vmem:[#allocation2 + $0xe8] sm:$0xff] %v846_v3  ;;  %894 = vst [vmem:[#allocation2 + $0x10] sm:$0xff] %v862_v4  ;;  %v847_v9 = vadd.f32 %v783_v5, %v414_v1  ;;  %v863_v10 = vadd.f32 %v823_v6, %v430_v2 }
 0x150   : > { %v787_v11 = vpop.f32.mrf.mxu0  ;;  %v827_v12 = vpop.f32.mrf.mxu1 }
 0x151   : > { %879 = vst [vmem:[#allocation2 + $0xb8] sm:$0xff] %v847_v9  ;;  %895 = vst [vmem:[#allocation2 + $0x28] sm:$0xff] %v863_v10  ;;  %v848_v15 = vadd.f32 %v787_v11, %v415_v7  ;;  %v864_v16 = vadd.f32 %v827_v12, %v431_v8 }
 0x152   : > { %v789_v17 = vpop.f32.mrf.mxu0  ;;  %v829_v18 = vpop.f32.mrf.mxu1 }
 0x153   : > { %880 = vst [vmem:[#allocation2 + $0x60] sm:$0xff] %v848_v15  ;;  %896 = vst [vmem:[#allocation2 + $0xa0] sm:$0xff] %v864_v16  ;;  %v849_v21 = vadd.f32 %v789_v17, %v416_v13  ;;  %v865_v22 = vadd.f32 %v829_v18, %v432_v14 }
 0x154   : > { %v791_v23 = vpop.f32.mrf.mxu0  ;;  %v831_v24 = vpop.f32.mrf.mxu1 }
 0x155   : > { %881 = vst [vmem:[#allocation2 + $0xf0] sm:$0xff] %v849_v21  ;;  %897 = vst [vmem:[#allocation2 + $0xf8] sm:$0xff] %v865_v22  ;;  %v850_v27 = vadd.f32 %v791_v23, %v417_v19  ;;  %v866_v28 = vadd.f32 %v831_v24, %v433_v20  ;;  %903 = sbr.rel (%p1196_p11) target bundleno = 372 (0x174), region = 78 }
 0x156   : > { %v793_v29 = vpop.f32.mrf.mxu0  ;;  %v833_v30 = vpop.f32.mrf.mxu1 }
 0x157   : > { %882 = vst [vmem:[#allocation2 + $0x8] sm:$0xff] %v850_v27  ;;  %898 = vst [vmem:[#allocation2 + $0x20] sm:$0xff] %v866_v28  ;;  %v851_v31 = vadd.f32 %v793_v29, %v418_v25  ;;  %v867_v32 = vadd.f32 %v833_v30, %v434_v26 }
 0x159   : > { %883 = vst [vmem:[#allocation2 + $0x78] sm:$0xff] %v851_v31  ;;  %899 = vst [vmem:[#allocation2 + $0x98] sm:$0xff] %v867_v32 }
 0x15a   : > { %v938_v33 = vlaneseq  ;;  %v936_v34 = vld [vmem:[%s1683_s2] sm:$0x3]  ;;  %v904_v36 = vld [vmem:[#allocation2 + $0xb0] sm:$0xff]  ;;  %v906_v38 = vld [vmem:[#allocation2 + $0xd8] sm:$0xff] }
 0x15b   : > { %v905_v37 = vld [vmem:[#allocation2] sm:$0xff]  ;;  %v907_v39 = vld [vmem:[#allocation2 + $0x18] sm:$0xff]  ;;  %v908_v42 = vld [vmem:[#allocation2 + $0x50] sm:$0xff] }
 0x15c   : > { %v939_v35 = vshrl.u32 %v938_v33, 7  ;;  %v909_v43 = vld [vmem:[#allocation2 + $0x68] sm:$0xff]  ;;  %v910_v44 = vld [vmem:[#allocation2 + $0x30] sm:$0xff]  ;;  %v912_v46 = vld [vmem:[#allocation2 + $0x80] sm:$0xff] }
 0x15d   : > { %v911_v45 = vld [vmem:[#allocation2 + $0x48] sm:$0xff]  ;;  %v915_v51 = vld [vmem:[#allocation2 + $0xb8] sm:$0xff]  ;;  %v916_v52 = vld [vmem:[#allocation2 + $0x60] sm:$0xff] }
 0x15e   : > { %v940_v40 = vsub.s32 0, %v939_v35  ;;  %v944_v41 = vsub.s32 1, %v939_v35  ;;  %v913_v47 = vld [vmem:[#allocation2 + $0x88] sm:$0xff]  ;;  %v917_v53 = vld [vmem:[#allocation2 + $0xf0] sm:$0xff]  ;;  %v920_v56 = vld [vmem:[#allocation2 + $0x38] sm:$0xff] }
 0x15f   : > { %v914_v48 = vld [vmem:[#allocation2 + $0xe8] sm:$0xff]  ;;  %v921_v61 = vld [vmem:[#allocation2 + $0x58] sm:$0xff]  ;;  %v922_v62 = vld [vmem:[#allocation2 + $0x40] sm:$0xff] }
 0x160   : > { %v1534_v49 = vrot.slane %v936_v34, %v940_v40  ;;  %v1536_v50 = vrot.slane %v936_v34, %v944_v41  ;;  %v918_v54 = vld [vmem:[#allocation2 + $0x8] sm:$0xff]  ;;  %v919_v55 = vld [vmem:[#allocation2 + $0x78] sm:$0xff]  ;;  %v924_v4 = vld [vmem:[#allocation2 + $0xe0] sm:$0xff] }
 0x161   : > { %v923_v63 = vld [vmem:[#allocation2 + $0xc8] sm:$0xff]  ;;  %v925_v5 = vld [vmem:[#allocation2 + $0x90] sm:$0xff]  ;;  %v927_v11 = vld [vmem:[#allocation2 + $0xc0] sm:$0xff] }
 0x162   : > { %v948_v57 = vadd.f32 %v1534_v49, %v904_v36  ;;  %v949_v58 = vadd.f32 %v1536_v50, %v905_v37  ;;  %v950_v59 = vadd.f32 %v1534_v49, %v906_v38  ;;  %v951_v60 = vadd.f32 %v1536_v50, %v907_v39  ;;  %v926_v6 = vld [vmem:[#allocation2 + $0x70] sm:$0xff]  ;;  %v928_v12 = vld [vmem:[#allocation2 + $0xa8] sm:$0xff]  ;;  %v932_v20 = vld [vmem:[#allocation2 + $0xa0] sm:$0xff] }
 0x163   : > { %v952_v0 = vadd.f32 %v1534_v49, %v908_v42  ;;  %v953_v1 = vadd.f32 %v1536_v50, %v909_v43  ;;  %v954_v2 = vadd.f32 %v1534_v49, %v910_v44  ;;  %v955_v3 = vadd.f32 %v1536_v50, %v911_v45  ;;  %v929_v13 = vld [vmem:[#allocation2 + $0xd0] sm:$0xff]  ;;  %v931_v19 = vld [vmem:[#allocation2 + $0x28] sm:$0xff]  ;;  %v933_v25 = vld [vmem:[#allocation2 + $0xf8] sm:$0xff] }
 0x164   : > { %980 = vst [vmem:[%s1684_s3] sm:$0xff] %v948_v57  ;;  %981 = vst [vmem:[%s1684_s3 + $0x8] sm:$0xff] %v949_v58  ;;  %v956_v7 = vadd.f32 %v1534_v49, %v912_v46  ;;  %v957_v8 = vadd.f32 %v1536_v50, %v913_v47  ;;  %v958_v9 = vadd.f32 %v1534_v49, %v914_v48  ;;  %v930_v18 = vld [vmem:[#allocation2 + $0x10] sm:$0xff]  ;;  %v934_v26 = vld [vmem:[#allocation2 + $0x20] sm:$0xff] }
 0x165   : > { %982 = vst [vmem:[%s1684_s3 + $0x10] sm:$0xff] %v950_v59  ;;  %983 = vst [vmem:[%s1684_s3 + $0x18] sm:$0xff] %v951_v60  ;;  %v959_v10 = vadd.f32 %v1536_v50, %v915_v51  ;;  %v960_v14 = vadd.f32 %v1534_v49, %v916_v52  ;;  %v961_v15 = vadd.f32 %v1536_v50, %v917_v53  ;;  %v935_v27 = vld [vmem:[#allocation2 + $0x98] sm:$0xff] }
 0x166   : > { %984 = vst [vmem:[%s1684_s3 + $0x20] sm:$0xff] %v952_v0  ;;  %985 = vst [vmem:[%s1684_s3 + $0x28] sm:$0xff] %v953_v1  ;;  %v962_v16 = vadd.f32 %v1534_v49, %v918_v54  ;;  %v963_v17 = vadd.f32 %v1536_v50, %v919_v55  ;;  %v964_v21 = vadd.f32 %v1534_v49, %v920_v56 }
 0x167   : > { %986 = vst [vmem:[%s1684_s3 + $0x30] sm:$0xff] %v954_v2  ;;  %987 = vst [vmem:[%s1684_s3 + $0x38] sm:$0xff] %v955_v3  ;;  %v965_v22 = vadd.f32 %v1536_v50, %v921_v61  ;;  %v966_v23 = vadd.f32 %v1534_v49, %v922_v62  ;;  %v967_v24 = vadd.f32 %v1536_v50, %v923_v63 }
 0x168   : > { %988 = vst [vmem:[%s1684_s3 + $0x40] sm:$0xff] %v956_v7  ;;  %989 = vst [vmem:[%s1684_s3 + $0x48] sm:$0xff] %v957_v8  ;;  %v968_v28 = vadd.f32 %v1534_v49, %v924_v4  ;;  %v969_v29 = vadd.f32 %v1536_v50, %v925_v5  ;;  %v970_v30 = vadd.f32 %v1534_v49, %v926_v6 }
 0x169   : > { %990 = vst [vmem:[%s1684_s3 + $0x50] sm:$0xff] %v958_v9  ;;  %991 = vst [vmem:[%s1684_s3 + $0x58] sm:$0xff] %v959_v10  ;;  %v971_v31 = vadd.f32 %v1536_v50, %v927_v11  ;;  %v972_v32 = vadd.f32 %v1534_v49, %v928_v12  ;;  %v973_v33 = vadd.f32 %v1536_v50, %v929_v13 }
 0x16a   : > { %992 = vst [vmem:[%s1684_s3 + $0x60] sm:$0xff] %v960_v14  ;;  %993 = vst [vmem:[%s1684_s3 + $0x68] sm:$0xff] %v961_v15  ;;  %v974_v34 = vadd.f32 %v1534_v49, %v930_v18  ;;  %v975_v35 = vadd.f32 %v1536_v50, %v931_v19  ;;  %v976_v36 = vadd.f32 %v1534_v49, %v932_v20 }
 0x16b   : > { %994 = vst [vmem:[%s1684_s3 + $0x70] sm:$0xff] %v962_v16  ;;  %995 = vst [vmem:[%s1684_s3 + $0x78] sm:$0xff] %v963_v17  ;;  %v977_v37 = vadd.f32 %v1536_v50, %v933_v25  ;;  %v978_v38 = vadd.f32 %v1534_v49, %v934_v26  ;;  %v979_v39 = vadd.f32 %v1536_v50, %v935_v27 }
 0x16c   : > { %996 = vst [vmem:[%s1684_s3 + $0x80] sm:$0xff] %v964_v21  ;;  %997 = vst [vmem:[%s1684_s3 + $0x88] sm:$0xff] %v965_v22 }
 0x16d   : > { %998 = vst [vmem:[%s1684_s3 + $0x90] sm:$0xff] %v966_v23  ;;  %999 = vst [vmem:[%s1684_s3 + $0x98] sm:$0xff] %v967_v24 }
 0x16e   : > { %1000 = vst [vmem:[%s1684_s3 + $0xa0] sm:$0xff] %v968_v28  ;;  %1001 = vst [vmem:[%s1684_s3 + $0xa8] sm:$0xff] %v969_v29 }
 0x16f   : > { %1002 = vst [vmem:[%s1684_s3 + $0xb0] sm:$0xff] %v970_v30  ;;  %1003 = vst [vmem:[%s1684_s3 + $0xb8] sm:$0xff] %v971_v31 }
 0x170   : > { %1004 = vst [vmem:[%s1684_s3 + $0xc0] sm:$0xff] %v972_v32  ;;  %1005 = vst [vmem:[%s1684_s3 + $0xc8] sm:$0xff] %v973_v33 }
 0x171   : > { %1006 = vst [vmem:[%s1684_s3 + $0xd0] sm:$0xff] %v974_v34  ;;  %1007 = vst [vmem:[%s1684_s3 + $0xd8] sm:$0xff] %v975_v35 }
 0x172   : > { %1008 = vst [vmem:[%s1684_s3 + $0xe0] sm:$0xff] %v976_v36  ;;  %1009 = vst [vmem:[%s1684_s3 + $0xe8] sm:$0xff] %v977_v37 }
 0x173   : > { %1010 = vst [vmem:[%s1684_s3 + $0xf0] sm:$0xff] %v978_v38  ;;  %1011 = vst [vmem:[%s1684_s3 + $0xf8] sm:$0xff] %v979_v39 }
 0x174 PF: > { %s13_s16 = sadd.s32 1, %s1386_s16   ;;  %s1685_s12 = smov %s1374_s13 }
 0x175   : > { %p10_p12 = scmp.ge.s32.totalorder %s13_s16, 11   ;;  %s1686_s13 = smov %s1444_s20 }
 0x176   : > { %s1687_s14 = smov %s1382_s15  ;;  %s1688_s15 = smov %s1690_s17 }
 0x177   :  { %12 = sbr.rel (!%p10_p12) target bundleno = 3 (0x3), region = 119 }

// kernel: generator_resnet_forward.49
= control target key start
LH: loop header
LB: loop body
LE: loop exit
PB: predicated region body
PF: predicated region fallthrough
CT: control target
= control target key end

     0   :  { %s1182_s12 = smov 0   ;;  %s1184_s13 = smov 0   ;;  %s1354_s0 = inlined_call_operand.vmem [shape: bf16[128,2304], index: 0, kind: input, shape index: {}]   ;;  %s1355_s1 = inlined_call_operand.vmem [shape: bf16[2304,128], index: 1, kind: input, shape index: {}]   ;;  %s1356_s2 = inlined_call_operand.vmem [shape: f32[1,128], index: 2, kind: input, shape index: {}]   ;;  %s1357_s3 = inlined_call_operand.vmem [shape: f32[128,128], index: 3, kind: output, shape index: {}]  }
   0x1   :  { %s1186_s14 = smov 0   ;;  %s1188_s15 = smov 0  }
   0x2   :  { %s1190_s16 = smov 0  }
   0x3 LB: > { %s25_s17 = sadd.s32 1, %s1155_s15  ;;  %p48_p1 = scmp.ne.s32.totalorder %s1147_s13, %s1143_s12  ;;  %s1159_s16 = sphi %s1190_s16, %s13_s16   ;;  %s1155_s15 = sphi %s1188_s15, %s1361_s15   ;;  %s1151_s14 = sphi %s1186_s14, %s1360_s14   ;;  %s1147_s13 = sphi %s1184_s13, %s1359_s13   ;;  %s1143_s12 = sphi %s1182_s12, %s1358_s12  }
   0x4   : > { %p26_p0 = scmp.ge.s32.totalorder %s25_s17, 9  ;;  %p49_p2 = scmp.eq.s32.totalorder %s1159_s16, 0 }
   0x5   : > { %s41_s19 = sadd.s32 1, %s1147_s13  ;;  %p912_p5 = scmp.ge.s32.totalorder %s1159_s16, 9 }
   0x6   : > { %s1363_s17 = smov (%p26_p0, %s25_s17), 0  ;;  %p50_p3 = por %p49_p2, %p48_p1 }
   0x7   : > { %s37_s18 = ssub.s32 %s1155_s15, %s1363_s17  ;;  %162 = sbr.rel (%p912_p5) target bundleno = 24 (0x18), region = 20 }
   0x8   : > { %p39_p4 = scmp.eq.s32.totalorder %s37_s18, 0 }
   0xa   : > { %s1217_s20 = scalar_select %p39_p4, %s1147_s13, %s41_s19  }
   0xc   : > { %165 = sbr.rel (!%p50_p3) target bundleno = 24 (0x18), region = 24  ;;  %s167_s21 = sand.u32 (%p50_p3), 1, %s1147_s13  }
   0xd   : > { %s959_s22 = sshll.u32 (%p50_p3), %s1155_s15, 3  ;;  %s913_s23 = sshll.u32 (%p50_p3), %s167_s21, 7 }
   0xe   : > { %s1225_s26 = scalar_lea.vmem (%p50_p3), %s1354_s0, %s959_s22  ;;  %s169_s27 = scalar_lea.vmem (%p50_p3), [#allocation3], %s913_s23 }
   0xf   : > { %v234_v0 = vld [vmem:[%s1225_s26] sm:$0xff] (%p50_p3)  ;;  %v236_v1 = vld [vmem:[%s1225_s26 + $0x48] sm:$0xff] (%p50_p3)  ;;  %v238_v2 = vld [vmem:[%s1225_s26 + $0x90] sm:$0xff] (%p50_p3) }
  0x10   : > { %235 = vst [vmem:[%s169_s27] sm:$0xff] (%p50_p3), %v234_v0  ;;  %237 = vst [vmem:[%s169_s27 + $0x8] sm:$0xff] (%p50_p3), %v236_v1  ;;  %v240_v3 = vld [vmem:[%s1225_s26 + $0xd8] sm:$0xff] (%p50_p3)  ;;  %v242_v4 = vld [vmem:[%s1225_s26 + $0x120] sm:$0xff] (%p50_p3) }
  0x11   : > { %239 = vst [vmem:[%s169_s27 + $0x10] sm:$0xff] %v238_v2  ;;  %v244_v5 = vld [vmem:[%s1225_s26 + $0x168] sm:$0xff]  ;;  %241 = vst [vmem:[%s169_s27 + $0x18] sm:$0xff] %v240_v3  ;;  %v246_v6 = vld [vmem:[%s1225_s26 + $0x1b0] sm:$0xff] }
  0x12   : > { %243 = vst [vmem:[%s169_s27 + $0x20] sm:$0xff] %v242_v4  ;;  %245 = vst [vmem:[%s169_s27 + $0x28] sm:$0xff] %v244_v5  ;;  %v248_v7 = vld [vmem:[%s1225_s26 + $0x1f8] sm:$0xff]  ;;  %v250_v8 = vld [vmem:[%s1225_s26 + $0x240] sm:$0xff] }
  0x13   : > { %247 = vst [vmem:[%s169_s27 + $0x30] sm:$0xff] %v246_v6  ;;  %249 = vst [vmem:[%s169_s27 + $0x38] sm:$0xff] %v248_v7  ;;  %v252_v9 = vld [vmem:[%s1225_s26 + $0x288] sm:$0xff]  ;;  %v254_v10 = vld [vmem:[%s1225_s26 + $0x2d0] sm:$0xff] }
  0x14   : > { %251 = vst [vmem:[%s169_s27 + $0x40] sm:$0xff] %v250_v8  ;;  %v256_v11 = vld [vmem:[%s1225_s26 + $0x318] sm:$0xff]  ;;  %253 = vst [vmem:[%s169_s27 + $0x48] sm:$0xff] %v252_v9  ;;  %v258_v12 = vld [vmem:[%s1225_s26 + $0x360] sm:$0xff] }
  0x15   : > { %255 = vst [vmem:[%s169_s27 + $0x50] sm:$0xff] %v254_v10  ;;  %257 = vst [vmem:[%s169_s27 + $0x58] sm:$0xff] %v256_v11  ;;  %v260_v13 = vld [vmem:[%s1225_s26 + $0x3a8] sm:$0xff]  ;;  %v262_v14 = vld [vmem:[%s1225_s26 + $0x3f0] sm:$0xff] }
  0x16   : > { %259 = vst [vmem:[%s169_s27 + $0x60] sm:$0xff] %v258_v12  ;;  %261 = vst [vmem:[%s169_s27 + $0x68] sm:$0xff] %v260_v13  ;;  %v264_v15 = vld [vmem:[%s1225_s26 + $0x438] sm:$0xff] }
  0x17   : > { %263 = vst [vmem:[%s169_s27 + $0x70] sm:$0xff] %v262_v14  ;;  %265 = vst [vmem:[%s169_s27 + $0x78] sm:$0xff] %v264_v15 }
  0x18 PF: > { %p916_p6 = scmp.ge.s32.totalorder %s1159_s16, 1  ;;  %p282_p7 = scmp.lt.s32.totalorder %s1159_s16, 10 }
  0x1a   : > { %p283_p8 = pnand %p916_p6, %p282_p7 }
  0x1b   : > { %s289_s28 = sand.u32 (!%p283_p8), 1, %s1143_s12   ;;  %s918_s29 = sshll.u32 (!%p283_p8), %s1151_s14, 5 }
  0x1c   : > { %286 = sbr.rel (%p283_p8) target bundleno = 319 (0x13f), region = 66  ;;  %s917_s30 = sshll.u32 (!%p283_p8), %s289_s28, 7 }
  0x1d   : > { %p329_p9 = scmp.lt.s32.totalorder (!%p283_p8), %s918_s29, 287  ;;  %s1252_s8 = scalar_lea.vmem (!%p283_p8), [#allocation3], %s917_s30 }
  0x1e   : > { %p920_p10 = scmp.ne.s32.totalorder (!%p283_p8), %s1151_s14, 0 }
  0x21   : > { %s1365_s29 = smov (!%p329_p9, %s918_s29), 287  ;;  %353 = sbr.rel (%p920_p10) target bundleno = 47 (0x2f), region = 74 }
  0x22   : > { %s919_s4 = sshll.u32 %s1365_s29, 2 }
  0x23   : > { %s1250_s7 = scalar_lea.vmem %s1355_s1, %s919_s4 }
  0x26   : > { %v1161_v16 = vmov 0.0  }
  0x27   : > { %354 = vst [vmem:[#allocation2 + $0x30] sm:$0xff] %v1161_v16  ;;  %355 = vst [vmem:[#allocation2] sm:$0xff] %v1161_v16 }
  0x28   : > { %356 = vst [vmem:[#allocation2 + $0x58] sm:$0xff] %v1161_v16  ;;  %357 = vst [vmem:[#allocation2 + $0x18] sm:$0xff] %v1161_v16 }
  0x29   : > { %358 = vst [vmem:[#allocation2 + $0x50] sm:$0xff] %v1161_v16  ;;  %359 = vst [vmem:[#allocation2 + $0x68] sm:$0xff] %v1161_v16 }
  0x2a   : > { %360 = vst [vmem:[#allocation2 + $0x8] sm:$0xff] %v1161_v16  ;;  %361 = vst [vmem:[#allocation2 + $0x48] sm:$0xff] %v1161_v16 }
  0x2b   : > { %362 = vst [vmem:[#allocation2 + $0x40] sm:$0xff] %v1161_v16  ;;  %363 = vst [vmem:[#allocation2 + $0x20] sm:$0xff] %v1161_v16 }
  0x2c   : > { %364 = vst [vmem:[#allocation2 + $0x10] sm:$0xff] %v1161_v16  ;;  %365 = vst [vmem:[#allocation2 + $0x38] sm:$0xff] %v1161_v16 }
  0x2d   : > { %366 = vst [vmem:[#allocation2 + $0x60] sm:$0xff] %v1161_v16  ;;  %367 = vst [vmem:[#allocation2 + $0x70] sm:$0xff] %v1161_v16 }
  0x2e   : > { %368 = vst [vmem:[#allocation2 + $0x78] sm:$0xff] %v1161_v16  ;;  %369 = vst [vmem:[#allocation2 + $0x28] sm:$0xff] %v1161_v16 }
  0x2f PF: > { %v1081_v17 = vld [vmem:[%s1250_s7 + $0x78] sm:$0xff]   ;;  %v1083_v19 = vld [vmem:[%s1250_s7 + $0x70] sm:$0xff]   ;;  %v1085_v21 = vld [vmem:[%s1250_s7 + $0x68] sm:$0xff]   ;;  %p953_p11 = scmp.ne.s32.totalorder %s1151_s14, 8 }
  0x30   : > { %v1082_v18 = vld [vmem:[%s1250_s7 + $0x38] sm:$0xff]   ;;  %960 = vmatprep.subr.bf16.mxu0 %v1081_v17  ;;  %1024 = vmatprep.subr.bf16.mxu1 %v1081_v17  ;;  %v1084_v20 = vld [vmem:[%s1250_s7 + $0x30] sm:$0xff]   ;;  %v1086_v22 = vld [vmem:[%s1250_s7 + $0x28] sm:$0xff]  }
  0x31   : > { %961 = vmatpush3.bf16.msra.mxu0 %v1082_v18  ;;  %1032 = vmatpush3.bf16.msra.mxu1 %v1082_v18  ;;  %v1087_v23 = vld [vmem:[%s1250_s7 + $0x60] sm:$0xff]   ;;  %v1089_v25 = vld [vmem:[%s1250_s7 + $0x58] sm:$0xff]   ;;  %v1091_v27 = vld [vmem:[%s1250_s7 + $0x50] sm:$0xff]  }
  0x32   : > { %962 = vmatprep.subr.bf16.mxu0 %v1083_v19  ;;  %1025 = vmatprep.subr.bf16.mxu1 %v1083_v19  ;;  %v1088_v24 = vld [vmem:[%s1250_s7 + $0x20] sm:$0xff]   ;;  %v1090_v26 = vld [vmem:[%s1250_s7 + $0x18] sm:$0xff]   ;;  %v1092_v30 = vld [vmem:[%s1250_s7 + $0x10] sm:$0xff]  }
  0x33   : > { %v1099_v28 = vld [vmem:[%s1252_s8 + $0x4] ss:$8 sps:$4 sm:$0xff]   ;;  %v1097_v35 = vld [vmem:[%s1252_s8] ss:$8 sps:$4 sm:$0xff]   ;;  %v1103_v37 = vld [vmem:[%s1252_s8 + $0x14] ss:$8 sps:$4 sm:$0xff]  }
  0x34   : > { %v1102_v29 = vld [vmem:[%s1252_s8 + $0x44] ss:$8 sps:$4 sm:$0xff]   ;;  %642 = vmatprep.mubr.bf16.mxu0 %v1099_v28  ;;  %v1100_v36 = vld [vmem:[%s1252_s8 + $0x40] ss:$8 sps:$4 sm:$0xff]   ;;  %v1105_v38 = vld [vmem:[%s1252_s8 + $0x54] ss:$8 sps:$4 sm:$0xff]  }
  0x35   : > { %963 = vmatpush3.bf16.msra.mxu0 %v1084_v20  ;;  %1033 = vmatpush3.bf16.msra.mxu1 %v1084_v20  ;;  %v1093_v31 = vld [vmem:[%s1250_s7 + $0x48] sm:$0xff]   ;;  %v1095_v33 = vld [vmem:[%s1250_s7 + $0x40] sm:$0xff]   ;;  %v1107_v39 = vld [vmem:[%s1252_s8 + $0x10] ss:$8 sps:$4 sm:$0xff]  }
  0x36   : > { %964 = vmatprep.subr.bf16.mxu0 %v1085_v21  ;;  %1026 = vmatprep.subr.bf16.mxu1 %v1085_v21  ;;  %v1094_v32 = vld [vmem:[%s1250_s7 + $0x8] sm:$0xff]   ;;  %v1096_v34 = vld [vmem:[%s1250_s7] sm:$0xff]   ;;  %v1108_v40 = vld [vmem:[%s1252_s8 + $0x50] ss:$8 sps:$4 sm:$0xff]  }
  0x37   : > { %674 = vmatprep.mubr.bf16.mxu1 %v1102_v29  ;;  %v1109_v41 = vld [vmem:[%s1252_s8 + $0x24] ss:$8 sps:$4 sm:$0xff]   ;;  %v1113_v43 = vld [vmem:[%s1252_s8 + $0x20] ss:$8 sps:$4 sm:$0xff]   ;;  %v1115_v45 = vld [vmem:[%s1252_s8 + $0x34] ss:$8 sps:$4 sm:$0xff]  }
  0x38   : > { %v1111_v42 = vld [vmem:[%s1252_s8 + $0x64] ss:$8 sps:$4 sm:$0xff]   ;;  %v1114_v44 = vld [vmem:[%s1252_s8 + $0x60] ss:$8 sps:$4 sm:$0xff]   ;;  %v1117_v46 = vld [vmem:[%s1252_s8 + $0x74] ss:$8 sps:$4 sm:$0xff]  }
  0x39   : > { %965 = vmatpush3.bf16.msra.mxu0 %v1086_v22  ;;  %1034 = vmatpush3.bf16.msra.mxu1 %v1086_v22  ;;  %v1119_v47 = vld [vmem:[%s1252_s8 + $0x30] ss:$8 sps:$4 sm:$0xff]   ;;  %v378_v53 = vld [vmem:[#allocation2 + $0x40] sm:$0xff] }
  0x3a   : > { %966 = vmatprep.subr.bf16.mxu0 %v1087_v23  ;;  %1027 = vmatprep.subr.bf16.mxu1 %v1087_v23  ;;  %v1120_v48 = vld [vmem:[%s1252_s8 + $0x70] ss:$8 sps:$4 sm:$0xff]   ;;  %v371_v61 = vld [vmem:[#allocation2] sm:$0xff] }
  0x3b   : > { %v370_v51 = vld [vmem:[#allocation2 + $0x30] sm:$0xff]  ;;  %v379_v63 = vld [vmem:[#allocation2 + $0x20] sm:$0xff]  ;;  %v372_v7 = vld [vmem:[#allocation2 + $0x58] sm:$0xff] }
  0x3c   : > { %v380_v9 = vld [vmem:[#allocation2 + $0x10] sm:$0xff]  ;;  %v373_v17 = vld [vmem:[#allocation2 + $0x18] sm:$0xff]  ;;  %v382_v29 = vld [vmem:[#allocation2 + $0x60] sm:$0xff] }
  0x3d   : > { %967 = vmatpush3.bf16.msra.mxu0 %v1088_v24  ;;  %1035 = vmatpush3.bf16.msra.mxu1 %v1088_v24  ;;  %v381_v19 = vld [vmem:[#allocation2 + $0x38] sm:$0xff] }
  0x3e   : > { %968 = vmatprep.subr.bf16.mxu0 %v1089_v25  ;;  %1028 = vmatprep.subr.bf16.mxu1 %v1089_v25 }
  0x41   : > { %969 = vmatpush3.bf16.msra.mxu0 %v1090_v26  ;;  %1036 = vmatpush3.bf16.msra.mxu1 %v1090_v26 }
  0x42   : > { %970 = vmatprep.subr.bf16.mxu0 %v1091_v27  ;;  %1029 = vmatprep.subr.bf16.mxu1 %v1091_v27  ;;  %v374_v27 = vld [vmem:[#allocation2 + $0x50] sm:$0xff] }
  0x45   : > { %971 = vmatpush3.bf16.msra.mxu0 %v1092_v30  ;;  %1037 = vmatpush3.bf16.msra.mxu1 %v1092_v30 }
  0x46   : > { %972 = vmatprep.subr.bf16.mxu0 %v1093_v31  ;;  %1030 = vmatprep.subr.bf16.mxu1 %v1093_v31 }
  0x49   : > { %973 = vmatpush3.bf16.msra.mxu0 %v1094_v32  ;;  %1038 = vmatpush3.bf16.msra.mxu1 %v1094_v32 }
  0x4a   : > { %974 = vmatprep.subr.bf16.mxu0 %v1095_v33  ;;  %1031 = vmatprep.subr.bf16.mxu1 %v1095_v33 }
  0x4d   : > { %975 = vmatpush3.bf16.msra.mxu0 %v1096_v34  ;;  %1039 = vmatpush3.bf16.msra.mxu1 %v1096_v34 }
  0x50   : > { %643 = vmatmul.mubr.bf16.vlgmr.msra.gmra.mxu0 %v1097_v35  ;;  %675 = vmatmul.mubr.bf16.vlgmr.msra.gmra.mxu1 %v1100_v36 }
  0x51   : > { %650 = vmatprep.mubr.bf16.mxu0 %v1103_v37  ;;  %682 = vmatprep.mubr.bf16.mxu1 %v1105_v38  ;;  %v375_v37 = vld [vmem:[#allocation2 + $0x68] sm:$0xff] }
  0x58   : > { %651 = vmatmul.mubr.bf16.gmra.mxu0 %v1107_v39  ;;  %683 = vmatmul.mubr.bf16.gmra.mxu1 %v1108_v40  ;;  %v383_v39 = vld [vmem:[#allocation2 + $0x70] sm:$0xff] }
  0x59   : > { %658 = vmatprep.mubr.bf16.mxu0 %v1109_v41  ;;  %690 = vmatprep.mubr.bf16.mxu1 %v1111_v42 }
  0x60   : > { %659 = vmatmul.mubr.bf16.gmra.mxu0 %v1113_v43  ;;  %691 = vmatmul.mubr.bf16.gmra.mxu1 %v1114_v44 }
  0x61   : > { %666 = vmatprep.mubr.bf16.mxu0 %v1115_v45  ;;  %698 = vmatprep.mubr.bf16.mxu1 %v1117_v46 }
  0x68   : > { %667 = vmatmul.mubr.bf16.gmra.mxu0 %v1119_v47  ;;  %699 = vmatmul.mubr.bf16.gmra.mxu1 %v1120_v48  ;;  %v376_v47 = vld [vmem:[#allocation2 + $0x8] sm:$0xff] }
 0x110   : > { %v976_v49 = vpop.f32.mrf.mxu0  ;;  %v1000_v50 = vpop.f32.mrf.mxu1 }
 0x112   : > { %v977_v52 = vpop.f32.mrf.mxu0  ;;  %v1001_v54 = vpop.f32.mrf.mxu1 }
 0x113   : > { %v978_v55 = vadd.f32 %v977_v52, %v976_v49  ;;  %v1002_v56 = vadd.f32 %v1001_v54, %v1000_v50  ;;  %v384_v49 = vld [vmem:[#allocation2 + $0x78] sm:$0xff] }
 0x114   : > { %v979_v57 = vpop.f32.mrf.mxu0  ;;  %v1003_v58 = vpop.f32.mrf.mxu1 }
 0x115   : > { %v707_v59 = vadd.f32 %v978_v55, %v370_v51  ;;  %v715_v60 = vadd.f32 %v1002_v56, %v378_v53 }
 0x116   : > { %v980_v62 = vpop.f32.mrf.mxu0  ;;  %v1004_v0 = vpop.f32.mrf.mxu1 }
 0x117   : > { %723 = vst [vmem:[#allocation2 + $0x30] sm:$0xff] %v707_v59  ;;  %731 = vst [vmem:[#allocation2 + $0x40] sm:$0xff] %v715_v60  ;;  %v981_v1 = vadd.f32 %v980_v62, %v979_v57  ;;  %v1005_v2 = vadd.f32 %v1004_v0, %v1003_v58  ;;  %v377_v57 = vld [vmem:[#allocation2 + $0x48] sm:$0xff] }
 0x118   : > { %v982_v3 = vpop.f32.mrf.mxu0  ;;  %v1006_v4 = vpop.f32.mrf.mxu1  ;;  %v385_v59 = vld [vmem:[#allocation2 + $0x28] sm:$0xff] }
 0x119   : > { %v708_v5 = vadd.f32 %v981_v1, %v371_v61  ;;  %v716_v6 = vadd.f32 %v1005_v2, %v379_v63 }
 0x11a   : > { %v983_v8 = vpop.f32.mrf.mxu0  ;;  %v1007_v10 = vpop.f32.mrf.mxu1 }
 0x11b   : > { %724 = vst [vmem:[#allocation2] sm:$0xff] %v708_v5  ;;  %732 = vst [vmem:[#allocation2 + $0x20] sm:$0xff] %v716_v6  ;;  %v984_v11 = vadd.f32 %v983_v8, %v982_v3  ;;  %v1008_v12 = vadd.f32 %v1007_v10, %v1006_v4 }
 0x11c   : > { %v985_v13 = vpop.f32.mrf.mxu0  ;;  %v1009_v14 = vpop.f32.mrf.mxu1 }
 0x11d   : > { %v709_v15 = vadd.f32 %v984_v11, %v372_v7  ;;  %v717_v16 = vadd.f32 %v1008_v12, %v380_v9 }
 0x11e   : > { %v986_v18 = vpop.f32.mrf.mxu0  ;;  %v1010_v20 = vpop.f32.mrf.mxu1 }
 0x11f   : > { %725 = vst [vmem:[#allocation2 + $0x58] sm:$0xff] %v709_v15  ;;  %733 = vst [vmem:[#allocation2 + $0x10] sm:$0xff] %v717_v16  ;;  %v987_v21 = vadd.f32 %v986_v18, %v985_v13  ;;  %v1011_v22 = vadd.f32 %v1010_v20, %v1009_v14 }
 0x120   : > { %v988_v23 = vpop.f32.mrf.mxu0  ;;  %v1012_v24 = vpop.f32.mrf.mxu1 }
 0x121   : > { %v710_v25 = vadd.f32 %v987_v21, %v373_v17  ;;  %v718_v26 = vadd.f32 %v1011_v22, %v381_v19 }
 0x122   : > { %v989_v28 = vpop.f32.mrf.mxu0  ;;  %v1013_v30 = vpop.f32.mrf.mxu1 }
 0x123   : > { %726 = vst [vmem:[#allocation2 + $0x18] sm:$0xff] %v710_v25  ;;  %734 = vst [vmem:[#allocation2 + $0x38] sm:$0xff] %v718_v26  ;;  %v990_v31 = vadd.f32 %v989_v28, %v988_v23  ;;  %v1014_v32 = vadd.f32 %v1013_v30, %v1012_v24 }
 0x124   : > { %v991_v33 = vpop.f32.mrf.mxu0  ;;  %v1015_v34 = vpop.f32.mrf.mxu1 }
 0x125   : > { %v711_v35 = vadd.f32 %v990_v31, %v374_v27  ;;  %v719_v36 = vadd.f32 %v1014_v32, %v382_v29 }
 0x126   : > { %v992_v38 = vpop.f32.mrf.mxu0  ;;  %v1016_v40 = vpop.f32.mrf.mxu1 }
 0x127   : > { %727 = vst [vmem:[#allocation2 + $0x50] sm:$0xff] %v711_v35  ;;  %735 = vst [vmem:[#allocation2 + $0x60] sm:$0xff] %v719_v36  ;;  %v993_v41 = vadd.f32 %v992_v38, %v991_v33  ;;  %v1017_v42 = vadd.f32 %v1016_v40, %v1015_v34 }
 0x128   : > { %v994_v43 = vpop.f32.mrf.mxu0  ;;  %v1018_v44 = vpop.f32.mrf.mxu1 }
 0x129   : > { %v712_v45 = vadd.f32 %v993_v41, %v375_v37  ;;  %v720_v46 = vadd.f32 %v1017_v42, %v383_v39 }
 0x12a   : > { %v995_v48 = vpop.f32.mrf.mxu0  ;;  %v1019_v50 = vpop.f32.mrf.mxu1 }
 0x12b   : > { %728 = vst [vmem:[#allocation2 + $0x68] sm:$0xff] %v712_v45  ;;  %736 = vst [vmem:[#allocation2 + $0x70] sm:$0xff] %v720_v46  ;;  %v996_v51 = vadd.f32 %v995_v48, %v994_v43  ;;  %v1020_v52 = vadd.f32 %v1019_v50, %v1018_v44 }
 0x12c   : > { %v997_v53 = vpop.f32.mrf.mxu0  ;;  %v1021_v54 = vpop.f32.mrf.mxu1 }
 0x12d   : > { %v713_v55 = vadd.f32 %v996_v51, %v376_v47  ;;  %v721_v56 = vadd.f32 %v1020_v52, %v384_v49 }
 0x12e   : > { %v998_v58 = vpop.f32.mrf.mxu0  ;;  %v1022_v60 = vpop.f32.mrf.mxu1 }
 0x12f   : > { %729 = vst [vmem:[#allocation2 + $0x8] sm:$0xff] %v713_v55  ;;  %737 = vst [vmem:[#allocation2 + $0x78] sm:$0xff] %v721_v56  ;;  %v999_v61 = vadd.f32 %v998_v58, %v997_v53  ;;  %v1023_v62 = vadd.f32 %v1022_v60, %v1021_v54  ;;  %742 = sbr.rel (%p953_p11) target bundleno = 319 (0x13f), region = 78 }
 0x131   : > { %v714_v63 = vadd.f32 %v999_v61, %v377_v57  ;;  %v722_v0 = vadd.f32 %v1023_v62, %v385_v59 }
 0x133   : > { %730 = vst [vmem:[#allocation2 + $0x48] sm:$0xff] %v714_v63  ;;  %738 = vst [vmem:[#allocation2 + $0x28] sm:$0xff] %v722_v0 }
 0x134   : > { %v743_v1 = vld [vmem:[#allocation2 + $0x30] sm:$0xff]  ;;  %v954_v2 = vld [vmem:[%s1356_s2] ss:$0 sm:$0xff]  ;;  %v745_v6 = vld [vmem:[#allocation2 + $0x58] sm:$0xff] }
 0x135   : > { %v744_v3 = vld [vmem:[#allocation2] sm:$0xff]  ;;  %v766_v4 = vadd.f32 %v954_v2, %v743_v1  ;;  %v746_v7 = vld [vmem:[#allocation2 + $0x18] sm:$0xff]  ;;  %v747_v8 = vld [vmem:[#allocation2 + $0x50] sm:$0xff]  ;;  %v768_v9 = vadd.f32 %v954_v2, %v745_v6 }
 0x136   : > { %v767_v5 = vadd.f32 %v954_v2, %v744_v3  ;;  %v769_v10 = vadd.f32 %v954_v2, %v746_v7  ;;  %v770_v11 = vadd.f32 %v954_v2, %v747_v8  ;;  %v748_v12 = vld [vmem:[#allocation2 + $0x68] sm:$0xff]  ;;  %v751_v18 = vld [vmem:[#allocation2 + $0x40] sm:$0xff]  ;;  %v753_v20 = vld [vmem:[#allocation2 + $0x10] sm:$0xff] }
 0x137   : > { %v749_v13 = vld [vmem:[#allocation2 + $0x8] sm:$0xff]  ;;  %782 = vst [vmem:[%s1357_s3] sm:$0xff] %v766_v4  ;;  %v771_v15 = vadd.f32 %v954_v2, %v748_v12  ;;  %v752_v19 = vld [vmem:[#allocation2 + $0x20] sm:$0xff]  ;;  %784 = vst [vmem:[%s1357_s3 + $0x10] sm:$0xff] %v768_v9  ;;  %v774_v21 = vadd.f32 %v954_v2, %v751_v18  ;;  %v776_v23 = vadd.f32 %v954_v2, %v753_v20 }
 0x138   : > { %783 = vst [vmem:[%s1357_s3 + $0x8] sm:$0xff] %v767_v5  ;;  %v772_v16 = vadd.f32 %v954_v2, %v749_v13  ;;  %785 = vst [vmem:[%s1357_s3 + $0x18] sm:$0xff] %v769_v10  ;;  %v775_v22 = vadd.f32 %v954_v2, %v752_v19  ;;  %v754_v24 = vld [vmem:[#allocation2 + $0x38] sm:$0xff]  ;;  %v755_v25 = vld [vmem:[#allocation2 + $0x60] sm:$0xff] }
 0x139   : > { %786 = vst [vmem:[%s1357_s3 + $0x20] sm:$0xff] %v770_v11  ;;  %v756_v26 = vld [vmem:[#allocation2 + $0x70] sm:$0xff]  ;;  %787 = vst [vmem:[%s1357_s3 + $0x28] sm:$0xff] %v771_v15  ;;  %v777_v27 = vadd.f32 %v954_v2, %v754_v24  ;;  %v778_v28 = vadd.f32 %v954_v2, %v755_v25  ;;  %v757_v30 = vld [vmem:[#allocation2 + $0x78] sm:$0xff] }
 0x13a   : > { %v750_v14 = vld [vmem:[#allocation2 + $0x48] sm:$0xff]  ;;  %788 = vst [vmem:[%s1357_s3 + $0x30] sm:$0xff] %v772_v16  ;;  %v779_v29 = vadd.f32 %v954_v2, %v756_v26  ;;  %790 = vst [vmem:[%s1357_s3 + $0x40] sm:$0xff] %v774_v21  ;;  %v780_v32 = vadd.f32 %v954_v2, %v757_v30 }
 0x13b   : > { %v773_v17 = vadd.f32 %v954_v2, %v750_v14  ;;  %v758_v31 = vld [vmem:[#allocation2 + $0x28] sm:$0xff]  ;;  %791 = vst [vmem:[%s1357_s3 + $0x48] sm:$0xff] %v775_v22  ;;  %792 = vst [vmem:[%s1357_s3 + $0x50] sm:$0xff] %v776_v23 }
 0x13c   : > { %v781_v33 = vadd.f32 %v954_v2, %v758_v31  ;;  %793 = vst [vmem:[%s1357_s3 + $0x58] sm:$0xff] %v777_v27  ;;  %794 = vst [vmem:[%s1357_s3 + $0x60] sm:$0xff] %v778_v28 }
 0x13d   : > { %789 = vst [vmem:[%s1357_s3 + $0x38] sm:$0xff] %v773_v17  ;;  %795 = vst [vmem:[%s1357_s3 + $0x68] sm:$0xff] %v779_v29 }
 0x13e   : > { %796 = vst [vmem:[%s1357_s3 + $0x70] sm:$0xff] %v780_v32  ;;  %797 = vst [vmem:[%s1357_s3 + $0x78] sm:$0xff] %v781_v33 }
 0x13f PF: > { %s13_s16 = sadd.s32 1, %s1159_s16   ;;  %s1358_s12 = smov %s1147_s13 }
 0x140   : > { %p10_p12 = scmp.ge.s32.totalorder %s13_s16, 11   ;;  %s1359_s13 = smov %s1217_s20 }
 0x141   : > { %s1360_s14 = smov %s1155_s15  ;;  %s1361_s15 = smov %s1363_s17 }
 0x142   :  { %12 = sbr.rel (!%p10_p12) target bundleno = 3 (0x3), region = 119 }

// kernel: generator_resnet_forward.52
= control target key start
LH: loop header
LB: loop body
LE: loop exit
PB: predicated region body
PF: predicated region fallthrough
CT: control target
= control target key end

     0   :  { %s2264_s12 = smov 0   ;;  %s2266_s13 = smov 0   ;;  %s2904_s0 = inlined_call_operand.vmem [shape: bf16[512,1280], index: 0, kind: input, shape index: {}]   ;;  %s2905_s1 = inlined_call_operand.vmem [shape: bf16[1280,128], index: 1, kind: input, shape index: {}]   ;;  %s2906_s2 = inlined_call_operand.vmem [shape: f32[1,128], index: 2, kind: input, shape index: {}]   ;;  %s2907_s3 = inlined_call_operand.vmem [shape: f32[512,128], index: 3, kind: output, shape index: {}]  }
   0x1   :  { %s2268_s14 = smov 0   ;;  %s2270_s15 = smov 0  }
   0x2   :  { %s2272_s16 = smov 0  }
   0x3 LB: > { %s25_s17 = sadd.s32 1, %s2236_s15  ;;  %p48_p1 = scmp.ne.s32.totalorder %s2228_s13, %s2224_s12  ;;  %s2240_s16 = sphi %s2272_s16, %s13_s16   ;;  %s2236_s15 = sphi %s2270_s15, %s2911_s15   ;;  %s2232_s14 = sphi %s2268_s14, %s2910_s14   ;;  %s2228_s13 = sphi %s2266_s13, %s2909_s13   ;;  %s2224_s12 = sphi %s2264_s12, %s2908_s12  }
   0x4   : > { %p26_p0 = scmp.ge.s32.totalorder %s25_s17, 5  ;;  %p49_p2 = scmp.eq.s32.totalorder %s2240_s16, 0 }
   0x5   : > { %s41_s19 = sadd.s32 1, %s2228_s13  ;;  %p1920_p5 = scmp.ge.s32.totalorder %s2240_s16, 5 }
   0x6   : > { %s2913_s17 = smov (%p26_p0, %s25_s17), 0  ;;  %p50_p3 = por %p49_p2, %p48_p1 }
   0x7   : > { %s37_s18 = ssub.s32 %s2236_s15, %s2913_s17  ;;  %162 = sbr.rel (%p1920_p5) target bundleno = 48 (0x30), region = 20 }
   0x8   : > { %p39_p4 = scmp.eq.s32.totalorder %s37_s18, 0 }
   0xa   : > { %s2299_s20 = scalar_select %p39_p4, %s2228_s13, %s41_s19  }
   0xc   : > { %165 = sbr.rel (!%p50_p3) target bundleno = 48 (0x30), region = 24  ;;  %s167_s21 = sand.u32 (%p50_p3), 1, %s2228_s13  }
   0xd   : > { %s2015_s22 = sshll.u32 (%p50_p3), %s2236_s15, 3  ;;  %s1921_s23 = sshll.u32 (%p50_p3), %s167_s21, 9 }
   0xe   : > { %s2307_s26 = scalar_lea.vmem (%p50_p3), %s2904_s0, %s2015_s22  ;;  %s2312_s27 = scalar_lea.vmem (%p50_p3), [#allocation3], %s1921_s23 }
   0xf   : > { %v330_v0 = vld [vmem:[%s2307_s26] sm:$0xff] (%p50_p3)  ;;  %v332_v1 = vld [vmem:[%s2307_s26 + $0x28] sm:$0xff] (%p50_p3)  ;;  %v334_v2 = vld [vmem:[%s2307_s26 + $0x50] sm:$0xff] (%p50_p3) }
  0x10   : > { %331 = vst [vmem:[%s2312_s27] sm:$0xff] (%p50_p3), %v330_v0  ;;  %333 = vst [vmem:[%s2312_s27 + $0x8] sm:$0xff] (%p50_p3), %v332_v1  ;;  %v336_v3 = vld [vmem:[%s2307_s26 + $0x78] sm:$0xff] (%p50_p3)  ;;  %v338_v4 = vld [vmem:[%s2307_s26 + $0xa0] sm:$0xff] (%p50_p3) }
  0x11   : > { %335 = vst [vmem:[%s2312_s27 + $0x10] sm:$0xff] %v334_v2  ;;  %v340_v5 = vld [vmem:[%s2307_s26 + $0xc8] sm:$0xff]  ;;  %337 = vst [vmem:[%s2312_s27 + $0x18] sm:$0xff] %v336_v3  ;;  %v342_v6 = vld [vmem:[%s2307_s26 + $0xf0] sm:$0xff] }
  0x12   : > { %339 = vst [vmem:[%s2312_s27 + $0x20] sm:$0xff] %v338_v4  ;;  %341 = vst [vmem:[%s2312_s27 + $0x28] sm:$0xff] %v340_v5  ;;  %v344_v7 = vld [vmem:[%s2307_s26 + $0x118] sm:$0xff]  ;;  %v346_v8 = vld [vmem:[%s2307_s26 + $0x140] sm:$0xff] }
  0x13   : > { %343 = vst [vmem:[%s2312_s27 + $0x30] sm:$0xff] %v342_v6  ;;  %345 = vst [vmem:[%s2312_s27 + $0x38] sm:$0xff] %v344_v7  ;;  %v348_v9 = vld [vmem:[%s2307_s26 + $0x168] sm:$0xff]  ;;  %v350_v10 = vld [vmem:[%s2307_s26 + $0x190] sm:$0xff] }
  0x14   : > { %347 = vst [vmem:[%s2312_s27 + $0x40] sm:$0xff] %v346_v8  ;;  %v352_v11 = vld [vmem:[%s2307_s26 + $0x1b8] sm:$0xff]  ;;  %349 = vst [vmem:[%s2312_s27 + $0x48] sm:$0xff] %v348_v9  ;;  %v354_v12 = vld [vmem:[%s2307_s26 + $0x1e0] sm:$0xff] }
  0x15   : > { %351 = vst [vmem:[%s2312_s27 + $0x50] sm:$0xff] %v350_v10  ;;  %353 = vst [vmem:[%s2312_s27 + $0x58] sm:$0xff] %v352_v11  ;;  %v356_v13 = vld [vmem:[%s2307_s26 + $0x208] sm:$0xff]  ;;  %v358_v14 = vld [vmem:[%s2307_s26 + $0x230] sm:$0xff] }
  0x16   : > { %355 = vst [vmem:[%s2312_s27 + $0x60] sm:$0xff] %v354_v12  ;;  %357 = vst [vmem:[%s2312_s27 + $0x68] sm:$0xff] %v356_v13  ;;  %v360_v15 = vld [vmem:[%s2307_s26 + $0x258] sm:$0xff]  ;;  %v362_v16 = vld [vmem:[%s2307_s26 + $0x280] sm:$0xff] }
  0x17   : > { %359 = vst [vmem:[%s2312_s27 + $0x70] sm:$0xff] %v358_v14  ;;  %v364_v17 = vld [vmem:[%s2307_s26 + $0x2a8] sm:$0xff]  ;;  %361 = vst [vmem:[%s2312_s27 + $0x78] sm:$0xff] %v360_v15  ;;  %v366_v18 = vld [vmem:[%s2307_s26 + $0x2d0] sm:$0xff] }
  0x18   : > { %363 = vst [vmem:[%s2312_s27 + $0x80] sm:$0xff] %v362_v16  ;;  %365 = vst [vmem:[%s2312_s27 + $0x88] sm:$0xff] %v364_v17  ;;  %v368_v19 = vld [vmem:[%s2307_s26 + $0x2f8] sm:$0xff]  ;;  %v370_v20 = vld [vmem:[%s2307_s26 + $0x320] sm:$0xff] }
  0x19   : > { %367 = vst [vmem:[%s2312_s27 + $0x90] sm:$0xff] %v366_v18  ;;  %369 = vst [vmem:[%s2312_s27 + $0x98] sm:$0xff] %v368_v19  ;;  %v372_v21 = vld [vmem:[%s2307_s26 + $0x348] sm:$0xff]  ;;  %v374_v22 = vld [vmem:[%s2307_s26 + $0x370] sm:$0xff] }
  0x1a   : > { %371 = vst [vmem:[%s2312_s27 + $0xa0] sm:$0xff] %v370_v20  ;;  %v376_v23 = vld [vmem:[%s2307_s26 + $0x398] sm:$0xff]  ;;  %373 = vst [vmem:[%s2312_s27 + $0xa8] sm:$0xff] %v372_v21  ;;  %v378_v24 = vld [vmem:[%s2307_s26 + $0x3c0] sm:$0xff] }
  0x1b   : > { %375 = vst [vmem:[%s2312_s27 + $0xb0] sm:$0xff] %v374_v22  ;;  %377 = vst [vmem:[%s2312_s27 + $0xb8] sm:$0xff] %v376_v23  ;;  %v380_v25 = vld [vmem:[%s2307_s26 + $0x3e8] sm:$0xff]  ;;  %v382_v26 = vld [vmem:[%s2307_s26 + $0x410] sm:$0xff] }
  0x1c   : > { %379 = vst [vmem:[%s2312_s27 + $0xc0] sm:$0xff] %v378_v24  ;;  %381 = vst [vmem:[%s2312_s27 + $0xc8] sm:$0xff] %v380_v25  ;;  %v384_v27 = vld [vmem:[%s2307_s26 + $0x438] sm:$0xff]  ;;  %v386_v28 = vld [vmem:[%s2307_s26 + $0x460] sm:$0xff] }
  0x1d   : > { %383 = vst [vmem:[%s2312_s27 + $0xd0] sm:$0xff] %v382_v26  ;;  %v388_v29 = vld [vmem:[%s2307_s26 + $0x488] sm:$0xff]  ;;  %385 = vst [vmem:[%s2312_s27 + $0xd8] sm:$0xff] %v384_v27  ;;  %v390_v30 = vld [vmem:[%s2307_s26 + $0x4b0] sm:$0xff] }
  0x1e   : > { %387 = vst [vmem:[%s2312_s27 + $0xe0] sm:$0xff] %v386_v28  ;;  %389 = vst [vmem:[%s2312_s27 + $0xe8] sm:$0xff] %v388_v29  ;;  %v392_v31 = vld [vmem:[%s2307_s26 + $0x4d8] sm:$0xff]  ;;  %v394_v32 = vld [vmem:[%s2307_s26 + $0x500] sm:$0xff] }
  0x1f   : > { %391 = vst [vmem:[%s2312_s27 + $0xf0] sm:$0xff] %v390_v30  ;;  %393 = vst [vmem:[%s2312_s27 + $0xf8] sm:$0xff] %v392_v31  ;;  %v396_v33 = vld [vmem:[%s2307_s26 + $0x528] sm:$0xff]  ;;  %v398_v34 = vld [vmem:[%s2307_s26 + $0x550] sm:$0xff] }
  0x20   : > { %395 = vst [vmem:[%s2312_s27 + $0x100] sm:$0xff] %v394_v32  ;;  %v400_v35 = vld [vmem:[%s2307_s26 + $0x578] sm:$0xff]  ;;  %397 = vst [vmem:[%s2312_s27 + $0x108] sm:$0xff] %v396_v33  ;;  %v402_v36 = vld [vmem:[%s2307_s26 + $0x5a0] sm:$0xff] }
  0x21   : > { %399 = vst [vmem:[%s2312_s27 + $0x110] sm:$0xff] %v398_v34  ;;  %401 = vst [vmem:[%s2312_s27 + $0x118] sm:$0xff] %v400_v35  ;;  %v404_v37 = vld [vmem:[%s2307_s26 + $0x5c8] sm:$0xff]  ;;  %v406_v38 = vld [vmem:[%s2307_s26 + $0x5f0] sm:$0xff] }
  0x22   : > { %403 = vst [vmem:[%s2312_s27 + $0x120] sm:$0xff] %v402_v36  ;;  %405 = vst [vmem:[%s2312_s27 + $0x128] sm:$0xff] %v404_v37  ;;  %v408_v39 = vld [vmem:[%s2307_s26 + $0x618] sm:$0xff]  ;;  %v410_v40 = vld [vmem:[%s2307_s26 + $0x640] sm:$0xff] }
  0x23   : > { %407 = vst [vmem:[%s2312_s27 + $0x130] sm:$0xff] %v406_v38  ;;  %v412_v41 = vld [vmem:[%s2307_s26 + $0x668] sm:$0xff]  ;;  %409 = vst [vmem:[%s2312_s27 + $0x138] sm:$0xff] %v408_v39  ;;  %v414_v42 = vld [vmem:[%s2307_s26 + $0x690] sm:$0xff] }
  0x24   : > { %411 = vst [vmem:[%s2312_s27 + $0x140] sm:$0xff] %v410_v40  ;;  %413 = vst [vmem:[%s2312_s27 + $0x148] sm:$0xff] %v412_v41  ;;  %v416_v43 = vld [vmem:[%s2307_s26 + $0x6b8] sm:$0xff]  ;;  %v418_v44 = vld [vmem:[%s2307_s26 + $0x6e0] sm:$0xff] }
  0x25   : > { %415 = vst [vmem:[%s2312_s27 + $0x150] sm:$0xff] %v414_v42  ;;  %417 = vst [vmem:[%s2312_s27 + $0x158] sm:$0xff] %v416_v43  ;;  %v420_v45 = vld [vmem:[%s2307_s26 + $0x708] sm:$0xff]  ;;  %v422_v46 = vld [vmem:[%s2307_s26 + $0x730] sm:$0xff] }
  0x26   : > { %419 = vst [vmem:[%s2312_s27 + $0x160] sm:$0xff] %v418_v44  ;;  %v424_v47 = vld [vmem:[%s2307_s26 + $0x758] sm:$0xff]  ;;  %421 = vst [vmem:[%s2312_s27 + $0x168] sm:$0xff] %v420_v45  ;;  %v426_v48 = vld [vmem:[%s2307_s26 + $0x780] sm:$0xff] }
  0x27   : > { %423 = vst [vmem:[%s2312_s27 + $0x170] sm:$0xff] %v422_v46  ;;  %425 = vst [vmem:[%s2312_s27 + $0x178] sm:$0xff] %v424_v47  ;;  %v428_v49 = vld [vmem:[%s2307_s26 + $0x7a8] sm:$0xff]  ;;  %v430_v50 = vld [vmem:[%s2307_s26 + $0x7d0] sm:$0xff] }
  0x28   : > { %427 = vst [vmem:[%s2312_s27 + $0x180] sm:$0xff] %v426_v48  ;;  %429 = vst [vmem:[%s2312_s27 + $0x188] sm:$0xff] %v428_v49  ;;  %v432_v51 = vld [vmem:[%s2307_s26 + $0x7f8] sm:$0xff]  ;;  %v434_v52 = vld [vmem:[%s2307_s26 + $0x820] sm:$0xff] }
  0x29   : > { %431 = vst [vmem:[%s2312_s27 + $0x190] sm:$0xff] %v430_v50  ;;  %v436_v53 = vld [vmem:[%s2307_s26 + $0x848] sm:$0xff]  ;;  %433 = vst [vmem:[%s2312_s27 + $0x198] sm:$0xff] %v432_v51  ;;  %v438_v54 = vld [vmem:[%s2307_s26 + $0x870] sm:$0xff] }
  0x2a   : > { %435 = vst [vmem:[%s2312_s27 + $0x1a0] sm:$0xff] %v434_v52  ;;  %437 = vst [vmem:[%s2312_s27 + $0x1a8] sm:$0xff] %v436_v53  ;;  %v440_v55 = vld [vmem:[%s2307_s26 + $0x898] sm:$0xff]  ;;  %v442_v56 = vld [vmem:[%s2307_s26 + $0x8c0] sm:$0xff] }
  0x2b   : > { %439 = vst [vmem:[%s2312_s27 + $0x1b0] sm:$0xff] %v438_v54  ;;  %441 = vst [vmem:[%s2312_s27 + $0x1b8] sm:$0xff] %v440_v55  ;;  %v444_v57 = vld [vmem:[%s2307_s26 + $0x8e8] sm:$0xff]  ;;  %v446_v58 = vld [vmem:[%s2307_s26 + $0x910] sm:$0xff] }
  0x2c   : > { %443 = vst [vmem:[%s2312_s27 + $0x1c0] sm:$0xff] %v442_v56  ;;  %v448_v59 = vld [vmem:[%s2307_s26 + $0x938] sm:$0xff]  ;;  %445 = vst [vmem:[%s2312_s27 + $0x1c8] sm:$0xff] %v444_v57  ;;  %v450_v60 = vld [vmem:[%s2307_s26 + $0x960] sm:$0xff] }
  0x2d   : > { %447 = vst [vmem:[%s2312_s27 + $0x1d0] sm:$0xff] %v446_v58  ;;  %449 = vst [vmem:[%s2312_s27 + $0x1d8] sm:$0xff] %v448_v59  ;;  %v452_v61 = vld [vmem:[%s2307_s26 + $0x988] sm:$0xff]  ;;  %v454_v62 = vld [vmem:[%s2307_s26 + $0x9b0] sm:$0xff] }
  0x2e   : > { %451 = vst [vmem:[%s2312_s27 + $0x1e0] sm:$0xff] %v450_v60  ;;  %453 = vst [vmem:[%s2312_s27 + $0x1e8] sm:$0xff] %v452_v61  ;;  %v456_v63 = vld [vmem:[%s2307_s26 + $0x9d8] sm:$0xff] }
  0x2f   : > { %455 = vst [vmem:[%s2312_s27 + $0x1f0] sm:$0xff] %v454_v62  ;;  %457 = vst [vmem:[%s2312_s27 + $0x1f8] sm:$0xff] %v456_v63 }
  0x30 PF: > { %p1924_p6 = scmp.ge.s32.totalorder %s2240_s16, 1  ;;  %p474_p7 = scmp.lt.s32.totalorder %s2240_s16, 6 }
  0x32   : > { %p475_p8 = pnand %p1924_p6, %p474_p7 }
  0x33   : > { %s481_s28 = sand.u32 (!%p475_p8), 1, %s2224_s12   ;;  %s1926_s29 = sshll.u32 (!%p475_p8), %s2232_s14, 5 }
  0x34   : > { %478 = sbr.rel (%p475_p8) target bundleno = 515 (0x203), region = 66  ;;  %s1925_s30 = sshll.u32 (!%p475_p8), %s481_s28, 9 }
  0x35   : > { %p521_p9 = scmp.lt.s32.totalorder (!%p475_p8), %s1926_s29, 159  ;;  %s2448_s8 = scalar_lea.vmem (!%p475_p8), [#allocation3], %s1925_s30 }
  0x36   : > { %p1928_p10 = scmp.ne.s32.totalorder (!%p475_p8), %s2232_s14, 0 }
  0x39   : > { %s2915_s29 = smov (!%p521_p9, %s1926_s29), 159  ;;  %545 = sbr.rel (%p1928_p10) target bundleno = 95 (0x5f), region = 74 }
  0x3a   : > { %s1927_s4 = sshll.u32 %s2915_s29, 2 }
  0x3b   : > { %s2446_s7 = scalar_lea.vmem %s2905_s1, %s1927_s4 }
  0x3e   : > { %v2242_v0 = vmov 0.0  }
  0x3f   : > { %546 = vst [vmem:[#allocation2 + $0xb0] sm:$0xff] %v2242_v0  ;;  %547 = vst [vmem:[#allocation2 + $0x1b0] sm:$0xff] %v2242_v0 }
  0x40   : > { %548 = vst [vmem:[#allocation2 + $0xd8] sm:$0xff] %v2242_v0  ;;  %549 = vst [vmem:[#allocation2 + $0x18] sm:$0xff] %v2242_v0 }
  0x41   : > { %550 = vst [vmem:[#allocation2 + $0x50] sm:$0xff] %v2242_v0  ;;  %551 = vst [vmem:[#allocation2 + $0x168] sm:$0xff] %v2242_v0 }
  0x42   : > { %552 = vst [vmem:[#allocation2 + $0x130] sm:$0xff] %v2242_v0  ;;  %553 = vst [vmem:[#allocation2 + $0x48] sm:$0xff] %v2242_v0 }
  0x43   : > { %554 = vst [vmem:[#allocation2 + $0x180] sm:$0xff] %v2242_v0  ;;  %555 = vst [vmem:[#allocation2 + $0x110] sm:$0xff] %v2242_v0 }
  0x44   : > { %556 = vst [vmem:[#allocation2 + $0x118] sm:$0xff] %v2242_v0  ;;  %557 = vst [vmem:[#allocation2 + $0x98] sm:$0xff] %v2242_v0 }
  0x45   : > { %558 = vst [vmem:[#allocation2 + $0x120] sm:$0xff] %v2242_v0  ;;  %559 = vst [vmem:[#allocation2 + $0x150] sm:$0xff] %v2242_v0 }
  0x46   : > { %560 = vst [vmem:[#allocation2 + $0x108] sm:$0xff] %v2242_v0  ;;  %561 = vst [vmem:[#allocation2 + $0x60] sm:$0xff] %v2242_v0 }
  0x47   : > { %562 = vst [vmem:[#allocation2 + $0xe0] sm:$0xff] %v2242_v0  ;;  %563 = vst [vmem:[#allocation2 + $0x188] sm:$0xff] %v2242_v0 }
  0x48   : > { %564 = vst [vmem:[#allocation2 + $0x138] sm:$0xff] %v2242_v0  ;;  %565 = vst [vmem:[#allocation2 + $0x140] sm:$0xff] %v2242_v0 }
  0x49   : > { %566 = vst [vmem:[#allocation2 + $0x80] sm:$0xff] %v2242_v0  ;;  %567 = vst [vmem:[#allocation2 + $0x1a8] sm:$0xff] %v2242_v0 }
  0x4a   : > { %568 = vst [vmem:[#allocation2 + $0x1b8] sm:$0xff] %v2242_v0  ;;  %569 = vst [vmem:[#allocation2 + $0x28] sm:$0xff] %v2242_v0 }
  0x4b   : > { %570 = vst [vmem:[#allocation2 + $0x1e8] sm:$0xff] %v2242_v0  ;;  %571 = vst [vmem:[#allocation2 + $0xf8] sm:$0xff] %v2242_v0 }
  0x4c   : > { %572 = vst [vmem:[#allocation2 + $0x160] sm:$0xff] %v2242_v0  ;;  %573 = vst [vmem:[#allocation2 + $0x30] sm:$0xff] %v2242_v0 }
  0x4d   : > { %574 = vst [vmem:[#allocation2 + $0x1e0] sm:$0xff] %v2242_v0  ;;  %575 = vst [vmem:[#allocation2] sm:$0xff] %v2242_v0 }
  0x4e   : > { %576 = vst [vmem:[#allocation2 + $0xf0] sm:$0xff] %v2242_v0  ;;  %577 = vst [vmem:[#allocation2 + $0x8] sm:$0xff] %v2242_v0 }
  0x4f   : > { %578 = vst [vmem:[#allocation2 + $0x148] sm:$0xff] %v2242_v0  ;;  %579 = vst [vmem:[#allocation2 + $0x1d0] sm:$0xff] %v2242_v0 }
  0x50   : > { %580 = vst [vmem:[#allocation2 + $0x100] sm:$0xff] %v2242_v0  ;;  %581 = vst [vmem:[#allocation2 + $0xc8] sm:$0xff] %v2242_v0 }
  0x51   : > { %582 = vst [vmem:[#allocation2 + $0x40] sm:$0xff] %v2242_v0  ;;  %583 = vst [vmem:[#allocation2 + $0x1f8] sm:$0xff] %v2242_v0 }
  0x52   : > { %584 = vst [vmem:[#allocation2 + $0x20] sm:$0xff] %v2242_v0  ;;  %585 = vst [vmem:[#allocation2 + $0x128] sm:$0xff] %v2242_v0 }
  0x53   : > { %586 = vst [vmem:[#allocation2 + $0x1a0] sm:$0xff] %v2242_v0  ;;  %587 = vst [vmem:[#allocation2 + $0x1f0] sm:$0xff] %v2242_v0 }
  0x54   : > { %588 = vst [vmem:[#allocation2 + $0xe8] sm:$0xff] %v2242_v0  ;;  %589 = vst [vmem:[#allocation2 + $0x78] sm:$0xff] %v2242_v0 }
  0x55   : > { %590 = vst [vmem:[#allocation2 + $0x70] sm:$0xff] %v2242_v0  ;;  %591 = vst [vmem:[#allocation2 + $0x90] sm:$0xff] %v2242_v0 }
  0x56   : > { %592 = vst [vmem:[#allocation2 + $0x1d8] sm:$0xff] %v2242_v0  ;;  %593 = vst [vmem:[#allocation2 + $0xd0] sm:$0xff] %v2242_v0 }
  0x57   : > { %594 = vst [vmem:[#allocation2 + $0xb8] sm:$0xff] %v2242_v0  ;;  %595 = vst [vmem:[#allocation2 + $0x88] sm:$0xff] %v2242_v0 }
  0x58   : > { %596 = vst [vmem:[#allocation2 + $0xa8] sm:$0xff] %v2242_v0  ;;  %597 = vst [vmem:[#allocation2 + $0x1c8] sm:$0xff] %v2242_v0 }
  0x59   : > { %598 = vst [vmem:[#allocation2 + $0x170] sm:$0xff] %v2242_v0  ;;  %599 = vst [vmem:[#allocation2 + $0x178] sm:$0xff] %v2242_v0 }
  0x5a   : > { %600 = vst [vmem:[#allocation2 + $0x68] sm:$0xff] %v2242_v0  ;;  %601 = vst [vmem:[#allocation2 + $0x190] sm:$0xff] %v2242_v0 }
  0x5b   : > { %602 = vst [vmem:[#allocation2 + $0x198] sm:$0xff] %v2242_v0  ;;  %603 = vst [vmem:[#allocation2 + $0x38] sm:$0xff] %v2242_v0 }
  0x5c   : > { %604 = vst [vmem:[#allocation2 + $0xc0] sm:$0xff] %v2242_v0  ;;  %605 = vst [vmem:[#allocation2 + $0x1c0] sm:$0xff] %v2242_v0 }
  0x5d   : > { %606 = vst [vmem:[#allocation2 + $0x158] sm:$0xff] %v2242_v0  ;;  %607 = vst [vmem:[#allocation2 + $0x10] sm:$0xff] %v2242_v0 }
  0x5e   : > { %608 = vst [vmem:[#allocation2 + $0x58] sm:$0xff] %v2242_v0  ;;  %609 = vst [vmem:[#allocation2 + $0xa0] sm:$0xff] %v2242_v0 }
  0x5f PF: > { %v2090_v1 = vld [vmem:[%s2446_s7 + $0x38] sm:$0xff]   ;;  %v2243_v2 = vmov 0   ;;  %v2091_v3 = vld [vmem:[%s2446_s7 + $0x30] sm:$0xff]   ;;  %v2092_v4 = vld [vmem:[%s2446_s7 + $0x28] sm:$0xff]   ;;  %p2009_p11 = scmp.ne.s32.totalorder %s2232_s14, 4 }
  0x60   : > { %1186 = vmatprep.subr.bf16.mxu0 %v2243_v2  ;;  %2016 = vmatprep.subr.bf16.mxu1 %v2243_v2  ;;  %v2093_v5 = vld [vmem:[%s2446_s7 + $0x20] sm:$0xff]   ;;  %v2094_v6 = vld [vmem:[%s2446_s7 + $0x18] sm:$0xff]   ;;  %v2095_v8 = vld [vmem:[%s2446_s7 + $0x10] sm:$0xff]  }
  0x61   : > { %1187 = vmatpush1.bf16.msra.mxu0 %v2090_v1  ;;  %2032 = vmatpush1.bf16.msra.mxu1 %v2090_v1  ;;  %v2108_v7 = vld [vmem:[%s2448_s8 + $0x4] ss:$8 sps:$4 sm:$0xff]   ;;  %v2098_v12 = vld [vmem:[%s2446_s7 + $0x78] sm:$0xff]   ;;  %v2099_v13 = vld [vmem:[%s2446_s7 + $0x70] sm:$0xff]  }
  0x62   : > { %1188 = vmatprep.subr.bf16.mxu0 %v2243_v2  ;;  %2017 = vmatprep.subr.bf16.mxu1 %v2243_v2  ;;  %v2111_v9 = vld [vmem:[%s2448_s8 + $0x104] ss:$8 sps:$4 sm:$0xff]   ;;  %v2102_v16 = vld [vmem:[%s2446_s7 + $0x58] sm:$0xff]   ;;  %v2103_v17 = vld [vmem:[%s2446_s7 + $0x50] sm:$0xff]  }
  0x63   : > { %1218 = vmatprep.mubr.bf16.mxu0 %v2108_v7  ;;  %1346 = vmatprep.mubr.bf16.mxu1 %v2111_v9  ;;  %v2096_v10 = vld [vmem:[%s2446_s7 + $0x8] sm:$0xff]   ;;  %v2097_v11 = vld [vmem:[%s2446_s7] sm:$0xff]   ;;  %v2112_v22 = vld [vmem:[%s2448_s8 + $0x14] ss:$8 sps:$4 sm:$0xff]  }
  0x64   : > { %v2100_v14 = vld [vmem:[%s2446_s7 + $0x68] sm:$0xff]   ;;  %v2101_v15 = vld [vmem:[%s2446_s7 + $0x60] sm:$0xff]   ;;  %v2114_v23 = vld [vmem:[%s2448_s8 + $0x114] ss:$8 sps:$4 sm:$0xff]  }
  0x65   : > { %1189 = vmatpush1.bf16.msra.mxu0 %v2091_v3  ;;  %2033 = vmatpush1.bf16.msra.mxu1 %v2091_v3  ;;  %v2104_v18 = vld [vmem:[%s2446_s7 + $0x48] sm:$0xff]   ;;  %v2105_v19 = vld [vmem:[%s2446_s7 + $0x40] sm:$0xff]   ;;  %v2116_v24 = vld [vmem:[%s2448_s8 + $0x10] ss:$8 sps:$4 sm:$0xff]  }
  0x66   : > { %1190 = vmatprep.subr.bf16.mxu0 %v2243_v2  ;;  %2018 = vmatprep.subr.bf16.mxu1 %v2243_v2  ;;  %v2106_v20 = vld [vmem:[%s2448_s8] ss:$8 sps:$4 sm:$0xff]   ;;  %v2117_v25 = vld [vmem:[%s2448_s8 + $0x110] ss:$8 sps:$4 sm:$0xff]   ;;  %v2118_v26 = vld [vmem:[%s2448_s8 + $0x24] ss:$8 sps:$4 sm:$0xff]  }
  0x67   : > { %v2109_v21 = vld [vmem:[%s2448_s8 + $0x100] ss:$8 sps:$4 sm:$0xff]   ;;  %v2120_v27 = vld [vmem:[%s2448_s8 + $0x124] ss:$8 sps:$4 sm:$0xff]   ;;  %v2124_v30 = vld [vmem:[%s2448_s8 + $0x34] ss:$8 sps:$4 sm:$0xff]  }
  0x68   : > { %v2122_v28 = vld [vmem:[%s2448_s8 + $0x20] ss:$8 sps:$4 sm:$0xff]   ;;  %v2126_v31 = vld [vmem:[%s2448_s8 + $0x134] ss:$8 sps:$4 sm:$0xff]   ;;  %v2128_v32 = vld [vmem:[%s2448_s8 + $0x30] ss:$8 sps:$4 sm:$0xff]  }
  0x69   : > { %1191 = vmatpush1.bf16.msra.mxu0 %v2092_v4  ;;  %2034 = vmatpush1.bf16.msra.mxu1 %v2092_v4  ;;  %v2123_v29 = vld [vmem:[%s2448_s8 + $0x120] ss:$8 sps:$4 sm:$0xff]   ;;  %v2129_v33 = vld [vmem:[%s2448_s8 + $0x130] ss:$8 sps:$4 sm:$0xff]   ;;  %v2130_v34 = vld [vmem:[%s2448_s8 + $0x44] ss:$8 sps:$4 sm:$0xff]  }
  0x6a   : > { %1192 = vmatprep.subr.bf16.mxu0 %v2243_v2  ;;  %2019 = vmatprep.subr.bf16.mxu1 %v2243_v2  ;;  %v2132_v35 = vld [vmem:[%s2448_s8 + $0x144] ss:$8 sps:$4 sm:$0xff]   ;;  %v2134_v36 = vld [vmem:[%s2448_s8 + $0x40] ss:$8 sps:$4 sm:$0xff]   ;;  %v2136_v38 = vld [vmem:[%s2448_s8 + $0x54] ss:$8 sps:$4 sm:$0xff]  }
  0x6b   : > { %v2135_v37 = vld [vmem:[%s2448_s8 + $0x140] ss:$8 sps:$4 sm:$0xff]   ;;  %v2138_v39 = vld [vmem:[%s2448_s8 + $0x154] ss:$8 sps:$4 sm:$0xff]   ;;  %v2140_v40 = vld [vmem:[%s2448_s8 + $0x50] ss:$8 sps:$4 sm:$0xff]  }
  0x6c   : > { %v2141_v41 = vld [vmem:[%s2448_s8 + $0x150] ss:$8 sps:$4 sm:$0xff]   ;;  %v2142_v42 = vld [vmem:[%s2448_s8 + $0x64] ss:$8 sps:$4 sm:$0xff]   ;;  %v2146_v44 = vld [vmem:[%s2448_s8 + $0x60] ss:$8 sps:$4 sm:$0xff]  }
  0x6d   : > { %1193 = vmatpush1.bf16.msra.mxu0 %v2093_v5  ;;  %2035 = vmatpush1.bf16.msra.mxu1 %v2093_v5  ;;  %v2144_v43 = vld [vmem:[%s2448_s8 + $0x164] ss:$8 sps:$4 sm:$0xff]   ;;  %v2147_v45 = vld [vmem:[%s2448_s8 + $0x160] ss:$8 sps:$4 sm:$0xff]   ;;  %v2148_v46 = vld [vmem:[%s2448_s8 + $0x74] ss:$8 sps:$4 sm:$0xff]  }
  0x6e   : > { %1194 = vmatprep.subr.bf16.mxu0 %v2243_v2  ;;  %2020 = vmatprep.subr.bf16.mxu1 %v2243_v2  ;;  %v2150_v47 = vld [vmem:[%s2448_s8 + $0x174] ss:$8 sps:$4 sm:$0xff]   ;;  %v2152_v48 = vld [vmem:[%s2448_s8 + $0x70] ss:$8 sps:$4 sm:$0xff]   ;;  %v2154_v50 = vld [vmem:[%s2448_s8 + $0x84] ss:$8 sps:$4 sm:$0xff]  }
  0x6f   : > { %v2153_v49 = vld [vmem:[%s2448_s8 + $0x170] ss:$8 sps:$4 sm:$0xff]   ;;  %v2156_v51 = vld [vmem:[%s2448_s8 + $0x184] ss:$8 sps:$4 sm:$0xff]   ;;  %v2158_v52 = vld [vmem:[%s2448_s8 + $0x80] ss:$8 sps:$4 sm:$0xff]  }
  0x70   : > { %v2159_v53 = vld [vmem:[%s2448_s8 + $0x180] ss:$8 sps:$4 sm:$0xff]   ;;  %v2160_v54 = vld [vmem:[%s2448_s8 + $0x94] ss:$8 sps:$4 sm:$0xff]   ;;  %v2164_v56 = vld [vmem:[%s2448_s8 + $0x90] ss:$8 sps:$4 sm:$0xff]  }
  0x71   : > { %1195 = vmatpush1.bf16.msra.mxu0 %v2094_v6  ;;  %2036 = vmatpush1.bf16.msra.mxu1 %v2094_v6  ;;  %v2162_v55 = vld [vmem:[%s2448_s8 + $0x194] ss:$8 sps:$4 sm:$0xff]   ;;  %v2165_v57 = vld [vmem:[%s2448_s8 + $0x190] ss:$8 sps:$4 sm:$0xff]   ;;  %v2166_v58 = vld [vmem:[%s2448_s8 + $0xa4] ss:$8 sps:$4 sm:$0xff]  }
  0x72   : > { %1196 = vmatprep.subr.bf16.mxu0 %v2243_v2  ;;  %2021 = vmatprep.subr.bf16.mxu1 %v2243_v2  ;;  %v2168_v59 = vld [vmem:[%s2448_s8 + $0x1a4] ss:$8 sps:$4 sm:$0xff]   ;;  %v2170_v60 = vld [vmem:[%s2448_s8 + $0xa0] ss:$8 sps:$4 sm:$0xff]   ;;  %v2172_v62 = vld [vmem:[%s2448_s8 + $0xb4] ss:$8 sps:$4 sm:$0xff]  }
  0x73   : > { %v2171_v61 = vld [vmem:[%s2448_s8 + $0x1a0] ss:$8 sps:$4 sm:$0xff]   ;;  %v2174_v63 = vld [vmem:[%s2448_s8 + $0x1b4] ss:$8 sps:$4 sm:$0xff]   ;;  %v2176_v0 = vld [vmem:[%s2448_s8 + $0xb0] ss:$8 sps:$4 sm:$0xff]  }
  0x74   : > { %v2177_v1 = vld [vmem:[%s2448_s8 + $0x1b0] ss:$8 sps:$4 sm:$0xff]   ;;  %v2180_v3 = vld [vmem:[%s2448_s8 + $0x1c4] ss:$8 sps:$4 sm:$0xff]   ;;  %v2182_v4 = vld [vmem:[%s2448_s8 + $0xc0] ss:$8 sps:$4 sm:$0xff]  }
  0x75   : > { %1197 = vmatpush1.bf16.msra.mxu0 %v2095_v8  ;;  %2037 = vmatpush1.bf16.msra.mxu1 %v2095_v8  ;;  %v2183_v5 = vld [vmem:[%s2448_s8 + $0x1c0] ss:$8 sps:$4 sm:$0xff]   ;;  %v2184_v6 = vld [vmem:[%s2448_s8 + $0xd4] ss:$8 sps:$4 sm:$0xff]   ;;  %v2188_v8 = vld [vmem:[%s2448_s8 + $0xd0] ss:$8 sps:$4 sm:$0xff]  }
  0x76   : > { %1198 = vmatprep.subr.bf16.mxu0 %v2243_v2  ;;  %2022 = vmatprep.subr.bf16.mxu1 %v2243_v2  ;;  %v2186_v7 = vld [vmem:[%s2448_s8 + $0x1d4] ss:$8 sps:$4 sm:$0xff]   ;;  %v2189_v9 = vld [vmem:[%s2448_s8 + $0x1d0] ss:$8 sps:$4 sm:$0xff]  }
  0x79   : > { %1199 = vmatpush1.bf16.msra.mxu0 %v2096_v10  ;;  %2038 = vmatpush1.bf16.msra.mxu1 %v2096_v10  ;;  %v2190_v10 = vld [vmem:[%s2448_s8 + $0xe4] ss:$8 sps:$4 sm:$0xff]  }
  0x7a   : > { %1200 = vmatprep.subr.bf16.mxu0 %v2243_v2  ;;  %2023 = vmatprep.subr.bf16.mxu1 %v2243_v2 }
  0x7d   : > { %1201 = vmatpush1.bf16.msra.mxu0 %v2097_v11  ;;  %2039 = vmatpush1.bf16.msra.mxu1 %v2097_v11  ;;  %v2192_v11 = vld [vmem:[%s2448_s8 + $0x1e4] ss:$8 sps:$4 sm:$0xff]  }
  0x7e   : > { %1202 = vmatprep.subr.bf16.mxu0 %v2243_v2  ;;  %2024 = vmatprep.subr.bf16.mxu1 %v2243_v2 }
  0x81   : > { %1203 = vmatpush2.bf16.msra.mxu0 %v2098_v12  ;;  %2040 = vmatpush2.bf16.msra.mxu1 %v2098_v12  ;;  %v2194_v12 = vld [vmem:[%s2448_s8 + $0xe0] ss:$8 sps:$4 sm:$0xff]  }
  0x82   : > { %1204 = vmatprep.subr.bf16.mxu0 %v2243_v2  ;;  %2025 = vmatprep.subr.bf16.mxu1 %v2243_v2 }
  0x85   : > { %1205 = vmatpush2.bf16.msra.mxu0 %v2099_v13  ;;  %2041 = vmatpush2.bf16.msra.mxu1 %v2099_v13  ;;  %v2195_v13 = vld [vmem:[%s2448_s8 + $0x1e0] ss:$8 sps:$4 sm:$0xff]  }
  0x86   : > { %1206 = vmatprep.subr.bf16.mxu0 %v2243_v2  ;;  %2026 = vmatprep.subr.bf16.mxu1 %v2243_v2 }
  0x89   : > { %1207 = vmatpush2.bf16.msra.mxu0 %v2100_v14  ;;  %2042 = vmatpush2.bf16.msra.mxu1 %v2100_v14  ;;  %v2196_v14 = vld [vmem:[%s2448_s8 + $0xf4] ss:$8 sps:$4 sm:$0xff]  }
  0x8a   : > { %1208 = vmatprep.subr.bf16.mxu0 %v2243_v2  ;;  %2027 = vmatprep.subr.bf16.mxu1 %v2243_v2 }
  0x8d   : > { %1209 = vmatpush2.bf16.msra.mxu0 %v2101_v15  ;;  %2043 = vmatpush2.bf16.msra.mxu1 %v2101_v15  ;;  %v2198_v15 = vld [vmem:[%s2448_s8 + $0x1f4] ss:$8 sps:$4 sm:$0xff]  }
  0x8e   : > { %1210 = vmatprep.subr.bf16.mxu0 %v2243_v2  ;;  %2028 = vmatprep.subr.bf16.mxu1 %v2243_v2 }
  0x91   : > { %1211 = vmatpush2.bf16.msra.mxu0 %v2102_v16  ;;  %2044 = vmatpush2.bf16.msra.mxu1 %v2102_v16  ;;  %v2200_v16 = vld [vmem:[%s2448_s8 + $0xf0] ss:$8 sps:$4 sm:$0xff]  }
  0x92   : > { %1212 = vmatprep.subr.bf16.mxu0 %v2243_v2  ;;  %2029 = vmatprep.subr.bf16.mxu1 %v2243_v2 }
  0x95   : > { %1213 = vmatpush2.bf16.msra.mxu0 %v2103_v17  ;;  %2045 = vmatpush2.bf16.msra.mxu1 %v2103_v17  ;;  %v2201_v17 = vld [vmem:[%s2448_s8 + $0x1f0] ss:$8 sps:$4 sm:$0xff]  }
  0x96   : > { %1214 = vmatprep.subr.bf16.mxu0 %v2243_v2  ;;  %2030 = vmatprep.subr.bf16.mxu1 %v2243_v2 }
  0x99   : > { %1215 = vmatpush2.bf16.msra.mxu0 %v2104_v18  ;;  %2046 = vmatpush2.bf16.msra.mxu1 %v2104_v18  ;;  %v610_v18 = vld [vmem:[#allocation2 + $0xb0] sm:$0xff] }
  0x9a   : > { %1216 = vmatprep.subr.bf16.mxu0 %v2243_v2  ;;  %2031 = vmatprep.subr.bf16.mxu1 %v2243_v2  ;;  %v2178_v2 = vld [vmem:[%s2448_s8 + $0xc4] ss:$8 sps:$4 sm:$0xff]  }
  0x9d   : > { %1217 = vmatpush2.bf16.msra.mxu0 %v2105_v19  ;;  %2047 = vmatpush2.bf16.msra.mxu1 %v2105_v19  ;;  %v642_v19 = vld [vmem:[#allocation2 + $0x148] sm:$0xff] }
  0xa0   : > { %1219 = vmatmul.mubr.bf16.vlgmr.msra.gmra.mxu0 %v2106_v20  ;;  %1347 = vmatmul.mubr.bf16.vlgmr.msra.gmra.mxu1 %v2109_v21 }
  0xa1   : > { %1226 = vmatprep.mubr.bf16.mxu0 %v2112_v22  ;;  %1354 = vmatprep.mubr.bf16.mxu1 %v2114_v23 }
  0xa8   : > { %1227 = vmatmul.mubr.bf16.gmra.mxu0 %v2116_v24  ;;  %1355 = vmatmul.mubr.bf16.gmra.mxu1 %v2117_v25 }
  0xa9   : > { %1234 = vmatprep.mubr.bf16.mxu0 %v2118_v26  ;;  %1362 = vmatprep.mubr.bf16.mxu1 %v2120_v27  ;;  %v611_v26 = vld [vmem:[#allocation2 + $0x1b0] sm:$0xff] }
  0xaa   : > { %v643_v27 = vld [vmem:[#allocation2 + $0x1d0] sm:$0xff] }
  0xb0   : > { %1235 = vmatmul.mubr.bf16.gmra.mxu0 %v2122_v28  ;;  %1363 = vmatmul.mubr.bf16.gmra.mxu1 %v2123_v29 }
  0xb1   : > { %1242 = vmatprep.mubr.bf16.mxu0 %v2124_v30  ;;  %1370 = vmatprep.mubr.bf16.mxu1 %v2126_v31 }
  0xb8   : > { %1243 = vmatmul.mubr.bf16.gmra.mxu0 %v2128_v32  ;;  %1371 = vmatmul.mubr.bf16.gmra.mxu1 %v2129_v33 }
  0xb9   : > { %1250 = vmatprep.mubr.bf16.mxu0 %v2130_v34  ;;  %1378 = vmatprep.mubr.bf16.mxu1 %v2132_v35  ;;  %v612_v34 = vld [vmem:[#allocation2 + $0xd8] sm:$0xff]  ;;  %v644_v35 = vld [vmem:[#allocation2 + $0x100] sm:$0xff] }
  0xc0   : > { %1251 = vmatmul.mubr.bf16.gmra.mxu0 %v2134_v36  ;;  %1379 = vmatmul.mubr.bf16.gmra.mxu1 %v2135_v37 }
  0xc1   : > { %1258 = vmatprep.mubr.bf16.mxu0 %v2136_v38  ;;  %1386 = vmatprep.mubr.bf16.mxu1 %v2138_v39 }
  0xc8   : > { %1259 = vmatmul.mubr.bf16.gmra.mxu0 %v2140_v40  ;;  %1387 = vmatmul.mubr.bf16.gmra.mxu1 %v2141_v41 }
  0xc9   : > { %1266 = vmatprep.mubr.bf16.mxu0 %v2142_v42  ;;  %1394 = vmatprep.mubr.bf16.mxu1 %v2144_v43  ;;  %v613_v42 = vld [vmem:[#allocation2 + $0x18] sm:$0xff]  ;;  %v645_v43 = vld [vmem:[#allocation2 + $0xc8] sm:$0xff] }
  0xd0   : > { %1267 = vmatmul.mubr.bf16.gmra.mxu0 %v2146_v44  ;;  %1395 = vmatmul.mubr.bf16.gmra.mxu1 %v2147_v45 }
  0xd1   : > { %1274 = vmatprep.mubr.bf16.mxu0 %v2148_v46  ;;  %1402 = vmatprep.mubr.bf16.mxu1 %v2150_v47 }
  0xd8   : > { %1275 = vmatmul.mubr.bf16.gmra.mxu0 %v2152_v48  ;;  %1403 = vmatmul.mubr.bf16.gmra.mxu1 %v2153_v49 }
  0xd9   : > { %1282 = vmatprep.mubr.bf16.mxu0 %v2154_v50  ;;  %1410 = vmatprep.mubr.bf16.mxu1 %v2156_v51  ;;  %v614_v50 = vld [vmem:[#allocation2 + $0x50] sm:$0xff]  ;;  %v646_v51 = vld [vmem:[#allocation2 + $0x40] sm:$0xff] }
  0xe0   : > { %1283 = vmatmul.mubr.bf16.gmra.mxu0 %v2158_v52  ;;  %1411 = vmatmul.mubr.bf16.gmra.mxu1 %v2159_v53 }
  0xe1   : > { %1290 = vmatprep.mubr.bf16.mxu0 %v2160_v54  ;;  %1418 = vmatprep.mubr.bf16.mxu1 %v2162_v55 }
  0xe8   : > { %1291 = vmatmul.mubr.bf16.gmra.mxu0 %v2164_v56  ;;  %1419 = vmatmul.mubr.bf16.gmra.mxu1 %v2165_v57 }
  0xe9   : > { %1298 = vmatprep.mubr.bf16.mxu0 %v2166_v58  ;;  %1426 = vmatprep.mubr.bf16.mxu1 %v2168_v59  ;;  %v615_v58 = vld [vmem:[#allocation2 + $0x168] sm:$0xff]  ;;  %v647_v59 = vld [vmem:[#allocation2 + $0x1f8] sm:$0xff] }
  0xf0   : > { %1299 = vmatmul.mubr.bf16.gmra.mxu0 %v2170_v60  ;;  %1427 = vmatmul.mubr.bf16.gmra.mxu1 %v2171_v61 }
  0xf1   : > { %1306 = vmatprep.mubr.bf16.mxu0 %v2172_v62  ;;  %1434 = vmatprep.mubr.bf16.mxu1 %v2174_v63 }
  0xf8   : > { %1307 = vmatmul.mubr.bf16.gmra.mxu0 %v2176_v0  ;;  %1435 = vmatmul.mubr.bf16.gmra.mxu1 %v2177_v1 }
  0xf9   : > { %1314 = vmatprep.mubr.bf16.mxu0 %v2178_v2  ;;  %1442 = vmatprep.mubr.bf16.mxu1 %v2180_v3  ;;  %v616_v2 = vld [vmem:[#allocation2 + $0x130] sm:$0xff]  ;;  %v648_v3 = vld [vmem:[#allocation2 + $0x20] sm:$0xff] }
 0x100   : > { %1315 = vmatmul.mubr.bf16.gmra.mxu0 %v2182_v4  ;;  %1443 = vmatmul.mubr.bf16.gmra.mxu1 %v2183_v5 }
 0x101   : > { %1322 = vmatprep.mubr.bf16.mxu0 %v2184_v6  ;;  %1450 = vmatprep.mubr.bf16.mxu1 %v2186_v7 }
 0x108   : > { %1323 = vmatmul.mubr.bf16.gmra.mxu0 %v2188_v8  ;;  %1451 = vmatmul.mubr.bf16.gmra.mxu1 %v2189_v9 }
 0x109   : > { %1330 = vmatprep.mubr.bf16.mxu0 %v2190_v10  ;;  %1458 = vmatprep.mubr.bf16.mxu1 %v2192_v11  ;;  %v617_v10 = vld [vmem:[#allocation2 + $0x48] sm:$0xff] }
 0x10a   : > { %v649_v11 = vld [vmem:[#allocation2 + $0x128] sm:$0xff] }
 0x110   : > { %1331 = vmatmul.mubr.bf16.gmra.mxu0 %v2194_v12  ;;  %1459 = vmatmul.mubr.bf16.gmra.mxu1 %v2195_v13 }
 0x111   : > { %1338 = vmatprep.mubr.bf16.mxu0 %v2196_v14  ;;  %1466 = vmatprep.mubr.bf16.mxu1 %v2198_v15 }
 0x118   : > { %1339 = vmatmul.mubr.bf16.gmra.mxu0 %v2200_v16  ;;  %1467 = vmatmul.mubr.bf16.gmra.mxu1 %v2201_v17 }
 0x160   : > { %v1220_v20 = vpop.f32.mrf.mxu0  ;;  %v1348_v21 = vpop.f32.mrf.mxu1 }
 0x161   : > { %v1475_v22 = vadd.f32 %v1220_v20, %v610_v18  ;;  %v1507_v23 = vadd.f32 %v1348_v21, %v642_v19  ;;  %v618_v18 = vld [vmem:[#allocation2 + $0x180] sm:$0xff] }
 0x162   : > { %v1222_v24 = vpop.f32.mrf.mxu0  ;;  %v1350_v25 = vpop.f32.mrf.mxu1  ;;  %v650_v19 = vld [vmem:[#allocation2 + $0x1a0] sm:$0xff] }
 0x163   : > { %1539 = vst [vmem:[#allocation2 + $0xb0] sm:$0xff] %v1475_v22  ;;  %1571 = vst [vmem:[#allocation2 + $0x148] sm:$0xff] %v1507_v23 }
 0x164   : > { %v1223_v28 = vpop.f32.mrf.mxu0  ;;  %v1351_v29 = vpop.f32.mrf.mxu1 }
 0x165   : > { %v1476_v30 = vadd.f32 %v1223_v28, %v611_v26  ;;  %v1508_v31 = vadd.f32 %v1351_v29, %v643_v27  ;;  %v619_v26 = vld [vmem:[#allocation2 + $0x110] sm:$0xff] }
 0x166   : > { %v1225_v32 = vpop.f32.mrf.mxu0  ;;  %v1353_v33 = vpop.f32.mrf.mxu1  ;;  %v651_v27 = vld [vmem:[#allocation2 + $0x1f0] sm:$0xff] }
 0x167   : > { %1540 = vst [vmem:[#allocation2 + $0x1b0] sm:$0xff] %v1476_v30  ;;  %1572 = vst [vmem:[#allocation2 + $0x1d0] sm:$0xff] %v1508_v31 }
 0x168   : > { %v1228_v36 = vpop.f32.mrf.mxu0  ;;  %v1356_v37 = vpop.f32.mrf.mxu1 }
 0x169   : > { %v1477_v38 = vadd.f32 %v1228_v36, %v612_v34  ;;  %v1509_v39 = vadd.f32 %v1356_v37, %v644_v35  ;;  %v620_v34 = vld [vmem:[#allocation2 + $0x118] sm:$0xff]  ;;  %v652_v35 = vld [vmem:[#allocation2 + $0xe8] sm:$0xff] }
 0x16a   : > { %v1230_v40 = vpop.f32.mrf.mxu0  ;;  %v1358_v41 = vpop.f32.mrf.mxu1 }
 0x16b   : > { %1541 = vst [vmem:[#allocation2 + $0xd8] sm:$0xff] %v1477_v38  ;;  %1573 = vst [vmem:[#allocation2 + $0x100] sm:$0xff] %v1509_v39 }
 0x16c   : > { %v1231_v44 = vpop.f32.mrf.mxu0  ;;  %v1359_v45 = vpop.f32.mrf.mxu1 }
 0x16d   : > { %v1478_v46 = vadd.f32 %v1231_v44, %v613_v42  ;;  %v1510_v47 = vadd.f32 %v1359_v45, %v645_v43  ;;  %v621_v42 = vld [vmem:[#allocation2 + $0x98] sm:$0xff] }
 0x16e   : > { %v1233_v48 = vpop.f32.mrf.mxu0  ;;  %v1361_v49 = vpop.f32.mrf.mxu1  ;;  %v653_v43 = vld [vmem:[#allocation2 + $0x78] sm:$0xff] }
 0x16f   : > { %1542 = vst [vmem:[#allocation2 + $0x18] sm:$0xff] %v1478_v46  ;;  %1574 = vst [vmem:[#allocation2 + $0xc8] sm:$0xff] %v1510_v47 }
 0x170   : > { %v1236_v52 = vpop.f32.mrf.mxu0  ;;  %v1364_v53 = vpop.f32.mrf.mxu1 }
 0x171   : > { %v1479_v54 = vadd.f32 %v1236_v52, %v614_v50  ;;  %v1511_v55 = vadd.f32 %v1364_v53, %v646_v51  ;;  %v622_v50 = vld [vmem:[#allocation2 + $0x120] sm:$0xff]  ;;  %v654_v51 = vld [vmem:[#allocation2 + $0x70] sm:$0xff] }
 0x172   : > { %v1238_v56 = vpop.f32.mrf.mxu0  ;;  %v1366_v57 = vpop.f32.mrf.mxu1 }
 0x173   : > { %1543 = vst [vmem:[#allocation2 + $0x50] sm:$0xff] %v1479_v54  ;;  %1575 = vst [vmem:[#allocation2 + $0x40] sm:$0xff] %v1511_v55 }
 0x174   : > { %v1239_v60 = vpop.f32.mrf.mxu0  ;;  %v1367_v61 = vpop.f32.mrf.mxu1 }
 0x175   : > { %v1480_v62 = vadd.f32 %v1239_v60, %v615_v58  ;;  %v1512_v63 = vadd.f32 %v1367_v61, %v647_v59  ;;  %v623_v58 = vld [vmem:[#allocation2 + $0x150] sm:$0xff] }
 0x176   : > { %v1241_v0 = vpop.f32.mrf.mxu0  ;;  %v1369_v1 = vpop.f32.mrf.mxu1  ;;  %v655_v59 = vld [vmem:[#allocation2 + $0x90] sm:$0xff] }
 0x177   : > { %1544 = vst [vmem:[#allocation2 + $0x168] sm:$0xff] %v1480_v62  ;;  %1576 = vst [vmem:[#allocation2 + $0x1f8] sm:$0xff] %v1512_v63 }
 0x178   : > { %v1244_v4 = vpop.f32.mrf.mxu0  ;;  %v1372_v5 = vpop.f32.mrf.mxu1 }
 0x179   : > { %v1481_v6 = vadd.f32 %v1244_v4, %v616_v2  ;;  %v1513_v7 = vadd.f32 %v1372_v5, %v648_v3  ;;  %v624_v2 = vld [vmem:[#allocation2 + $0x108] sm:$0xff]  ;;  %v656_v3 = vld [vmem:[#allocation2 + $0x1d8] sm:$0xff] }
 0x17a   : > { %v1246_v8 = vpop.f32.mrf.mxu0  ;;  %v1374_v9 = vpop.f32.mrf.mxu1 }
 0x17b   : > { %1545 = vst [vmem:[#allocation2 + $0x130] sm:$0xff] %v1481_v6  ;;  %1577 = vst [vmem:[#allocation2 + $0x20] sm:$0xff] %v1513_v7 }
 0x17c   : > { %v1247_v12 = vpop.f32.mrf.mxu0  ;;  %v1375_v13 = vpop.f32.mrf.mxu1 }
 0x17d   : > { %v1482_v14 = vadd.f32 %v1247_v12, %v617_v10  ;;  %v1514_v15 = vadd.f32 %v1375_v13, %v649_v11  ;;  %v625_v10 = vld [vmem:[#allocation2 + $0x60] sm:$0xff]  ;;  %v657_v11 = vld [vmem:[#allocation2 + $0xd0] sm:$0xff] }
 0x17e   : > { %v1249_v16 = vpop.f32.mrf.mxu0  ;;  %v1377_v17 = vpop.f32.mrf.mxu1 }
 0x17f   : > { %1546 = vst [vmem:[#allocation2 + $0x48] sm:$0xff] %v1482_v14  ;;  %1578 = vst [vmem:[#allocation2 + $0x128] sm:$0xff] %v1514_v15 }
 0x180   : > { %v1252_v20 = vpop.f32.mrf.mxu0  ;;  %v1380_v21 = vpop.f32.mrf.mxu1 }
 0x181   : > { %v1483_v22 = vadd.f32 %v1252_v20, %v618_v18  ;;  %v1515_v23 = vadd.f32 %v1380_v21, %v650_v19  ;;  %v626_v18 = vld [vmem:[#allocation2 + $0xe0] sm:$0xff]  ;;  %v658_v19 = vld [vmem:[#allocation2 + $0xb8] sm:$0xff] }
 0x182   : > { %v1254_v24 = vpop.f32.mrf.mxu0  ;;  %v1382_v25 = vpop.f32.mrf.mxu1 }
 0x183   : > { %1547 = vst [vmem:[#allocation2 + $0x180] sm:$0xff] %v1483_v22  ;;  %1579 = vst [vmem:[#allocation2 + $0x1a0] sm:$0xff] %v1515_v23 }
 0x184   : > { %v1255_v28 = vpop.f32.mrf.mxu0  ;;  %v1383_v29 = vpop.f32.mrf.mxu1 }
 0x185   : > { %v1484_v30 = vadd.f32 %v1255_v28, %v619_v26  ;;  %v1516_v31 = vadd.f32 %v1383_v29, %v651_v27  ;;  %v627_v26 = vld [vmem:[#allocation2 + $0x188] sm:$0xff] }
 0x186   : > { %v1257_v32 = vpop.f32.mrf.mxu0  ;;  %v1385_v33 = vpop.f32.mrf.mxu1  ;;  %v659_v27 = vld [vmem:[#allocation2 + $0x88] sm:$0xff] }
 0x187   : > { %1548 = vst [vmem:[#allocation2 + $0x110] sm:$0xff] %v1484_v30  ;;  %1580 = vst [vmem:[#allocation2 + $0x1f0] sm:$0xff] %v1516_v31 }
 0x188   : > { %v1260_v36 = vpop.f32.mrf.mxu0  ;;  %v1388_v37 = vpop.f32.mrf.mxu1 }
 0x189   : > { %v1485_v38 = vadd.f32 %v1260_v36, %v620_v34  ;;  %v1517_v39 = vadd.f32 %v1388_v37, %v652_v35  ;;  %v628_v34 = vld [vmem:[#allocation2 + $0x138] sm:$0xff]  ;;  %v660_v35 = vld [vmem:[#allocation2 + $0xa8] sm:$0xff] }
 0x18a   : > { %v1262_v40 = vpop.f32.mrf.mxu0  ;;  %v1390_v41 = vpop.f32.mrf.mxu1 }
 0x18b   : > { %1549 = vst [vmem:[#allocation2 + $0x118] sm:$0xff] %v1485_v38  ;;  %1581 = vst [vmem:[#allocation2 + $0xe8] sm:$0xff] %v1517_v39 }
 0x18c   : > { %v1263_v44 = vpop.f32.mrf.mxu0  ;;  %v1391_v45 = vpop.f32.mrf.mxu1 }
 0x18d   : > { %v1486_v46 = vadd.f32 %v1263_v44, %v621_v42  ;;  %v1518_v47 = vadd.f32 %v1391_v45, %v653_v43  ;;  %v629_v42 = vld [vmem:[#allocation2 + $0x140] sm:$0xff]  ;;  %v661_v43 = vld [vmem:[#allocation2 + $0x1c8] sm:$0xff] }
 0x18e   : > { %v1265_v48 = vpop.f32.mrf.mxu0  ;;  %v1393_v49 = vpop.f32.mrf.mxu1 }
 0x18f   : > { %1550 = vst [vmem:[#allocation2 + $0x98] sm:$0xff] %v1486_v46  ;;  %1582 = vst [vmem:[#allocation2 + $0x78] sm:$0xff] %v1518_v47 }
 0x190   : > { %v1268_v52 = vpop.f32.mrf.mxu0  ;;  %v1396_v53 = vpop.f32.mrf.mxu1 }
 0x191   : > { %v1487_v54 = vadd.f32 %v1268_v52, %v622_v50  ;;  %v1519_v55 = vadd.f32 %v1396_v53, %v654_v51  ;;  %v630_v50 = vld [vmem:[#allocation2 + $0x80] sm:$0xff]  ;;  %v662_v51 = vld [vmem:[#allocation2 + $0x170] sm:$0xff] }
 0x192   : > { %v1270_v56 = vpop.f32.mrf.mxu0  ;;  %v1398_v57 = vpop.f32.mrf.mxu1 }
 0x193   : > { %1551 = vst [vmem:[#allocation2 + $0x120] sm:$0xff] %v1487_v54  ;;  %1583 = vst [vmem:[#allocation2 + $0x70] sm:$0xff] %v1519_v55 }
 0x194   : > { %v1271_v60 = vpop.f32.mrf.mxu0  ;;  %v1399_v61 = vpop.f32.mrf.mxu1 }
 0x195   : > { %v1488_v62 = vadd.f32 %v1271_v60, %v623_v58  ;;  %v1520_v63 = vadd.f32 %v1399_v61, %v655_v59  ;;  %v631_v58 = vld [vmem:[#allocation2 + $0x1a8] sm:$0xff]  ;;  %v663_v59 = vld [vmem:[#allocation2 + $0x178] sm:$0xff] }
 0x196   : > { %v1273_v0 = vpop.f32.mrf.mxu0  ;;  %v1401_v1 = vpop.f32.mrf.mxu1 }
 0x197   : > { %1552 = vst [vmem:[#allocation2 + $0x150] sm:$0xff] %v1488_v62  ;;  %1584 = vst [vmem:[#allocation2 + $0x90] sm:$0xff] %v1520_v63 }
 0x198   : > { %v1276_v4 = vpop.f32.mrf.mxu0  ;;  %v1404_v5 = vpop.f32.mrf.mxu1 }
 0x199   : > { %v1489_v6 = vadd.f32 %v1276_v4, %v624_v2  ;;  %v1521_v7 = vadd.f32 %v1404_v5, %v656_v3  ;;  %v632_v2 = vld [vmem:[#allocation2 + $0x1b8] sm:$0xff]  ;;  %v664_v3 = vld [vmem:[#allocation2 + $0x68] sm:$0xff] }
 0x19a   : > { %v1278_v8 = vpop.f32.mrf.mxu0  ;;  %v1406_v9 = vpop.f32.mrf.mxu1 }
 0x19b   : > { %1553 = vst [vmem:[#allocation2 + $0x108] sm:$0xff] %v1489_v6  ;;  %1585 = vst [vmem:[#allocation2 + $0x1d8] sm:$0xff] %v1521_v7 }
 0x19c   : > { %v1279_v12 = vpop.f32.mrf.mxu0  ;;  %v1407_v13 = vpop.f32.mrf.mxu1 }
 0x19d   : > { %v1490_v14 = vadd.f32 %v1279_v12, %v625_v10  ;;  %v1522_v15 = vadd.f32 %v1407_v13, %v657_v11  ;;  %v633_v10 = vld [vmem:[#allocation2 + $0x28] sm:$0xff]  ;;  %v665_v11 = vld [vmem:[#allocation2 + $0x190] sm:$0xff] }
 0x19e   : > { %v1281_v16 = vpop.f32.mrf.mxu0  ;;  %v1409_v17 = vpop.f32.mrf.mxu1 }
 0x19f   : > { %1554 = vst [vmem:[#allocation2 + $0x60] sm:$0xff] %v1490_v14  ;;  %1586 = vst [vmem:[#allocation2 + $0xd0] sm:$0xff] %v1522_v15 }
 0x1a0   : > { %v1284_v20 = vpop.f32.mrf.mxu0  ;;  %v1412_v21 = vpop.f32.mrf.mxu1 }
 0x1a1   : > { %v1491_v22 = vadd.f32 %v1284_v20, %v626_v18  ;;  %v1523_v23 = vadd.f32 %v1412_v21, %v658_v19  ;;  %v634_v18 = vld [vmem:[#allocation2 + $0x1e8] sm:$0xff]  ;;  %v666_v19 = vld [vmem:[#allocation2 + $0x198] sm:$0xff] }
 0x1a2   : > { %v1286_v24 = vpop.f32.mrf.mxu0  ;;  %v1414_v25 = vpop.f32.mrf.mxu1 }
 0x1a3   : > { %1555 = vst [vmem:[#allocation2 + $0xe0] sm:$0xff] %v1491_v22  ;;  %1587 = vst [vmem:[#allocation2 + $0xb8] sm:$0xff] %v1523_v23 }
 0x1a4   : > { %v1287_v28 = vpop.f32.mrf.mxu0  ;;  %v1415_v29 = vpop.f32.mrf.mxu1 }
 0x1a5   : > { %v1492_v30 = vadd.f32 %v1287_v28, %v627_v26  ;;  %v1524_v31 = vadd.f32 %v1415_v29, %v659_v27  ;;  %v635_v26 = vld [vmem:[#allocation2 + $0xf8] sm:$0xff] }
 0x1a6   : > { %v1289_v32 = vpop.f32.mrf.mxu0  ;;  %v1417_v33 = vpop.f32.mrf.mxu1  ;;  %v667_v27 = vld [vmem:[#allocation2 + $0x38] sm:$0xff] }
 0x1a7   : > { %1556 = vst [vmem:[#allocation2 + $0x188] sm:$0xff] %v1492_v30  ;;  %1588 = vst [vmem:[#allocation2 + $0x88] sm:$0xff] %v1524_v31 }
 0x1a8   : > { %v1292_v36 = vpop.f32.mrf.mxu0  ;;  %v1420_v37 = vpop.f32.mrf.mxu1 }
 0x1a9   : > { %v1493_v38 = vadd.f32 %v1292_v36, %v628_v34  ;;  %v1525_v39 = vadd.f32 %v1420_v37, %v660_v35  ;;  %v636_v34 = vld [vmem:[#allocation2 + $0x160] sm:$0xff] }
 0x1aa   : > { %v1294_v40 = vpop.f32.mrf.mxu0  ;;  %v1422_v41 = vpop.f32.mrf.mxu1  ;;  %v668_v35 = vld [vmem:[#allocation2 + $0xc0] sm:$0xff] }
 0x1ab   : > { %1557 = vst [vmem:[#allocation2 + $0x138] sm:$0xff] %v1493_v38  ;;  %1589 = vst [vmem:[#allocation2 + $0xa8] sm:$0xff] %v1525_v39 }
 0x1ac   : > { %v1295_v44 = vpop.f32.mrf.mxu0  ;;  %v1423_v45 = vpop.f32.mrf.mxu1 }
 0x1ad   : > { %v1494_v46 = vadd.f32 %v1295_v44, %v629_v42  ;;  %v1526_v47 = vadd.f32 %v1423_v45, %v661_v43  ;;  %v637_v42 = vld [vmem:[#allocation2 + $0x30] sm:$0xff]  ;;  %v669_v43 = vld [vmem:[#allocation2 + $0x1c0] sm:$0xff] }
 0x1ae   : > { %v1297_v48 = vpop.f32.mrf.mxu0  ;;  %v1425_v49 = vpop.f32.mrf.mxu1 }
 0x1af   : > { %1558 = vst [vmem:[#allocation2 + $0x140] sm:$0xff] %v1494_v46  ;;  %1590 = vst [vmem:[#allocation2 + $0x1c8] sm:$0xff] %v1526_v47 }
 0x1b0   : > { %v1300_v52 = vpop.f32.mrf.mxu0  ;;  %v1428_v53 = vpop.f32.mrf.mxu1 }
 0x1b1   : > { %v1495_v54 = vadd.f32 %v1300_v52, %v630_v50  ;;  %v1527_v55 = vadd.f32 %v1428_v53, %v662_v51  ;;  %v638_v50 = vld [vmem:[#allocation2 + $0x1e0] sm:$0xff]  ;;  %v670_v51 = vld [vmem:[#allocation2 + $0x158] sm:$0xff] }
 0x1b2   : > { %v1302_v56 = vpop.f32.mrf.mxu0  ;;  %v1430_v57 = vpop.f32.mrf.mxu1 }
 0x1b3   : > { %1559 = vst [vmem:[#allocation2 + $0x80] sm:$0xff] %v1495_v54  ;;  %1591 = vst [vmem:[#allocation2 + $0x170] sm:$0xff] %v1527_v55 }
 0x1b4   : > { %v1303_v60 = vpop.f32.mrf.mxu0  ;;  %v1431_v61 = vpop.f32.mrf.mxu1 }
 0x1b5   : > { %v1496_v62 = vadd.f32 %v1303_v60, %v631_v58  ;;  %v1528_v63 = vadd.f32 %v1431_v61, %v663_v59  ;;  %v639_v58 = vld [vmem:[#allocation2] sm:$0xff]  ;;  %v671_v59 = vld [vmem:[#allocation2 + $0x10] sm:$0xff] }
 0x1b6   : > { %v1305_v0 = vpop.f32.mrf.mxu0  ;;  %v1433_v1 = vpop.f32.mrf.mxu1 }
 0x1b7   : > { %1560 = vst [vmem:[#allocation2 + $0x1a8] sm:$0xff] %v1496_v62  ;;  %1592 = vst [vmem:[#allocation2 + $0x178] sm:$0xff] %v1528_v63 }
 0x1b8   : > { %v1308_v4 = vpop.f32.mrf.mxu0  ;;  %v1436_v5 = vpop.f32.mrf.mxu1 }
 0x1b9   : > { %v1497_v6 = vadd.f32 %v1308_v4, %v632_v2  ;;  %v1529_v7 = vadd.f32 %v1436_v5, %v664_v3  ;;  %v640_v2 = vld [vmem:[#allocation2 + $0xf0] sm:$0xff]  ;;  %v672_v3 = vld [vmem:[#allocation2 + $0x58] sm:$0xff] }
 0x1ba   : > { %v1310_v8 = vpop.f32.mrf.mxu0  ;;  %v1438_v9 = vpop.f32.mrf.mxu1 }
 0x1bb   : > { %1561 = vst [vmem:[#allocation2 + $0x1b8] sm:$0xff] %v1497_v6  ;;  %1593 = vst [vmem:[#allocation2 + $0x68] sm:$0xff] %v1529_v7 }
 0x1bc   : > { %v1311_v12 = vpop.f32.mrf.mxu0  ;;  %v1439_v13 = vpop.f32.mrf.mxu1 }
 0x1bd   : > { %v1498_v14 = vadd.f32 %v1311_v12, %v633_v10  ;;  %v1530_v15 = vadd.f32 %v1439_v13, %v665_v11  ;;  %v641_v10 = vld [vmem:[#allocation2 + $0x8] sm:$0xff]  ;;  %v673_v11 = vld [vmem:[#allocation2 + $0xa0] sm:$0xff] }
 0x1be   : > { %v1313_v16 = vpop.f32.mrf.mxu0  ;;  %v1441_v17 = vpop.f32.mrf.mxu1 }
 0x1bf   : > { %1562 = vst [vmem:[#allocation2 + $0x28] sm:$0xff] %v1498_v14  ;;  %1594 = vst [vmem:[#allocation2 + $0x190] sm:$0xff] %v1530_v15 }
 0x1c0   : > { %v1316_v20 = vpop.f32.mrf.mxu0  ;;  %v1444_v21 = vpop.f32.mrf.mxu1 }
 0x1c1   : > { %v1499_v22 = vadd.f32 %v1316_v20, %v634_v18  ;;  %v1531_v23 = vadd.f32 %v1444_v21, %v666_v19 }
 0x1c2   : > { %v1318_v24 = vpop.f32.mrf.mxu0  ;;  %v1446_v25 = vpop.f32.mrf.mxu1 }
 0x1c3   : > { %1563 = vst [vmem:[#allocation2 + $0x1e8] sm:$0xff] %v1499_v22  ;;  %1595 = vst [vmem:[#allocation2 + $0x198] sm:$0xff] %v1531_v23 }
 0x1c4   : > { %v1319_v28 = vpop.f32.mrf.mxu0  ;;  %v1447_v29 = vpop.f32.mrf.mxu1 }
 0x1c5   : > { %v1500_v30 = vadd.f32 %v1319_v28, %v635_v26  ;;  %v1532_v31 = vadd.f32 %v1447_v29, %v667_v27 }
 0x1c6   : > { %v1321_v32 = vpop.f32.mrf.mxu0  ;;  %v1449_v33 = vpop.f32.mrf.mxu1 }
 0x1c7   : > { %1564 = vst [vmem:[#allocation2 + $0xf8] sm:$0xff] %v1500_v30  ;;  %1596 = vst [vmem:[#allocation2 + $0x38] sm:$0xff] %v1532_v31 }
 0x1c8   : > { %v1324_v36 = vpop.f32.mrf.mxu0  ;;  %v1452_v37 = vpop.f32.mrf.mxu1 }
 0x1c9   : > { %v1501_v38 = vadd.f32 %v1324_v36, %v636_v34  ;;  %v1533_v39 = vadd.f32 %v1452_v37, %v668_v35 }
 0x1ca   : > { %v1326_v40 = vpop.f32.mrf.mxu0  ;;  %v1454_v41 = vpop.f32.mrf.mxu1 }
 0x1cb   : > { %1565 = vst [vmem:[#allocation2 + $0x160] sm:$0xff] %v1501_v38  ;;  %1597 = vst [vmem:[#allocation2 + $0xc0] sm:$0xff] %v1533_v39 }
 0x1cc   : > { %v1327_v44 = vpop.f32.mrf.mxu0  ;;  %v1455_v45 = vpop.f32.mrf.mxu1 }
 0x1cd   : > { %v1502_v46 = vadd.f32 %v1327_v44, %v637_v42  ;;  %v1534_v47 = vadd.f32 %v1455_v45, %v669_v43 }
 0x1ce   : > { %v1329_v48 = vpop.f32.mrf.mxu0  ;;  %v1457_v49 = vpop.f32.mrf.mxu1 }
 0x1cf   : > { %1566 = vst [vmem:[#allocation2 + $0x30] sm:$0xff] %v1502_v46  ;;  %1598 = vst [vmem:[#allocation2 + $0x1c0] sm:$0xff] %v1534_v47 }
 0x1d0   : > { %v1332_v52 = vpop.f32.mrf.mxu0  ;;  %v1460_v53 = vpop.f32.mrf.mxu1 }
 0x1d1   : > { %v1503_v54 = vadd.f32 %v1332_v52, %v638_v50  ;;  %v1535_v55 = vadd.f32 %v1460_v53, %v670_v51 }
 0x1d2   : > { %v1334_v56 = vpop.f32.mrf.mxu0  ;;  %v1462_v57 = vpop.f32.mrf.mxu1 }
 0x1d3   : > { %1567 = vst [vmem:[#allocation2 + $0x1e0] sm:$0xff] %v1503_v54  ;;  %1599 = vst [vmem:[#allocation2 + $0x158] sm:$0xff] %v1535_v55 }
 0x1d4   : > { %v1335_v60 = vpop.f32.mrf.mxu0  ;;  %v1463_v61 = vpop.f32.mrf.mxu1 }
 0x1d5   : > { %v1504_v62 = vadd.f32 %v1335_v60, %v639_v58  ;;  %v1536_v63 = vadd.f32 %v1463_v61, %v671_v59 }
 0x1d6   : > { %v1337_v0 = vpop.f32.mrf.mxu0  ;;  %v1465_v1 = vpop.f32.mrf.mxu1 }
 0x1d7   : > { %1568 = vst [vmem:[#allocation2] sm:$0xff] %v1504_v62  ;;  %1600 = vst [vmem:[#allocation2 + $0x10] sm:$0xff] %v1536_v63 }
 0x1d8   : > { %v1340_v4 = vpop.f32.mrf.mxu0  ;;  %v1468_v5 = vpop.f32.mrf.mxu1 }
 0x1d9   : > { %v1505_v6 = vadd.f32 %v1340_v4, %v640_v2  ;;  %v1537_v7 = vadd.f32 %v1468_v5, %v672_v3 }
 0x1da   : > { %v1342_v8 = vpop.f32.mrf.mxu0  ;;  %v1470_v9 = vpop.f32.mrf.mxu1 }
 0x1db   : > { %1569 = vst [vmem:[#allocation2 + $0xf0] sm:$0xff] %v1505_v6  ;;  %1601 = vst [vmem:[#allocation2 + $0x58] sm:$0xff] %v1537_v7  ;;  %1606 = sbr.rel (%p2009_p11) target bundleno = 515 (0x203), region = 78 }
 0x1dc   : > { %v1343_v12 = vpop.f32.mrf.mxu0  ;;  %v1471_v13 = vpop.f32.mrf.mxu1 }
 0x1dd   : > { %v1506_v14 = vadd.f32 %v1343_v12, %v641_v10  ;;  %v1538_v15 = vadd.f32 %v1471_v13, %v673_v11 }
 0x1de   : > { %v1345_v16 = vpop.f32.mrf.mxu0  ;;  %v1473_v17 = vpop.f32.mrf.mxu1 }
 0x1df   : > { %1570 = vst [vmem:[#allocation2 + $0x8] sm:$0xff] %v1506_v14  ;;  %1602 = vst [vmem:[#allocation2 + $0xa0] sm:$0xff] %v1538_v15 }
 0x1e0   : > { %v1607_v18 = vld [vmem:[#allocation2 + $0xb0] sm:$0xff]  ;;  %v2631_v19 = vld [vmem:[%s2906_s2] ss:$0 sm:$0xff]  ;;  %v1609_v23 = vld [vmem:[#allocation2 + $0xd8] sm:$0xff] }
 0x1e1   : > { %v1608_v20 = vld [vmem:[#allocation2 + $0x1b0] sm:$0xff]  ;;  %v1678_v21 = vadd.f32 %v2631_v19, %v1607_v18  ;;  %v1610_v24 = vld [vmem:[#allocation2 + $0x18] sm:$0xff]  ;;  %v1680_v26 = vadd.f32 %v2631_v19, %v1609_v23  ;;  %v1612_v29 = vld [vmem:[#allocation2 + $0x168] sm:$0xff] }
 0x1e2   : > { %v1679_v22 = vadd.f32 %v2631_v19, %v1608_v20  ;;  %v1611_v25 = vld [vmem:[#allocation2 + $0x50] sm:$0xff]  ;;  %v1681_v27 = vadd.f32 %v2631_v19, %v1610_v24  ;;  %v1614_v31 = vld [vmem:[#allocation2 + $0x48] sm:$0xff]  ;;  %v1683_v32 = vadd.f32 %v2631_v19, %v1612_v29  ;;  %v1615_v35 = vld [vmem:[#allocation2 + $0x180] sm:$0xff] }
 0x1e3   : > { %v1682_v28 = vadd.f32 %v2631_v19, %v1611_v25  ;;  %v1613_v30 = vld [vmem:[#allocation2 + $0x130] sm:$0xff]  ;;  %1742 = vst [vmem:[%s2907_s3] sm:$0xff] %v1678_v21  ;;  %v1685_v34 = vadd.f32 %v2631_v19, %v1614_v31  ;;  %v1617_v37 = vld [vmem:[#allocation2 + $0x118] sm:$0xff]  ;;  %1744 = vst [vmem:[%s2907_s3 + $0x10] sm:$0xff] %v1680_v26  ;;  %v1686_v38 = vadd.f32 %v2631_v19, %v1615_v35 }
 0x1e4   : > { %1743 = vst [vmem:[%s2907_s3 + $0x8] sm:$0xff] %v1679_v22  ;;  %v1684_v33 = vadd.f32 %v2631_v19, %v1613_v30  ;;  %v1616_v36 = vld [vmem:[#allocation2 + $0x110] sm:$0xff]  ;;  %1745 = vst [vmem:[%s2907_s3 + $0x18] sm:$0xff] %v1681_v27  ;;  %v1688_v40 = vadd.f32 %v2631_v19, %v1617_v37  ;;  %v1618_v41 = vld [vmem:[#allocation2 + $0x98] sm:$0xff] }
 0x1e5   : > { %1746 = vst [vmem:[%s2907_s3 + $0x20] sm:$0xff] %v1682_v28  ;;  %v1687_v39 = vadd.f32 %v2631_v19, %v1616_v36  ;;  %v1619_v42 = vld [vmem:[#allocation2 + $0x120] sm:$0xff]  ;;  %v1620_v43 = vld [vmem:[#allocation2 + $0x150] sm:$0xff]  ;;  %1747 = vst [vmem:[%s2907_s3 + $0x28] sm:$0xff] %v1683_v32  ;;  %v1689_v44 = vadd.f32 %v2631_v19, %v1618_v41 }
 0x1e6   : > { %1748 = vst [vmem:[%s2907_s3 + $0x30] sm:$0xff] %v1684_v33  ;;  %1749 = vst [vmem:[%s2907_s3 + $0x38] sm:$0xff] %v1685_v34  ;;  %v1690_v45 = vadd.f32 %v2631_v19, %v1619_v42  ;;  %v1691_v46 = vadd.f32 %v2631_v19, %v1620_v43  ;;  %v1621_v47 = vld [vmem:[#allocation2 + $0x108] sm:$0xff]  ;;  %v1622_v48 = vld [vmem:[#allocation2 + $0x60] sm:$0xff] }
 0x1e7   : > { %v1623_v49 = vld [vmem:[#allocation2 + $0xe0] sm:$0xff]  ;;  %1750 = vst [vmem:[%s2907_s3 + $0x40] sm:$0xff] %v1686_v38  ;;  %1751 = vst [vmem:[%s2907_s3 + $0x48] sm:$0xff] %v1687_v39  ;;  %v1692_v50 = vadd.f32 %v2631_v19, %v1621_v47  ;;  %v1693_v51 = vadd.f32 %v2631_v19, %v1622_v48  ;;  %v1624_v53 = vld [vmem:[#allocation2 + $0x188] sm:$0xff] }
 0x1e8   : > { %1752 = vst [vmem:[%s2907_s3 + $0x50] sm:$0xff] %v1688_v40  ;;  %v1694_v52 = vadd.f32 %v2631_v19, %v1623_v49  ;;  %v1625_v54 = vld [vmem:[#allocation2 + $0x138] sm:$0xff]  ;;  %v1626_v55 = vld [vmem:[#allocation2 + $0x140] sm:$0xff]  ;;  %1753 = vst [vmem:[%s2907_s3 + $0x58] sm:$0xff] %v1689_v44  ;;  %v1695_v56 = vadd.f32 %v2631_v19, %v1624_v53 }
 0x1e9   : > { %1754 = vst [vmem:[%s2907_s3 + $0x60] sm:$0xff] %v1690_v45  ;;  %1755 = vst [vmem:[%s2907_s3 + $0x68] sm:$0xff] %v1691_v46  ;;  %v1696_v57 = vadd.f32 %v2631_v19, %v1625_v54  ;;  %v1697_v58 = vadd.f32 %v2631_v19, %v1626_v55  ;;  %v1627_v59 = vld [vmem:[#allocation2 + $0x80] sm:$0xff]  ;;  %v1628_v60 = vld [vmem:[#allocation2 + $0x1a8] sm:$0xff] }
 0x1ea   : > { %v1629_v61 = vld [vmem:[#allocation2 + $0x1b8] sm:$0xff]  ;;  %1756 = vst [vmem:[%s2907_s3 + $0x70] sm:$0xff] %v1692_v50  ;;  %1757 = vst [vmem:[%s2907_s3 + $0x78] sm:$0xff] %v1693_v51  ;;  %v1698_v62 = vadd.f32 %v2631_v19, %v1627_v59  ;;  %v1699_v63 = vadd.f32 %v2631_v19, %v1628_v60  ;;  %v1630_v1 = vld [vmem:[#allocation2 + $0x28] sm:$0xff] }
 0x1eb   : > { %1758 = vst [vmem:[%s2907_s3 + $0x80] sm:$0xff] %v1694_v52  ;;  %v1700_v0 = vadd.f32 %v2631_v19, %v1629_v61  ;;  %v1631_v2 = vld [vmem:[#allocation2 + $0x1e8] sm:$0xff]  ;;  %v1632_v3 = vld [vmem:[#allocation2 + $0xf8] sm:$0xff]  ;;  %1759 = vst [vmem:[%s2907_s3 + $0x88] sm:$0xff] %v1695_v56  ;;  %v1701_v4 = vadd.f32 %v2631_v19, %v1630_v1 }
 0x1ec   : > { %1760 = vst [vmem:[%s2907_s3 + $0x90] sm:$0xff] %v1696_v57  ;;  %1761 = vst [vmem:[%s2907_s3 + $0x98] sm:$0xff] %v1697_v58  ;;  %v1702_v5 = vadd.f32 %v2631_v19, %v1631_v2  ;;  %v1703_v6 = vadd.f32 %v2631_v19, %v1632_v3  ;;  %v1633_v7 = vld [vmem:[#allocation2 + $0x160] sm:$0xff]  ;;  %v1634_v8 = vld [vmem:[#allocation2 + $0x30] sm:$0xff] }
 0x1ed   : > { %v1635_v9 = vld [vmem:[#allocation2 + $0x1e0] sm:$0xff]  ;;  %1762 = vst [vmem:[%s2907_s3 + $0xa0] sm:$0xff] %v1698_v62  ;;  %1763 = vst [vmem:[%s2907_s3 + $0xa8] sm:$0xff] %v1699_v63  ;;  %v1704_v10 = vadd.f32 %v2631_v19, %v1633_v7  ;;  %v1705_v11 = vadd.f32 %v2631_v19, %v1634_v8  ;;  %v1637_v14 = vld [vmem:[#allocation2 + $0xf0] sm:$0xff] }
 0x1ee   : > { %1764 = vst [vmem:[%s2907_s3 + $0xb0] sm:$0xff] %v1700_v0  ;;  %v1706_v12 = vadd.f32 %v2631_v19, %v1635_v9  ;;  %v1636_v13 = vld [vmem:[#allocation2] sm:$0xff]  ;;  %v1638_v15 = vld [vmem:[#allocation2 + $0x8] sm:$0xff]  ;;  %1765 = vst [vmem:[%s2907_s3 + $0xb8] sm:$0xff] %v1701_v4  ;;  %v1708_v17 = vadd.f32 %v2631_v19, %v1637_v14 }
 0x1ef   : > { %1766 = vst [vmem:[%s2907_s3 + $0xc0] sm:$0xff] %v1702_v5  ;;  %1767 = vst [vmem:[%s2907_s3 + $0xc8] sm:$0xff] %v1703_v6  ;;  %v1707_v16 = vadd.f32 %v2631_v19, %v1636_v13  ;;  %v1709_v18 = vadd.f32 %v2631_v19, %v1638_v15  ;;  %v1639_v20 = vld [vmem:[#allocation2 + $0x148] sm:$0xff]  ;;  %v1640_v21 = vld [vmem:[#allocation2 + $0x1d0] sm:$0xff] }
 0x1f0   : > { %v1641_v22 = vld [vmem:[#allocation2 + $0x100] sm:$0xff]  ;;  %1768 = vst [vmem:[%s2907_s3 + $0xd0] sm:$0xff] %v1704_v10  ;;  %1769 = vst [vmem:[%s2907_s3 + $0xd8] sm:$0xff] %v1705_v11  ;;  %v1710_v23 = vadd.f32 %v2631_v19, %v1639_v20  ;;  %v1711_v24 = vadd.f32 %v2631_v19, %v1640_v21  ;;  %v1642_v26 = vld [vmem:[#allocation2 + $0xc8] sm:$0xff] }
 0x1f1   : > { %1770 = vst [vmem:[%s2907_s3 + $0xe0] sm:$0xff] %v1706_v12  ;;  %v1712_v25 = vadd.f32 %v2631_v19, %v1641_v22  ;;  %v1643_v27 = vld [vmem:[#allocation2 + $0x40] sm:$0xff]  ;;  %v1644_v28 = vld [vmem:[#allocation2 + $0x1f8] sm:$0xff]  ;;  %1771 = vst [vmem:[%s2907_s3 + $0xe8] sm:$0xff] %v1707_v16  ;;  %v1713_v29 = vadd.f32 %v2631_v19, %v1642_v26 }
 0x1f2   : > { %1772 = vst [vmem:[%s2907_s3 + $0xf0] sm:$0xff] %v1708_v17  ;;  %1773 = vst [vmem:[%s2907_s3 + $0xf8] sm:$0xff] %v1709_v18  ;;  %v1714_v30 = vadd.f32 %v2631_v19, %v1643_v27  ;;  %v1715_v31 = vadd.f32 %v2631_v19, %v1644_v28  ;;  %v1645_v32 = vld [vmem:[#allocation2 + $0x20] sm:$0xff]  ;;  %v1646_v33 = vld [vmem:[#allocation2 + $0x128] sm:$0xff] }
 0x1f3   : > { %v1647_v34 = vld [vmem:[#allocation2 + $0x1a0] sm:$0xff]  ;;  %1774 = vst [vmem:[%s2907_s3 + $0x100] sm:$0xff] %v1710_v23  ;;  %1775 = vst [vmem:[%s2907_s3 + $0x108] sm:$0xff] %v1711_v24  ;;  %v1716_v35 = vadd.f32 %v2631_v19, %v1645_v32  ;;  %v1717_v36 = vadd.f32 %v2631_v19, %v1646_v33  ;;  %v1648_v38 = vld [vmem:[#allocation2 + $0x1f0] sm:$0xff] }
 0x1f4   : > { %1776 = vst [vmem:[%s2907_s3 + $0x110] sm:$0xff] %v1712_v25  ;;  %v1718_v37 = vadd.f32 %v2631_v19, %v1647_v34  ;;  %v1649_v39 = vld [vmem:[#allocation2 + $0xe8] sm:$0xff]  ;;  %v1650_v40 = vld [vmem:[#allocation2 + $0x78] sm:$0xff]  ;;  %1777 = vst [vmem:[%s2907_s3 + $0x118] sm:$0xff] %v1713_v29  ;;  %v1719_v41 = vadd.f32 %v2631_v19, %v1648_v38 }
 0x1f5   : > { %1778 = vst [vmem:[%s2907_s3 + $0x120] sm:$0xff] %v1714_v30  ;;  %1779 = vst [vmem:[%s2907_s3 + $0x128] sm:$0xff] %v1715_v31  ;;  %v1720_v42 = vadd.f32 %v2631_v19, %v1649_v39  ;;  %v1721_v43 = vadd.f32 %v2631_v19, %v1650_v40  ;;  %v1651_v44 = vld [vmem:[#allocation2 + $0x70] sm:$0xff]  ;;  %v1653_v46 = vld [vmem:[#allocation2 + $0x1d8] sm:$0xff] }
 0x1f6   : > { %v1652_v45 = vld [vmem:[#allocation2 + $0x90] sm:$0xff]  ;;  %1780 = vst [vmem:[%s2907_s3 + $0x130] sm:$0xff] %v1716_v35  ;;  %1781 = vst [vmem:[%s2907_s3 + $0x138] sm:$0xff] %v1717_v36  ;;  %v1722_v47 = vadd.f32 %v2631_v19, %v1651_v44  ;;  %v1724_v49 = vadd.f32 %v2631_v19, %v1653_v46  ;;  %v1655_v51 = vld [vmem:[#allocation2 + $0xb8] sm:$0xff] }
 0x1f7   : > { %1782 = vst [vmem:[%s2907_s3 + $0x140] sm:$0xff] %v1718_v37  ;;  %v1723_v48 = vadd.f32 %v2631_v19, %v1652_v45  ;;  %v1654_v50 = vld [vmem:[#allocation2 + $0xd0] sm:$0xff]  ;;  %v1656_v52 = vld [vmem:[#allocation2 + $0x88] sm:$0xff]  ;;  %1783 = vst [vmem:[%s2907_s3 + $0x148] sm:$0xff] %v1719_v41  ;;  %v1726_v54 = vadd.f32 %v2631_v19, %v1655_v51 }
 0x1f8   : > { %1784 = vst [vmem:[%s2907_s3 + $0x150] sm:$0xff] %v1720_v42  ;;  %1785 = vst [vmem:[%s2907_s3 + $0x158] sm:$0xff] %v1721_v43  ;;  %v1725_v53 = vadd.f32 %v2631_v19, %v1654_v50  ;;  %v1727_v55 = vadd.f32 %v2631_v19, %v1656_v52  ;;  %v1657_v56 = vld [vmem:[#allocation2 + $0xa8] sm:$0xff]  ;;  %v1659_v58 = vld [vmem:[#allocation2 + $0x170] sm:$0xff] }
 0x1f9   : > { %v1658_v57 = vld [vmem:[#allocation2 + $0x1c8] sm:$0xff]  ;;  %1786 = vst [vmem:[%s2907_s3 + $0x160] sm:$0xff] %v1722_v47  ;;  %1787 = vst [vmem:[%s2907_s3 + $0x168] sm:$0xff] %v1723_v48  ;;  %v1728_v59 = vadd.f32 %v2631_v19, %v1657_v56  ;;  %v1730_v61 = vadd.f32 %v2631_v19, %v1659_v58  ;;  %v1660_v62 = vld [vmem:[#allocation2 + $0x178] sm:$0xff] }
 0x1fa   : > { %1788 = vst [vmem:[%s2907_s3 + $0x170] sm:$0xff] %v1724_v49  ;;  %v1729_v60 = vadd.f32 %v2631_v19, %v1658_v57  ;;  %v1661_v63 = vld [vmem:[#allocation2 + $0x68] sm:$0xff]  ;;  %v1662_v0 = vld [vmem:[#allocation2 + $0x190] sm:$0xff]  ;;  %1789 = vst [vmem:[%s2907_s3 + $0x178] sm:$0xff] %v1725_v53  ;;  %v1731_v1 = vadd.f32 %v2631_v19, %v1660_v62 }
 0x1fb   : > { %1790 = vst [vmem:[%s2907_s3 + $0x180] sm:$0xff] %v1726_v54  ;;  %1791 = vst [vmem:[%s2907_s3 + $0x188] sm:$0xff] %v1727_v55  ;;  %v1732_v2 = vadd.f32 %v2631_v19, %v1661_v63  ;;  %v1733_v3 = vadd.f32 %v2631_v19, %v1662_v0  ;;  %v1663_v4 = vld [vmem:[#allocation2 + $0x198] sm:$0xff]  ;;  %v1665_v6 = vld [vmem:[#allocation2 + $0xc0] sm:$0xff] }
 0x1fc   : > { %v1664_v5 = vld [vmem:[#allocation2 + $0x38] sm:$0xff]  ;;  %1792 = vst [vmem:[%s2907_s3 + $0x190] sm:$0xff] %v1728_v59  ;;  %1793 = vst [vmem:[%s2907_s3 + $0x198] sm:$0xff] %v1729_v60  ;;  %v1734_v7 = vadd.f32 %v2631_v19, %v1663_v4  ;;  %v1736_v9 = vadd.f32 %v2631_v19, %v1665_v6  ;;  %v1666_v10 = vld [vmem:[#allocation2 + $0x1c0] sm:$0xff] }
 0x1fd   : > { %1794 = vst [vmem:[%s2907_s3 + $0x1a0] sm:$0xff] %v1730_v61  ;;  %v1735_v8 = vadd.f32 %v2631_v19, %v1664_v5  ;;  %v1667_v11 = vld [vmem:[#allocation2 + $0x158] sm:$0xff]  ;;  %v1668_v12 = vld [vmem:[#allocation2 + $0x10] sm:$0xff]  ;;  %1795 = vst [vmem:[%s2907_s3 + $0x1a8] sm:$0xff] %v1731_v1  ;;  %v1737_v13 = vadd.f32 %v2631_v19, %v1666_v10 }
 0x1fe   : > { %1796 = vst [vmem:[%s2907_s3 + $0x1b0] sm:$0xff] %v1732_v2  ;;  %1797 = vst [vmem:[%s2907_s3 + $0x1b8] sm:$0xff] %v1733_v3  ;;  %v1738_v14 = vadd.f32 %v2631_v19, %v1667_v11  ;;  %v1739_v15 = vadd.f32 %v2631_v19, %v1668_v12  ;;  %v1669_v16 = vld [vmem:[#allocation2 + $0x58] sm:$0xff]  ;;  %v1670_v17 = vld [vmem:[#allocation2 + $0xa0] sm:$0xff] }
 0x1ff   : > { %1798 = vst [vmem:[%s2907_s3 + $0x1c0] sm:$0xff] %v1734_v7  ;;  %1799 = vst [vmem:[%s2907_s3 + $0x1c8] sm:$0xff] %v1735_v8  ;;  %v1740_v18 = vadd.f32 %v2631_v19, %v1669_v16  ;;  %v1741_v20 = vadd.f32 %v2631_v19, %v1670_v17 }
 0x200   : > { %1800 = vst [vmem:[%s2907_s3 + $0x1d0] sm:$0xff] %v1736_v9  ;;  %1801 = vst [vmem:[%s2907_s3 + $0x1d8] sm:$0xff] %v1737_v13 }
 0x201   : > { %1802 = vst [vmem:[%s2907_s3 + $0x1e0] sm:$0xff] %v1738_v14  ;;  %1803 = vst [vmem:[%s2907_s3 + $0x1e8] sm:$0xff] %v1739_v15 }
 0x202   : > { %1804 = vst [vmem:[%s2907_s3 + $0x1f0] sm:$0xff] %v1740_v18  ;;  %1805 = vst [vmem:[%s2907_s3 + $0x1f8] sm:$0xff] %v1741_v20 }
 0x203 PF: > { %s13_s16 = sadd.s32 1, %s2240_s16   ;;  %s2908_s12 = smov %s2228_s13 }
 0x204   : > { %p10_p12 = scmp.ge.s32.totalorder %s13_s16, 7   ;;  %s2909_s13 = smov %s2299_s20 }
 0x205   : > { %s2910_s14 = smov %s2236_s15  ;;  %s2911_s15 = smov %s2913_s17 }
 0x206   :  { %12 = sbr.rel (!%p10_p12) target bundleno = 3 (0x3), region = 119 }

// kernel: generator_resnet_forward.55
= control target key start
LH: loop header
LB: loop body
LE: loop exit
PB: predicated region body
PF: predicated region fallthrough
CT: control target
= control target key end

     0   :  { %s2456_s12 = smov 0   ;;  %s2458_s13 = smov 0   ;;  %s3096_s0 = inlined_call_operand.vmem [shape: bf16[512,3328], index: 0, kind: input, shape index: {}]   ;;  %s3097_s1 = inlined_call_operand.vmem [shape: bf16[3328,128], index: 1, kind: input, shape index: {}]   ;;  %s3098_s2 = inlined_call_operand.vmem [shape: f32[1,128], index: 2, kind: input, shape index: {}]   ;;  %s3099_s3 = inlined_call_operand.vmem [shape: f32[512,128], index: 3, kind: output, shape index: {}]  }
   0x1   :  { %s2460_s14 = smov 0   ;;  %s2462_s15 = smov 0  }
   0x2   :  { %s2464_s16 = smov 0  }
   0x3 LB: > { %s25_s17 = sadd.s32 1, %s2428_s15  ;;  %p48_p1 = scmp.ne.s32.totalorder %s2420_s13, %s2416_s12  ;;  %s2432_s16 = sphi %s2464_s16, %s13_s16   ;;  %s2428_s15 = sphi %s2462_s15, %s3103_s15   ;;  %s2424_s14 = sphi %s2460_s14, %s3102_s14   ;;  %s2420_s13 = sphi %s2458_s13, %s3101_s13   ;;  %s2416_s12 = sphi %s2456_s12, %s3100_s12  }
   0x4   : > { %p26_p0 = scmp.ge.s32.totalorder %s25_s17, 13  ;;  %p49_p2 = scmp.eq.s32.totalorder %s2432_s16, 0 }
   0x5   : > { %s41_s19 = sadd.s32 1, %s2420_s13  ;;  %p1984_p5 = scmp.ge.s32.totalorder %s2432_s16, 13 }
   0x6   : > { %s3105_s17 = smov (%p26_p0, %s25_s17), 0  ;;  %p50_p3 = por %p49_p2, %p48_p1 }
   0x7   : > { %s37_s18 = ssub.s32 %s2428_s15, %s3105_s17  ;;  %162 = sbr.rel (%p1984_p5) target bundleno = 48 (0x30), region = 20 }
   0x8   : > { %p39_p4 = scmp.eq.s32.totalorder %s37_s18, 0 }
   0xa   : > { %s2491_s20 = scalar_select %p39_p4, %s2420_s13, %s41_s19  }
   0xc   : > { %165 = sbr.rel (!%p50_p3) target bundleno = 48 (0x30), region = 24  ;;  %s167_s21 = sand.u32 (%p50_p3), 1, %s2420_s13  }
   0xd   : > { %s2079_s22 = sshll.u32 (%p50_p3), %s2428_s15, 3  ;;  %s1985_s23 = sshll.u32 (%p50_p3), %s167_s21, 9 }
   0xe   : > { %s2499_s26 = scalar_lea.vmem (%p50_p3), %s3096_s0, %s2079_s22  ;;  %s2504_s27 = scalar_lea.vmem (%p50_p3), [#allocation3], %s1985_s23 }
   0xf   : > { %v330_v0 = vld [vmem:[%s2499_s26] sm:$0xff] (%p50_p3)  ;;  %v332_v1 = vld [vmem:[%s2499_s26 + $0x68] sm:$0xff] (%p50_p3)  ;;  %v334_v2 = vld [vmem:[%s2499_s26 + $0xd0] sm:$0xff] (%p50_p3) }
  0x10   : > { %331 = vst [vmem:[%s2504_s27] sm:$0xff] (%p50_p3), %v330_v0  ;;  %333 = vst [vmem:[%s2504_s27 + $0x8] sm:$0xff] (%p50_p3), %v332_v1  ;;  %v336_v3 = vld [vmem:[%s2499_s26 + $0x138] sm:$0xff] (%p50_p3)  ;;  %v338_v4 = vld [vmem:[%s2499_s26 + $0x1a0] sm:$0xff] (%p50_p3) }
  0x11   : > { %335 = vst [vmem:[%s2504_s27 + $0x10] sm:$0xff] %v334_v2  ;;  %v340_v5 = vld [vmem:[%s2499_s26 + $0x208] sm:$0xff]  ;;  %337 = vst [vmem:[%s2504_s27 + $0x18] sm:$0xff] %v336_v3  ;;  %v342_v6 = vld [vmem:[%s2499_s26 + $0x270] sm:$0xff] }
  0x12   : > { %339 = vst [vmem:[%s2504_s27 + $0x20] sm:$0xff] %v338_v4  ;;  %341 = vst [vmem:[%s2504_s27 + $0x28] sm:$0xff] %v340_v5  ;;  %v344_v7 = vld [vmem:[%s2499_s26 + $0x2d8] sm:$0xff]  ;;  %v346_v8 = vld [vmem:[%s2499_s26 + $0x340] sm:$0xff] }
  0x13   : > { %343 = vst [vmem:[%s2504_s27 + $0x30] sm:$0xff] %v342_v6  ;;  %345 = vst [vmem:[%s2504_s27 + $0x38] sm:$0xff] %v344_v7  ;;  %v348_v9 = vld [vmem:[%s2499_s26 + $0x3a8] sm:$0xff]  ;;  %v350_v10 = vld [vmem:[%s2499_s26 + $0x410] sm:$0xff] }
  0x14   : > { %347 = vst [vmem:[%s2504_s27 + $0x40] sm:$0xff] %v346_v8  ;;  %v352_v11 = vld [vmem:[%s2499_s26 + $0x478] sm:$0xff]  ;;  %349 = vst [vmem:[%s2504_s27 + $0x48] sm:$0xff] %v348_v9  ;;  %v354_v12 = vld [vmem:[%s2499_s26 + $0x4e0] sm:$0xff] }
  0x15   : > { %351 = vst [vmem:[%s2504_s27 + $0x50] sm:$0xff] %v350_v10  ;;  %353 = vst [vmem:[%s2504_s27 + $0x58] sm:$0xff] %v352_v11  ;;  %v356_v13 = vld [vmem:[%s2499_s26 + $0x548] sm:$0xff]  ;;  %v358_v14 = vld [vmem:[%s2499_s26 + $0x5b0] sm:$0xff] }
  0x16   : > { %355 = vst [vmem:[%s2504_s27 + $0x60] sm:$0xff] %v354_v12  ;;  %357 = vst [vmem:[%s2504_s27 + $0x68] sm:$0xff] %v356_v13  ;;  %v360_v15 = vld [vmem:[%s2499_s26 + $0x618] sm:$0xff]  ;;  %v362_v16 = vld [vmem:[%s2499_s26 + $0x680] sm:$0xff] }
  0x17   : > { %359 = vst [vmem:[%s2504_s27 + $0x70] sm:$0xff] %v358_v14  ;;  %v364_v17 = vld [vmem:[%s2499_s26 + $0x6e8] sm:$0xff]  ;;  %361 = vst [vmem:[%s2504_s27 + $0x78] sm:$0xff] %v360_v15  ;;  %v366_v18 = vld [vmem:[%s2499_s26 + $0x750] sm:$0xff] }
  0x18   : > { %363 = vst [vmem:[%s2504_s27 + $0x80] sm:$0xff] %v362_v16  ;;  %365 = vst [vmem:[%s2504_s27 + $0x88] sm:$0xff] %v364_v17  ;;  %v368_v19 = vld [vmem:[%s2499_s26 + $0x7b8] sm:$0xff]  ;;  %v370_v20 = vld [vmem:[%s2499_s26 + $0x820] sm:$0xff] }
  0x19   : > { %367 = vst [vmem:[%s2504_s27 + $0x90] sm:$0xff] %v366_v18  ;;  %369 = vst [vmem:[%s2504_s27 + $0x98] sm:$0xff] %v368_v19  ;;  %v372_v21 = vld [vmem:[%s2499_s26 + $0x888] sm:$0xff]  ;;  %v374_v22 = vld [vmem:[%s2499_s26 + $0x8f0] sm:$0xff] }
  0x1a   : > { %371 = vst [vmem:[%s2504_s27 + $0xa0] sm:$0xff] %v370_v20  ;;  %v376_v23 = vld [vmem:[%s2499_s26 + $0x958] sm:$0xff]  ;;  %373 = vst [vmem:[%s2504_s27 + $0xa8] sm:$0xff] %v372_v21  ;;  %v378_v24 = vld [vmem:[%s2499_s26 + $0x9c0] sm:$0xff] }
  0x1b   : > { %375 = vst [vmem:[%s2504_s27 + $0xb0] sm:$0xff] %v374_v22  ;;  %377 = vst [vmem:[%s2504_s27 + $0xb8] sm:$0xff] %v376_v23  ;;  %v380_v25 = vld [vmem:[%s2499_s26 + $0xa28] sm:$0xff]  ;;  %v382_v26 = vld [vmem:[%s2499_s26 + $0xa90] sm:$0xff] }
  0x1c   : > { %379 = vst [vmem:[%s2504_s27 + $0xc0] sm:$0xff] %v378_v24  ;;  %381 = vst [vmem:[%s2504_s27 + $0xc8] sm:$0xff] %v380_v25  ;;  %v384_v27 = vld [vmem:[%s2499_s26 + $0xaf8] sm:$0xff]  ;;  %v386_v28 = vld [vmem:[%s2499_s26 + $0xb60] sm:$0xff] }
  0x1d   : > { %383 = vst [vmem:[%s2504_s27 + $0xd0] sm:$0xff] %v382_v26  ;;  %v388_v29 = vld [vmem:[%s2499_s26 + $0xbc8] sm:$0xff]  ;;  %385 = vst [vmem:[%s2504_s27 + $0xd8] sm:$0xff] %v384_v27  ;;  %v390_v30 = vld [vmem:[%s2499_s26 + $0xc30] sm:$0xff] }
  0x1e   : > { %387 = vst [vmem:[%s2504_s27 + $0xe0] sm:$0xff] %v386_v28  ;;  %389 = vst [vmem:[%s2504_s27 + $0xe8] sm:$0xff] %v388_v29  ;;  %v392_v31 = vld [vmem:[%s2499_s26 + $0xc98] sm:$0xff]  ;;  %v394_v32 = vld [vmem:[%s2499_s26 + $0xd00] sm:$0xff] }
  0x1f   : > { %391 = vst [vmem:[%s2504_s27 + $0xf0] sm:$0xff] %v390_v30  ;;  %393 = vst [vmem:[%s2504_s27 + $0xf8] sm:$0xff] %v392_v31  ;;  %v396_v33 = vld [vmem:[%s2499_s26 + $0xd68] sm:$0xff]  ;;  %v398_v34 = vld [vmem:[%s2499_s26 + $0xdd0] sm:$0xff] }
  0x20   : > { %395 = vst [vmem:[%s2504_s27 + $0x100] sm:$0xff] %v394_v32  ;;  %v400_v35 = vld [vmem:[%s2499_s26 + $0xe38] sm:$0xff]  ;;  %397 = vst [vmem:[%s2504_s27 + $0x108] sm:$0xff] %v396_v33  ;;  %v402_v36 = vld [vmem:[%s2499_s26 + $0xea0] sm:$0xff] }
  0x21   : > { %399 = vst [vmem:[%s2504_s27 + $0x110] sm:$0xff] %v398_v34  ;;  %401 = vst [vmem:[%s2504_s27 + $0x118] sm:$0xff] %v400_v35  ;;  %v404_v37 = vld [vmem:[%s2499_s26 + $0xf08] sm:$0xff]  ;;  %v406_v38 = vld [vmem:[%s2499_s26 + $0xf70] sm:$0xff] }
  0x22   : > { %403 = vst [vmem:[%s2504_s27 + $0x120] sm:$0xff] %v402_v36  ;;  %405 = vst [vmem:[%s2504_s27 + $0x128] sm:$0xff] %v404_v37  ;;  %v408_v39 = vld [vmem:[%s2499_s26 + $0xfd8] sm:$0xff]  ;;  %v410_v40 = vld [vmem:[%s2499_s26 + $0x1040] sm:$0xff] }
  0x23   : > { %407 = vst [vmem:[%s2504_s27 + $0x130] sm:$0xff] %v406_v38  ;;  %v412_v41 = vld [vmem:[%s2499_s26 + $0x10a8] sm:$0xff]  ;;  %409 = vst [vmem:[%s2504_s27 + $0x138] sm:$0xff] %v408_v39  ;;  %v414_v42 = vld [vmem:[%s2499_s26 + $0x1110] sm:$0xff] }
  0x24   : > { %411 = vst [vmem:[%s2504_s27 + $0x140] sm:$0xff] %v410_v40  ;;  %413 = vst [vmem:[%s2504_s27 + $0x148] sm:$0xff] %v412_v41  ;;  %v416_v43 = vld [vmem:[%s2499_s26 + $0x1178] sm:$0xff]  ;;  %v418_v44 = vld [vmem:[%s2499_s26 + $0x11e0] sm:$0xff] }
  0x25   : > { %415 = vst [vmem:[%s2504_s27 + $0x150] sm:$0xff] %v414_v42  ;;  %417 = vst [vmem:[%s2504_s27 + $0x158] sm:$0xff] %v416_v43  ;;  %v420_v45 = vld [vmem:[%s2499_s26 + $0x1248] sm:$0xff]  ;;  %v422_v46 = vld [vmem:[%s2499_s26 + $0x12b0] sm:$0xff] }
  0x26   : > { %419 = vst [vmem:[%s2504_s27 + $0x160] sm:$0xff] %v418_v44  ;;  %v424_v47 = vld [vmem:[%s2499_s26 + $0x1318] sm:$0xff]  ;;  %421 = vst [vmem:[%s2504_s27 + $0x168] sm:$0xff] %v420_v45  ;;  %v426_v48 = vld [vmem:[%s2499_s26 + $0x1380] sm:$0xff] }
  0x27   : > { %423 = vst [vmem:[%s2504_s27 + $0x170] sm:$0xff] %v422_v46  ;;  %425 = vst [vmem:[%s2504_s27 + $0x178] sm:$0xff] %v424_v47  ;;  %v428_v49 = vld [vmem:[%s2499_s26 + $0x13e8] sm:$0xff]  ;;  %v430_v50 = vld [vmem:[%s2499_s26 + $0x1450] sm:$0xff] }
  0x28   : > { %427 = vst [vmem:[%s2504_s27 + $0x180] sm:$0xff] %v426_v48  ;;  %429 = vst [vmem:[%s2504_s27 + $0x188] sm:$0xff] %v428_v49  ;;  %v432_v51 = vld [vmem:[%s2499_s26 + $0x14b8] sm:$0xff]  ;;  %v434_v52 = vld [vmem:[%s2499_s26 + $0x1520] sm:$0xff] }
  0x29   : > { %431 = vst [vmem:[%s2504_s27 + $0x190] sm:$0xff] %v430_v50  ;;  %v436_v53 = vld [vmem:[%s2499_s26 + $0x1588] sm:$0xff]  ;;  %433 = vst [vmem:[%s2504_s27 + $0x198] sm:$0xff] %v432_v51  ;;  %v438_v54 = vld [vmem:[%s2499_s26 + $0x15f0] sm:$0xff] }
  0x2a   : > { %435 = vst [vmem:[%s2504_s27 + $0x1a0] sm:$0xff] %v434_v52  ;;  %437 = vst [vmem:[%s2504_s27 + $0x1a8] sm:$0xff] %v436_v53  ;;  %v440_v55 = vld [vmem:[%s2499_s26 + $0x1658] sm:$0xff]  ;;  %v442_v56 = vld [vmem:[%s2499_s26 + $0x16c0] sm:$0xff] }
  0x2b   : > { %439 = vst [vmem:[%s2504_s27 + $0x1b0] sm:$0xff] %v438_v54  ;;  %441 = vst [vmem:[%s2504_s27 + $0x1b8] sm:$0xff] %v440_v55  ;;  %v444_v57 = vld [vmem:[%s2499_s26 + $0x1728] sm:$0xff]  ;;  %v446_v58 = vld [vmem:[%s2499_s26 + $0x1790] sm:$0xff] }
  0x2c   : > { %443 = vst [vmem:[%s2504_s27 + $0x1c0] sm:$0xff] %v442_v56  ;;  %v448_v59 = vld [vmem:[%s2499_s26 + $0x17f8] sm:$0xff]  ;;  %445 = vst [vmem:[%s2504_s27 + $0x1c8] sm:$0xff] %v444_v57  ;;  %v450_v60 = vld [vmem:[%s2499_s26 + $0x1860] sm:$0xff] }
  0x2d   : > { %447 = vst [vmem:[%s2504_s27 + $0x1d0] sm:$0xff] %v446_v58  ;;  %449 = vst [vmem:[%s2504_s27 + $0x1d8] sm:$0xff] %v448_v59  ;;  %v452_v61 = vld [vmem:[%s2499_s26 + $0x18c8] sm:$0xff]  ;;  %v454_v62 = vld [vmem:[%s2499_s26 + $0x1930] sm:$0xff] }
  0x2e   : > { %451 = vst [vmem:[%s2504_s27 + $0x1e0] sm:$0xff] %v450_v60  ;;  %453 = vst [vmem:[%s2504_s27 + $0x1e8] sm:$0xff] %v452_v61  ;;  %v456_v63 = vld [vmem:[%s2499_s26 + $0x1998] sm:$0xff] }
  0x2f   : > { %455 = vst [vmem:[%s2504_s27 + $0x1f0] sm:$0xff] %v454_v62  ;;  %457 = vst [vmem:[%s2504_s27 + $0x1f8] sm:$0xff] %v456_v63 }
  0x30 PF: > { %p1988_p6 = scmp.ge.s32.totalorder %s2432_s16, 1  ;;  %p474_p7 = scmp.lt.s32.totalorder %s2432_s16, 14 }
  0x32   : > { %p475_p8 = pnand %p1988_p6, %p474_p7 }
  0x33   : > { %s481_s28 = sand.u32 (!%p475_p8), 1, %s2416_s12   ;;  %s1990_s29 = sshll.u32 (!%p475_p8), %s2424_s14, 5 }
  0x34   : > { %478 = sbr.rel (%p475_p8) target bundleno = 561 (0x231), region = 66  ;;  %s1989_s30 = sshll.u32 (!%p475_p8), %s481_s28, 9 }
  0x35   : > { %p521_p9 = scmp.lt.s32.totalorder (!%p475_p8), %s1990_s29, 415  ;;  %s2640_s8 = scalar_lea.vmem (!%p475_p8), [#allocation3], %s1989_s30 }
  0x36   : > { %p1992_p10 = scmp.ne.s32.totalorder (!%p475_p8), %s2424_s14, 0 }
  0x39   : > { %s3107_s29 = smov (!%p521_p9, %s1990_s29), 415  ;;  %545 = sbr.rel (%p1992_p10) target bundleno = 95 (0x5f), region = 74 }
  0x3a   : > { %s1991_s4 = sshll.u32 %s3107_s29, 2 }
  0x3b   : > { %s2638_s7 = scalar_lea.vmem %s3097_s1, %s1991_s4 }
  0x3e   : > { %v2434_v0 = vmov 0.0  }
  0x3f   : > { %546 = vst [vmem:[#allocation2 + $0xb0] sm:$0xff] %v2434_v0  ;;  %547 = vst [vmem:[#allocation2 + $0x1b0] sm:$0xff] %v2434_v0 }
  0x40   : > { %548 = vst [vmem:[#allocation2 + $0xd8] sm:$0xff] %v2434_v0  ;;  %549 = vst [vmem:[#allocation2 + $0x18] sm:$0xff] %v2434_v0 }
  0x41   : > { %550 = vst [vmem:[#allocation2 + $0x50] sm:$0xff] %v2434_v0  ;;  %551 = vst [vmem:[#allocation2 + $0x168] sm:$0xff] %v2434_v0 }
  0x42   : > { %552 = vst [vmem:[#allocation2 + $0x130] sm:$0xff] %v2434_v0  ;;  %553 = vst [vmem:[#allocation2 + $0x48] sm:$0xff] %v2434_v0 }
  0x43   : > { %554 = vst [vmem:[#allocation2 + $0x180] sm:$0xff] %v2434_v0  ;;  %555 = vst [vmem:[#allocation2 + $0x110] sm:$0xff] %v2434_v0 }
  0x44   : > { %556 = vst [vmem:[#allocation2 + $0x118] sm:$0xff] %v2434_v0  ;;  %557 = vst [vmem:[#allocation2 + $0x98] sm:$0xff] %v2434_v0 }
  0x45   : > { %558 = vst [vmem:[#allocation2 + $0x120] sm:$0xff] %v2434_v0  ;;  %559 = vst [vmem:[#allocation2 + $0x150] sm:$0xff] %v2434_v0 }
  0x46   : > { %560 = vst [vmem:[#allocation2 + $0x108] sm:$0xff] %v2434_v0  ;;  %561 = vst [vmem:[#allocation2 + $0x60] sm:$0xff] %v2434_v0 }
  0x47   : > { %562 = vst [vmem:[#allocation2 + $0xe0] sm:$0xff] %v2434_v0  ;;  %563 = vst [vmem:[#allocation2 + $0x188] sm:$0xff] %v2434_v0 }
  0x48   : > { %564 = vst [vmem:[#allocation2 + $0x138] sm:$0xff] %v2434_v0  ;;  %565 = vst [vmem:[#allocation2 + $0x140] sm:$0xff] %v2434_v0 }
  0x49   : > { %566 = vst [vmem:[#allocation2 + $0x80] sm:$0xff] %v2434_v0  ;;  %567 = vst [vmem:[#allocation2 + $0x1a8] sm:$0xff] %v2434_v0 }
  0x4a   : > { %568 = vst [vmem:[#allocation2 + $0x1b8] sm:$0xff] %v2434_v0  ;;  %569 = vst [vmem:[#allocation2 + $0x28] sm:$0xff] %v2434_v0 }
  0x4b   : > { %570 = vst [vmem:[#allocation2 + $0x1e8] sm:$0xff] %v2434_v0  ;;  %571 = vst [vmem:[#allocation2 + $0xf8] sm:$0xff] %v2434_v0 }
  0x4c   : > { %572 = vst [vmem:[#allocation2 + $0x160] sm:$0xff] %v2434_v0  ;;  %573 = vst [vmem:[#allocation2 + $0x30] sm:$0xff] %v2434_v0 }
  0x4d   : > { %574 = vst [vmem:[#allocation2 + $0x1e0] sm:$0xff] %v2434_v0  ;;  %575 = vst [vmem:[#allocation2] sm:$0xff] %v2434_v0 }
  0x4e   : > { %576 = vst [vmem:[#allocation2 + $0xf0] sm:$0xff] %v2434_v0  ;;  %577 = vst [vmem:[#allocation2 + $0x8] sm:$0xff] %v2434_v0 }
  0x4f   : > { %578 = vst [vmem:[#allocation2 + $0x148] sm:$0xff] %v2434_v0  ;;  %579 = vst [vmem:[#allocation2 + $0x1d0] sm:$0xff] %v2434_v0 }
  0x50   : > { %580 = vst [vmem:[#allocation2 + $0x100] sm:$0xff] %v2434_v0  ;;  %581 = vst [vmem:[#allocation2 + $0xc8] sm:$0xff] %v2434_v0 }
  0x51   : > { %582 = vst [vmem:[#allocation2 + $0x40] sm:$0xff] %v2434_v0  ;;  %583 = vst [vmem:[#allocation2 + $0x1f8] sm:$0xff] %v2434_v0 }
  0x52   : > { %584 = vst [vmem:[#allocation2 + $0x20] sm:$0xff] %v2434_v0  ;;  %585 = vst [vmem:[#allocation2 + $0x128] sm:$0xff] %v2434_v0 }
  0x53   : > { %586 = vst [vmem:[#allocation2 + $0x1a0] sm:$0xff] %v2434_v0  ;;  %587 = vst [vmem:[#allocation2 + $0x1f0] sm:$0xff] %v2434_v0 }
  0x54   : > { %588 = vst [vmem:[#allocation2 + $0xe8] sm:$0xff] %v2434_v0  ;;  %589 = vst [vmem:[#allocation2 + $0x78] sm:$0xff] %v2434_v0 }
  0x55   : > { %590 = vst [vmem:[#allocation2 + $0x70] sm:$0xff] %v2434_v0  ;;  %591 = vst [vmem:[#allocation2 + $0x90] sm:$0xff] %v2434_v0 }
  0x56   : > { %592 = vst [vmem:[#allocation2 + $0x1d8] sm:$0xff] %v2434_v0  ;;  %593 = vst [vmem:[#allocation2 + $0xd0] sm:$0xff] %v2434_v0 }
  0x57   : > { %594 = vst [vmem:[#allocation2 + $0xb8] sm:$0xff] %v2434_v0  ;;  %595 = vst [vmem:[#allocation2 + $0x88] sm:$0xff] %v2434_v0 }
  0x58   : > { %596 = vst [vmem:[#allocation2 + $0xa8] sm:$0xff] %v2434_v0  ;;  %597 = vst [vmem:[#allocation2 + $0x1c8] sm:$0xff] %v2434_v0 }
  0x59   : > { %598 = vst [vmem:[#allocation2 + $0x170] sm:$0xff] %v2434_v0  ;;  %599 = vst [vmem:[#allocation2 + $0x178] sm:$0xff] %v2434_v0 }
  0x5a   : > { %600 = vst [vmem:[#allocation2 + $0x68] sm:$0xff] %v2434_v0  ;;  %601 = vst [vmem:[#allocation2 + $0x190] sm:$0xff] %v2434_v0 }
  0x5b   : > { %602 = vst [vmem:[#allocation2 + $0x198] sm:$0xff] %v2434_v0  ;;  %603 = vst [vmem:[#allocation2 + $0x38] sm:$0xff] %v2434_v0 }
  0x5c   : > { %604 = vst [vmem:[#allocation2 + $0xc0] sm:$0xff] %v2434_v0  ;;  %605 = vst [vmem:[#allocation2 + $0x1c0] sm:$0xff] %v2434_v0 }
  0x5d   : > { %606 = vst [vmem:[#allocation2 + $0x158] sm:$0xff] %v2434_v0  ;;  %607 = vst [vmem:[#allocation2 + $0x10] sm:$0xff] %v2434_v0 }
  0x5e   : > { %608 = vst [vmem:[#allocation2 + $0x58] sm:$0xff] %v2434_v0  ;;  %609 = vst [vmem:[#allocation2 + $0xa0] sm:$0xff] %v2434_v0 }
  0x5f PF: > { %v2154_v1 = vld [vmem:[%s2638_s7 + $0x38] sm:$0xff]   ;;  %v2435_v2 = vmov 0   ;;  %v2155_v3 = vld [vmem:[%s2638_s7 + $0x30] sm:$0xff]   ;;  %v2156_v4 = vld [vmem:[%s2638_s7 + $0x28] sm:$0xff]   ;;  %p2073_p11 = scmp.ne.s32.totalorder %s2424_s14, 12 }
  0x60   : > { %1186 = vmatprep.subr.bf16.mxu0 %v2435_v2  ;;  %2080 = vmatprep.subr.bf16.mxu1 %v2435_v2  ;;  %v2157_v5 = vld [vmem:[%s2638_s7 + $0x20] sm:$0xff]   ;;  %v2158_v6 = vld [vmem:[%s2638_s7 + $0x18] sm:$0xff]   ;;  %v2159_v8 = vld [vmem:[%s2638_s7 + $0x10] sm:$0xff]  }
  0x61   : > { %1187 = vmatpush1.bf16.msra.mxu0 %v2154_v1  ;;  %2096 = vmatpush1.bf16.msra.mxu1 %v2154_v1  ;;  %v2172_v7 = vld [vmem:[%s2640_s8 + $0x4] ss:$8 sps:$4 sm:$0xff]   ;;  %v2162_v12 = vld [vmem:[%s2638_s7 + $0x78] sm:$0xff]   ;;  %v2163_v13 = vld [vmem:[%s2638_s7 + $0x70] sm:$0xff]  }
  0x62   : > { %1188 = vmatprep.subr.bf16.mxu0 %v2435_v2  ;;  %2081 = vmatprep.subr.bf16.mxu1 %v2435_v2  ;;  %v2175_v9 = vld [vmem:[%s2640_s8 + $0x104] ss:$8 sps:$4 sm:$0xff]   ;;  %v2166_v16 = vld [vmem:[%s2638_s7 + $0x58] sm:$0xff]   ;;  %v2167_v17 = vld [vmem:[%s2638_s7 + $0x50] sm:$0xff]  }
  0x63   : > { %1218 = vmatprep.mubr.bf16.mxu0 %v2172_v7  ;;  %1346 = vmatprep.mubr.bf16.mxu1 %v2175_v9  ;;  %v2160_v10 = vld [vmem:[%s2638_s7 + $0x8] sm:$0xff]   ;;  %v2161_v11 = vld [vmem:[%s2638_s7] sm:$0xff]   ;;  %v2176_v22 = vld [vmem:[%s2640_s8 + $0x14] ss:$8 sps:$4 sm:$0xff]  }
  0x64   : > { %v2164_v14 = vld [vmem:[%s2638_s7 + $0x68] sm:$0xff]   ;;  %v2165_v15 = vld [vmem:[%s2638_s7 + $0x60] sm:$0xff]   ;;  %v2178_v23 = vld [vmem:[%s2640_s8 + $0x114] ss:$8 sps:$4 sm:$0xff]  }
  0x65   : > { %1189 = vmatpush1.bf16.msra.mxu0 %v2155_v3  ;;  %2097 = vmatpush1.bf16.msra.mxu1 %v2155_v3  ;;  %v2168_v18 = vld [vmem:[%s2638_s7 + $0x48] sm:$0xff]   ;;  %v2169_v19 = vld [vmem:[%s2638_s7 + $0x40] sm:$0xff]   ;;  %v2180_v24 = vld [vmem:[%s2640_s8 + $0x10] ss:$8 sps:$4 sm:$0xff]  }
  0x66   : > { %1190 = vmatprep.subr.bf16.mxu0 %v2435_v2  ;;  %2082 = vmatprep.subr.bf16.mxu1 %v2435_v2  ;;  %v2170_v20 = vld [vmem:[%s2640_s8] ss:$8 sps:$4 sm:$0xff]   ;;  %v2181_v25 = vld [vmem:[%s2640_s8 + $0x110] ss:$8 sps:$4 sm:$0xff]   ;;  %v2182_v26 = vld [vmem:[%s2640_s8 + $0x24] ss:$8 sps:$4 sm:$0xff]  }
  0x67   : > { %v2173_v21 = vld [vmem:[%s2640_s8 + $0x100] ss:$8 sps:$4 sm:$0xff]   ;;  %v2184_v27 = vld [vmem:[%s2640_s8 + $0x124] ss:$8 sps:$4 sm:$0xff]   ;;  %v2188_v30 = vld [vmem:[%s2640_s8 + $0x34] ss:$8 sps:$4 sm:$0xff]  }
  0x68   : > { %v2186_v28 = vld [vmem:[%s2640_s8 + $0x20] ss:$8 sps:$4 sm:$0xff]   ;;  %v2190_v31 = vld [vmem:[%s2640_s8 + $0x134] ss:$8 sps:$4 sm:$0xff]   ;;  %v2192_v32 = vld [vmem:[%s2640_s8 + $0x30] ss:$8 sps:$4 sm:$0xff]  }
  0x69   : > { %1191 = vmatpush1.bf16.msra.mxu0 %v2156_v4  ;;  %2098 = vmatpush1.bf16.msra.mxu1 %v2156_v4  ;;  %v2187_v29 = vld [vmem:[%s2640_s8 + $0x120] ss:$8 sps:$4 sm:$0xff]   ;;  %v2193_v33 = vld [vmem:[%s2640_s8 + $0x130] ss:$8 sps:$4 sm:$0xff]   ;;  %v2194_v34 = vld [vmem:[%s2640_s8 + $0x44] ss:$8 sps:$4 sm:$0xff]  }
  0x6a   : > { %1192 = vmatprep.subr.bf16.mxu0 %v2435_v2  ;;  %2083 = vmatprep.subr.bf16.mxu1 %v2435_v2  ;;  %v2196_v35 = vld [vmem:[%s2640_s8 + $0x144] ss:$8 sps:$4 sm:$0xff]   ;;  %v2198_v36 = vld [vmem:[%s2640_s8 + $0x40] ss:$8 sps:$4 sm:$0xff]   ;;  %v2200_v38 = vld [vmem:[%s2640_s8 + $0x54] ss:$8 sps:$4 sm:$0xff]  }
  0x6b   : > { %v2199_v37 = vld [vmem:[%s2640_s8 + $0x140] ss:$8 sps:$4 sm:$0xff]   ;;  %v2202_v39 = vld [vmem:[%s2640_s8 + $0x154] ss:$8 sps:$4 sm:$0xff]   ;;  %v2204_v40 = vld [vmem:[%s2640_s8 + $0x50] ss:$8 sps:$4 sm:$0xff]  }
  0x6c   : > { %v2205_v41 = vld [vmem:[%s2640_s8 + $0x150] ss:$8 sps:$4 sm:$0xff]   ;;  %v2206_v42 = vld [vmem:[%s2640_s8 + $0x64] ss:$8 sps:$4 sm:$0xff]   ;;  %v2210_v44 = vld [vmem:[%s2640_s8 + $0x60] ss:$8 sps:$4 sm:$0xff]  }
  0x6d   : > { %1193 = vmatpush1.bf16.msra.mxu0 %v2157_v5  ;;  %2099 = vmatpush1.bf16.msra.mxu1 %v2157_v5  ;;  %v2208_v43 = vld [vmem:[%s2640_s8 + $0x164] ss:$8 sps:$4 sm:$0xff]   ;;  %v2211_v45 = vld [vmem:[%s2640_s8 + $0x160] ss:$8 sps:$4 sm:$0xff]   ;;  %v2212_v46 = vld [vmem:[%s2640_s8 + $0x74] ss:$8 sps:$4 sm:$0xff]  }
  0x6e   : > { %1194 = vmatprep.subr.bf16.mxu0 %v2435_v2  ;;  %2084 = vmatprep.subr.bf16.mxu1 %v2435_v2  ;;  %v2214_v47 = vld [vmem:[%s2640_s8 + $0x174] ss:$8 sps:$4 sm:$0xff]   ;;  %v2216_v48 = vld [vmem:[%s2640_s8 + $0x70] ss:$8 sps:$4 sm:$0xff]   ;;  %v2218_v50 = vld [vmem:[%s2640_s8 + $0x84] ss:$8 sps:$4 sm:$0xff]  }
  0x6f   : > { %v2217_v49 = vld [vmem:[%s2640_s8 + $0x170] ss:$8 sps:$4 sm:$0xff]   ;;  %v2220_v51 = vld [vmem:[%s2640_s8 + $0x184] ss:$8 sps:$4 sm:$0xff]   ;;  %v2222_v52 = vld [vmem:[%s2640_s8 + $0x80] ss:$8 sps:$4 sm:$0xff]  }
  0x70   : > { %v2223_v53 = vld [vmem:[%s2640_s8 + $0x180] ss:$8 sps:$4 sm:$0xff]   ;;  %v2224_v54 = vld [vmem:[%s2640_s8 + $0x94] ss:$8 sps:$4 sm:$0xff]   ;;  %v2228_v56 = vld [vmem:[%s2640_s8 + $0x90] ss:$8 sps:$4 sm:$0xff]  }
  0x71   : > { %1195 = vmatpush1.bf16.msra.mxu0 %v2158_v6  ;;  %2100 = vmatpush1.bf16.msra.mxu1 %v2158_v6  ;;  %v2226_v55 = vld [vmem:[%s2640_s8 + $0x194] ss:$8 sps:$4 sm:$0xff]   ;;  %v2229_v57 = vld [vmem:[%s2640_s8 + $0x190] ss:$8 sps:$4 sm:$0xff]   ;;  %v2230_v58 = vld [vmem:[%s2640_s8 + $0xa4] ss:$8 sps:$4 sm:$0xff]  }
  0x72   : > { %1196 = vmatprep.subr.bf16.mxu0 %v2435_v2  ;;  %2085 = vmatprep.subr.bf16.mxu1 %v2435_v2  ;;  %v2232_v59 = vld [vmem:[%s2640_s8 + $0x1a4] ss:$8 sps:$4 sm:$0xff]   ;;  %v2234_v60 = vld [vmem:[%s2640_s8 + $0xa0] ss:$8 sps:$4 sm:$0xff]   ;;  %v2236_v62 = vld [vmem:[%s2640_s8 + $0xb4] ss:$8 sps:$4 sm:$0xff]  }
  0x73   : > { %v2235_v61 = vld [vmem:[%s2640_s8 + $0x1a0] ss:$8 sps:$4 sm:$0xff]   ;;  %v2238_v63 = vld [vmem:[%s2640_s8 + $0x1b4] ss:$8 sps:$4 sm:$0xff]   ;;  %v2240_v0 = vld [vmem:[%s2640_s8 + $0xb0] ss:$8 sps:$4 sm:$0xff]  }
  0x74   : > { %v2241_v1 = vld [vmem:[%s2640_s8 + $0x1b0] ss:$8 sps:$4 sm:$0xff]   ;;  %v2244_v3 = vld [vmem:[%s2640_s8 + $0x1c4] ss:$8 sps:$4 sm:$0xff]   ;;  %v2246_v4 = vld [vmem:[%s2640_s8 + $0xc0] ss:$8 sps:$4 sm:$0xff]  }
  0x75   : > { %1197 = vmatpush1.bf16.msra.mxu0 %v2159_v8  ;;  %2101 = vmatpush1.bf16.msra.mxu1 %v2159_v8  ;;  %v2247_v5 = vld [vmem:[%s2640_s8 + $0x1c0] ss:$8 sps:$4 sm:$0xff]   ;;  %v2248_v6 = vld [vmem:[%s2640_s8 + $0xd4] ss:$8 sps:$4 sm:$0xff]   ;;  %v2252_v8 = vld [vmem:[%s2640_s8 + $0xd0] ss:$8 sps:$4 sm:$0xff]  }
  0x76   : > { %1198 = vmatprep.subr.bf16.mxu0 %v2435_v2  ;;  %2086 = vmatprep.subr.bf16.mxu1 %v2435_v2  ;;  %v2250_v7 = vld [vmem:[%s2640_s8 + $0x1d4] ss:$8 sps:$4 sm:$0xff]   ;;  %v2253_v9 = vld [vmem:[%s2640_s8 + $0x1d0] ss:$8 sps:$4 sm:$0xff]  }
  0x79   : > { %1199 = vmatpush1.bf16.msra.mxu0 %v2160_v10  ;;  %2102 = vmatpush1.bf16.msra.mxu1 %v2160_v10  ;;  %v2254_v10 = vld [vmem:[%s2640_s8 + $0xe4] ss:$8 sps:$4 sm:$0xff]  }
  0x7a   : > { %1200 = vmatprep.subr.bf16.mxu0 %v2435_v2  ;;  %2087 = vmatprep.subr.bf16.mxu1 %v2435_v2 }
  0x7d   : > { %1201 = vmatpush1.bf16.msra.mxu0 %v2161_v11  ;;  %2103 = vmatpush1.bf16.msra.mxu1 %v2161_v11  ;;  %v2256_v11 = vld [vmem:[%s2640_s8 + $0x1e4] ss:$8 sps:$4 sm:$0xff]  }
  0x7e   : > { %1202 = vmatprep.subr.bf16.mxu0 %v2435_v2  ;;  %2088 = vmatprep.subr.bf16.mxu1 %v2435_v2 }
  0x81   : > { %1203 = vmatpush2.bf16.msra.mxu0 %v2162_v12  ;;  %2104 = vmatpush2.bf16.msra.mxu1 %v2162_v12  ;;  %v2258_v12 = vld [vmem:[%s2640_s8 + $0xe0] ss:$8 sps:$4 sm:$0xff]  }
  0x82   : > { %1204 = vmatprep.subr.bf16.mxu0 %v2435_v2  ;;  %2089 = vmatprep.subr.bf16.mxu1 %v2435_v2 }
  0x85   : > { %1205 = vmatpush2.bf16.msra.mxu0 %v2163_v13  ;;  %2105 = vmatpush2.bf16.msra.mxu1 %v2163_v13  ;;  %v2259_v13 = vld [vmem:[%s2640_s8 + $0x1e0] ss:$8 sps:$4 sm:$0xff]  }
  0x86   : > { %1206 = vmatprep.subr.bf16.mxu0 %v2435_v2  ;;  %2090 = vmatprep.subr.bf16.mxu1 %v2435_v2 }
  0x89   : > { %1207 = vmatpush2.bf16.msra.mxu0 %v2164_v14  ;;  %2106 = vmatpush2.bf16.msra.mxu1 %v2164_v14  ;;  %v2260_v14 = vld [vmem:[%s2640_s8 + $0xf4] ss:$8 sps:$4 sm:$0xff]  }
  0x8a   : > { %1208 = vmatprep.subr.bf16.mxu0 %v2435_v2  ;;  %2091 = vmatprep.subr.bf16.mxu1 %v2435_v2 }
  0x8d   : > { %1209 = vmatpush2.bf16.msra.mxu0 %v2165_v15  ;;  %2107 = vmatpush2.bf16.msra.mxu1 %v2165_v15  ;;  %v2262_v15 = vld [vmem:[%s2640_s8 + $0x1f4] ss:$8 sps:$4 sm:$0xff]  }
  0x8e   : > { %1210 = vmatprep.subr.bf16.mxu0 %v2435_v2  ;;  %2092 = vmatprep.subr.bf16.mxu1 %v2435_v2 }
  0x91   : > { %1211 = vmatpush2.bf16.msra.mxu0 %v2166_v16  ;;  %2108 = vmatpush2.bf16.msra.mxu1 %v2166_v16  ;;  %v2264_v16 = vld [vmem:[%s2640_s8 + $0xf0] ss:$8 sps:$4 sm:$0xff]  }
  0x92   : > { %1212 = vmatprep.subr.bf16.mxu0 %v2435_v2  ;;  %2093 = vmatprep.subr.bf16.mxu1 %v2435_v2 }
  0x95   : > { %1213 = vmatpush2.bf16.msra.mxu0 %v2167_v17  ;;  %2109 = vmatpush2.bf16.msra.mxu1 %v2167_v17  ;;  %v2265_v17 = vld [vmem:[%s2640_s8 + $0x1f0] ss:$8 sps:$4 sm:$0xff]  }
  0x96   : > { %1214 = vmatprep.subr.bf16.mxu0 %v2435_v2  ;;  %2094 = vmatprep.subr.bf16.mxu1 %v2435_v2 }
  0x99   : > { %1215 = vmatpush2.bf16.msra.mxu0 %v2168_v18  ;;  %2110 = vmatpush2.bf16.msra.mxu1 %v2168_v18  ;;  %v610_v18 = vld [vmem:[#allocation2 + $0xb0] sm:$0xff] }
  0x9a   : > { %1216 = vmatprep.subr.bf16.mxu0 %v2435_v2  ;;  %2095 = vmatprep.subr.bf16.mxu1 %v2435_v2  ;;  %v2242_v2 = vld [vmem:[%s2640_s8 + $0xc4] ss:$8 sps:$4 sm:$0xff]  }
  0x9d   : > { %1217 = vmatpush2.bf16.msra.mxu0 %v2169_v19  ;;  %2111 = vmatpush2.bf16.msra.mxu1 %v2169_v19  ;;  %v642_v19 = vld [vmem:[#allocation2 + $0x148] sm:$0xff] }
  0xa0   : > { %1219 = vmatmul.mubr.bf16.vlgmr.msra.gmra.mxu0 %v2170_v20  ;;  %1347 = vmatmul.mubr.bf16.vlgmr.msra.gmra.mxu1 %v2173_v21 }
  0xa1   : > { %1226 = vmatprep.mubr.bf16.mxu0 %v2176_v22  ;;  %1354 = vmatprep.mubr.bf16.mxu1 %v2178_v23 }
  0xa8   : > { %1227 = vmatmul.mubr.bf16.gmra.mxu0 %v2180_v24  ;;  %1355 = vmatmul.mubr.bf16.gmra.mxu1 %v2181_v25 }
  0xa9   : > { %1234 = vmatprep.mubr.bf16.mxu0 %v2182_v26  ;;  %1362 = vmatprep.mubr.bf16.mxu1 %v2184_v27  ;;  %v611_v26 = vld [vmem:[#allocation2 + $0x1b0] sm:$0xff] }
  0xaa   : > { %v643_v27 = vld [vmem:[#allocation2 + $0x1d0] sm:$0xff] }
  0xb0   : > { %1235 = vmatmul.mubr.bf16.gmra.mxu0 %v2186_v28  ;;  %1363 = vmatmul.mubr.bf16.gmra.mxu1 %v2187_v29 }
  0xb1   : > { %1242 = vmatprep.mubr.bf16.mxu0 %v2188_v30  ;;  %1370 = vmatprep.mubr.bf16.mxu1 %v2190_v31 }
  0xb8   : > { %1243 = vmatmul.mubr.bf16.gmra.mxu0 %v2192_v32  ;;  %1371 = vmatmul.mubr.bf16.gmra.mxu1 %v2193_v33 }
  0xb9   : > { %1250 = vmatprep.mubr.bf16.mxu0 %v2194_v34  ;;  %1378 = vmatprep.mubr.bf16.mxu1 %v2196_v35  ;;  %v612_v34 = vld [vmem:[#allocation2 + $0xd8] sm:$0xff]  ;;  %v644_v35 = vld [vmem:[#allocation2 + $0x100] sm:$0xff] }
  0xc0   : > { %1251 = vmatmul.mubr.bf16.gmra.mxu0 %v2198_v36  ;;  %1379 = vmatmul.mubr.bf16.gmra.mxu1 %v2199_v37 }
  0xc1   : > { %1258 = vmatprep.mubr.bf16.mxu0 %v2200_v38  ;;  %1386 = vmatprep.mubr.bf16.mxu1 %v2202_v39 }
  0xc8   : > { %1259 = vmatmul.mubr.bf16.gmra.mxu0 %v2204_v40  ;;  %1387 = vmatmul.mubr.bf16.gmra.mxu1 %v2205_v41 }
  0xc9   : > { %1266 = vmatprep.mubr.bf16.mxu0 %v2206_v42  ;;  %1394 = vmatprep.mubr.bf16.mxu1 %v2208_v43  ;;  %v613_v42 = vld [vmem:[#allocation2 + $0x18] sm:$0xff]  ;;  %v645_v43 = vld [vmem:[#allocation2 + $0xc8] sm:$0xff] }
  0xd0   : > { %1267 = vmatmul.mubr.bf16.gmra.mxu0 %v2210_v44  ;;  %1395 = vmatmul.mubr.bf16.gmra.mxu1 %v2211_v45 }
  0xd1   : > { %1274 = vmatprep.mubr.bf16.mxu0 %v2212_v46  ;;  %1402 = vmatprep.mubr.bf16.mxu1 %v2214_v47 }
  0xd8   : > { %1275 = vmatmul.mubr.bf16.gmra.mxu0 %v2216_v48  ;;  %1403 = vmatmul.mubr.bf16.gmra.mxu1 %v2217_v49 }
  0xd9   : > { %1282 = vmatprep.mubr.bf16.mxu0 %v2218_v50  ;;  %1410 = vmatprep.mubr.bf16.mxu1 %v2220_v51  ;;  %v614_v50 = vld [vmem:[#allocation2 + $0x50] sm:$0xff]  ;;  %v646_v51 = vld [vmem:[#allocation2 + $0x40] sm:$0xff] }
  0xe0   : > { %1283 = vmatmul.mubr.bf16.gmra.mxu0 %v2222_v52  ;;  %1411 = vmatmul.mubr.bf16.gmra.mxu1 %v2223_v53 }
  0xe1   : > { %1290 = vmatprep.mubr.bf16.mxu0 %v2224_v54  ;;  %1418 = vmatprep.mubr.bf16.mxu1 %v2226_v55 }
  0xe8   : > { %1291 = vmatmul.mubr.bf16.gmra.mxu0 %v2228_v56  ;;  %1419 = vmatmul.mubr.bf16.gmra.mxu1 %v2229_v57 }
  0xe9   : > { %1298 = vmatprep.mubr.bf16.mxu0 %v2230_v58  ;;  %1426 = vmatprep.mubr.bf16.mxu1 %v2232_v59  ;;  %v615_v58 = vld [vmem:[#allocation2 + $0x168] sm:$0xff]  ;;  %v647_v59 = vld [vmem:[#allocation2 + $0x1f8] sm:$0xff] }
  0xf0   : > { %1299 = vmatmul.mubr.bf16.gmra.mxu0 %v2234_v60  ;;  %1427 = vmatmul.mubr.bf16.gmra.mxu1 %v2235_v61 }
  0xf1   : > { %1306 = vmatprep.mubr.bf16.mxu0 %v2236_v62  ;;  %1434 = vmatprep.mubr.bf16.mxu1 %v2238_v63 }
  0xf8   : > { %1307 = vmatmul.mubr.bf16.gmra.mxu0 %v2240_v0  ;;  %1435 = vmatmul.mubr.bf16.gmra.mxu1 %v2241_v1 }
  0xf9   : > { %1314 = vmatprep.mubr.bf16.mxu0 %v2242_v2  ;;  %1442 = vmatprep.mubr.bf16.mxu1 %v2244_v3  ;;  %v616_v2 = vld [vmem:[#allocation2 + $0x130] sm:$0xff]  ;;  %v648_v3 = vld [vmem:[#allocation2 + $0x20] sm:$0xff] }
 0x100   : > { %1315 = vmatmul.mubr.bf16.gmra.mxu0 %v2246_v4  ;;  %1443 = vmatmul.mubr.bf16.gmra.mxu1 %v2247_v5 }
 0x101   : > { %1322 = vmatprep.mubr.bf16.mxu0 %v2248_v6  ;;  %1450 = vmatprep.mubr.bf16.mxu1 %v2250_v7 }
 0x108   : > { %1323 = vmatmul.mubr.bf16.gmra.mxu0 %v2252_v8  ;;  %1451 = vmatmul.mubr.bf16.gmra.mxu1 %v2253_v9 }
 0x109   : > { %1330 = vmatprep.mubr.bf16.mxu0 %v2254_v10  ;;  %1458 = vmatprep.mubr.bf16.mxu1 %v2256_v11  ;;  %v617_v10 = vld [vmem:[#allocation2 + $0x48] sm:$0xff] }
 0x10a   : > { %v649_v11 = vld [vmem:[#allocation2 + $0x128] sm:$0xff] }
 0x110   : > { %1331 = vmatmul.mubr.bf16.gmra.mxu0 %v2258_v12  ;;  %1459 = vmatmul.mubr.bf16.gmra.mxu1 %v2259_v13 }
 0x111   : > { %1338 = vmatprep.mubr.bf16.mxu0 %v2260_v14  ;;  %1466 = vmatprep.mubr.bf16.mxu1 %v2262_v15 }
 0x118   : > { %1339 = vmatmul.mubr.bf16.gmra.mxu0 %v2264_v16  ;;  %1467 = vmatmul.mubr.bf16.gmra.mxu1 %v2265_v17 }
 0x160   : > { %v1220_v20 = vpop.f32.mrf.mxu0  ;;  %v1348_v21 = vpop.f32.mrf.mxu1 }
 0x161   : > { %v1475_v22 = vadd.f32 %v1220_v20, %v610_v18  ;;  %v1507_v23 = vadd.f32 %v1348_v21, %v642_v19  ;;  %v618_v18 = vld [vmem:[#allocation2 + $0x180] sm:$0xff] }
 0x162   : > { %v1222_v24 = vpop.f32.mrf.mxu0  ;;  %v1350_v25 = vpop.f32.mrf.mxu1  ;;  %v650_v19 = vld [vmem:[#allocation2 + $0x1a0] sm:$0xff] }
 0x163   : > { %1539 = vst [vmem:[#allocation2 + $0xb0] sm:$0xff] %v1475_v22  ;;  %1571 = vst [vmem:[#allocation2 + $0x148] sm:$0xff] %v1507_v23 }
 0x164   : > { %v1223_v28 = vpop.f32.mrf.mxu0  ;;  %v1351_v29 = vpop.f32.mrf.mxu1 }
 0x165   : > { %v1476_v30 = vadd.f32 %v1223_v28, %v611_v26  ;;  %v1508_v31 = vadd.f32 %v1351_v29, %v643_v27  ;;  %v619_v26 = vld [vmem:[#allocation2 + $0x110] sm:$0xff] }
 0x166   : > { %v1225_v32 = vpop.f32.mrf.mxu0  ;;  %v1353_v33 = vpop.f32.mrf.mxu1  ;;  %v651_v27 = vld [vmem:[#allocation2 + $0x1f0] sm:$0xff] }
 0x167   : > { %1540 = vst [vmem:[#allocation2 + $0x1b0] sm:$0xff] %v1476_v30  ;;  %1572 = vst [vmem:[#allocation2 + $0x1d0] sm:$0xff] %v1508_v31 }
 0x168   : > { %v1228_v36 = vpop.f32.mrf.mxu0  ;;  %v1356_v37 = vpop.f32.mrf.mxu1 }
 0x169   : > { %v1477_v38 = vadd.f32 %v1228_v36, %v612_v34  ;;  %v1509_v39 = vadd.f32 %v1356_v37, %v644_v35  ;;  %v620_v34 = vld [vmem:[#allocation2 + $0x118] sm:$0xff]  ;;  %v652_v35 = vld [vmem:[#allocation2 + $0xe8] sm:$0xff] }
 0x16a   : > { %v1230_v40 = vpop.f32.mrf.mxu0  ;;  %v1358_v41 = vpop.f32.mrf.mxu1 }
 0x16b   : > { %1541 = vst [vmem:[#allocation2 + $0xd8] sm:$0xff] %v1477_v38  ;;  %1573 = vst [vmem:[#allocation2 + $0x100] sm:$0xff] %v1509_v39 }
 0x16c   : > { %v1231_v44 = vpop.f32.mrf.mxu0  ;;  %v1359_v45 = vpop.f32.mrf.mxu1 }
 0x16d   : > { %v1478_v46 = vadd.f32 %v1231_v44, %v613_v42  ;;  %v1510_v47 = vadd.f32 %v1359_v45, %v645_v43  ;;  %v621_v42 = vld [vmem:[#allocation2 + $0x98] sm:$0xff] }
 0x16e   : > { %v1233_v48 = vpop.f32.mrf.mxu0  ;;  %v1361_v49 = vpop.f32.mrf.mxu1  ;;  %v653_v43 = vld [vmem:[#allocation2 + $0x78] sm:$0xff] }
 0x16f   : > { %1542 = vst [vmem:[#allocation2 + $0x18] sm:$0xff] %v1478_v46  ;;  %1574 = vst [vmem:[#allocation2 + $0xc8] sm:$0xff] %v1510_v47 }
 0x170   : > { %v1236_v52 = vpop.f32.mrf.mxu0  ;;  %v1364_v53 = vpop.f32.mrf.mxu1 }
 0x171   : > { %v1479_v54 = vadd.f32 %v1236_v52, %v614_v50  ;;  %v1511_v55 = vadd.f32 %v1364_v53, %v646_v51  ;;  %v622_v50 = vld [vmem:[#allocation2 + $0x120] sm:$0xff]  ;;  %v654_v51 = vld [vmem:[#allocation2 + $0x70] sm:$0xff] }
 0x172   : > { %v1238_v56 = vpop.f32.mrf.mxu0  ;;  %v1366_v57 = vpop.f32.mrf.mxu1 }
 0x173   : > { %1543 = vst [vmem:[#allocation2 + $0x50] sm:$0xff] %v1479_v54  ;;  %1575 = vst [vmem:[#allocation2 + $0x40] sm:$0xff] %v1511_v55 }
 0x174   : > { %v1239_v60 = vpop.f32.mrf.mxu0  ;;  %v1367_v61 = vpop.f32.mrf.mxu1 }
 0x175   : > { %v1480_v62 = vadd.f32 %v1239_v60, %v615_v58  ;;  %v1512_v63 = vadd.f32 %v1367_v61, %v647_v59  ;;  %v623_v58 = vld [vmem:[#allocation2 + $0x150] sm:$0xff] }
 0x176   : > { %v1241_v0 = vpop.f32.mrf.mxu0  ;;  %v1369_v1 = vpop.f32.mrf.mxu1  ;;  %v655_v59 = vld [vmem:[#allocation2 + $0x90] sm:$0xff] }
 0x177   : > { %1544 = vst [vmem:[#allocation2 + $0x168] sm:$0xff] %v1480_v62  ;;  %1576 = vst [vmem:[#allocation2 + $0x1f8] sm:$0xff] %v1512_v63 }
 0x178   : > { %v1244_v4 = vpop.f32.mrf.mxu0  ;;  %v1372_v5 = vpop.f32.mrf.mxu1 }
 0x179   : > { %v1481_v6 = vadd.f32 %v1244_v4, %v616_v2  ;;  %v1513_v7 = vadd.f32 %v1372_v5, %v648_v3  ;;  %v624_v2 = vld [vmem:[#allocation2 + $0x108] sm:$0xff]  ;;  %v656_v3 = vld [vmem:[#allocation2 + $0x1d8] sm:$0xff] }
 0x17a   : > { %v1246_v8 = vpop.f32.mrf.mxu0  ;;  %v1374_v9 = vpop.f32.mrf.mxu1 }
 0x17b   : > { %1545 = vst [vmem:[#allocation2 + $0x130] sm:$0xff] %v1481_v6  ;;  %1577 = vst [vmem:[#allocation2 + $0x20] sm:$0xff] %v1513_v7 }
 0x17c   : > { %v1247_v12 = vpop.f32.mrf.mxu0  ;;  %v1375_v13 = vpop.f32.mrf.mxu1 }
 0x17d   : > { %v1482_v14 = vadd.f32 %v1247_v12, %v617_v10  ;;  %v1514_v15 = vadd.f32 %v1375_v13, %v649_v11  ;;  %v625_v10 = vld [vmem:[#allocation2 + $0x60] sm:$0xff]  ;;  %v657_v11 = vld [vmem:[#allocation2 + $0xd0] sm:$0xff] }
 0x17e   : > { %v1249_v16 = vpop.f32.mrf.mxu0  ;;  %v1377_v17 = vpop.f32.mrf.mxu1 }
 0x17f   : > { %1546 = vst [vmem:[#allocation2 + $0x48] sm:$0xff] %v1482_v14  ;;  %1578 = vst [vmem:[#allocation2 + $0x128] sm:$0xff] %v1514_v15 }
 0x180   : > { %v1252_v20 = vpop.f32.mrf.mxu0  ;;  %v1380_v21 = vpop.f32.mrf.mxu1 }
 0x181   : > { %v1483_v22 = vadd.f32 %v1252_v20, %v618_v18  ;;  %v1515_v23 = vadd.f32 %v1380_v21, %v650_v19  ;;  %v626_v18 = vld [vmem:[#allocation2 + $0xe0] sm:$0xff]  ;;  %v658_v19 = vld [vmem:[#allocation2 + $0xb8] sm:$0xff] }
 0x182   : > { %v1254_v24 = vpop.f32.mrf.mxu0  ;;  %v1382_v25 = vpop.f32.mrf.mxu1 }
 0x183   : > { %1547 = vst [vmem:[#allocation2 + $0x180] sm:$0xff] %v1483_v22  ;;  %1579 = vst [vmem:[#allocation2 + $0x1a0] sm:$0xff] %v1515_v23 }
 0x184   : > { %v1255_v28 = vpop.f32.mrf.mxu0  ;;  %v1383_v29 = vpop.f32.mrf.mxu1 }
 0x185   : > { %v1484_v30 = vadd.f32 %v1255_v28, %v619_v26  ;;  %v1516_v31 = vadd.f32 %v1383_v29, %v651_v27  ;;  %v627_v26 = vld [vmem:[#allocation2 + $0x188] sm:$0xff] }
 0x186   : > { %v1257_v32 = vpop.f32.mrf.mxu0  ;;  %v1385_v33 = vpop.f32.mrf.mxu1  ;;  %v659_v27 = vld [vmem:[#allocation2 + $0x88] sm:$0xff] }
 0x187   : > { %1548 = vst [vmem:[#allocation2 + $0x110] sm:$0xff] %v1484_v30  ;;  %1580 = vst [vmem:[#allocation2 + $0x1f0] sm:$0xff] %v1516_v31 }
 0x188   : > { %v1260_v36 = vpop.f32.mrf.mxu0  ;;  %v1388_v37 = vpop.f32.mrf.mxu1 }
 0x189   : > { %v1485_v38 = vadd.f32 %v1260_v36, %v620_v34  ;;  %v1517_v39 = vadd.f32 %v1388_v37, %v652_v35  ;;  %v628_v34 = vld [vmem:[#allocation2 + $0x138] sm:$0xff]  ;;  %v660_v35 = vld [vmem:[#allocation2 + $0xa8] sm:$0xff] }
 0x18a   : > { %v1262_v40 = vpop.f32.mrf.mxu0  ;;  %v1390_v41 = vpop.f32.mrf.mxu1 }
 0x18b   : > { %1549 = vst [vmem:[#allocation2 + $0x118] sm:$0xff] %v1485_v38  ;;  %1581 = vst [vmem:[#allocation2 + $0xe8] sm:$0xff] %v1517_v39 }
 0x18c   : > { %v1263_v44 = vpop.f32.mrf.mxu0  ;;  %v1391_v45 = vpop.f32.mrf.mxu1 }
 0x18d   : > { %v1486_v46 = vadd.f32 %v1263_v44, %v621_v42  ;;  %v1518_v47 = vadd.f32 %v1391_v45, %v653_v43  ;;  %v629_v42 = vld [vmem:[#allocation2 + $0x140] sm:$0xff]  ;;  %v661_v43 = vld [vmem:[#allocation2 + $0x1c8] sm:$0xff] }
 0x18e   : > { %v1265_v48 = vpop.f32.mrf.mxu0  ;;  %v1393_v49 = vpop.f32.mrf.mxu1 }
 0x18f   : > { %1550 = vst [vmem:[#allocation2 + $0x98] sm:$0xff] %v1486_v46  ;;  %1582 = vst [vmem:[#allocation2 + $0x78] sm:$0xff] %v1518_v47 }
 0x190   : > { %v1268_v52 = vpop.f32.mrf.mxu0  ;;  %v1396_v53 = vpop.f32.mrf.mxu1 }
 0x191   : > { %v1487_v54 = vadd.f32 %v1268_v52, %v622_v50  ;;  %v1519_v55 = vadd.f32 %v1396_v53, %v654_v51  ;;  %v630_v50 = vld [vmem:[#allocation2 + $0x80] sm:$0xff]  ;;  %v662_v51 = vld [vmem:[#allocation2 + $0x170] sm:$0xff] }
 0x192   : > { %v1270_v56 = vpop.f32.mrf.mxu0  ;;  %v1398_v57 = vpop.f32.mrf.mxu1 }
 0x193   : > { %1551 = vst [vmem:[#allocation2 + $0x120] sm:$0xff] %v1487_v54  ;;  %1583 = vst [vmem:[#allocation2 + $0x70] sm:$0xff] %v1519_v55 }
 0x194   : > { %v1271_v60 = vpop.f32.mrf.mxu0  ;;  %v1399_v61 = vpop.f32.mrf.mxu1 }
 0x195   : > { %v1488_v62 = vadd.f32 %v1271_v60, %v623_v58  ;;  %v1520_v63 = vadd.f32 %v1399_v61, %v655_v59  ;;  %v631_v58 = vld [vmem:[#allocation2 + $0x1a8] sm:$0xff]  ;;  %v663_v59 = vld [vmem:[#allocation2 + $0x178] sm:$0xff] }
 0x196   : > { %v1273_v0 = vpop.f32.mrf.mxu0  ;;  %v1401_v1 = vpop.f32.mrf.mxu1 }
 0x197   : > { %1552 = vst [vmem:[#allocation2 + $0x150] sm:$0xff] %v1488_v62  ;;  %1584 = vst [vmem:[#allocation2 + $0x90] sm:$0xff] %v1520_v63 }
 0x198   : > { %v1276_v4 = vpop.f32.mrf.mxu0  ;;  %v1404_v5 = vpop.f32.mrf.mxu1 }
 0x199   : > { %v1489_v6 = vadd.f32 %v1276_v4, %v624_v2  ;;  %v1521_v7 = vadd.f32 %v1404_v5, %v656_v3  ;;  %v632_v2 = vld [vmem:[#allocation2 + $0x1b8] sm:$0xff]  ;;  %v664_v3 = vld [vmem:[#allocation2 + $0x68] sm:$0xff] }
 0x19a   : > { %v1278_v8 = vpop.f32.mrf.mxu0  ;;  %v1406_v9 = vpop.f32.mrf.mxu1 }
 0x19b   : > { %1553 = vst [vmem:[#allocation2 + $0x108] sm:$0xff] %v1489_v6  ;;  %1585 = vst [vmem:[#allocation2 + $0x1d8] sm:$0xff] %v1521_v7 }
 0x19c   : > { %v1279_v12 = vpop.f32.mrf.mxu0  ;;  %v1407_v13 = vpop.f32.mrf.mxu1 }
 0x19d   : > { %v1490_v14 = vadd.f32 %v1279_v12, %v625_v10  ;;  %v1522_v15 = vadd.f32 %v1407_v13, %v657_v11  ;;  %v633_v10 = vld [vmem:[#allocation2 + $0x28] sm:$0xff]  ;;  %v665_v11 = vld [vmem:[#allocation2 + $0x190] sm:$0xff] }
 0x19e   : > { %v1281_v16 = vpop.f32.mrf.mxu0  ;;  %v1409_v17 = vpop.f32.mrf.mxu1 }
 0x19f   : > { %1554 = vst [vmem:[#allocation2 + $0x60] sm:$0xff] %v1490_v14  ;;  %1586 = vst [vmem:[#allocation2 + $0xd0] sm:$0xff] %v1522_v15 }
 0x1a0   : > { %v1284_v20 = vpop.f32.mrf.mxu0  ;;  %v1412_v21 = vpop.f32.mrf.mxu1 }
 0x1a1   : > { %v1491_v22 = vadd.f32 %v1284_v20, %v626_v18  ;;  %v1523_v23 = vadd.f32 %v1412_v21, %v658_v19  ;;  %v634_v18 = vld [vmem:[#allocation2 + $0x1e8] sm:$0xff]  ;;  %v666_v19 = vld [vmem:[#allocation2 + $0x198] sm:$0xff] }
 0x1a2   : > { %v1286_v24 = vpop.f32.mrf.mxu0  ;;  %v1414_v25 = vpop.f32.mrf.mxu1 }
 0x1a3   : > { %1555 = vst [vmem:[#allocation2 + $0xe0] sm:$0xff] %v1491_v22  ;;  %1587 = vst [vmem:[#allocation2 + $0xb8] sm:$0xff] %v1523_v23 }
 0x1a4   : > { %v1287_v28 = vpop.f32.mrf.mxu0  ;;  %v1415_v29 = vpop.f32.mrf.mxu1 }
 0x1a5   : > { %v1492_v30 = vadd.f32 %v1287_v28, %v627_v26  ;;  %v1524_v31 = vadd.f32 %v1415_v29, %v659_v27  ;;  %v635_v26 = vld [vmem:[#allocation2 + $0xf8] sm:$0xff] }
 0x1a6   : > { %v1289_v32 = vpop.f32.mrf.mxu0  ;;  %v1417_v33 = vpop.f32.mrf.mxu1  ;;  %v667_v27 = vld [vmem:[#allocation2 + $0x38] sm:$0xff] }
 0x1a7   : > { %1556 = vst [vmem:[#allocation2 + $0x188] sm:$0xff] %v1492_v30  ;;  %1588 = vst [vmem:[#allocation2 + $0x88] sm:$0xff] %v1524_v31 }
 0x1a8   : > { %v1292_v36 = vpop.f32.mrf.mxu0  ;;  %v1420_v37 = vpop.f32.mrf.mxu1 }
 0x1a9   : > { %v1493_v38 = vadd.f32 %v1292_v36, %v628_v34  ;;  %v1525_v39 = vadd.f32 %v1420_v37, %v660_v35  ;;  %v636_v34 = vld [vmem:[#allocation2 + $0x160] sm:$0xff] }
 0x1aa   : > { %v1294_v40 = vpop.f32.mrf.mxu0  ;;  %v1422_v41 = vpop.f32.mrf.mxu1  ;;  %v668_v35 = vld [vmem:[#allocation2 + $0xc0] sm:$0xff] }
 0x1ab   : > { %1557 = vst [vmem:[#allocation2 + $0x138] sm:$0xff] %v1493_v38  ;;  %1589 = vst [vmem:[#allocation2 + $0xa8] sm:$0xff] %v1525_v39 }
 0x1ac   : > { %v1295_v44 = vpop.f32.mrf.mxu0  ;;  %v1423_v45 = vpop.f32.mrf.mxu1 }
 0x1ad   : > { %v1494_v46 = vadd.f32 %v1295_v44, %v629_v42  ;;  %v1526_v47 = vadd.f32 %v1423_v45, %v661_v43  ;;  %v637_v42 = vld [vmem:[#allocation2 + $0x30] sm:$0xff]  ;;  %v669_v43 = vld [vmem:[#allocation2 + $0x1c0] sm:$0xff] }
 0x1ae   : > { %v1297_v48 = vpop.f32.mrf.mxu0  ;;  %v1425_v49 = vpop.f32.mrf.mxu1 }
 0x1af   : > { %1558 = vst [vmem:[#allocation2 + $0x140] sm:$0xff] %v1494_v46  ;;  %1590 = vst [vmem:[#allocation2 + $0x1c8] sm:$0xff] %v1526_v47 }
 0x1b0   : > { %v1300_v52 = vpop.f32.mrf.mxu0  ;;  %v1428_v53 = vpop.f32.mrf.mxu1 }
 0x1b1   : > { %v1495_v54 = vadd.f32 %v1300_v52, %v630_v50  ;;  %v1527_v55 = vadd.f32 %v1428_v53, %v662_v51  ;;  %v638_v50 = vld [vmem:[#allocation2 + $0x1e0] sm:$0xff]  ;;  %v670_v51 = vld [vmem:[#allocation2 + $0x158] sm:$0xff] }
 0x1b2   : > { %v1302_v56 = vpop.f32.mrf.mxu0  ;;  %v1430_v57 = vpop.f32.mrf.mxu1 }
 0x1b3   : > { %1559 = vst [vmem:[#allocation2 + $0x80] sm:$0xff] %v1495_v54  ;;  %1591 = vst [vmem:[#allocation2 + $0x170] sm:$0xff] %v1527_v55 }
 0x1b4   : > { %v1303_v60 = vpop.f32.mrf.mxu0  ;;  %v1431_v61 = vpop.f32.mrf.mxu1 }
 0x1b5   : > { %v1496_v62 = vadd.f32 %v1303_v60, %v631_v58  ;;  %v1528_v63 = vadd.f32 %v1431_v61, %v663_v59  ;;  %v639_v58 = vld [vmem:[#allocation2] sm:$0xff]  ;;  %v671_v59 = vld [vmem:[#allocation2 + $0x10] sm:$0xff] }
 0x1b6   : > { %v1305_v0 = vpop.f32.mrf.mxu0  ;;  %v1433_v1 = vpop.f32.mrf.mxu1 }
 0x1b7   : > { %1560 = vst [vmem:[#allocation2 + $0x1a8] sm:$0xff] %v1496_v62  ;;  %1592 = vst [vmem:[#allocation2 + $0x178] sm:$0xff] %v1528_v63 }
 0x1b8   : > { %v1308_v4 = vpop.f32.mrf.mxu0  ;;  %v1436_v5 = vpop.f32.mrf.mxu1 }
 0x1b9   : > { %v1497_v6 = vadd.f32 %v1308_v4, %v632_v2  ;;  %v1529_v7 = vadd.f32 %v1436_v5, %v664_v3  ;;  %v640_v2 = vld [vmem:[#allocation2 + $0xf0] sm:$0xff]  ;;  %v672_v3 = vld [vmem:[#allocation2 + $0x58] sm:$0xff] }
 0x1ba   : > { %v1310_v8 = vpop.f32.mrf.mxu0  ;;  %v1438_v9 = vpop.f32.mrf.mxu1 }
 0x1bb   : > { %1561 = vst [vmem:[#allocation2 + $0x1b8] sm:$0xff] %v1497_v6  ;;  %1593 = vst [vmem:[#allocation2 + $0x68] sm:$0xff] %v1529_v7 }
 0x1bc   : > { %v1311_v12 = vpop.f32.mrf.mxu0  ;;  %v1439_v13 = vpop.f32.mrf.mxu1 }
 0x1bd   : > { %v1498_v14 = vadd.f32 %v1311_v12, %v633_v10  ;;  %v1530_v15 = vadd.f32 %v1439_v13, %v665_v11  ;;  %v641_v10 = vld [vmem:[#allocation2 + $0x8] sm:$0xff]  ;;  %v673_v11 = vld [vmem:[#allocation2 + $0xa0] sm:$0xff] }
 0x1be   : > { %v1313_v16 = vpop.f32.mrf.mxu0  ;;  %v1441_v17 = vpop.f32.mrf.mxu1 }
 0x1bf   : > { %1562 = vst [vmem:[#allocation2 + $0x28] sm:$0xff] %v1498_v14  ;;  %1594 = vst [vmem:[#allocation2 + $0x190] sm:$0xff] %v1530_v15 }
 0x1c0   : > { %v1316_v20 = vpop.f32.mrf.mxu0  ;;  %v1444_v21 = vpop.f32.mrf.mxu1 }
 0x1c1   : > { %v1499_v22 = vadd.f32 %v1316_v20, %v634_v18  ;;  %v1531_v23 = vadd.f32 %v1444_v21, %v666_v19 }
 0x1c2   : > { %v1318_v24 = vpop.f32.mrf.mxu0  ;;  %v1446_v25 = vpop.f32.mrf.mxu1 }
 0x1c3   : > { %1563 = vst [vmem:[#allocation2 + $0x1e8] sm:$0xff] %v1499_v22  ;;  %1595 = vst [vmem:[#allocation2 + $0x198] sm:$0xff] %v1531_v23 }
 0x1c4   : > { %v1319_v28 = vpop.f32.mrf.mxu0  ;;  %v1447_v29 = vpop.f32.mrf.mxu1 }
 0x1c5   : > { %v1500_v30 = vadd.f32 %v1319_v28, %v635_v26  ;;  %v1532_v31 = vadd.f32 %v1447_v29, %v667_v27 }
 0x1c6   : > { %v1321_v32 = vpop.f32.mrf.mxu0  ;;  %v1449_v33 = vpop.f32.mrf.mxu1 }
 0x1c7   : > { %1564 = vst [vmem:[#allocation2 + $0xf8] sm:$0xff] %v1500_v30  ;;  %1596 = vst [vmem:[#allocation2 + $0x38] sm:$0xff] %v1532_v31 }
 0x1c8   : > { %v1324_v36 = vpop.f32.mrf.mxu0  ;;  %v1452_v37 = vpop.f32.mrf.mxu1 }
 0x1c9   : > { %v1501_v38 = vadd.f32 %v1324_v36, %v636_v34  ;;  %v1533_v39 = vadd.f32 %v1452_v37, %v668_v35 }
 0x1ca   : > { %v1326_v40 = vpop.f32.mrf.mxu0  ;;  %v1454_v41 = vpop.f32.mrf.mxu1 }
 0x1cb   : > { %1565 = vst [vmem:[#allocation2 + $0x160] sm:$0xff] %v1501_v38  ;;  %1597 = vst [vmem:[#allocation2 + $0xc0] sm:$0xff] %v1533_v39 }
 0x1cc   : > { %v1327_v44 = vpop.f32.mrf.mxu0  ;;  %v1455_v45 = vpop.f32.mrf.mxu1 }
 0x1cd   : > { %v1502_v46 = vadd.f32 %v1327_v44, %v637_v42  ;;  %v1534_v47 = vadd.f32 %v1455_v45, %v669_v43 }
 0x1ce   : > { %v1329_v48 = vpop.f32.mrf.mxu0  ;;  %v1457_v49 = vpop.f32.mrf.mxu1 }
 0x1cf   : > { %1566 = vst [vmem:[#allocation2 + $0x30] sm:$0xff] %v1502_v46  ;;  %1598 = vst [vmem:[#allocation2 + $0x1c0] sm:$0xff] %v1534_v47 }
 0x1d0   : > { %v1332_v52 = vpop.f32.mrf.mxu0  ;;  %v1460_v53 = vpop.f32.mrf.mxu1 }
 0x1d1   : > { %v1503_v54 = vadd.f32 %v1332_v52, %v638_v50  ;;  %v1535_v55 = vadd.f32 %v1460_v53, %v670_v51 }
 0x1d2   : > { %v1334_v56 = vpop.f32.mrf.mxu0  ;;  %v1462_v57 = vpop.f32.mrf.mxu1 }
 0x1d3   : > { %1567 = vst [vmem:[#allocation2 + $0x1e0] sm:$0xff] %v1503_v54  ;;  %1599 = vst [vmem:[#allocation2 + $0x158] sm:$0xff] %v1535_v55 }
 0x1d4   : > { %v1335_v60 = vpop.f32.mrf.mxu0  ;;  %v1463_v61 = vpop.f32.mrf.mxu1 }
 0x1d5   : > { %v1504_v62 = vadd.f32 %v1335_v60, %v639_v58  ;;  %v1536_v63 = vadd.f32 %v1463_v61, %v671_v59 }
 0x1d6   : > { %v1337_v0 = vpop.f32.mrf.mxu0  ;;  %v1465_v1 = vpop.f32.mrf.mxu1 }
 0x1d7   : > { %1568 = vst [vmem:[#allocation2] sm:$0xff] %v1504_v62  ;;  %1600 = vst [vmem:[#allocation2 + $0x10] sm:$0xff] %v1536_v63 }
 0x1d8   : > { %v1340_v4 = vpop.f32.mrf.mxu0  ;;  %v1468_v5 = vpop.f32.mrf.mxu1 }
 0x1d9   : > { %v1505_v6 = vadd.f32 %v1340_v4, %v640_v2  ;;  %v1537_v7 = vadd.f32 %v1468_v5, %v672_v3 }
 0x1da   : > { %v1342_v8 = vpop.f32.mrf.mxu0  ;;  %v1470_v9 = vpop.f32.mrf.mxu1 }
 0x1db   : > { %1569 = vst [vmem:[#allocation2 + $0xf0] sm:$0xff] %v1505_v6  ;;  %1601 = vst [vmem:[#allocation2 + $0x58] sm:$0xff] %v1537_v7  ;;  %1606 = sbr.rel (%p2073_p11) target bundleno = 561 (0x231), region = 78 }
 0x1dc   : > { %v1343_v12 = vpop.f32.mrf.mxu0  ;;  %v1471_v13 = vpop.f32.mrf.mxu1 }
 0x1dd   : > { %v1506_v14 = vadd.f32 %v1343_v12, %v641_v10  ;;  %v1538_v15 = vadd.f32 %v1471_v13, %v673_v11 }
 0x1de   : > { %v1345_v16 = vpop.f32.mrf.mxu0  ;;  %v1473_v17 = vpop.f32.mrf.mxu1 }
 0x1df   : > { %1570 = vst [vmem:[#allocation2 + $0x8] sm:$0xff] %v1506_v14  ;;  %1602 = vst [vmem:[#allocation2 + $0xa0] sm:$0xff] %v1538_v15 }
 0x1e0   : > { %v1607_v18 = vld [vmem:[#allocation2 + $0xb0] sm:$0xff]  ;;  %v2823_v19 = vld [vmem:[%s3098_s2] ss:$0 sm:$0xff]  ;;  %v1609_v23 = vld [vmem:[#allocation2 + $0xd8] sm:$0xff] }
 0x1e1   : > { %v1608_v20 = vld [vmem:[#allocation2 + $0x1b0] sm:$0xff]  ;;  %v1678_v21 = vadd.f32 %v2823_v19, %v1607_v18  ;;  %v1610_v24 = vld [vmem:[#allocation2 + $0x18] sm:$0xff]  ;;  %v1680_v26 = vadd.f32 %v2823_v19, %v1609_v23  ;;  %v1612_v28 = vld [vmem:[#allocation2 + $0x168] sm:$0xff] }
 0x1e2   : > { %v1679_v22 = vadd.f32 %v2823_v19, %v1608_v20  ;;  %v1611_v25 = vld [vmem:[#allocation2 + $0x50] sm:$0xff]  ;;  %v1681_v27 = vadd.f32 %v2823_v19, %v1610_v24  ;;  %v1614_v31 = vld [vmem:[#allocation2 + $0x48] sm:$0xff]  ;;  %v1683_v32 = vadd.f32 %v2823_v19, %v1612_v28  ;;  %v1615_v33 = vld [vmem:[#allocation2 + $0x180] sm:$0xff] }
 0x1e3   : > { %v1613_v29 = vld [vmem:[#allocation2 + $0x130] sm:$0xff]  ;;  %2266 = vtanh.f32 %v1678_v21  ;;  %v1682_v30 = vadd.f32 %v2823_v19, %v1611_v25  ;;  %v1685_v36 = vadd.f32 %v2823_v19, %v1614_v31  ;;  %v1617_v37 = vld [vmem:[#allocation2 + $0x118] sm:$0xff]  ;;  %v1686_v38 = vadd.f32 %v2823_v19, %v1615_v33  ;;  %v1619_v41 = vld [vmem:[#allocation2 + $0x120] sm:$0xff] }
 0x1e4   : > { %2268 = vtanh.f32 %v1679_v22  ;;  %v1684_v34 = vadd.f32 %v2823_v19, %v1613_v29  ;;  %v1616_v35 = vld [vmem:[#allocation2 + $0x110] sm:$0xff]  ;;  %v1618_v39 = vld [vmem:[#allocation2 + $0x98] sm:$0xff]  ;;  %v1688_v42 = vadd.f32 %v2823_v19, %v1617_v37  ;;  %v1621_v45 = vld [vmem:[#allocation2 + $0x108] sm:$0xff]  ;;  %v1690_v46 = vadd.f32 %v2823_v19, %v1619_v41 }
 0x1e5   : > { %2270 = vtanh.f32 %v1680_v26  ;;  %v1687_v40 = vadd.f32 %v2823_v19, %v1616_v35  ;;  %v1620_v43 = vld [vmem:[#allocation2 + $0x150] sm:$0xff]  ;;  %v1689_v44 = vadd.f32 %v2823_v19, %v1618_v39  ;;  %v1622_v47 = vld [vmem:[#allocation2 + $0x60] sm:$0xff]  ;;  %v1692_v50 = vadd.f32 %v2823_v19, %v1621_v45  ;;  %v1624_v51 = vld [vmem:[#allocation2 + $0x188] sm:$0xff] }
 0x1e6   : > { %2272 = vtanh.f32 %v1681_v27  ;;  %v1691_v48 = vadd.f32 %v2823_v19, %v1620_v43  ;;  %v1623_v49 = vld [vmem:[#allocation2 + $0xe0] sm:$0xff]  ;;  %v1693_v52 = vadd.f32 %v2823_v19, %v1622_v47  ;;  %v1625_v53 = vld [vmem:[#allocation2 + $0x138] sm:$0xff]  ;;  %v1695_v57 = vadd.f32 %v2823_v19, %v1624_v51  ;;  %v1628_v61 = vld [vmem:[#allocation2 + $0x1a8] sm:$0xff] }
 0x1e7   : > { %2274 = vtanh.f32 %v1682_v30  ;;  %v1694_v54 = vadd.f32 %v2823_v19, %v1623_v49  ;;  %v1626_v55 = vld [vmem:[#allocation2 + $0x140] sm:$0xff]  ;;  %v1696_v60 = vadd.f32 %v2823_v19, %v1625_v53  ;;  %v1629_v0 = vld [vmem:[#allocation2 + $0x1b8] sm:$0xff]  ;;  %v1630_v3 = vld [vmem:[#allocation2 + $0x28] sm:$0xff]  ;;  %v1699_v5 = vadd.f32 %v2823_v19, %v1628_v61 }
 0x1e8   : > { %2276 = vtanh.f32 %v1683_v32  ;;  %v1627_v58 = vld [vmem:[#allocation2 + $0x80] sm:$0xff]  ;;  %v1697_v63 = vadd.f32 %v2823_v19, %v1626_v55  ;;  %v1631_v6 = vld [vmem:[#allocation2 + $0x1e8] sm:$0xff]  ;;  %v1700_v8 = vadd.f32 %v2823_v19, %v1629_v0  ;;  %v1632_v9 = vld [vmem:[#allocation2 + $0xf8] sm:$0xff]  ;;  %v1701_v11 = vadd.f32 %v2823_v19, %v1630_v3 }
 0x1e9   : > { %2278 = vtanh.f32 %v1684_v34  ;;  %v1698_v2 = vadd.f32 %v2823_v19, %v1627_v58  ;;  %v1633_v12 = vld [vmem:[#allocation2 + $0x160] sm:$0xff]  ;;  %v1702_v14 = vadd.f32 %v2823_v19, %v1631_v6  ;;  %v1634_v15 = vld [vmem:[#allocation2 + $0x30] sm:$0xff]  ;;  %v1703_v17 = vadd.f32 %v2823_v19, %v1632_v9  ;;  %v1638_v28 = vld [vmem:[#allocation2 + $0x8] sm:$0xff] }
 0x1ea   : > { %2280 = vtanh.f32 %v1685_v36  ;;  %v1635_v18 = vld [vmem:[#allocation2 + $0x1e0] sm:$0xff]  ;;  %v1704_v21 = vadd.f32 %v2823_v19, %v1633_v12  ;;  %v1705_v24 = vadd.f32 %v2823_v19, %v1634_v15  ;;  %v1637_v25 = vld [vmem:[#allocation2 + $0xf0] sm:$0xff]  ;;  %v1639_v31 = vld [vmem:[#allocation2 + $0x148] sm:$0xff]  ;;  %v1709_v36 = vadd.f32 %v2823_v19, %v1638_v28 }
 0x1eb   : > { %2282 = vtanh.f32 %v1686_v38  ;;  %v1636_v22 = vld [vmem:[#allocation2] sm:$0xff]  ;;  %v1706_v27 = vadd.f32 %v2823_v19, %v1635_v18  ;;  %v1708_v33 = vadd.f32 %v2823_v19, %v1637_v25  ;;  %v1640_v34 = vld [vmem:[#allocation2 + $0x1d0] sm:$0xff]  ;;  %v1710_v39 = vadd.f32 %v2823_v19, %v1639_v31  ;;  %v1649_v61 = vld [vmem:[#allocation2 + $0xe8] sm:$0xff] }
 0x1ec   : > { %2284 = vtanh.f32 %v1687_v40  ;;  %v1707_v30 = vadd.f32 %v2823_v19, %v1636_v22  ;;  %v1641_v37 = vld [vmem:[#allocation2 + $0x100] sm:$0xff]  ;;  %v1642_v40 = vld [vmem:[#allocation2 + $0xc8] sm:$0xff]  ;;  %v1648_v58 = vld [vmem:[#allocation2 + $0x1f0] sm:$0xff] }
 0x1ed   : > { %2286 = vtanh.f32 %v1688_v42  ;;  %v1711_v42 = vadd.f32 %v2823_v19, %v1640_v34  ;;  %v1643_v43 = vld [vmem:[#allocation2 + $0x40] sm:$0xff]  ;;  %v1712_v45 = vadd.f32 %v2823_v19, %v1641_v37  ;;  %v1650_v0 = vld [vmem:[#allocation2 + $0x78] sm:$0xff]  ;;  %v1651_v3 = vld [vmem:[#allocation2 + $0x70] sm:$0xff] }
 0x1ee   : > { %2288 = vtanh.f32 %v1689_v44  ;;  %v1645_v49 = vld [vmem:[#allocation2 + $0x20] sm:$0xff]  ;;  %v1714_v51 = vadd.f32 %v2823_v19, %v1643_v43  ;;  %v1652_v6 = vld [vmem:[#allocation2 + $0x90] sm:$0xff]  ;;  %v1653_v9 = vld [vmem:[#allocation2 + $0x1d8] sm:$0xff] }
 0x1ef   : > { %2290 = vtanh.f32 %v1690_v46  ;;  %v1644_v46 = vld [vmem:[#allocation2 + $0x1f8] sm:$0xff]  ;;  %v1647_v55 = vld [vmem:[#allocation2 + $0x1a0] sm:$0xff]  ;;  %v1654_v12 = vld [vmem:[#allocation2 + $0xd0] sm:$0xff] }
 0x1f0   : > { %v2267_v56 = vpop.eup %2266  ;;  %2292 = vtanh.f32 %v1691_v48  ;;  %v1713_v48 = vadd.f32 %v2823_v19, %v1642_v40  ;;  %v1655_v15 = vld [vmem:[#allocation2 + $0xb8] sm:$0xff]  ;;  %v1656_v18 = vld [vmem:[#allocation2 + $0x88] sm:$0xff]  ;;  %v1659_v28 = vld [vmem:[#allocation2 + $0x170] sm:$0xff] }
 0x1f1   : > { %v2269_v59 = vpop.eup %2268  ;;  %1806 = vst [vmem:[%s3099_s3] sm:$0xff] %v2267_v56  ;;  %2294 = vtanh.f32 %v1692_v50  ;;  %v1657_v22 = vld [vmem:[#allocation2 + $0xa8] sm:$0xff]  ;;  %v1660_v31 = vld [vmem:[#allocation2 + $0x178] sm:$0xff]  ;;  %v1662_v37 = vld [vmem:[#allocation2 + $0x190] sm:$0xff] }
 0x1f2   : > { %v2271_v62 = vpop.eup %2270  ;;  %1807 = vst [vmem:[%s3099_s3 + $0x8] sm:$0xff] %v2269_v59  ;;  %2296 = vtanh.f32 %v1693_v52  ;;  %v1646_v52 = vld [vmem:[#allocation2 + $0x128] sm:$0xff]  ;;  %v1663_v40 = vld [vmem:[#allocation2 + $0x198] sm:$0xff] }
 0x1f3   : > { %v2273_v1 = vpop.eup %2272  ;;  %1808 = vst [vmem:[%s3099_s3 + $0x10] sm:$0xff] %v2271_v62  ;;  %2298 = vtanh.f32 %v1694_v54  ;;  %v1715_v54 = vadd.f32 %v2823_v19, %v1644_v46  ;;  %v1658_v25 = vld [vmem:[#allocation2 + $0x1c8] sm:$0xff]  ;;  %v1664_v43 = vld [vmem:[#allocation2 + $0x38] sm:$0xff]  ;;  %v1665_v46 = vld [vmem:[#allocation2 + $0xc0] sm:$0xff] }
 0x1f4   : > { %v2275_v4 = vpop.eup %2274  ;;  %1809 = vst [vmem:[%s3099_s3 + $0x18] sm:$0xff] %v2273_v1  ;;  %2300 = vtanh.f32 %v1695_v57  ;;  %v1716_v57 = vadd.f32 %v2823_v19, %v1645_v49  ;;  %v1661_v34 = vld [vmem:[#allocation2 + $0x68] sm:$0xff]  ;;  %v1666_v49 = vld [vmem:[#allocation2 + $0x1c0] sm:$0xff] }
 0x1f5   : > { %v2277_v7 = vpop.eup %2276  ;;  %1810 = vst [vmem:[%s3099_s3 + $0x20] sm:$0xff] %v2275_v4  ;;  %2302 = vtanh.f32 %v1696_v60  ;;  %v1717_v60 = vadd.f32 %v2823_v19, %v1646_v52  ;;  %v1667_v52 = vld [vmem:[#allocation2 + $0x158] sm:$0xff] }
 0x1f6   : > { %v2279_v10 = vpop.eup %2278  ;;  %1811 = vst [vmem:[%s3099_s3 + $0x28] sm:$0xff] %v2277_v7  ;;  %2304 = vtanh.f32 %v1697_v63  ;;  %v1718_v63 = vadd.f32 %v2823_v19, %v1647_v55  ;;  %v1668_v55 = vld [vmem:[#allocation2 + $0x10] sm:$0xff] }
 0x1f7   : > { %v2281_v13 = vpop.eup %2280  ;;  %1812 = vst [vmem:[%s3099_s3 + $0x30] sm:$0xff] %v2279_v10  ;;  %2306 = vtanh.f32 %v1698_v2  ;;  %v1719_v2 = vadd.f32 %v2823_v19, %v1648_v58  ;;  %v1669_v58 = vld [vmem:[#allocation2 + $0x58] sm:$0xff] }
 0x1f8   : > { %v2283_v16 = vpop.eup %2282  ;;  %1813 = vst [vmem:[%s3099_s3 + $0x38] sm:$0xff] %v2281_v13  ;;  %2308 = vtanh.f32 %v1699_v5  ;;  %v1720_v5 = vadd.f32 %v2823_v19, %v1649_v61  ;;  %v1670_v61 = vld [vmem:[#allocation2 + $0xa0] sm:$0xff] }
 0x1f9   : > { %v2285_v20 = vpop.eup %2284  ;;  %1814 = vst [vmem:[%s3099_s3 + $0x40] sm:$0xff] %v2283_v16  ;;  %2310 = vtanh.f32 %v1700_v8  ;;  %v1721_v8 = vadd.f32 %v2823_v19, %v1650_v0 }
 0x1fa   : > { %v2287_v23 = vpop.eup %2286  ;;  %1815 = vst [vmem:[%s3099_s3 + $0x48] sm:$0xff] %v2285_v20  ;;  %2312 = vtanh.f32 %v1701_v11  ;;  %v1722_v11 = vadd.f32 %v2823_v19, %v1651_v3  ;;  %v1741_v3 = vadd.f32 %v2823_v19, %v1670_v61 }
 0x1fb   : > { %v2289_v26 = vpop.eup %2288  ;;  %1816 = vst [vmem:[%s3099_s3 + $0x50] sm:$0xff] %v2287_v23  ;;  %2314 = vtanh.f32 %v1702_v14  ;;  %v1723_v14 = vadd.f32 %v2823_v19, %v1652_v6 }
 0x1fc   : > { %v2291_v29 = vpop.eup %2290  ;;  %1817 = vst [vmem:[%s3099_s3 + $0x58] sm:$0xff] %v2289_v26  ;;  %2316 = vtanh.f32 %v1703_v17  ;;  %v1724_v17 = vadd.f32 %v2823_v19, %v1653_v9 }
 0x1fd   : > { %v2293_v32 = vpop.eup %2292  ;;  %1818 = vst [vmem:[%s3099_s3 + $0x60] sm:$0xff] %v2291_v29  ;;  %2318 = vtanh.f32 %v1704_v21  ;;  %v1725_v21 = vadd.f32 %v2823_v19, %v1654_v12 }
 0x1fe   : > { %v2295_v35 = vpop.eup %2294  ;;  %1819 = vst [vmem:[%s3099_s3 + $0x68] sm:$0xff] %v2293_v32  ;;  %2320 = vtanh.f32 %v1705_v24  ;;  %v1726_v24 = vadd.f32 %v2823_v19, %v1655_v15 }
 0x1ff   : > { %v2297_v38 = vpop.eup %2296  ;;  %1820 = vst [vmem:[%s3099_s3 + $0x70] sm:$0xff] %v2295_v35  ;;  %2322 = vtanh.f32 %v1706_v27  ;;  %v1727_v27 = vadd.f32 %v2823_v19, %v1656_v18 }
 0x200   : > { %v2299_v41 = vpop.eup %2298  ;;  %1821 = vst [vmem:[%s3099_s3 + $0x78] sm:$0xff] %v2297_v38  ;;  %2324 = vtanh.f32 %v1707_v30  ;;  %v1728_v30 = vadd.f32 %v2823_v19, %v1657_v22 }
 0x201   : > { %v2301_v44 = vpop.eup %2300  ;;  %1822 = vst [vmem:[%s3099_s3 + $0x80] sm:$0xff] %v2299_v41  ;;  %2326 = vtanh.f32 %v1708_v33  ;;  %v1729_v33 = vadd.f32 %v2823_v19, %v1658_v25 }
 0x202   : > { %v2303_v47 = vpop.eup %2302  ;;  %1823 = vst [vmem:[%s3099_s3 + $0x88] sm:$0xff] %v2301_v44  ;;  %2328 = vtanh.f32 %v1709_v36  ;;  %v1730_v36 = vadd.f32 %v2823_v19, %v1659_v28 }
 0x203   : > { %v2305_v50 = vpop.eup %2304  ;;  %1824 = vst [vmem:[%s3099_s3 + $0x90] sm:$0xff] %v2303_v47  ;;  %2330 = vtanh.f32 %v1710_v39  ;;  %v1731_v39 = vadd.f32 %v2823_v19, %v1660_v31 }
 0x204   : > { %v2307_v53 = vpop.eup %2306  ;;  %1825 = vst [vmem:[%s3099_s3 + $0x98] sm:$0xff] %v2305_v50  ;;  %2332 = vtanh.f32 %v1711_v42  ;;  %v1732_v42 = vadd.f32 %v2823_v19, %v1661_v34 }
 0x205   : > { %v2309_v56 = vpop.eup %2308  ;;  %1826 = vst [vmem:[%s3099_s3 + $0xa0] sm:$0xff] %v2307_v53  ;;  %2334 = vtanh.f32 %v1712_v45  ;;  %v1733_v45 = vadd.f32 %v2823_v19, %v1662_v37 }
 0x206   : > { %v2311_v59 = vpop.eup %2310  ;;  %1827 = vst [vmem:[%s3099_s3 + $0xa8] sm:$0xff] %v2309_v56  ;;  %2336 = vtanh.f32 %v1713_v48  ;;  %v1734_v48 = vadd.f32 %v2823_v19, %v1663_v40 }
 0x207   : > { %v2313_v62 = vpop.eup %2312  ;;  %1828 = vst [vmem:[%s3099_s3 + $0xb0] sm:$0xff] %v2311_v59  ;;  %2338 = vtanh.f32 %v1714_v51  ;;  %v1735_v51 = vadd.f32 %v2823_v19, %v1664_v43 }
 0x208   : > { %v2315_v1 = vpop.eup %2314  ;;  %1829 = vst [vmem:[%s3099_s3 + $0xb8] sm:$0xff] %v2313_v62  ;;  %2340 = vtanh.f32 %v1715_v54  ;;  %v1736_v54 = vadd.f32 %v2823_v19, %v1665_v46 }
 0x209   : > { %v2317_v4 = vpop.eup %2316  ;;  %1830 = vst [vmem:[%s3099_s3 + $0xc0] sm:$0xff] %v2315_v1  ;;  %2342 = vtanh.f32 %v1716_v57  ;;  %v1737_v57 = vadd.f32 %v2823_v19, %v1666_v49  ;;  %v1740_v1 = vadd.f32 %v2823_v19, %v1669_v58 }
 0x20a   : > { %v2319_v7 = vpop.eup %2318  ;;  %1831 = vst [vmem:[%s3099_s3 + $0xc8] sm:$0xff] %v2317_v4  ;;  %2344 = vtanh.f32 %v1717_v60  ;;  %v1738_v60 = vadd.f32 %v2823_v19, %v1667_v52 }
 0x20b   : > { %v2321_v10 = vpop.eup %2320  ;;  %1832 = vst [vmem:[%s3099_s3 + $0xd0] sm:$0xff] %v2319_v7  ;;  %2346 = vtanh.f32 %v1718_v63  ;;  %v1739_v63 = vadd.f32 %v2823_v19, %v1668_v55 }
 0x20c   : > { %v2323_v13 = vpop.eup %2322  ;;  %1833 = vst [vmem:[%s3099_s3 + $0xd8] sm:$0xff] %v2321_v10  ;;  %2348 = vtanh.f32 %v1719_v2 }
 0x20d   : > { %v2325_v16 = vpop.eup %2324  ;;  %1834 = vst [vmem:[%s3099_s3 + $0xe0] sm:$0xff] %v2323_v13  ;;  %2350 = vtanh.f32 %v1720_v5 }
 0x20e   : > { %v2327_v20 = vpop.eup %2326  ;;  %1835 = vst [vmem:[%s3099_s3 + $0xe8] sm:$0xff] %v2325_v16  ;;  %2352 = vtanh.f32 %v1721_v8 }
 0x20f   : > { %v2329_v23 = vpop.eup %2328  ;;  %1836 = vst [vmem:[%s3099_s3 + $0xf0] sm:$0xff] %v2327_v20  ;;  %2354 = vtanh.f32 %v1722_v11 }
 0x210   : > { %v2331_v26 = vpop.eup %2330  ;;  %1837 = vst [vmem:[%s3099_s3 + $0xf8] sm:$0xff] %v2329_v23  ;;  %2356 = vtanh.f32 %v1723_v14 }
 0x211   : > { %v2333_v29 = vpop.eup %2332  ;;  %1838 = vst [vmem:[%s3099_s3 + $0x100] sm:$0xff] %v2331_v26  ;;  %2358 = vtanh.f32 %v1724_v17 }
 0x212   : > { %v2335_v32 = vpop.eup %2334  ;;  %1839 = vst [vmem:[%s3099_s3 + $0x108] sm:$0xff] %v2333_v29  ;;  %2360 = vtanh.f32 %v1725_v21 }
 0x213   : > { %v2337_v35 = vpop.eup %2336  ;;  %1840 = vst [vmem:[%s3099_s3 + $0x110] sm:$0xff] %v2335_v32  ;;  %2362 = vtanh.f32 %v1726_v24 }
 0x214   : > { %v2339_v38 = vpop.eup %2338  ;;  %1841 = vst [vmem:[%s3099_s3 + $0x118] sm:$0xff] %v2337_v35  ;;  %2364 = vtanh.f32 %v1727_v27 }
 0x215   : > { %v2341_v41 = vpop.eup %2340  ;;  %1842 = vst [vmem:[%s3099_s3 + $0x120] sm:$0xff] %v2339_v38  ;;  %2366 = vtanh.f32 %v1728_v30 }
 0x216   : > { %v2343_v44 = vpop.eup %2342  ;;  %1843 = vst [vmem:[%s3099_s3 + $0x128] sm:$0xff] %v2341_v41  ;;  %2368 = vtanh.f32 %v1729_v33 }
 0x217   : > { %v2345_v47 = vpop.eup %2344  ;;  %1844 = vst [vmem:[%s3099_s3 + $0x130] sm:$0xff] %v2343_v44  ;;  %2370 = vtanh.f32 %v1730_v36 }
 0x218   : > { %v2347_v50 = vpop.eup %2346  ;;  %1845 = vst [vmem:[%s3099_s3 + $0x138] sm:$0xff] %v2345_v47  ;;  %2372 = vtanh.f32 %v1731_v39 }
 0x219   : > { %v2349_v53 = vpop.eup %2348  ;;  %1846 = vst [vmem:[%s3099_s3 + $0x140] sm:$0xff] %v2347_v50  ;;  %2374 = vtanh.f32 %v1732_v42 }
 0x21a   : > { %v2351_v56 = vpop.eup %2350  ;;  %1847 = vst [vmem:[%s3099_s3 + $0x148] sm:$0xff] %v2349_v53  ;;  %2376 = vtanh.f32 %v1733_v45 }
 0x21b   : > { %v2353_v59 = vpop.eup %2352  ;;  %1848 = vst [vmem:[%s3099_s3 + $0x150] sm:$0xff] %v2351_v56  ;;  %2378 = vtanh.f32 %v1734_v48 }
 0x21c   : > { %v2355_v62 = vpop.eup %2354  ;;  %1849 = vst [vmem:[%s3099_s3 + $0x158] sm:$0xff] %v2353_v59  ;;  %2380 = vtanh.f32 %v1735_v51 }
 0x21d   : > { %v2357_v0 = vpop.eup %2356  ;;  %1850 = vst [vmem:[%s3099_s3 + $0x160] sm:$0xff] %v2355_v62  ;;  %2382 = vtanh.f32 %v1736_v54 }
 0x21e   : > { %v2359_v2 = vpop.eup %2358  ;;  %1851 = vst [vmem:[%s3099_s3 + $0x168] sm:$0xff] %v2357_v0  ;;  %2384 = vtanh.f32 %v1737_v57 }
 0x21f   : > { %v2361_v4 = vpop.eup %2360  ;;  %1852 = vst [vmem:[%s3099_s3 + $0x170] sm:$0xff] %v2359_v2  ;;  %2386 = vtanh.f32 %v1738_v60 }
 0x220   : > { %v2363_v5 = vpop.eup %2362  ;;  %1853 = vst [vmem:[%s3099_s3 + $0x178] sm:$0xff] %v2361_v4  ;;  %2388 = vtanh.f32 %v1739_v63 }
 0x221   : > { %v2365_v6 = vpop.eup %2364  ;;  %1854 = vst [vmem:[%s3099_s3 + $0x180] sm:$0xff] %v2363_v5  ;;  %2390 = vtanh.f32 %v1740_v1 }
 0x222   : > { %v2367_v7 = vpop.eup %2366  ;;  %1855 = vst [vmem:[%s3099_s3 + $0x188] sm:$0xff] %v2365_v6  ;;  %2392 = vtanh.f32 %v1741_v3 }
 0x223   : > { %v2369_v19 = vpop.eup %2368  ;;  %1856 = vst [vmem:[%s3099_s3 + $0x190] sm:$0xff] %v2367_v7 }
 0x224   : > { %v2371_v8 = vpop.eup %2370  ;;  %1857 = vst [vmem:[%s3099_s3 + $0x198] sm:$0xff] %v2369_v19 }
 0x225   : > { %v2373_v9 = vpop.eup %2372  ;;  %1858 = vst [vmem:[%s3099_s3 + $0x1a0] sm:$0xff] %v2371_v8 }
 0x226   : > { %v2375_v10 = vpop.eup %2374  ;;  %1859 = vst [vmem:[%s3099_s3 + $0x1a8] sm:$0xff] %v2373_v9 }
 0x227   : > { %v2377_v11 = vpop.eup %2376  ;;  %1860 = vst [vmem:[%s3099_s3 + $0x1b0] sm:$0xff] %v2375_v10 }
 0x228   : > { %v2379_v12 = vpop.eup %2378  ;;  %1861 = vst [vmem:[%s3099_s3 + $0x1b8] sm:$0xff] %v2377_v11 }
 0x229   : > { %v2381_v13 = vpop.eup %2380  ;;  %1862 = vst [vmem:[%s3099_s3 + $0x1c0] sm:$0xff] %v2379_v12 }
 0x22a   : > { %v2383_v14 = vpop.eup %2382  ;;  %1863 = vst [vmem:[%s3099_s3 + $0x1c8] sm:$0xff] %v2381_v13 }
 0x22b   : > { %v2385_v15 = vpop.eup %2384  ;;  %1864 = vst [vmem:[%s3099_s3 + $0x1d0] sm:$0xff] %v2383_v14 }
 0x22c   : > { %v2387_v16 = vpop.eup %2386  ;;  %1865 = vst [vmem:[%s3099_s3 + $0x1d8] sm:$0xff] %v2385_v15 }
 0x22d   : > { %v2389_v17 = vpop.eup %2388  ;;  %1866 = vst [vmem:[%s3099_s3 + $0x1e0] sm:$0xff] %v2387_v16 }
 0x22e   : > { %v2391_v18 = vpop.eup %2390  ;;  %1867 = vst [vmem:[%s3099_s3 + $0x1e8] sm:$0xff] %v2389_v17 }
 0x22f   : > { %v2393_v20 = vpop.eup %2392  ;;  %1868 = vst [vmem:[%s3099_s3 + $0x1f0] sm:$0xff] %v2391_v18 }
 0x230   : > { %1869 = vst [vmem:[%s3099_s3 + $0x1f8] sm:$0xff] %v2393_v20 }
 0x231 PF: > { %s13_s16 = sadd.s32 1, %s2432_s16   ;;  %s3100_s12 = smov %s2420_s13 }
 0x232   : > { %p10_p12 = scmp.ge.s32.totalorder %s13_s16, 15   ;;  %s3101_s13 = smov %s2491_s20 }
 0x233   : > { %s3102_s14 = smov %s2428_s15  ;;  %s3103_s15 = smov %s3105_s17 }
 0x234   :  { %12 = sbr.rel (!%p10_p12) target bundleno = 3 (0x3), region = 119 }

</bundles_post_ra>
